<compile_context>
chip_gen: v7x
topology: tpu7x:2x2x1
jax: 0.10.0
libtpu: 0.0.40
codegen_flags: <defaults>
</compile_context>

<pallas_src>
import functools

import jax
import jax.numpy as jnp
from jax.experimental import pallas as pl
from jax.experimental.pallas import tpu as pltpu


# ----------------------------------------------------------------------------
# small helpers
# ----------------------------------------------------------------------------
def _apply_act(y, act):
    if act == "none":
        return y
    if act == "relu":
        return jnp.maximum(y, 0.0)
    if act == "leaky":
        return jnp.where(y > 0, y, 0.01 * y)
    raise ValueError(act)


def _divisors_desc(n):
    return [d for d in range(n, 0, -1) if n % d == 0]


@functools.lru_cache(maxsize=None)
def _vmem_limit():
    """~75% of physical VMEM: ~48 MiB on v7x (64 MiB/TC), ~96 MiB on v5e/v6e."""
    try:
        cap = pltpu.get_tpu_info().vmem_capacity_bytes
        return int(min(0.75 * cap, 100 * 1024 * 1024))
    except Exception:
        return 48 * 1024 * 1024


def _budget():
    return int(0.85 * _vmem_limit())


def _compiler_params(n_axes):
    return pltpu.CompilerParams(
        dimension_semantics=("parallel",) * n_axes,
        vmem_limit_bytes=_vmem_limit())


def _pick_nco(cout):
    """Smallest Cout split > 1 whose tile stays a multiple of 128 (lane-dense)."""
    for d in range(2, cout + 1):
        if cout % d == 0 and (cout // d) % 128 == 0:
            return d
    return 1


def _dup2(x, axis):
    """Duplicate every element along `axis` (must not be the last/lane axis)."""
    shape = list(x.shape)
    y = jnp.broadcast_to(jnp.expand_dims(x, axis + 1),
                         tuple(shape[:axis + 1] + [2] + shape[axis + 1:]))
    shape[axis] *= 2
    return y.reshape(tuple(shape))


def _interleave2(a, b, axis):
    """out[..., 2k, ...] = a[..., k, ...]; out[..., 2k+1, ...] = b[..., k, ...]."""
    da, db = _dup2(a, axis), _dup2(b, axis)
    sel = jax.lax.broadcasted_iota(jnp.int32, da.shape, axis)
    return jnp.where(sel % 2 == 0, da, db)


def _row_slabs(xp, th, nt):
    """Overlapping (th+2)-row slabs of a 1-padded NHWC tensor (halo duplication).
    TODO(synk): still an HBM gather; fold into the DMA at large resolutions."""
    n, _, wp, c = xp.shape
    ridx = jnp.arange(nt)[:, None] * th + jnp.arange(th + 2)[None, :]
    return xp[:, ridx].reshape(n * nt, th + 2, wp, c)


# ----------------------------------------------------------------------------
# Kernel 1: 3x3 conv (stride 1, pad 1) + folded BN affine + activation, NHWC.
#   Multiple inputs = fused channel concat.  grid = (N//bn, row_tiles, cout_tiles)
# ----------------------------------------------------------------------------
def _conv3x3_kernel(*refs, n_in, bn, TH, W, act):
    x_refs = refs[:n_in]
    w_refs = refs[n_in:2 * n_in]
    scale_ref, shift_ref, o_ref = refs[2 * n_in:2 * n_in + 3]
    tco = o_ref.shape[-1]
    m = bn * TH * W

    acc = None
    for xr, wr in zip(x_refs, w_refs):
        xb = xr[...]                                     # (bn, TH+2, W+2, c)
        c = xb.shape[-1]
        for ky in range(3):
            rows = xb[:, ky:ky + TH]                     # (bn, TH, W+2, c)
            slab = jnp.concatenate(
                [rows[:, :, 0:W, :], rows[:, :, 1:W + 1, :], rows[:, :, 2:W + 2, :]],
                axis=-1).reshape(m, 3 * c)
            part = jnp.dot(slab, wr[ky], preferred_element_type=jnp.float32)
            acc = part if acc is None else acc + part

    y = acc * scale_ref[...] + shift_ref[...]
    y = _apply_act(y, act)
    o_ref[...] = y.reshape(bn, TH, W, tco).astype(o_ref.dtype)


def _plan_conv3x3(N, H, W, cins, cout):
    budget = _budget()
    w_bytes = sum(9 * c * cout * 2 for c in cins)
    in_bytes = N * H * W * sum(cins) * 2
    # fold batch into the matmul M dim only on small, weight-DMA-bound levels
    fold = (H * W <= 1024) and (w_bytes >= in_bytes)
    bn = N if fold else 1

    def usage(bn_, th, tco):
        ins = 2 * sum(bn_ * (th + 2) * (W + 2) * c * 2 for c in cins)
        wts = 2 * sum(9 * c * tco * 2 for c in cins)
        out = 2 * bn_ * th * W * tco * 2
        tmp = bn_ * th * W * (6 * tco + 6 * max(cins))   # f32 acc + lane slab
        return ins + wts + out + tmp

    TH = H
    if not fold:
        for d in _divisors_desc(H):
            if usage(1, d, cout) <= budget:
                TH = d
                break
        else:
            TH = 1
    elif usage(bn, TH, cout) > budget:
        bn = 1

    nco, tco = 1, cout
    if (N // bn) * (H // TH) == 1:           # give the second TC work via Cout split
        d = _pick_nco(cout)
        if d > 1:
            nco, tco = d, cout // d
    return bn, TH, nco, tco


def conv3x3(xs, ws, scale, shift, act, *, force_th=None):
    """xs: list of (N,H,W,ci) bf16 (channel-concatenated view), ws: matching list
    of (3,3,ci,Cout) bf16 weights, scale/shift: (Cout,) f32 folded BN affine."""
    xs, ws = list(xs), list(ws)
    N, H, W, _ = xs[0].shape
    cout = ws[0].shape[-1]
    cins = [int(x.shape[-1]) for x in xs]
    n_in = len(xs)

    if force_th is None:
        bn, TH, nco, tco = _plan_conv3x3(N, H, W, cins, cout)
    else:
        bn, TH, nco, tco = 1, force_th, 1, cout
    nt = H // TH
    assert bn == 1 or nt == 1

    xps = [jnp.pad(x, ((0, 0), (1, 1), (1, 1), (0, 0))) for x in xs]
    if nt > 1:
        xps = [_row_slabs(xp, TH, nt) for xp in xps]
    # (3,3,ci,Cout) -> (3, 3*ci, Cout): per-ky weight needs no in-kernel reshape
    wrs = [w.reshape(3, 3 * c, cout) for w, c in zip(ws, cins)]

    def make_in_map(nt_):
        return lambda nb, t, co: (nb * nt_ + t, 0, 0, 0)

    w_map = lambda nb, t, co: (0, 0, co)
    aff_map = lambda nb, t, co: (0, co)
    out_map = lambda nb, t, co: (nb, t, 0, co)

    kernel = functools.partial(_conv3x3_kernel, n_in=n_in, bn=bn, TH=TH, W=W, act=act)
    return pl.pallas_call(
        kernel,
        out_shape=jax.ShapeDtypeStruct((N, H, W, cout), xs[0].dtype),
        grid=(N // bn, nt, nco),
        in_specs=(
            [pl.BlockSpec((bn, TH + 2, W + 2, c), make_in_map(nt)) for c in cins]
            + [pl.BlockSpec((3, 3 * c, tco), w_map) for c in cins]
            + [pl.BlockSpec((1, tco), aff_map), pl.BlockSpec((1, tco), aff_map)]),
        out_specs=pl.BlockSpec((bn, TH, W, tco), out_map),
        compiler_params=_compiler_params(3),
    )(*xps, *wrs, scale.reshape(1, cout), shift.reshape(1, cout))


# ----------------------------------------------------------------------------
# Kernel 2: fused nearest-x2 upsample + 3x3 conv + BN affine + activation.
#   4-parity decomposition: out[2i+a, 2j+b] = sum_{dy,dx} xl[i-1+a+dy-?, ...] ...
#   i.e. a 2x2 conv per output parity with tap-summed weights (folded in-kernel).
# ----------------------------------------------------------------------------
def _upconv3x3_kernel(x_ref, w_ref, scale_ref, shift_ref, o_ref, *, bn, THl, Wl, act):
    xb = x_ref[...]                                      # (bn, THl+2, Wl+2, Cin)
    tco = o_ref.shape[-1]
    ml = bn * THl * Wl

    views = [[xb[:, s:s + THl, u:u + Wl, :].reshape(ml, xb.shape[-1])
              for u in range(3)] for s in range(3)]
    taps = [[w_ref[ky, kx].astype(jnp.float32) for kx in range(3)] for ky in range(3)]
    # row-parity combined taps: rows[a][dy] is a list over kx of (Cin, tco)
    rows = [[taps[0], [taps[1][k] + taps[2][k] for k in range(3)]],
            [[taps[0][k] + taps[1][k] for k in range(3)], taps[2]]]
    kx_sets = {(0, 0): (0,), (0, 1): (1, 2), (1, 0): (0, 1), (1, 1): (2,)}

    outs = {}
    for a in range(2):
        for b in range(2):
            acc = None
            for dy in range(2):
                for dx in range(2):
                    ks = kx_sets[(b, dx)]
                    we = rows[a][dy][ks[0]]
                    for kx in ks[1:]:
                        we = we + rows[a][dy][kx]
                    part = jnp.dot(views[a + dy][b + dx], we.astype(jnp.bfloat16),
                                   preferred_element_type=jnp.float32)
                    acc = part if acc is None else acc + part
            y = _apply_act(acc * scale_ref[...] + shift_ref[...], act)
            outs[(a, b)] = y.astype(o_ref.dtype).reshape(bn, THl, Wl, tco)

    top = _interleave2(outs[(0, 0)], outs[(0, 1)], axis=2)   # even output rows
    bot = _interleave2(outs[(1, 0)], outs[(1, 1)], axis=2)   # odd output rows
    o_ref[...] = _interleave2(top, bot, axis=1)


def _plan_upconv(N, Hl, Wl, cin, cout):
    budget = _budget()
    w_bytes = 9 * cin * cout * 2
    in_bytes = N * Hl * Wl * cin * 2
    fold = (4 * Hl * Wl <= 1024) and (w_bytes >= in_bytes)
    bn = N if fold else 1

    def usage(bn_, thl, tco):
        ins = 2 * bn_ * (thl + 2) * (Wl + 2) * cin * 2
        wts = 2 * 9 * cin * tco * 2
        out = 2 * bn_ * 4 * thl * Wl * tco * 2
        tmp = (bn_ * thl * Wl * (16 * tco + 18 * cin)
               + 9 * cin * tco * 4
               + 12 * bn_ * thl * Wl * tco * 2)
        return ins + wts + out + tmp

    THl = Hl
    if not fold:
        for d in _divisors_desc(Hl):
            if usage(1, d, cout) <= budget:
                THl = d
                break
        else:
            THl = 1
    elif usage(bn, THl, cout) > budget:
        bn = 1

    nco, tco = 1, cout
    if (N // bn) * (Hl // THl) == 1:
        d = _pick_nco(cout)
        if d > 1:
            nco, tco = d, cout // d
    return bn, THl, nco, tco


def upconv3x3(x, w, scale, shift, act):
    """nn.Upsample(scale=2, nearest) + conv3x3 + BN + act without materializing
    the 4x-sized upsampled activation in HBM."""
    N, Hl, Wl, cin = x.shape
    cout = w.shape[-1]
    bn, THl, nco, tco = _plan_upconv(N, Hl, Wl, cin, cout)
    nt = Hl // THl
    assert bn == 1 or nt == 1

    xp = jnp.pad(x, ((0, 0), (1, 1), (1, 1), (0, 0)))
    if nt > 1:
        xp = _row_slabs(xp, THl, nt)

    in_map = (lambda nt_: (lambda nb, t, co: (nb * nt_ + t, 0, 0, 0)))(nt)
    w_map = lambda nb, t, co: (0, 0, 0, co)
    aff_map = lambda nb, t, co: (0, co)
    out_map = lambda nb, t, co: (nb, t, 0, co)

    kernel = functools.partial(_upconv3x3_kernel, bn=bn, THl=THl, Wl=Wl, act=act)
    return pl.pallas_call(
        kernel,
        out_shape=jax.ShapeDtypeStruct((N, 2 * Hl, 2 * Wl, cout), x.dtype),
        grid=(N // bn, nt, nco),
        in_specs=[
            pl.BlockSpec((bn, THl + 2, Wl + 2, cin), in_map),
            pl.BlockSpec((3, 3, cin, tco), w_map),
            pl.BlockSpec((1, tco), aff_map),
            pl.BlockSpec((1, tco), aff_map)],
        out_specs=pl.BlockSpec((bn, 2 * THl, 2 * Wl, tco), out_map),
        compiler_params=_compiler_params(3),
    )(xp, w, scale.reshape(1, cout), shift.reshape(1, cout))


# ----------------------------------------------------------------------------
# Kernel 3: fully fused attention gate.  The gating 1x1 projection is computed at
# g's native (low) resolution and replicated in VMEM; psi (Cout=1) is a VPU
# multiply + lane reduction so every store stays lane-dense.
# ----------------------------------------------------------------------------
def _attn_gate_kernel(g_ref, x_ref, wg_ref, wx_ref, affg_ref, affx_ref,
                      wpsi_ref, bpsi_ref, o_ref):
    _, THg, Wg, Fg = g_ref.shape
    _, TH, W, Fl = x_ref.shape
    Fi = wg_ref.shape[-1]

    g1 = jnp.dot(g_ref[...].reshape(THg * Wg, Fg), wg_ref[...],
                 preferred_element_type=jnp.float32)
    g1 = g1 * affg_ref[0:1, :] + affg_ref[1:2, :]
    g1 = _dup2(_dup2(g1.reshape(1, THg, Wg, Fi), 2), 1)      # nearest x2 upsample

    xb = x_ref[...]
    x1 = jnp.dot(xb.reshape(TH * W, Fl), wx_ref[...],
                 preferred_element_type=jnp.float32)
    x1 = (x1 * affx_ref[0:1, :] + affx_ref[1:2, :]).reshape(1, TH, W, Fi)

    t = jnp.maximum(g1 + x1, 0.0)
    p = jnp.sum(t * wpsi_ref[...], axis=-1, keepdims=True) + bpsi_ref[...]
    p = jax.nn.sigmoid(p)
    o_ref[...] = (xb.astype(jnp.float32) * p).astype(o_ref.dtype)


def _plan_gate(Hg, Wg, Fg, Fl, Fi):
    budget = _budget()

    def usage(thg):
        g_blk = 2 * thg * Wg * Fg * 2
        x_blk = 2 * 4 * thg * Wg * Fl * 2 * 2
        w_blk = 2 * (Fg + Fl) * Fi * 2
        tmp = 16 * thg * Wg * Fi * 4
        return g_blk + x_blk + w_blk + tmp

    for d in _divisors_desc(Hg):
        if usage(d) <= budget:
            return d
    return 1


def attention_apply(p, g, x):
    """x * sigmoid(BN(psi(relu(BN(Wg*up(g)) + BN(Wx*x))))).
    TODO(synk): Attention_block definition is not in the reference; the standard
    additive gate with nearest-upsampled gating signal is assumed."""
    N, H, W, Fl = x.shape
    _, Hg, Wg, Fg = g.shape
    Fi = p["wg"].shape[-1]
    THg = _plan_gate(Hg, Wg, Fg, Fl, Fi)
    ntg = Hg // THg

    tile_map = lambda n, t: (n, t, 0, 0)
    full_map = lambda n, t: (0, 0)

    return pl.pallas_call(
        _attn_gate_kernel,
        out_shape=jax.ShapeDtypeStruct((N, H, W, Fl), x.dtype),
        grid=(N, ntg),
        in_specs=[
            pl.BlockSpec((1, THg, Wg, Fg), tile_map),
            pl.BlockSpec((1, 2 * THg, W, Fl), tile_map),
            pl.BlockSpec((Fg, Fi), full_map),
            pl.BlockSpec((Fl, Fi), full_map),
            pl.BlockSpec((2, Fi), full_map),
            pl.BlockSpec((2, Fi), full_map),
            pl.BlockSpec((1, Fi), full_map),
            pl.BlockSpec((1, 1), full_map)],
        out_specs=pl.BlockSpec((1, 2 * THg, W, Fl), tile_map),
        compiler_params=_compiler_params(2),
    )(g, x, p["wg"], p["wx"], p["affg"], p["affx"], p["psi_w"], p["psi_b"])


# ----------------------------------------------------------------------------
# Kernel 4: 1x1 conv output head (Cout=2), weight/bias zero-padded to 128 lanes
# so stores are lane-dense; the 2 real channels are sliced outside.
# ----------------------------------------------------------------------------
def _head_kernel(x_ref, w_ref, b_ref, o_ref):
    y = jnp.dot(x_ref[...], w_ref[...], preferred_element_type=jnp.float32)
    o_ref[...] = y + b_ref[...]


def _pick_tm(m, cap=1024):
    limit = min(cap, max(8, m // 2))
    for d in range(limit, 7, -1):
        if m % d == 0 and d % 8 == 0:
            return d
    return m


def out_head_apply(p, x):
    N, H, W, cin = x.shape
    M = N * H * W
    TM = _pick_tm(M)
    out = pl.pallas_call(
        _head_kernel,
        out_shape=jax.ShapeDtypeStruct((M, 128), jnp.float32),
        grid=(M // TM,),
        in_specs=[
            pl.BlockSpec((TM, cin), lambda i: (i, 0)),
            pl.BlockSpec((cin, 128), lambda i: (0, 0)),
            pl.BlockSpec((1, 128), lambda i: (0, 0))],
        out_specs=pl.BlockSpec((TM, 128), lambda i: (i, 0)),
        compiler_params=_compiler_params(1),
    )(x.reshape(M, cin), p["w"], p["b"])
    return out[:, :2].reshape(N, H, W, 2)


# ----------------------------------------------------------------------------
# glue (module-level ops)
# ----------------------------------------------------------------------------
def conv_block_apply(p, xs):
    x = conv3x3(xs, list(p["w1"]), p["s1"], p["sh1"], "leaky")
    return conv3x3([x], [p["w2"]], p["s2"], p["sh2"], "leaky")


def up_conv_apply(p, x):
    return upconv3x3(x, p["w"], p["s"], p["sh"], "relu")


# ----------------------------------------------------------------------------
# parameter initialization (deterministic, eval-mode BN folded, bf16 weights)
# ----------------------------------------------------------------------------
def _fold_bn(bias, gamma, beta, mean, var, eps=1e-5):
    scale = gamma / jnp.sqrt(var + eps)
    shift = beta - mean * scale + bias * scale
    return scale, shift


def _init_conv_bn(key, kh, kw, cin, cout, wdtype=jnp.bfloat16):
    k1, k2, k3, k4, k5, k6 = jax.random.split(key, 6)
    fan = kh * kw * cin
    w = jax.random.normal(k1, (kh, kw, cin, cout), jnp.float32) / jnp.sqrt(fan)
    b = 0.01 * jax.random.normal(k2, (cout,), jnp.float32)
    gamma = 1.0 + 0.1 * jax.random.normal(k3, (cout,), jnp.float32)
    beta = 0.1 * jax.random.normal(k4, (cout,), jnp.float32)
    mean = 0.05 * jax.random.normal(k5, (cout,), jnp.float32)
    var = jax.random.uniform(k6, (cout,), jnp.float32, minval=0.5, maxval=1.5)
    scale, shift = _fold_bn(b, gamma, beta, mean, var)
    return w.astype(wdtype), scale, shift


def _init_ag(key, Fg, Fl, Fi):
    k = jax.random.split(key, 3)
    wg, sg, shg = _init_conv_bn(k[0], 1, 1, Fg, Fi)
    wx, sx, shx = _init_conv_bn(k[1], 1, 1, Fl, Fi)
    wp, sp, shp = _init_conv_bn(k[2], 1, 1, Fi, 1, wdtype=jnp.float32)
    return dict(
        wg=wg[0, 0], wx=wx[0, 0],
        affg=jnp.stack([sg, shg]), affx=jnp.stack([sx, shx]),
        # psi BN scale folded into the psi weight row (VPU multiply + lane reduce)
        psi_w=(wp[0, 0][:, 0] * sp[0]).reshape(1, Fi),
        psi_b=shp.reshape(1, 1))


def _init_cb(key, ci, co):
    k1, k2 = jax.random.split(key)
    w1, s1, sh1 = _init_conv_bn(k1, 3, 3, ci, co)
    w2, s2, sh2 = _init_conv_bn(k2, 3, 3, co, co)
    half = ci // 2
    # first conv weight pre-split so the torch.cat can be fused away
    return dict(w1=(w1[:, :, :half, :], w1[:, :, half:, :]),
                s1=s1, sh1=sh1, w2=w2, s2=s2, sh2=sh2)


def _init_up(key, ci, co):
    w, s, sh = _init_conv_bn(key, 3, 3, ci, co)
    return dict(w=w, s=s, sh=sh)


def _init_head(key, ci):
    k1, k2 = jax.random.split(key)
    w = jax.random.normal(k1, (ci, 2), jnp.float32) / jnp.sqrt(ci)
    b = 0.01 * jax.random.normal(k2, (2,), jnp.float32)
    wp = jnp.zeros((ci, 128), jnp.float32).at[:, :2].set(w).astype(jnp.bfloat16)
    bp = jnp.zeros((1, 128), jnp.float32).at[:, :2].set(b.reshape(1, 2))
    return dict(w=wp, b=bp)


def init_params(key):
    dims = [3, 64, 128, 320, 640, 1024]
    keys = iter(jax.random.split(key, 32))
    P = {}
    # TODO(synk): hardnet() encoder not provided; synthetic conv pyramid stand-in.
    for i in range(1, 6):
        w, s, sh = _init_conv_bn(next(keys), 3, 3, dims[i - 1], dims[i])
        P[f"enc{i}"] = dict(w=w, s=s, sh=sh)

    P["ag_L4"] = _init_ag(next(keys), dims[5], dims[4], dims[4])
    P["ag_L3"] = _init_ag(next(keys), dims[4], dims[3], dims[3])
    P["ag_L2"] = _init_ag(next(keys), dims[3], dims[2], dims[2])

    P["up_5to4"] = _init_up(next(keys), dims[5], dims[4])
    P["up_4to3"] = _init_up(next(keys), dims[4], dims[3])
    P["up_3to2"] = _init_up(next(keys), dims[3], dims[2])
    P["up_2to1"] = _init_up(next(keys), dims[2], dims[1])

    P["conv_L4"] = _init_cb(next(keys), dims[4] * 2, dims[4])
    P["conv_L3"] = _init_cb(next(keys), dims[3] * 2, dims[3])
    P["conv_L2"] = _init_cb(next(keys), dims[2] * 2, dims[2])
    P["conv_L1"] = _init_cb(next(keys), dims[1] * 2, dims[1])

    P["out_L4"] = _init_head(next(keys), dims[4])
    P["out_L3"] = _init_head(next(keys), dims[3])
    P["out_L2"] = _init_head(next(keys), dims[2])
    P["out_L1"] = _init_head(next(keys), dims[1])
    return P


# ----------------------------------------------------------------------------
# NeoUnet forward
# ----------------------------------------------------------------------------
def neounet_forward(P, x_nchw):
    x = jnp.transpose(x_nchw, (0, 2, 3, 1)).astype(jnp.bfloat16)   # NCHW -> NHWC

    # synthetic hardnet encoder: feature pyramid hdb_outs[0..5]
    feats = [x]
    f = x
    for i in range(1, 6):
        f = f[:, ::2, ::2, :]
        p = P[f"enc{i}"]
        f = conv3x3([f], [p["w"]], p["s"], p["sh"], "leaky")
        feats.append(f)

    # level 4
    x4 = attention_apply(P["ag_L4"], feats[5], feats[4])
    g4 = up_conv_apply(P["up_5to4"], feats[5])
    conv4 = conv_block_apply(P["conv_L4"], [x4, g4])
    out4 = out_head_apply(P["out_L4"], conv4)

    # level 3
    x3 = attention_apply(P["ag_L3"], conv4, feats[3])
    g3 = up_conv_apply(P["up_4to3"], conv4)
    conv3_ = conv_block_apply(P["conv_L3"], [x3, g3])
    out3 = out_head_apply(P["out_L3"], conv3_)

    # level 2
    x2 = attention_apply(P["ag_L2"], conv3_, feats[2])
    g2 = up_conv_apply(P["up_3to2"], conv3_)
    conv2_ = conv_block_apply(P["conv_L2"], [x2, g2])
    out2 = out_head_apply(P["out_L2"], conv2_)

    # level 1
    x1 = feats[1]
    g1 = up_conv_apply(P["up_2to1"], conv2_)
    conv1_ = conv_block_apply(P["conv_L1"], [x1, g1])
    out1 = out_head_apply(P["out_L1"], conv1_)

    to_nchw = lambda t: jnp.transpose(t, (0, 3, 1, 2))
    return to_nchw(out1), to_nchw(out2), to_nchw(out3), to_nchw(out4)


if __name__ == "__main__":
    key = jax.random.PRNGKey(0)
    pkey, xkey, ckey = jax.random.split(key, 3)
    k = jax.random.split(ckey, 10)

    def check(name, got, ref, tol=0.15):
        err = float(jnp.max(jnp.abs(got.astype(jnp.float32) - ref.astype(jnp.float32))))
        assert err < tol, f"{name}: max abs err {err}"

    dn = ("NHWC", "HWIO", "NHWC")

    # (A) fused channel-concat conv3x3 vs XLA reference (+ forced row-tiled path)
    xa = jax.random.normal(k[0], (2, 16, 16, 96), jnp.float32).astype(jnp.bfloat16)
    xb = jax.random.normal(k[1], (2, 16, 16, 64), jnp.float32).astype(jnp.bfloat16)
    w, s, sh = _init_conv_bn(k[2], 3, 3, 160, 128)
    refa = jax.lax.conv_general_dilated(
        jnp.concatenate([xa, xb], axis=-1), w, (1, 1), "SAME",
        dimension_numbers=dn, preferred_element_type=jnp.float32)
    refa = refa * s + sh
    refa = jnp.where(refa > 0, refa, 0.01 * refa)
    check("conv3x3-cat",
          conv3x3([xa, xb], [w[:, :, :96], w[:, :, 96:]], s, sh, "leaky"), refa)
    check("conv3x3-rowtile",
          conv3x3([xa, xb], [w[:, :, :96], w[:, :, 96:]], s, sh, "leaky",
                  force_th=4), refa)

    # (B) weight-bound path with Cout-tile grid axis (nco > 1)
    xc = jax.random.normal(k[3], (2, 4, 4, 320), jnp.float32).astype(jnp.bfloat16)
    wc, sc, shc = _init_conv_bn(k[4], 3, 3, 320, 640)
    refc = jax.lax.conv_general_dilated(xc, wc, (1, 1), "SAME",
                                        dimension_numbers=dn,
                                        preferred_element_type=jnp.float32)
    refc = refc * sc + shc
    refc = jnp.where(refc > 0, refc, 0.01 * refc)
    check("conv3x3-coutsplit", conv3x3([xc], [wc], sc, shc, "leaky"), refc)

    # (C) fused nearest-x2 upsample + conv3x3 (parity decomposition)
    xu = jax.random.normal(k[5], (2, 8, 8, 64), jnp.float32).astype(jnp.bfloat16)
    wu, su, shu = _init_conv_bn(k[6], 3, 3, 64, 64)
    xup = jnp.repeat(jnp.repeat(xu, 2, axis=1), 2, axis=2)
    refu = jax.lax.conv_general_dilated(xup, wu, (1, 1), "SAME",
                                        dimension_numbers=dn,
                                        preferred_element_type=jnp.float32)
    refu = jnp.maximum(refu * su + shu, 0.0)
    check("upconv3x3", upconv3x3(xu, wu, su, shu, "relu"), refu)

    # (D) fused attention gate (gating projection at native low resolution)
    gg = jax.random.normal(k[7], (2, 4, 4, 96), jnp.float32).astype(jnp.bfloat16)
    xg = jax.random.normal(k[8], (2, 8, 8, 64), jnp.float32).astype(jnp.bfloat16)
    ag = _init_ag(k[9], 96, 64, 64)
    g_up = jnp.repeat(jnp.repeat(gg.astype(jnp.float32), 2, axis=1), 2, axis=2)
    g1 = (g_up @ ag["wg"].astype(jnp.float32)) * ag["affg"][0] + ag["affg"][1]
    x1 = (xg.astype(jnp.float32) @ ag["wx"].astype(jnp.float32)) * ag["affx"][0] + ag["affx"][1]
    tt = jnp.maximum(g1 + x1, 0.0)
    pp = jax.nn.sigmoid(jnp.sum(tt * ag["psi_w"][0], -1, keepdims=True) + ag["psi_b"][0, 0])
    refg = xg.astype(jnp.float32) * pp
    check("attn-gate", attention_apply(ag, gg, xg), refg)

    # --- full NeoUnet forward ------------------------------------------------
    params = init_params(pkey)
    x = jax.random.normal(xkey, (2, 3, 64, 64), jnp.float32)
    fwd = jax.jit(neounet_forward)
    out1, out2, out3, out4 = jax.block_until_ready(fwd(params, x))

    assert out1.shape == (2, 2, 32, 32), out1.shape
    assert out2.shape == (2, 2, 16, 16), out2.shape
    assert out3.shape == (2, 2, 8, 8), out3.shape
    assert out4.shape == (2, 2, 4, 4), out4.shape
    assert all(bool(jnp.all(jnp.isfinite(o))) for o in (out1, out2, out3, out4))
    print("KERNEL_OK")
</pallas_src>

<mosaic_0001>
module attributes {stable_mosaic.version = 11 : i64} {
  func.func @_conv3x3_kernel(%arg0: i32, %arg1: i32, %arg2: i32, %arg3: memref<2x18x18x96xbf16, #tpu.memory_space<vmem>>, %arg4: memref<2x18x18x64xbf16, #tpu.memory_space<vmem>>, %arg5: memref<3x288x128xbf16, #tpu.memory_space<vmem>>, %arg6: memref<3x192x128xbf16, #tpu.memory_space<vmem>>, %arg7: memref<1x128xf32, #tpu.memory_space<vmem>>, %arg8: memref<1x128xf32, #tpu.memory_space<vmem>>, %arg9: memref<2x16x16x128xbf16, #tpu.memory_space<vmem>>) attributes {dimension_semantics = [#tpu.dimension_semantics<parallel>, #tpu.dimension_semantics<parallel>, #tpu.dimension_semantics<parallel>], iteration_bounds = array<i64: 1, 1, 1>, scalar_prefetch = 0 : i64, scratch_operands = 0 : i64, tpu.core_type = #tpu.core_type<tc>, window_params = [{transform_indices = @transform_0, window_bounds = array<i64: 2, 18, 18, 96>}, {transform_indices = @transform_1, window_bounds = array<i64: 2, 18, 18, 64>}, {transform_indices = @transform_2, window_bounds = array<i64: 3, 288, 128>}, {transform_indices = @transform_3, window_bounds = array<i64: 3, 192, 128>}, {transform_indices = @transform_4, window_bounds = array<i64: 1, 128>}, {transform_indices = @transform_5, window_bounds = array<i64: 1, 128>}, {transform_indices = @transform_6, window_bounds = array<i64: 2, 16, 16, 128>}]} {
    %c0 = arith.constant 0 : index
    %c0_0 = arith.constant 0 : index
    %c0_1 = arith.constant 0 : index
    %c0_2 = arith.constant 0 : index
    %0 = vector.load %arg3[%c0, %c0_0, %c0_1, %c0_2] : memref<2x18x18x96xbf16, #tpu.memory_space<vmem>>, vector<2x18x18x96xbf16>
    %1 = vector.extract_strided_slice %0 {offsets = [0, 0, 0, 0], sizes = [2, 16, 18, 96], strides = [1, 1, 1, 1]} : vector<2x18x18x96xbf16> to vector<2x16x18x96xbf16>
    %2 = vector.extract_strided_slice %1 {offsets = [0, 0, 0, 0], sizes = [2, 16, 16, 96], strides = [1, 1, 1, 1]} : vector<2x16x18x96xbf16> to vector<2x16x16x96xbf16>
    %3 = vector.extract_strided_slice %1 {offsets = [0, 0, 1, 0], sizes = [2, 16, 16, 96], strides = [1, 1, 1, 1]} : vector<2x16x18x96xbf16> to vector<2x16x16x96xbf16>
    %4 = vector.extract_strided_slice %1 {offsets = [0, 0, 2, 0], sizes = [2, 16, 16, 96], strides = [1, 1, 1, 1]} : vector<2x16x18x96xbf16> to vector<2x16x16x96xbf16>
    %5 = tpu.concatenate %2, %3, %4 in 3 : vector<2x16x16x96xbf16>, vector<2x16x16x96xbf16>, vector<2x16x16x96xbf16> -> vector<2x16x16x288xbf16>
    %6 = vector.shape_cast %5 : vector<2x16x16x288xbf16> to vector<512x288xbf16>
    %c0_3 = arith.constant 0 : index
    %c0_4 = arith.constant 0 : index
    %c0_5 = arith.constant 0 : index
    %7 = vector.load %arg5[%c0_3, %c0_4, %c0_5] : memref<3x288x128xbf16, #tpu.memory_space<vmem>>, vector<1x288x128xbf16>
    %8 = vector.shape_cast %7 : vector<1x288x128xbf16> to vector<288x128xbf16>
    %cst = arith.constant dense<0.000000e+00> : vector<512x128xf32>
    %9 = tpu.matmul %6, %8, %cst {dimension_numbers = #tpu.dot_dimension_numbers<[1], [0], [0], [1], [0, 0, 1, 1], [], []>} : vector<512x288xbf16>, vector<288x128xbf16>, vector<512x128xf32> -> vector<512x128xf32>
    %10 = vector.extract_strided_slice %0 {offsets = [0, 1, 0, 0], sizes = [2, 16, 18, 96], strides = [1, 1, 1, 1]} : vector<2x18x18x96xbf16> to vector<2x16x18x96xbf16>
    %11 = vector.extract_strided_slice %10 {offsets = [0, 0, 0, 0], sizes = [2, 16, 16, 96], strides = [1, 1, 1, 1]} : vector<2x16x18x96xbf16> to vector<2x16x16x96xbf16>
    %12 = vector.extract_strided_slice %10 {offsets = [0, 0, 1, 0], sizes = [2, 16, 16, 96], strides = [1, 1, 1, 1]} : vector<2x16x18x96xbf16> to vector<2x16x16x96xbf16>
    %13 = vector.extract_strided_slice %10 {offsets = [0, 0, 2, 0], sizes = [2, 16, 16, 96], strides = [1, 1, 1, 1]} : vector<2x16x18x96xbf16> to vector<2x16x16x96xbf16>
    %14 = tpu.concatenate %11, %12, %13 in 3 : vector<2x16x16x96xbf16>, vector<2x16x16x96xbf16>, vector<2x16x16x96xbf16> -> vector<2x16x16x288xbf16>
    %15 = vector.shape_cast %14 : vector<2x16x16x288xbf16> to vector<512x288xbf16>
    %c1 = arith.constant 1 : index
    %c0_6 = arith.constant 0 : index
    %c0_7 = arith.constant 0 : index
    %16 = vector.load %arg5[%c1, %c0_6, %c0_7] : memref<3x288x128xbf16, #tpu.memory_space<vmem>>, vector<1x288x128xbf16>
    %17 = vector.shape_cast %16 : vector<1x288x128xbf16> to vector<288x128xbf16>
    %cst_8 = arith.constant dense<0.000000e+00> : vector<512x128xf32>
    %18 = tpu.matmul %15, %17, %cst_8 {dimension_numbers = #tpu.dot_dimension_numbers<[1], [0], [0], [1], [0, 0, 1, 1], [], []>} : vector<512x288xbf16>, vector<288x128xbf16>, vector<512x128xf32> -> vector<512x128xf32>
    %19 = arith.addf %9, %18 : vector<512x128xf32>
    %20 = vector.extract_strided_slice %0 {offsets = [0, 2, 0, 0], sizes = [2, 16, 18, 96], strides = [1, 1, 1, 1]} : vector<2x18x18x96xbf16> to vector<2x16x18x96xbf16>
    %21 = vector.extract_strided_slice %20 {offsets = [0, 0, 0, 0], sizes = [2, 16, 16, 96], strides = [1, 1, 1, 1]} : vector<2x16x18x96xbf16> to vector<2x16x16x96xbf16>
    %22 = vector.extract_strided_slice %20 {offsets = [0, 0, 1, 0], sizes = [2, 16, 16, 96], strides = [1, 1, 1, 1]} : vector<2x16x18x96xbf16> to vector<2x16x16x96xbf16>
    %23 = vector.extract_strided_slice %20 {offsets = [0, 0, 2, 0], sizes = [2, 16, 16, 96], strides = [1, 1, 1, 1]} : vector<2x16x18x96xbf16> to vector<2x16x16x96xbf16>
    %24 = tpu.concatenate %21, %22, %23 in 3 : vector<2x16x16x96xbf16>, vector<2x16x16x96xbf16>, vector<2x16x16x96xbf16> -> vector<2x16x16x288xbf16>
    %25 = vector.shape_cast %24 : vector<2x16x16x288xbf16> to vector<512x288xbf16>
    %c2 = arith.constant 2 : index
    %c0_9 = arith.constant 0 : index
    %c0_10 = arith.constant 0 : index
    %26 = vector.load %arg5[%c2, %c0_9, %c0_10] : memref<3x288x128xbf16, #tpu.memory_space<vmem>>, vector<1x288x128xbf16>
    %27 = vector.shape_cast %26 : vector<1x288x128xbf16> to vector<288x128xbf16>
    %cst_11 = arith.constant dense<0.000000e+00> : vector<512x128xf32>
    %28 = tpu.matmul %25, %27, %cst_11 {dimension_numbers = #tpu.dot_dimension_numbers<[1], [0], [0], [1], [0, 0, 1, 1], [], []>} : vector<512x288xbf16>, vector<288x128xbf16>, vector<512x128xf32> -> vector<512x128xf32>
    %29 = arith.addf %19, %28 : vector<512x128xf32>
    %c0_12 = arith.constant 0 : index
    %c0_13 = arith.constant 0 : index
    %c0_14 = arith.constant 0 : index
    %c0_15 = arith.constant 0 : index
    %30 = vector.load %arg4[%c0_12, %c0_13, %c0_14, %c0_15] : memref<2x18x18x64xbf16, #tpu.memory_space<vmem>>, vector<2x18x18x64xbf16>
    %31 = vector.extract_strided_slice %30 {offsets = [0, 0, 0, 0], sizes = [2, 16, 18, 64], strides = [1, 1, 1, 1]} : vector<2x18x18x64xbf16> to vector<2x16x18x64xbf16>
    %32 = vector.extract_strided_slice %31 {offsets = [0, 0, 0, 0], sizes = [2, 16, 16, 64], strides = [1, 1, 1, 1]} : vector<2x16x18x64xbf16> to vector<2x16x16x64xbf16>
    %33 = vector.extract_strided_slice %31 {offsets = [0, 0, 1, 0], sizes = [2, 16, 16, 64], strides = [1, 1, 1, 1]} : vector<2x16x18x64xbf16> to vector<2x16x16x64xbf16>
    %34 = vector.extract_strided_slice %31 {offsets = [0, 0, 2, 0], sizes = [2, 16, 16, 64], strides = [1, 1, 1, 1]} : vector<2x16x18x64xbf16> to vector<2x16x16x64xbf16>
    %35 = tpu.concatenate %32, %33, %34 in 3 : vector<2x16x16x64xbf16>, vector<2x16x16x64xbf16>, vector<2x16x16x64xbf16> -> vector<2x16x16x192xbf16>
    %36 = vector.shape_cast %35 : vector<2x16x16x192xbf16> to vector<512x192xbf16>
    %c0_16 = arith.constant 0 : index
    %c0_17 = arith.constant 0 : index
    %c0_18 = arith.constant 0 : index
    %37 = vector.load %arg6[%c0_16, %c0_17, %c0_18] : memref<3x192x128xbf16, #tpu.memory_space<vmem>>, vector<1x192x128xbf16>
    %38 = vector.shape_cast %37 : vector<1x192x128xbf16> to vector<192x128xbf16>
    %cst_19 = arith.constant dense<0.000000e+00> : vector<512x128xf32>
    %39 = tpu.matmul %36, %38, %cst_19 {dimension_numbers = #tpu.dot_dimension_numbers<[1], [0], [0], [1], [0, 0, 1, 1], [], []>} : vector<512x192xbf16>, vector<192x128xbf16>, vector<512x128xf32> -> vector<512x128xf32>
    %40 = arith.addf %29, %39 : vector<512x128xf32>
    %41 = vector.extract_strided_slice %30 {offsets = [0, 1, 0, 0], sizes = [2, 16, 18, 64], strides = [1, 1, 1, 1]} : vector<2x18x18x64xbf16> to vector<2x16x18x64xbf16>
    %42 = vector.extract_strided_slice %41 {offsets = [0, 0, 0, 0], sizes = [2, 16, 16, 64], strides = [1, 1, 1, 1]} : vector<2x16x18x64xbf16> to vector<2x16x16x64xbf16>
    %43 = vector.extract_strided_slice %41 {offsets = [0, 0, 1, 0], sizes = [2, 16, 16, 64], strides = [1, 1, 1, 1]} : vector<2x16x18x64xbf16> to vector<2x16x16x64xbf16>
    %44 = vector.extract_strided_slice %41 {offsets = [0, 0, 2, 0], sizes = [2, 16, 16, 64], strides = [1, 1, 1, 1]} : vector<2x16x18x64xbf16> to vector<2x16x16x64xbf16>
    %45 = tpu.concatenate %42, %43, %44 in 3 : vector<2x16x16x64xbf16>, vector<2x16x16x64xbf16>, vector<2x16x16x64xbf16> -> vector<2x16x16x192xbf16>
    %46 = vector.shape_cast %45 : vector<2x16x16x192xbf16> to vector<512x192xbf16>
    %c1_20 = arith.constant 1 : index
    %c0_21 = arith.constant 0 : index
    %c0_22 = arith.constant 0 : index
    %47 = vector.load %arg6[%c1_20, %c0_21, %c0_22] : memref<3x192x128xbf16, #tpu.memory_space<vmem>>, vector<1x192x128xbf16>
    %48 = vector.shape_cast %47 : vector<1x192x128xbf16> to vector<192x128xbf16>
    %cst_23 = arith.constant dense<0.000000e+00> : vector<512x128xf32>
    %49 = tpu.matmul %46, %48, %cst_23 {dimension_numbers = #tpu.dot_dimension_numbers<[1], [0], [0], [1], [0, 0, 1, 1], [], []>} : vector<512x192xbf16>, vector<192x128xbf16>, vector<512x128xf32> -> vector<512x128xf32>
    %50 = arith.addf %40, %49 : vector<512x128xf32>
    %51 = vector.extract_strided_slice %30 {offsets = [0, 2, 0, 0], sizes = [2, 16, 18, 64], strides = [1, 1, 1, 1]} : vector<2x18x18x64xbf16> to vector<2x16x18x64xbf16>
    %52 = vector.extract_strided_slice %51 {offsets = [0, 0, 0, 0], sizes = [2, 16, 16, 64], strides = [1, 1, 1, 1]} : vector<2x16x18x64xbf16> to vector<2x16x16x64xbf16>
    %53 = vector.extract_strided_slice %51 {offsets = [0, 0, 1, 0], sizes = [2, 16, 16, 64], strides = [1, 1, 1, 1]} : vector<2x16x18x64xbf16> to vector<2x16x16x64xbf16>
    %54 = vector.extract_strided_slice %51 {offsets = [0, 0, 2, 0], sizes = [2, 16, 16, 64], strides = [1, 1, 1, 1]} : vector<2x16x18x64xbf16> to vector<2x16x16x64xbf16>
    %55 = tpu.concatenate %52, %53, %54 in 3 : vector<2x16x16x64xbf16>, vector<2x16x16x64xbf16>, vector<2x16x16x64xbf16> -> vector<2x16x16x192xbf16>
    %56 = vector.shape_cast %55 : vector<2x16x16x192xbf16> to vector<512x192xbf16>
    %c2_24 = arith.constant 2 : index
    %c0_25 = arith.constant 0 : index
    %c0_26 = arith.constant 0 : index
    %57 = vector.load %arg6[%c2_24, %c0_25, %c0_26] : memref<3x192x128xbf16, #tpu.memory_space<vmem>>, vector<1x192x128xbf16>
    %58 = vector.shape_cast %57 : vector<1x192x128xbf16> to vector<192x128xbf16>
    %cst_27 = arith.constant dense<0.000000e+00> : vector<512x128xf32>
    %59 = tpu.matmul %56, %58, %cst_27 {dimension_numbers = #tpu.dot_dimension_numbers<[1], [0], [0], [1], [0, 0, 1, 1], [], []>} : vector<512x192xbf16>, vector<192x128xbf16>, vector<512x128xf32> -> vector<512x128xf32>
    %60 = arith.addf %50, %59 : vector<512x128xf32>
    %c0_28 = arith.constant 0 : index
    %c0_29 = arith.constant 0 : index
    %61 = vector.load %arg7[%c0_28, %c0_29] : memref<1x128xf32, #tpu.memory_space<vmem>>, vector<1x128xf32>
    %62 = vector.broadcast %61 : vector<1x128xf32> to vector<512x128xf32>
    %63 = arith.mulf %60, %62 : vector<512x128xf32>
    %c0_30 = arith.constant 0 : index
    %c0_31 = arith.constant 0 : index
    %64 = vector.load %arg8[%c0_30, %c0_31] : memref<1x128xf32, #tpu.memory_space<vmem>>, vector<1x128xf32>
    %65 = vector.broadcast %64 : vector<1x128xf32> to vector<512x128xf32>
    %66 = arith.addf %63, %65 : vector<512x128xf32>
    %cst_32 = arith.constant 0.000000e+00 : f32
    %67 = vector.broadcast %cst_32 : f32 to vector<512x128xf32>
    %68 = arith.cmpf ogt, %66, %67 : vector<512x128xf32>
    %cst_33 = arith.constant 0.00999999977 : f32
    %69 = vector.broadcast %cst_33 : f32 to vector<512x128xf32>
    %70 = arith.mulf %69, %66 : vector<512x128xf32>
    %71 = arith.select %68, %66, %70 : vector<512x128xi1>, vector<512x128xf32>
    %72 = vector.shape_cast %71 : vector<512x128xf32> to vector<2x16x16x128xf32>
    %73 = arith.truncf %72 : vector<2x16x16x128xf32> to vector<2x16x16x128xbf16>
    %c0_34 = arith.constant 0 : index
    %c0_35 = arith.constant 0 : index
    %c0_36 = arith.constant 0 : index
    %c0_37 = arith.constant 0 : index
    %74 = vector.load %arg9[%c0_34, %c0_35, %c0_36, %c0_37] : memref<2x16x16x128xbf16, #tpu.memory_space<vmem>>, vector<2x16x16x128xbf16>
    tpu.vector_store %arg9[%c0_34, %c0_35, %c0_36, %c0_37], %73 {strides = array<i32>} : memref<2x16x16x128xbf16, #tpu.memory_space<vmem>>, vector<2x16x16x128xbf16>,
    return
  }
  func.func @transform_0(%arg0: i32, %arg1: i32, %arg2: i32) -> (i32, i32, i32, i32) {
    %c1_i32 = arith.constant 1 : i32
    %0 = arith.muli %arg0, %c1_i32 : i32
    %1 = arith.addi %0, %arg1 : i32
    %c0_i32 = arith.constant 0 : i32
    %c0_i32_0 = arith.constant 0 : i32
    %c0_i32_1 = arith.constant 0 : i32
    %c0_i32_2 = arith.constant 0 : i32
    return %1, %c0_i32, %c0_i32_0, %c0_i32_1 : i32, i32, i32, i32
  }
  func.func @transform_1(%arg0: i32, %arg1: i32, %arg2: i32) -> (i32, i32, i32, i32) {
    %c1_i32 = arith.constant 1 : i32
    %0 = arith.muli %arg0, %c1_i32 : i32
    %1 = arith.addi %0, %arg1 : i32
    %c0_i32 = arith.constant 0 : i32
    %c0_i32_0 = arith.constant 0 : i32
    %c0_i32_1 = arith.constant 0 : i32
    %c0_i32_2 = arith.constant 0 : i32
    return %1, %c0_i32, %c0_i32_0, %c0_i32_1 : i32, i32, i32, i32
  }
  func.func @transform_2(%arg0: i32, %arg1: i32, %arg2: i32) -> (i32, i32, i32) {
    %c0_i32 = arith.constant 0 : i32
    %c0_i32_0 = arith.constant 0 : i32
    %c0_i32_1 = arith.constant 0 : i32
    return %c0_i32, %c0_i32_0, %arg2 : i32, i32, i32
  }
  func.func @transform_3(%arg0: i32, %arg1: i32, %arg2: i32) -> (i32, i32, i32) {
    %c0_i32 = arith.constant 0 : i32
    %c0_i32_0 = arith.constant 0 : i32
    %c0_i32_1 = arith.constant 0 : i32
    return %c0_i32, %c0_i32_0, %arg2 : i32, i32, i32
  }
  func.func @transform_4(%arg0: i32, %arg1: i32, %arg2: i32) -> (i32, i32) {
    %c0_i32 = arith.constant 0 : i32
    %c0_i32_0 = arith.constant 0 : i32
    return %c0_i32, %arg2 : i32, i32
  }
  func.func @transform_5(%arg0: i32, %arg1: i32, %arg2: i32) -> (i32, i32) {
    %c0_i32 = arith.constant 0 : i32
    %c0_i32_0 = arith.constant 0 : i32
    return %c0_i32, %arg2 : i32, i32
  }
  func.func @transform_6(%arg0: i32, %arg1: i32, %arg2: i32) -> (i32, i32, i32, i32) {
    %c0_i32 = arith.constant 0 : i32
    %c0_i32_0 = arith.constant 0 : i32
    return %arg0, %arg1, %c0_i32, %arg2 : i32, i32, i32, i32
  }
}

</mosaic_0001>

<bundles_post_ra>
// kernel: tpu_custom_call.1
= control target key start
LH: loop header
LB: loop body
LE: loop exit
PB: predicated region body
PF: predicated region fallthrough
CT: control target
= control target key end

     0   :  { %vm888_vm0 = vcmask 1046528   ;;  %s8648_s9 = smov 64   ;;  %vm439_vm1 = vsmask.f32 7424  ;;  %s8649_s22 = smov 96   ;;  %vm1490_vm2 = vcmask 261120   ;;  %s13261_s0 = inlined_call_operand.vmem [shape: bf16[2,18,18,96], index: 0, kind: input, shape index: {}]   ;;  %s13262_s1 = inlined_call_operand.vmem [shape: bf16[2,18,18,64], index: 1, kind: input, shape index: {}]   ;;  %s13263_s2 = inlined_call_operand.vmem [shape: bf16[3,288,128], index: 2, kind: input, shape index: {}]   ;;  %s13264_s3 = inlined_call_operand.vmem [shape: bf16[3,192,128], index: 3, kind: input, shape index: {}]   ;;  %s13265_s4 = inlined_call_operand.vmem [shape: f32[1,128], index: 4, kind: input, shape index: {}]   ;;  %s13266_s5 = inlined_call_operand.vmem [shape: f32[1,128], index: 5, kind: input, shape index: {}]   ;;  %s13267_s6 = inlined_call_operand.hbm [shape: bf16[2,16,16,128], index: 6, kind: output, shape index: {}]  }
   0x1   :  { %v8691_v0 = vld [vmem:[%s13261_s0 + $0x18] sm:$0xff]   ;;  %v8696_v1 = vld [vmem:[%s13261_s0 + $0x20] ss:$0 sps:$4 sm:$0x11]   ;;  %v8710_v9 = vld [vmem:[%s13261_s0 + $0x24] sm:$0xff]   ;;  %vm1146_vm3 = vcmask 523264  }
   0x2   :  { %v895_v2 = vrot.slane %v8691_v0, 1  ;;  %v896_v3 = vrot.slane %v8696_v1, 1  ;;  %v8279_v4 = vld [vmem:[%s13261_s0] sm:$0xff]   ;;  %v8280_v5 = vld [vmem:[%s13261_s0 + $0x8] ss:$0 sps:$4 sm:$0x11]  }
   0x3   :  { %v889_v7 = vrot.slane %v8279_v4, 1  ;;  %v890_v8 = vrot.slane %v8280_v5, 1  ;;  %v8715_v10 = vld [vmem:[%s13261_s0 + $0x2c] ss:$0 sps:$4 sm:$0x11]   ;;  %v898_v12 = vrot.slane %v8710_v9, 1 }
   0x4   :  { %v897_v6 = vsel %vm888_vm0, %v895_v2, %v896_v3  ;;  %v899_v13 = vrot.slane %v8715_v10, 1  ;;  %v8724_v14 = vld [vmem:[%s13261_s0 + $0xc] sm:$0xff]   ;;  %v8729_v15 = vld [vmem:[%s13261_s0 + $0x14] ss:$0 sps:$4 sm:$0x11]   ;;  %v8738_v19 = vld [vmem:[%s13261_s0 + $0x3c] sm:$0xff]  }
   0x5   :  { %989 = vrot.lane.b32.xlu1 %v897_v6, %s8648_s9  ;;  %v891_v11 = vsel %vm888_vm0, %v889_v7, %v890_v8  ;;  %v892_v17 = vrot.slane %v8724_v14, 1  ;;  %v893_v18 = vrot.slane %v8729_v15, 1  ;;  %v8743_v20 = vld [vmem:[%s13261_s0 + $0x44] ss:$0 sps:$4 sm:$0x11]   ;;  %v904_v22 = vrot.slane %v8738_v19, 1 }
   0x6   :  { %985 = vrot.lane.b32.xlu0 %v891_v11, %s8648_s9  ;;  %v900_v16 = vsel %vm888_vm0, %v898_v12, %v899_v13  ;;  %v905_v23 = vrot.slane %v8743_v20, 1  ;;  %v8752_v24 = vld [vmem:[%s13261_s0 + $0x30] sm:$0xff]   ;;  %v8757_v25 = vld [vmem:[%s13261_s0 + $0x38] ss:$0 sps:$4 sm:$0x11]   ;;  %v8780_v34 = vld [vmem:[%s13261_s0 + $0x48] sm:$0xff]  }
   0x7   :  { %v894_v21 = vsel %vm888_vm0, %v892_v17, %v893_v18  ;;  %v901_v27 = vrot.slane %v8752_v24, 1  ;;  %v902_v28 = vrot.slane %v8757_v25, 1  ;;  %v8766_v29 = vld [vmem:[%s13261_s0 + $0x54] sm:$0xff]   ;;  %v8771_v30 = vld [vmem:[%s13261_s0 + $0x5c] ss:$0 sps:$4 sm:$0x11]  }
   0x8   :  { %v906_v26 = vsel %vm888_vm0, %v904_v22, %v905_v23  ;;  %v910_v32 = vrot.slane %v8766_v29, 1  ;;  %v911_v33 = vrot.slane %v8771_v30, 1  ;;  %v8785_v35 = vld [vmem:[%s13261_s0 + $0x50] ss:$0 sps:$4 sm:$0x11]   ;;  %v907_v37 = vrot.slane %v8780_v34, 1 }
   0x9   :  { %991 = vrot.lane.b32.xlu1 %v900_v16, %s8648_s9  ;;  %v903_v31 = vsel %vm888_vm0, %v901_v27, %v902_v28  ;;  %v908_v38 = vrot.slane %v8785_v35, 1  ;;  %v8794_v39 = vld [vmem:[%s13261_s0 + $0x6c] sm:$0xff]   ;;  %v8799_v40 = vld [vmem:[%s13261_s0 + $0x74] ss:$0 sps:$4 sm:$0x11]   ;;  %v8808_v44 = vld [vmem:[%s13261_s0 + $0x60] sm:$0xff]  }
   0xa   :  { %987 = vrot.lane.b32.xlu0 %v894_v21, %s8648_s9  ;;  %v912_v36 = vsel %vm888_vm0, %v910_v32, %v911_v33  ;;  %v916_v42 = vrot.slane %v8794_v39, 1  ;;  %v917_v43 = vrot.slane %v8799_v40, 1  ;;  %v8813_v45 = vld [vmem:[%s13261_s0 + $0x68] ss:$0 sps:$4 sm:$0x11]   ;;  %v913_v47 = vrot.slane %v8808_v44, 1 }
   0xb   :  { %v909_v41 = vsel %vm888_vm0, %v907_v37, %v908_v38  ;;  %v914_v48 = vrot.slane %v8813_v45, 1  ;;  %v8822_v49 = vld [vmem:[%s13261_s0 + $0x84] sm:$0xff]   ;;  %v8827_v50 = vld [vmem:[%s13261_s0 + $0x8c] ss:$0 sps:$4 sm:$0x11]   ;;  %v8836_v54 = vld [vmem:[%s13261_s0 + $0x78] sm:$0xff]  }
   0xc   :  { %v918_v46 = vsel %vm888_vm0, %v916_v42, %v917_v43  ;;  %v922_v52 = vrot.slane %v8822_v49, 1  ;;  %v923_v53 = vrot.slane %v8827_v50, 1  ;;  %v8841_v55 = vld [vmem:[%s13261_s0 + $0x80] ss:$0 sps:$4 sm:$0x11]   ;;  %v919_v57 = vrot.slane %v8836_v54, 1 }
   0xd   :  { %995 = vrot.lane.b32.xlu1 %v906_v26, %s8648_s9  ;;  %v915_v51 = vsel %vm888_vm0, %v913_v47, %v914_v48  ;;  %v920_v58 = vrot.slane %v8841_v55, 1  ;;  %v8850_v59 = vld [vmem:[%s13261_s0 + $0x9c] sm:$0xff]   ;;  %v8855_v60 = vld [vmem:[%s13261_s0 + $0xa4] ss:$0 sps:$4 sm:$0x11]   ;;  %v8864_v2 = vld [vmem:[%s13261_s0 + $0x90] sm:$0xff]  }
   0xe   :  { %993 = vrot.lane.b32.xlu0 %v903_v31, %s8648_s9  ;;  %v924_v56 = vsel %vm888_vm0, %v922_v52, %v923_v53  ;;  %v928_v62 = vrot.slane %v8850_v59, 1  ;;  %v929_v63 = vrot.slane %v8855_v60, 1  ;;  %v8869_v3 = vld [vmem:[%s13261_s0 + $0x98] ss:$0 sps:$4 sm:$0x11]   ;;  %v925_v5 = vrot.slane %v8864_v2, 1 }
   0xf   :  { %v921_v61 = vsel %vm888_vm0, %v919_v57, %v920_v58  ;;  %v926_v6 = vrot.slane %v8869_v3, 1  ;;  %v8878_v7 = vld [vmem:[%s13261_s0 + $0xa8] sm:$0xff]   ;;  %v8883_v8 = vld [vmem:[%s13261_s0 + $0xb0] ss:$0 sps:$4 sm:$0x11]   ;;  %v453_v11 = vshrl.u32 %v8724_v14, 16 }
  0x10   :  { %v930_v4 = vsel %vm888_vm0, %v928_v62, %v929_v63  ;;  %v455_v12 = vshll.u32 %v8724_v14, 16  ;;  %v460_v13 = vshll.u32 %v8729_v15, 16  ;;  %v931_v17 = vrot.slane %v8878_v7, 1  ;;  %v8896_v22 = vld [vmem:[%s13261_s0 + $0xb4] sm:$0xff]  }
  0x11   :  { %999 = vrot.lane.b32.xlu1 %v912_v36, %s8648_s9  ;;  %v927_v16 = vsel %vm888_vm0, %v925_v5, %v926_v6  ;;  %v932_v18 = vrot.slane %v8883_v8, 1  ;;  %v465_v21 = vshrl.u32 %v8691_v0, 16  ;;  %v467_v14 = vshll.u32 %v8691_v0, 16  ;;  %v8905_v28 = vld [vmem:[%s13261_s0 + $0xbc] ss:$0 sps:$4 sm:$0x11]  }
  0x12   :  { %997 = vrot.lane.b32.xlu0 %v909_v41, %s8648_s9  ;;  %v457_v23 = vrot.slane %v455_v12, 1  ;;  %v462_v26 = vrot.slane %v460_v13, 1  ;;  %v472_v15 = vshll.u32 %v8696_v1, 16  ;;  %v934_v31 = vrot.slane %v8896_v22, 1  ;;  %v8913_v0 = vld [vmem:[%s13261_s0 + $0xe4] sm:$0xff]   ;;  %v8311_v42 = vld [vmem:[%s13261_s0 + $0xd8] sm:$0xff]  }
  0x13   :  { %v933_v27 = vsel %vm888_vm0, %v931_v17, %v932_v18  ;;  %v469_v33 = vrot.slane %v467_v14, 1  ;;  %v935_v37 = vrot.slane %v8905_v28, 1  ;;  %v8919_v41 = vld [vmem:[%s13261_s0 + $0xec] ss:$0 sps:$4 sm:$0x11]   ;;  %v940_v43 = vrot.slane %v8913_v0, 1 }
  0x14   :  { %v458_v32 = vor.u32 %v457_v23, %v453_v11  ;;  %v474_v36 = vrot.slane %v472_v15, 1  ;;  %v937_v52 = vrot.slane %v8311_v42, 1  ;;  %v477_v57 = vshrl.u32 %v8710_v9, 16  ;;  %v8944_v62 = vld [vmem:[%s13261_s0 + $0xf8] ss:$0 sps:$4 sm:$0x11]  }
  0x15   :  { %1003 = vrot.lane.b32.xlu1 %v918_v46, %s8648_s9  ;;  %v470_v38 = vor.u32 %v469_v33, %v465_v21  ;;  %v8312_v46 = vld [vmem:[%s13261_s0 + $0xe0] ss:$0 sps:$4 sm:$0x11]   ;;  %v936_v48 = vsel %vm888_vm0, %v934_v31, %v935_v37  ;;  %v479_v58 = vshll.u32 %v8710_v9, 16  ;;  %v484_v63 = vshll.u32 %v8715_v10, 16 }
  0x16   :  { %1001 = vrot.lane.b32.xlu0 %v915_v51, %s8648_s9  ;;  %v463_v1 = vsel %vm439_vm1, %v458_v32, %v462_v26  ;;  %v941_v51 = vrot.slane %v8919_v41, 1  ;;  %v938_v53 = vrot.slane %v8312_v46, 1  ;;  %v491_v5 = vshll.u32 %v8752_v24, 16  ;;  %v8955_v12 = vld [vmem:[%s13261_s0 + $0xfc] sm:$0xff]  }
  0x17   :  { %v475_v47 = vsel %vm439_vm1, %v470_v38, %v474_v36  ;;  %v481_v11 = vrot.slane %v479_v58, 1  ;;  %v496_v9 = vshll.u32 %v8757_v25, 16  ;;  %v944_v10 = vrot.slane %v8944_v62, 1  ;;  %v8968_v21 = vld [vmem:[%s13261_s0 + $0x104] ss:$0 sps:$4 sm:$0x11]  }
  0x18   :  { %v939_v13 = vsel %vm888_vm0, %v937_v52, %v938_v53  ;;  %v493_v17 = vrot.slane %v491_v5, 1  ;;  %v946_v14 = vrot.slane %v8955_v12, 1  ;;  %v8978_v31 = vld [vmem:[%s13261_s0 + $0x11c] ss:$0 sps:$4 sm:$0x11]   ;;  %v8986_v36 = vld [vmem:[%s13261_s0 + $0x108] sm:$0xff]  }
  0x19   :  { %1007 = vrot.lane.b32.xlu1 %v924_v56, %s8648_s9  ;;  %v8936_v56 = vld [vmem:[%s13261_s0 + $0xf0] sm:$0xff]   ;;  %v482_v18 = vor.u32 %v481_v11, %v477_v57  ;;  %v498_v25 = vrot.slane %v496_v9, 1  ;;  %v953_v33 = vrot.slane %v8978_v31, 1  ;;  %v9005_v46 = vld [vmem:[%s13261_s0 + $0x128] ss:$0 sps:$4 sm:$0x11]  }
  0x1a   :  { %1005 = vrot.lane.b32.xlu0 %v921_v61, %s8648_s9  ;;  %v942_v61 = vsel %vm888_vm0, %v940_v43, %v941_v51  ;;  %v943_v6 = vrot.slane %v8936_v56, 1  ;;  %v8991_v37 = vld [vmem:[%s13261_s0 + $0x110] ss:$0 sps:$4 sm:$0x11]   ;;  %v949_v43 = vrot.slane %v8986_v36, 1  ;;  %v503_v51 = vshll.u32 %v8738_v19, 16 }
  0x1b   :  { %v508_v52 = vshll.u32 %v8743_v20, 16  ;;  %v956_v57 = vrot.slane %v9005_v46, 1  ;;  %v513_v58 = vshrl.u32 %v8780_v34, 16  ;;  %v520_v5 = vshll.u32 %v8785_v35, 16  ;;  %v9022_v20 = vld [vmem:[%s13261_s0 + $0x12c] sm:$0xff]   ;;  %v9034_v35 = vld [vmem:[%s13261_s0 + $0x144] sm:$0xff]  }
  0x1c   :  { %v945_v23 = vsel %vm888_vm0, %v943_v6, %v944_v10  ;;  %v9027_v6 = vld [vmem:[%s13261_s0 + $0x134] ss:$0 sps:$4 sm:$0x11]   ;;  %vm1049_vm4 = vcmask 785408  }
  0x1d   :  { %1011 = vrot.lane.b32.xlu1 %v930_v4, %s8648_s9  ;;  %v489_v4 = vshrl.u32 %v8752_v24, 16  ;;  %v8962_v24 = vld [vmem:[%s13261_s0 + $0x114] sm:$0xff]   ;;  %v510_v9 = vrot.slane %v508_v52, 1  ;;  %v532_v52 = vshll.u32 %v8771_v30, 16  ;;  %v9087_v30 = vld [vmem:[%s13261_s0 + $0x15c] sm:$0xff]  }
  0x1e   :  { %1009 = vrot.lane.b32.xlu0 %v927_v16, %s8648_s9  ;;  %v486_v16 = vrot.slane %v484_v63, 1  ;;  %v952_v15 = vrot.slane %v8962_v24, 1 }
  0x1f   :  { %v494_v26 = vor.u32 %v493_v17, %v489_v4  ;;  %v505_v4 = vrot.slane %v503_v51, 1  ;;  %v522_v17 = vrot.slane %v520_v5, 1 }
  0x20   :  { %v487_v32 = vsel %vm439_vm1, %v482_v18, %v486_v16  ;;  %v954_v63 = vsel %vm888_vm0, %v952_v15, %v953_v33  ;;  %v9045_v18 = vld [vmem:[%s13261_s0 + $0x138] sm:$0xff]   ;;  %v525_v15 = vshrl.u32 %v8766_v29, 16 }
  0x21   :  { %1013 = vrot.lane.b32.xlu1 %v933_v27, %s8648_s9  ;;  %v947_v27 = vrot.slane %v8968_v21, 1  ;;  %v499_v38 = vsel %vm439_vm1, %v494_v26, %v498_v25  ;;  %v958_v25 = vrot.slane %v9022_v20, 1  ;;  %v9067_v33 = vld [vmem:[%s13261_s0 + $0x158] ss:$0 sps:$4 sm:$0x11]  }
  0x22   :  { %826 = vrot.lane.b32.xlu0 %v463_v1, %s8649_s22  ;;  %v8996_v1 = vld [vmem:[%s13261_s0 + $0x120] sm:$0xff]  }
  0x23   :  { %v948_v42 = vsel %vm888_vm0, %v946_v14, %v947_v27  ;;  %v955_v53 = vrot.slane %v8996_v1, 1  ;;  %v959_v14 = vrot.slane %v9027_v6, 1  ;;  %v964_v27 = vrot.slane %v9034_v35, 1 }
  0x25   :  { %828 = vrot.lane.b32.xlu1 %v475_v47, %s8649_s22  ;;  %v950_v47 = vrot.slane %v8991_v37, 1  ;;  %v957_v10 = vsel %vm888_vm0, %v955_v53, %v956_v57  ;;  %v537_v53 = vshrl.u32 %v8808_v44, 16  ;;  %v544_v57 = vshll.u32 %v8813_v45, 16 }
  0x26   :  { %1015 = vrot.lane.b32.xlu0 %v936_v48, %s8648_s9  ;;  %v501_v48 = vshrl.u32 %v8738_v19, 16 }
  0x28   :  { %v506_v11 = vor.u32 %v505_v4, %v501_v48  ;;  %v539_v48 = vshll.u32 %v8808_v44, 16  ;;  %v968_v4 = vrot.slane %v9067_v33, 1  ;;  %v9092_v44 = vld [vmem:[%s13261_s0 + $0x164] ss:$0 sps:$4 sm:$0x11]  }
  0x29   :  { %1019 = vrot.lane.b32.xlu1 %v942_v61, %s8648_s9  ;;  %v515_v61 = vshll.u32 %v8780_v34, 16  ;;  %v951_v34 = vsel %vm888_vm0, %v949_v43, %v950_v47  ;;  %v961_v47 = vrot.slane %v9045_v18, 1 }
  0x2a   :  { %1017 = vrot.lane.b32.xlu0 %v939_v13, %s8648_s9  ;;  %v9039_v13 = vld [vmem:[%s13261_s0 + $0x14c] ss:$0 sps:$4 sm:$0x11]   ;;  %v511_v26 = vsel %vm439_vm1, %v506_v11, %v510_v9  ;;  %v534_v11 = vrot.slane %v532_v52, 1 }
  0x2b   :  { %v517_v19 = vrot.slane %v515_v61, 1  ;;  %v965_v43 = vrot.slane %v9039_v13, 1  ;;  %v541_v61 = vrot.slane %v539_v48, 1  ;;  %v9133_v48 = vld [vmem:[%s13261_s0 + $0x188] ss:$0 sps:$4 sm:$0x11]  }
  0x2c   :  { %13514 = vst [vmem:[#allocation6_spill] sm:$0xff] %v9133_v48 }
  0x2d   :  { %1021 = vrot.lane.b32.xlu1 %v945_v23, %s8648_s9  ;;  %v518_v16 = vor.u32 %v517_v19, %v513_v58  ;;  %v9052_v23 = vld [vmem:[%s13261_s0 + $0x140] ss:$0 sps:$4 sm:$0x11]   ;;  %v966_v5 = vsel %vm888_vm0, %v964_v27, %v965_v43  ;;  %v9099_v19 = vld [vmem:[%s13261_s0 + $0x174] sm:$0xff]   ;;  %v542_v9 = vor.u32 %v541_v61, %v537_v53  ;;  %v549_v61 = vshrl.u32 %v8794_v39, 16 }
  0x2e   :  { %830 = vrot.lane.b32.xlu0 %v487_v32, %s8649_s22  ;;  %v9062_v32 = vld [vmem:[%s13261_s0 + $0x150] sm:$0xff]   ;;  %v962_v51 = vrot.slane %v9052_v23, 1  ;;  %v976_v27 = vrot.slane %v9099_v19, 1 }
  0x30   :  { %v963_v45 = vsel %vm888_vm0, %v961_v47, %v962_v51  ;;  %v563_v51 = vshll.u32 %v8836_v54, 16 }
  0x31   :  { %832 = vrot.lane.b32.xlu1 %v499_v38, %s8649_s22  ;;  %v527_v38 = vshll.u32 %v8766_v29, 16  ;;  %v960_v29 = vsel %vm888_vm0, %v958_v25, %v959_v14  ;;  %v9117_v14 = vld [vmem:[%s13261_s0 + $0x170] ss:$0 sps:$4 sm:$0x11]  }
  0x32   :  { %1023 = vrot.lane.b32.xlu0 %v948_v42, %s8648_s9  ;;  %v523_v42 = vsel %vm439_vm1, %v518_v16, %v522_v17  ;;  %v9105_v16 = vld [vmem:[%s13261_s0 + $0x17c] ss:$0 sps:$4 sm:$0x11]   ;;  %v9110_v17 = vld [vmem:[%s13261_s0 + $0x168] sm:$0xff]  }
  0x33   :  { %v529_v58 = vrot.slane %v527_v38, 1  ;;  %v9125_v38 = vld [vmem:[%s13261_s0 + $0x180] sm:$0xff]   ;;  %v977_v52 = vrot.slane %v9105_v16, 1  ;;  %v973_v53 = vrot.slane %v9110_v17, 1 }
  0x34   :  { %13513 = vst [vmem:[#allocation5_spill] sm:$0xff] %v9125_v38 }
  0x35   :  { %1027 = vrot.lane.b32.xlu1 %v954_v63, %s8648_s9  ;;  %v967_v63 = vrot.slane %v9062_v32, 1 }
  0x36   :  { %1025 = vrot.lane.b32.xlu0 %v951_v34, %s8648_s9  ;;  %v530_v34 = vor.u32 %v529_v58, %v525_v15  ;;  %v971_v15 = vrot.slane %v9092_v44, 1  ;;  %v974_v58 = vrot.slane %v9117_v14, 1 }
  0x37   :  { %v969_v25 = vsel %vm888_vm0, %v967_v63, %v968_v4  ;;  %v8341_v4 = vld [vmem:[%s13263_s2 + $0x90] sm:$0xff]  }
  0x38   :  { %v535_v43 = vsel %vm439_vm1, %v530_v34, %v534_v11  ;;  %v979_v34 = vrot.slane %v9125_v38, 1  ;;  %v980_v11 = vrot.slane %v9133_v48, 1  ;;  %v611_v48 = vshll.u32 %v8878_v7, 16  ;;  %v8343_v38 = vld [vmem:[%s13263_s2 + $0xa0] sm:$0xff]  }
  0x39   :  { %1029 = vrot.lane.b32.xlu1 %v957_v10, %s8648_s9  ;;  %v546_v10 = vrot.slane %v544_v57, 1  ;;  %v556_v57 = vshll.u32 %v8799_v40, 16  ;;  %v9151_v40 = vld [vmem:[%s13261_s0 + $0x194] ss:$0 sps:$4 sm:$0x11]  }
  0x3a   :  { %834 = vrot.lane.b32.xlu0 %v511_v26, %s8649_s22  ;;  %v970_v26 = vrot.slane %v9087_v30, 1  ;;  %13515 = vst [vmem:[#allocation7_spill] sm:$0xff] %v9151_v40 }
  0x3b   :  { %v547_v47 = vsel %vm439_vm1, %v542_v9, %v546_v10  ;;  %v587_v9 = vshll.u32 %v8864_v2, 16  ;;  %v558_v10 = vrot.slane %v556_v57, 1 }
  0x3d   :  { %836 = vrot.lane.b32.xlu1 %v523_v42, %s8649_s22  ;;  %v551_v42 = vshll.u32 %v8794_v39, 16  ;;  %v972_v39 = vsel %vm888_vm0, %v970_v26, %v971_v15  ;;  %v575_v26 = vshll.u32 %v8822_v49, 16  ;;  %v978_v15 = vsel %vm888_vm0, %v976_v27, %v977_v52 }
  0x3e   :  { %1031 = vrot.lane.b32.xlu0 %v960_v29, %s8648_s9  ;;  %v568_v29 = vshll.u32 %v8841_v55, 16  ;;  %v13271_v55 = vmov 0   ;;  %v589_v57 = vrot.slane %v587_v9, 1  ;;  %v580_v52 = vshll.u32 %v8827_v50, 16 }
  0x3f   :  { %v553_v63 = vrot.slane %v551_v42, 1  ;;  %1555 = vmatprep.subr.bf16.mxu1 %v13271_v55  ;;  %v9165_v42 = vld [vmem:[%s13261_s0 + $0x18c] sm:$0xff]   ;;  %v577_v27 = vrot.slane %v575_v26, 1  ;;  %v981_v50 = vsel %vm888_vm0, %v979_v34, %v980_v11 }
  0x40   :  { %1556 = vmatpush1.bf16.msra.mxu1 %v8341_v4  ;;  %v592_v4 = vshll.u32 %v8869_v3, 16  ;;  %v9184_v3 = vld [vmem:[%s13261_s0 + $0xc0] sm:$0xff]   ;;  %v582_v11 = vrot.slane %v580_v52, 1  ;;  %v652_v52 = vshll.u32 %v8919_v41, 16 }
  0x41   :  { %1035 = vrot.lane.b32.xlu1 %v966_v5, %s8648_s9  ;;  %v561_v5 = vshrl.u32 %v8836_v54, 16  ;;  %v8342_v54 = vld [vmem:[%s13263_s2 + $0x98] sm:$0xff]   ;;  %1557 = vmatprep.subr.bf16.mxu1 %v13271_v55  ;;  %v975_v55 = vsel %vm888_vm0, %v973_v53, %v974_v58  ;;  %v613_v53 = vrot.slane %v611_v48, 1  ;;  %v13516_v58 = vmov 0  }
  0x42   :  { %1033 = vrot.lane.b32.xlu0 %v963_v45, %s8648_s9  ;;  %v565_v45 = vrot.slane %v563_v51, 1  ;;  %v585_v51 = vshrl.u32 %v8864_v2, 16  ;;  %v616_v2 = vshll.u32 %v8883_v8, 16  ;;  %v599_v8 = vshll.u32 %v8850_v59, 16 }
  0x44   :  { %1558 = vmatpush1.bf16.msra.mxu1 %v8342_v54  ;;  %v590_v9 = vor.u32 %v589_v57, %v585_v51  ;;  %v594_v54 = vrot.slane %v592_v4, 1  ;;  %v618_v26 = vrot.slane %v616_v2, 1  ;;  %v647_v57 = vshll.u32 %v8913_v0, 16 }
  0x45   :  { %1037 = vrot.lane.b32.xlu1 %v969_v25, %s8648_s9  ;;  %v570_v25 = vrot.slane %v568_v29, 1  ;;  %v573_v29 = vshrl.u32 %v8822_v49, 16  ;;  %v982_v49 = vrot.slane %v9165_v42, 1  ;;  %1559 = vmatprep.subr.bf16.mxu1 %v13516_v58 }
  0x46   :  { %838 = vrot.lane.b32.xlu0 %v535_v43, %s8649_s22  ;;  %v554_v43 = vor.u32 %v553_v63, %v549_v61  ;;  %v983_v61 = vrot.slane %v9151_v40, 1  ;;  %v609_v63 = vshrl.u32 %v8878_v7, 16 }
  0x47   :  { %v578_v34 = vor.u32 %v577_v27, %v573_v29  ;;  %v8347_v29 = vld [vmem:[%s13263_s2 + $0xb0] sm:$0xff]  }
  0x48   :  { %v559_v7 = vsel %vm439_vm1, %v554_v43, %v558_v10  ;;  %1560 = vmatpush1.bf16.msra.mxu1 %v8343_v38  ;;  %v614_v40 = vor.u32 %v613_v53, %v609_v63  ;;  %v601_v43 = vrot.slane %v599_v8, 1  ;;  %v628_v38 = vshll.u32 %v8905_v28, 16  ;;  %v8350_v8 = vld [vmem:[%s13263_s2 + $0xb8] sm:$0xff]  }
  0x49   :  { %840 = vrot.lane.b32.xlu1 %v547_v47, %s8649_s22  ;;  %v566_v47 = vor.u32 %v565_v45, %v561_v5  ;;  %v604_v5 = vshll.u32 %v8855_v60, 16  ;;  %v9197_v45 = vld [vmem:[%s13261_s0 + $0xc8] ss:$0 sps:$4 sm:$0x11]   ;;  %v597_v60 = vshrl.u32 %v8850_v59, 16  ;;  %1561 = vmatprep.subr.bf16.mxu1 %v13516_v58  ;;  %v621_v59 = vshrl.u32 %v8896_v22, 16 }
  0x4a   :  { %1039 = vrot.lane.b32.xlu0 %v972_v39, %s8648_s9  ;;  %v1298_v39 = vshll.u32 %v9184_v3, 16  ;;  %v1303_v10 = vshll.u32 %v9197_v45, 16  ;;  %v984_v27 = vsel %vm888_vm0, %v982_v49, %v983_v61  ;;  %v664_v63 = vshll.u32 %v8944_v62, 16 }
  0x4b   :  { %v571_v48 = vsel %vm439_vm1, %v566_v47, %v570_v25  ;;  %v623_v25 = vshll.u32 %v8896_v22, 16  ;;  %v606_v51 = vrot.slane %v604_v5, 1  ;;  %v645_v47 = vshrl.u32 %v8913_v0, 16  ;;  %v9225_v22 = vld [vmem:[%s13261_s0 + $0xcc] sm:$0xff]  }
  0x4c   :  { %v1300_v4 = vrot.slane %v1298_v39, 1  ;;  %v1305_v28 = vrot.slane %v1303_v10, 1  ;;  %v659_v0 = vshll.u32 %v8936_v56, 16  ;;  %v595_v49 = vsel %vm439_vm1, %v590_v9, %v594_v54 }
  0x4d   :  { %1043 = vrot.lane.b32.xlu1 %v978_v15, %s8648_s9  ;;  %v8346_v15 = vld [vmem:[%s13263_s2 + $0xa8] sm:$0xff]   ;;  %v625_v2 = vrot.slane %v623_v25, 1  ;;  %v583_v61 = vsel %vm439_vm1, %v578_v34, %v582_v11  ;;  %v619_v41 = vsel %vm439_vm1, %v614_v40, %v618_v26  ;;  %v602_v53 = vor.u32 %v601_v43, %v597_v60 }
  0x4e   :  { %1041 = vrot.lane.b32.xlu0 %v975_v55, %s8648_s9  ;;  %v1296_v55 = vshrl.u32 %v9184_v3, 16  ;;  %1562 = vmatpush1.bf16.msra.mxu1 %v8346_v15  ;;  %v630_v5 = vrot.slane %v628_v38, 1  ;;  %v649_v62 = vrot.slane %v647_v57, 1  ;;  %v1323_v39 = vrot.slane %v9184_v3, 1  ;;  %v8353_v15 = vld [vmem:[%s13263_s2 + $0x80] sm:$0xff]  }
  0x4f   :  { %1563 = vmatprep.subr.bf16.mxu1 %v13516_v58  ;;  %v657_v40 = vshrl.u32 %v8936_v56, 16  ;;  %v683_v9 = vshll.u32 %v8986_v36, 16  ;;  %v688_v54 = vshll.u32 %v8991_v37, 16  ;;  %v661_v11 = vrot.slane %v659_v0, 1  ;;  %7972 = vmatprep.subr.bf16.mxu0 %v8353_v15 }
  0x50   :  { %v1301_v34 = vor.u32 %v1300_v4, %v1296_v55  ;;  %v9249_v26 = vrot.slane %v664_v63, 1  ;;  %v2867_v60 = vrot.slane %v9225_v22, 1  ;;  %v681_v10 = vshrl.u32 %v8986_v36, 16  ;;  %v8351_v55 = vld [vmem:[%s13263_s2 + $0xc0] sm:$0xff]   ;;  %7973 = vmatpush3.bf16.msra.mxu0 %v8353_v15 }
  0x51   :  { %1045 = vrot.lane.b32.xlu1 %v981_v50, %s8648_s9  ;;  %v9237_v50 = vld [vmem:[%s13261_s0 + $0xd4] ss:$0 sps:$4 sm:$0x11]   ;;  %v671_v37 = vshll.u32 %v8955_v12, 16  ;;  %v676_v25 = vshll.u32 %v8968_v21, 16  ;;  %v607_v43 = vsel %vm439_vm1, %v602_v53, %v606_v51  ;;  %v669_v4 = vshrl.u32 %v8955_v12, 16 }
  0x52   :  { %842 = vrot.lane.b32.xlu0 %v559_v7, %s8649_s22  ;;  %v1324_v7 = vrot.slane %v9197_v45, 1  ;;  %1564 = vmatpush1.bf16.msra.mxu1 %v8347_v29  ;;  %v2868_v56 = vrot.slane %v9237_v50, 1  ;;  %v707_v38 = vshll.u32 %v8996_v1, 16  ;;  %v626_v57 = vor.u32 %v625_v2, %v621_v59  ;;  %v8363_v12 = vld [vmem:[%s13262_s1 + $0x20] ss:$0 sps:$4 sm:$0x11]  }
  0x53   :  { %1565 = vmatprep.subr.bf16.mxu1 %v13516_v58  ;;  %v685_v36 = vrot.slane %v683_v9, 1  ;;  %v9267_v29 = vrot.slane %v688_v54, 1  ;;  %v712_v21 = vshll.u32 %v9005_v46, 16  ;;  %v1306_v51 = vsel %vm439_vm1, %v1301_v34, %v1305_v28  ;;  %v8355_v28 = vld [vmem:[%s13262_s1 + $0x8] ss:$0 sps:$4 sm:$0x11]  }
  0x54   :  { %v695_v59 = vshll.u32 %v8962_v24, 16  ;;  %v650_v2 = vor.u32 %v649_v62, %v645_v47  ;;  %v673_v0 = vrot.slane %v671_v37, 1  ;;  %v9280_v63 = vrot.slane %v676_v25, 1 }
  0x55   :  { %844 = vrot.lane.b32.xlu1 %v571_v48, %s8649_s22  ;;  %v654_v48 = vrot.slane %v652_v52, 1  ;;  %v700_v52 = vshll.u32 %v8978_v31, 16  ;;  %v705_v46 = vshrl.u32 %v8996_v1, 16  ;;  %v719_v31 = vshll.u32 %v9022_v20, 16 }
  0x56   :  { %1047 = vrot.lane.b32.xlu0 %v984_v27, %s8648_s9  ;;  %1566 = vmatpush1.bf16.msra.mxu1 %v8350_v8  ;;  %v9273_v27 = vld [vmem:[%s13262_s1] sm:$0xff]   ;;  %v724_v47 = vshll.u32 %v9027_v6, 16  ;;  %v631_v53 = vsel %vm439_vm1, %v626_v57, %v630_v5  ;;  %v717_v1 = vshrl.u32 %v9022_v20, 16  ;;  %v9297_v62 = vrot.slane %v712_v21, 1  ;;  %v8357_v6 = vld [vmem:[%s13263_s2 + $0x88] sm:$0xff]  }
  0x57   :  { %1567 = vmatprep.subr.bf16.mxu1 %v13516_v58  ;;  %v4047_v8 = vshll.u32 %v9273_v27, 16  ;;  %v697_v9 = vrot.slane %v695_v59, 1  ;;  %v9299_v54 = vrot.slane %v700_v52, 1  ;;  %v4052_v34 = vshll.u32 %v8355_v28, 16  ;;  %v9308_v5 = vld [vmem:[%s13262_s1 + $0xc] sm:$0xff]   ;;  %7974 = vmatprep.subr.bf16.mxu0 %v8357_v6  ;;  %v9361_v28 = vld [vmem:[%s13262_s1 + $0x18] sm:$0xff]  }
  0x58   :  { %v655_v15 = vsel %vm439_vm1, %v650_v2, %v654_v48  ;;  %v662_v37 = vor.u32 %v661_v11, %v657_v40  ;;  %v4045_v25 = vshrl.u32 %v9273_v27, 16  ;;  %v729_v21 = vshrl.u32 %v9045_v18, 16  ;;  %7975 = vmatpush3.bf16.msra.mxu0 %v8357_v6  ;;  %v8359_v11 = vld [vmem:[%s13262_s1 + $0x14] ss:$0 sps:$4 sm:$0x11]  }
  0x59   :  { %848 = vrot.lane.b32.xlu1 %v595_v49, %s8649_s22  ;;  %v8352_v49 = vld [vmem:[%s13263_s2 + $0xc8] sm:$0xff]   ;;  %v9318_v57 = vrot.slane %v4047_v8, 1  ;;  %v1325_v48 = vsel %vm888_vm0, %v1323_v39, %v1324_v7  ;;  %v731_v40 = vshll.u32 %v9045_v18, 16  ;;  %v9331_v59 = vrot.slane %v4052_v34, 1  ;;  %v9339_v39 = vld [vmem:[%s13263_s2 + $0x1a0] sm:$0xff]   ;;  %v8370_v18 = vld [vmem:[%s13263_s2 + $0xf0] sm:$0xff]  }
  0x5a   :  { %846 = vrot.lane.b32.xlu0 %v583_v61, %s8649_s22  ;;  %v709_v61 = vrot.slane %v707_v38, 1  ;;  %1568 = vmatpush1.bf16.msra.mxu1 %v8351_v55  ;;  %v8356_v55 = vld [vmem:[%s13263_s2 + $0xd0] sm:$0xff]   ;;  %v9316_v38 = vrot.slane %v724_v47, 1  ;;  %v736_v45 = vshll.u32 %v9052_v23, 16  ;;  %v4059_v3 = vshll.u32 %v9308_v5, 16 }
  0x5b   :  { %1569 = vmatprep.subr.bf16.mxu1 %v13516_v58  ;;  %v667_v7 = vsel %vm439_vm1, %v662_v37, %v9249_v26  ;;  %v4064_v52 = vshll.u32 %v8359_v11, 16  ;;  %8040 = vmatprep.subr.bf16.mxu0 %v9339_v39  ;;  %v743_v23 = vshll.u32 %v9034_v35, 16  ;;  %v2869_v2 = vsel %vm888_vm0, %v2867_v60, %v2868_v56  ;;  %v8369_v27 = vld [vmem:[%s13262_s1 + $0x38] ss:$0 sps:$4 sm:$0x11]  }
  0x5c   :  { %v674_v26 = vor.u32 %v673_v0, %v669_v4  ;;  %v733_v50 = vrot.slane %v731_v40, 1  ;;  %v9366_v22 = vrot.slane %v736_v45, 1  ;;  %v4061_v60 = vrot.slane %v4059_v3, 1 }
  0x5d   :  { %852 = vrot.lane.b32.xlu1 %v619_v41, %s8649_s22  ;;  %v693_v41 = vshrl.u32 %v8962_v24, 16  ;;  %v710_v56 = vor.u32 %v709_v61, %v705_v46  ;;  %v9372_v4 = vrot.slane %v4064_v52, 1  ;;  %v741_v0 = vshrl.u32 %v9034_v35, 16  ;;  %v8366_v24 = vld [vmem:[%s13262_s1 + $0x2c] ss:$0 sps:$4 sm:$0x11]  }
  0x5e   :  { %850 = vrot.lane.b32.xlu0 %v607_v43, %s8649_s22  ;;  %v721_v43 = vrot.slane %v719_v31, 1  ;;  %1570 = vmatpush1.bf16.msra.mxu1 %v8352_v49  ;;  %v4057_v49 = vshrl.u32 %v9308_v5, 16  ;;  %v4071_v31 = vshll.u32 %v9361_v28, 16  ;;  %v745_v47 = vrot.slane %v743_v23, 1  ;;  %v9443_v23 = vld [vmem:[%s13262_s1 + $0x3c] sm:$0xff]  }
  0x5f   :  { %1571 = vmatprep.subr.bf16.mxu1 %v13516_v58  ;;  %v4076_v8 = vshll.u32 %v8363_v12, 16  ;;  %v755_v34 = vshll.u32 %v9062_v32, 16  ;;  %v679_v46 = vsel %vm439_vm1, %v674_v26, %v9280_v63  ;;  %v698_v61 = vor.u32 %v697_v9, %v693_v41  ;;  %v8372_v5 = vld [vmem:[%s13262_s1 + $0x44] ss:$0 sps:$4 sm:$0x11]  }
  0x60   :  { %v4069_v6 = vshrl.u32 %v9361_v28, 16  ;;  %v4073_v37 = vrot.slane %v4071_v31, 1  ;;  %v715_v63 = vsel %vm439_vm1, %v710_v56, %v9297_v62  ;;  %v722_v41 = vor.u32 %v721_v43, %v717_v1  ;;  %v9413_v62 = vld [vmem:[%s13262_s1 + $0x30] sm:$0xff]  }
  0x61   :  { %1319 = vrot.lane.b32.xlu1 %v1306_v51, %s8649_s22  ;;  %v686_v51 = vor.u32 %v685_v36, %v681_v10  ;;  %v8360_v10 = vld [vmem:[%s13263_s2 + $0xd8] sm:$0xff]   ;;  %v748_v36 = vshll.u32 %v9039_v13, 16  ;;  %v757_v11 = vrot.slane %v755_v34, 1  ;;  %v703_v20 = vsel %vm439_vm1, %v698_v61, %v9299_v54 }
  0x62   :  { %854 = vrot.lane.b32.xlu0 %v631_v53, %s8649_s22  ;;  %1572 = vmatpush1.bf16.msra.mxu1 %v8356_v55  ;;  %v753_v55 = vshrl.u32 %v9062_v32, 16  ;;  %v8367_v32 = vld [vmem:[%s13263_s2 + $0xe8] sm:$0xff]   ;;  %v4050_v1 = vor.u32 %v9318_v57, %v4045_v25  ;;  %v767_v43 = vshll.u32 %v9087_v30, 16  ;;  %v772_v45 = vshll.u32 %v9092_v44, 16 }
  0x63   :  { %v691_v13 = vsel %vm439_vm1, %v686_v51, %v9267_v29  ;;  %1573 = vmatprep.subr.bf16.mxu1 %v13516_v58  ;;  %v9379_v29 = vld [vmem:[%s13262_s1 + $0x24] sm:$0xff]   ;;  %v9382_v53 = vrot.slane %v748_v36, 1  ;;  %v4088_v51 = vshll.u32 %v8366_v24, 16  ;;  %v734_v3 = vor.u32 %v733_v50, %v729_v21 }
  0x64   :  { %v4081_v9 = vshrl.u32 %v9379_v29, 16  ;;  %v4083_v40 = vshll.u32 %v9379_v29, 16  ;;  %v765_v54 = vshrl.u32 %v9087_v30, 16  ;;  %v727_v25 = vsel %vm439_vm1, %v722_v41, %v9316_v38  ;;  %v8376_v29 = vld [vmem:[%s13263_s2 + $0x100] sm:$0xff]  }
  0x65   :  { %858 = vrot.lane.b32.xlu1 %v655_v15, %s8649_s22  ;;  %v8364_v15 = vld [vmem:[%s13263_s2 + $0xe0] sm:$0xff]   ;;  %v4095_v44 = vshll.u32 %v9413_v62, 16  ;;  %v9437_v57 = vrot.slane %v4088_v51, 1  ;;  %v4100_v21 = vshll.u32 %v8369_v27, 16  ;;  %v4055_v38 = vsel %vm439_vm1, %v4050_v1, %v9331_v59 }
  0x66   :  { %1329 = vrot.lane.b32.xlu0 %v1325_v48, %s8648_s9  ;;  %1574 = vmatpush1.bf16.msra.mxu1 %v8360_v10  ;;  %v760_v48 = vshll.u32 %v9067_v33, 16  ;;  %v4078_v33 = vrot.slane %v4076_v8, 1  ;;  %v4085_v52 = vrot.slane %v4083_v40, 1  ;;  %v779_v10 = vshll.u32 %v9110_v17, 16 }
  0x67   :  { %1575 = vmatprep.subr.bf16.mxu1 %v13516_v58  ;;  %v4062_v36 = vor.u32 %v4061_v60, %v4057_v49  ;;  %v9449_v26 = vrot.slane %v772_v45, 1  ;;  %v739_v28 = vsel %vm439_vm1, %v734_v3, %v9366_v22  ;;  %v777_v50 = vshrl.u32 %v9110_v17, 16 }
  0x68   :  { %v784_v59 = vshll.u32 %v9117_v14, 16  ;;  %v746_v60 = vor.u32 %v745_v47, %v741_v0  ;;  %v4074_v12 = vor.u32 %v4073_v37, %v4069_v6  ;;  %v4097_v56 = vrot.slane %v4095_v44, 1  ;;  %v8373_v0 = vld [vmem:[%s13263_s2 + $0xf8] sm:$0xff]   ;;  %v8375_v37 = vld [vmem:[%s13262_s1 + $0x50] ss:$0 sps:$4 sm:$0x11]  }
  0x69   :  { %860 = vrot.lane.b32.xlu1 %v667_v7, %s8649_s22  ;;  %v762_v7 = vrot.slane %v760_v48, 1  ;;  %v4107_v22 = vshll.u32 %v9443_v23, 16  ;;  %v9467_v31 = vrot.slane %v4100_v21, 1  ;;  %v9469_v8 = vrot.slane %v779_v10, 1 }
  0x6a   :  { %2873 = vrot.lane.b32.xlu0 %v2869_v2, %s8648_s9  ;;  %1576 = vmatpush1.bf16.msra.mxu1 %v8364_v15  ;;  %v769_v2 = vrot.slane %v767_v43, 1  ;;  %v4105_v14 = vshrl.u32 %v9443_v23, 16  ;;  %v4112_v34 = vshll.u32 %v8372_v5, 16  ;;  %v4067_v61 = vsel %vm439_vm1, %v4062_v36, %v9372_v4  ;;  %v9489_v4 = vld [vmem:[%s13262_s1 + $0x48] sm:$0xff]   ;;  %v13518_v43 = vld [vmem:[#allocation6_spill] sm:$0xff] }
  0x6b   :  { %1577 = vmatprep.subr.bf16.mxu1 %v13516_v58  ;;  %v758_v35 = vor.u32 %v757_v11, %v753_v55  ;;  %v791_v47 = vshll.u32 %v9099_v19, 16  ;;  %v9483_v6 = vrot.slane %v784_v59, 1  ;;  %v796_v15 = vshll.u32 %v9105_v16, 16  ;;  %v8378_v21 = vld [vmem:[%s13262_s1 + $0x5c] ss:$0 sps:$4 sm:$0x11]  }
  0x6c   :  { %v751_v48 = vsel %vm439_vm1, %v746_v60, %v9382_v53  ;;  %v4079_v24 = vsel %vm439_vm1, %v4074_v12, %v4078_v33  ;;  %v789_v16 = vshrl.u32 %v9099_v19, 16  ;;  %v4086_v41 = vor.u32 %v4085_v52, %v4081_v9  ;;  %v9510_v53 = vld [vmem:[%s13262_s1 + $0x54] sm:$0xff]   ;;  %v9613_v23 = vld [vmem:[%s13261_s0 + $0x1a0] ss:$0 sps:$4 sm:$0x11]  }
  0x6d   :  { %864 = vrot.lane.b32.xlu1 %v691_v13, %s8649_s22  ;;  %v4093_v13 = vshrl.u32 %v9413_v62, 16  ;;  %v9504_v40 = vrot.slane %v4112_v34, 1  ;;  %v4124_v11 = vshll.u32 %v8375_v37, 16  ;;  %v763_v51 = vsel %vm439_vm1, %v758_v35, %v762_v7  ;;  %v13517_v9 = vld [vmem:[#allocation5_spill] sm:$0xff] }
  0x6e   :  { %862 = vrot.lane.b32.xlu0 %v679_v46, %s8649_s22  ;;  %1578 = vmatpush1.bf16.msra.mxu1 %v8367_v32  ;;  %v4119_v32 = vshll.u32 %v9489_v4, 16  ;;  %v803_v1 = vshll.u32 %v13517_v9, 16  ;;  %v808_v45 = vshll.u32 %v13518_v43, 16  ;;  %v9523_v3 = vrot.slane %v796_v15, 1 }
  0x6f   :  { %1579 = vmatprep.subr.bf16.mxu1 %v13516_v58  ;;  %v4117_v52 = vshrl.u32 %v9489_v4, 16  ;;  %v801_v27 = vshrl.u32 %v13517_v9, 16  ;;  %v770_v44 = vor.u32 %v769_v2, %v765_v54  ;;  %v4129_v10 = vshrl.u32 %v9510_v53, 16  ;;  %v9554_v2 = vld [vmem:[%s13262_s1 + $0x60] sm:$0xff]   ;;  %v9652_v9 = vld [vmem:[%s13262_s1 + $0x90] sm:$0xff]  }
  0x70   :  { %v4121_v7 = vrot.slane %v4119_v32, 1  ;;  %v4091_v30 = vsel %vm439_vm1, %v4086_v41, %v9437_v57  ;;  %v4098_v54 = vor.u32 %v4097_v56, %v4093_v13  ;;  %v815_v36 = vshll.u32 %v9165_v42, 16  ;;  %v13519_v57 = vld [vmem:[#allocation7_spill] sm:$0xff]  ;;  %v9567_v13 = vld [vmem:[%s13261_s0 + $0x198] sm:$0xff]  }
  0x71   :  { %868 = vrot.lane.b32.xlu1 %v715_v63, %s8649_s22  ;;  %v4109_v63 = vrot.slane %v4107_v22, 1  ;;  %v805_v59 = vrot.slane %v803_v1, 1  ;;  %v9558_v5 = vrot.slane %v808_v45, 1  ;;  %v4136_v60 = vshll.u32 %v8378_v21, 16  ;;  %v9603_v41 = vld [vmem:[%s13262_s1 + $0x78] sm:$0xff]  }
  0x72   :  { %866 = vrot.lane.b32.xlu0 %v703_v20, %s8649_s22  ;;  %1580 = vmatpush1.bf16.msra.mxu1 %v8370_v18  ;;  %v793_v20 = vrot.slane %v791_v47, 1  ;;  %v9534_v18 = vrot.slane %v4124_v11, 1  ;;  %v820_v12 = vshll.u32 %v13519_v57, 16  ;;  %v813_v62 = vshrl.u32 %v9165_v42, 16  ;;  %v9584_v47 = vld [vmem:[%s13262_s1 + $0x6c] sm:$0xff]  }
  0x73   :  { %1581 = vmatprep.subr.bf16.mxu1 %v13516_v58  ;;  %v775_v22 = vsel %vm439_vm1, %v770_v44, %v9449_v26  ;;  %v782_v34 = vor.u32 %v9469_v8, %v777_v50  ;;  %v9576_v35 = vrot.slane %v815_v36, 1  ;;  %v9587_v15 = vrot.slane %v4136_v60, 1  ;;  %v9662_v60 = vld [vmem:[%s13262_s1 + $0x84] sm:$0xff]  }
  0x74   :  { %v9589_v26 = vrot.slane %v820_v12, 1  ;;  %v4141_v17 = vshrl.u32 %v9554_v2, 16  ;;  %v4143_v50 = vshll.u32 %v9554_v2, 16  ;;  %v4103_v4 = vsel %vm439_vm1, %v4098_v54, %v9467_v31 }
  0x75   :  { %870 = vrot.lane.b32.xlu1 %v727_v25, %s8649_s22  ;;  %v4110_v37 = vor.u32 %v4109_v63, %v4105_v14  ;;  %v794_v31 = vor.u32 %v793_v20, %v789_v16  ;;  %v1310_v14 = vshll.u32 %v9567_v13, 16  ;;  %v4153_v63 = vshrl.u32 %v9584_v47, 16 }
  0x76   :  { %4428 = vrot.lane.b32.xlu0 %v4055_v38, %s8648_s9  ;;  %1582 = vmatpush1.bf16.msra.mxu1 %v8373_v0  ;;  %v4131_v38 = vshll.u32 %v9510_v53, 16  ;;  %v8381_v0 = vld [vmem:[%s13262_s1 + $0x68] ss:$0 sps:$4 sm:$0x11]   ;;  %v4145_v32 = vrot.slane %v4143_v50, 1  ;;  %v4122_v19 = vor.u32 %v4121_v7, %v4117_v52  ;;  %v4155_v20 = vshll.u32 %v9584_v47, 16 }
  0x77   :  { %v9461_v49 = vpop.permute.xlu1 %989  ;;  %1583 = vmatprep.subr.bf16.mxu1 %v13516_v58  ;;  %v1315_v1 = vshll.u32 %v9613_v23, 16  ;;  %v4115_v45 = vsel %vm439_vm1, %v4110_v37, %v9504_v40  ;;  %v799_v52 = vsel %vm439_vm1, %v794_v31, %v9523_v3  ;;  %v806_v7 = vor.u32 %v805_v59, %v801_v27 }
  0x78   :  { %v9472_v46 = vpop.permute.xlu0 %985  ;;  %v4157_v44 = vrot.slane %v4155_v20, 1  ;;  %v4127_v40 = vsel %vm439_vm1, %v4122_v19, %v9534_v18  ;;  %v4165_v54 = vshrl.u32 %v9603_v41, 16  ;;  %v4167_v36 = vshll.u32 %v9603_v41, 16 }
  0x79   :  { %7976 = vmatprep.mubr.msk.bf16.mxu0 %vm1490_vm2, %v9472_v46  ;;  %872 = vrot.lane.b32.xlu1 %v739_v28, %s8649_s22  ;;  %v1317_v21 = vrot.slane %v1315_v1, 1  ;;  %v1326_v18 = vrot.slane %v9567_v13, 1  ;;  %v1327_v59 = vrot.slane %v9613_v23, 1  ;;  %v4189_v53 = vshrl.u32 %v9652_v9, 16 }
  0x7a   :  { %4430 = vrot.lane.b32.xlu0 %v4067_v61, %s8648_s9  ;;  %1584 = vmatpush1.bf16.msra.mxu1 %v8376_v29  ;;  %v4133_v61 = vrot.slane %v4131_v38, 1  ;;  %v1312_v29 = vrot.slane %v1310_v14, 1  ;;  %v8387_v38 = vld [vmem:[%s13262_s1 + $0x80] ss:$0 sps:$4 sm:$0x11]   ;;  %v811_v50 = vsel %vm439_vm1, %v806_v7, %v9558_v5  ;;  %v9696_v5 = vld [vmem:[%s13262_s1 + $0xa8] sm:$0xff]  }
  0x7b   :  { %v9494_v55 = vpop.permute.xlu1 %991  ;;  %1585 = vmatprep.subr.bf16.mxu1 %v13516_v58  ;;  %v4172_v27 = vshll.u32 %v8387_v38, 16  ;;  %v8391_v14 = vld [vmem:[%s13262_s1 + $0x8c] ss:$0 sps:$4 sm:$0x11]   ;;  %v4213_v2 = vshrl.u32 %v9696_v5, 16  ;;  %v9729_v7 = vld [vmem:[%s13262_s1 + $0xd8] sm:$0xff]   ;;  %v4158_v38 = vor.u32 %v4157_v44, %v4153_v63 }
  0x7c   :  { %v9512_v33 = vpop.permute.xlu0 %987  ;;  %v4134_v3 = vor.u32 %v4133_v61, %v4129_v10  ;;  %v4191_v10 = vshll.u32 %v9652_v9, 16  ;;  %v8389_v61 = vld [vmem:[%s13262_s1 + $0x98] ss:$0 sps:$4 sm:$0x11]   ;;  %v1328_v9 = vsel %vm888_vm0, %v1326_v18, %v1327_v59  ;;  %v9822_v18 = vld [vmem:[%s13262_s1 + $0x108] sm:$0xff]  }
  0x7d   :  { %7977 = vmatmul.mubr.msk.bf16.vlgmr.msra.gmra.mrb[0].mxu0 %vm1490_vm2, %v9512_v33  ;;  %874 = vrot.lane.b32.xlu1 %v751_v48, %s8649_s22  ;;  %v4148_v48 = vshll.u32 %v8381_v0, 16  ;;  %v4196_v31 = vshll.u32 %v8389_v61, 16  ;;  %v9749_v63 = vld [vmem:[%s13262_s1 + $0xb4] sm:$0xff]  }
  0x7e   :  { %8041 = vmatpush3.bf16.msra.mxu0 %v9339_v39  ;;  %7980 = vmatprep.mubr.msk.bf16.mxu0 %vm1490_vm2, %v9461_v49  ;;  %v8379_v39 = vld [vmem:[%s13263_s2 + $0x108] sm:$0xff]   ;;  %v4193_v37 = vrot.slane %v4191_v10, 1 }
  0x7f   :  { %v9528_v25 = vpop.permute.xlu1 %995  ;;  %4432 = vrot.lane.b32.xlu0 %v4079_v24, %s8648_s9  ;;  %1586 = vmatpush1.bf16.msra.mxu1 %v8379_v39  ;;  %v1308_v24 = vshrl.u32 %v9567_v13, 16  ;;  %v9623_v16 = vrot.slane %v4148_v48, 1  ;;  %v4177_v48 = vshrl.u32 %v9662_v60, 16  ;;  %v9707_v20 = vrot.slane %v4196_v31, 1  ;;  %v8511_v10 = vld [vmem:[%s13261_s0 + $0xc] sm:$0xff]  }
  0x80   :  { %v9556_v28 = vpop.permute.xlu0 %993 }
  0x81   :  { %876 = vrot.lane.b32.xlu1 %v763_v51, %s8649_s22  ;;  %v787_v51 = vsel %vm439_vm1, %v782_v34, %v9483_v6  ;;  %v8385_v6 = vld [vmem:[%s13262_s1 + $0x74] ss:$0 sps:$4 sm:$0x11]   ;;  %v9673_v34 = vrot.slane %v4172_v27, 1  ;;  %v1313_v19 = vor.u32 %v1312_v29, %v1308_v24  ;;  %v9724_v29 = vld [vmem:[%s13262_s1 + $0x9c] sm:$0xff]  }
  0x82   :  { %v4203_v47 = vshll.u32 %v9724_v29, 16 }
  0x83   :  { %v9569_v56 = vpop.permute.xlu1 %999  ;;  %4434 = vrot.lane.b32.xlu0 %v4091_v30, %s8648_s9  ;;  %v4160_v30 = vshll.u32 %v8385_v6, 16  ;;  %v8393_v6 = vld [vmem:[%s13262_s1 + $0xb0] ss:$0 sps:$4 sm:$0x11]  }
  0x84   :  { %v9593_v8 = vpop.permute.xlu0 %997 }
  0x85   :  { %7981 = vmatmul.mubr.msk.bf16.gmra.mrb[4].mxu0 %vm1490_vm2, %v9494_v55  ;;  %878 = vrot.lane.b32.xlu1 %v775_v22, %s8649_s22  ;;  %v9666_v12 = vrot.slane %v4160_v30, 1  ;;  %v4169_v22 = vrot.slane %v4167_v36, 1  ;;  %v8395_v30 = vld [vmem:[%s13262_s1 + $0xa4] ss:$0 sps:$4 sm:$0x11]  }
  0x86   :  { %7984 = vmatprep.mubr.msk.bf16.mxu0 %vm1490_vm2, %v9556_v28 }
  0x87   :  { %v9617_v11 = vpop.permute.xlu1 %1003  ;;  %4436 = vrot.lane.b32.xlu0 %v4103_v4, %s8648_s9  ;;  %v818_v4 = vor.u32 %v9576_v35, %v813_v62  ;;  %v4139_v62 = vsel %vm439_vm1, %v4134_v3, %v9587_v15  ;;  %v4146_v35 = vor.u32 %v4145_v32, %v4141_v17  ;;  %v4215_v17 = vshll.u32 %v9696_v5, 16 }
  0x88   :  { %v9628_v43 = vpop.permute.xlu0 %1001  ;;  %v4220_v32 = vshll.u32 %v8393_v6, 16  ;;  %v1318_v3 = vsel %vm439_vm1, %v1313_v19, %v1317_v21  ;;  %v4170_v61 = vor.u32 %v4169_v22, %v4165_v54  ;;  %v4163_v41 = vsel %vm439_vm1, %v4158_v38, %v9666_v12  ;;  %v9785_v19 = vld [vmem:[%s13262_s1 + $0xf0] sm:$0xff]   ;;  %v8401_v38 = vld [vmem:[%s13262_s1 + $0xf8] ss:$0 sps:$4 sm:$0x11]  }
  0x89   :  { %880 = vrot.lane.b32.xlu1 %v787_v51, %s8649_s22  ;;  %v4179_v51 = vshll.u32 %v9662_v60, 16  ;;  %v823_v15 = vsel %vm439_vm1, %v818_v4, %v9589_v26  ;;  %v4151_v26 = vsel %vm439_vm1, %v4146_v35, %v9623_v16  ;;  %v4201_v16 = vshrl.u32 %v9724_v29, 16  ;;  %v8397_v4 = vld [vmem:[%s13262_s1 + $0xe0] ss:$0 sps:$4 sm:$0x11]   ;;  %v8512_v60 = vld [vmem:[%s13261_s0 + $0x18] sm:$0xff]  }
  0x8a   :  { %v9742_v27 = vrot.slane %v4220_v32, 1  ;;  %v4225_v35 = vshrl.u32 %v9749_v63, 16  ;;  %v4194_v12 = vor.u32 %v4193_v37, %v4189_v53  ;;  %v4227_v32 = vshll.u32 %v9749_v63, 16 }
  0x8b   :  { %v9643_v39 = vpop.permute.xlu1 %1007  ;;  %4438 = vrot.lane.b32.xlu0 %v4115_v45, %s8648_s9  ;;  %v4181_v1 = vrot.slane %v4179_v51, 1  ;;  %v4184_v45 = vshll.u32 %v8391_v14, 16  ;;  %v4205_v14 = vrot.slane %v4203_v47, 1  ;;  %v4237_v51 = vshrl.u32 %v9729_v7, 16 }
  0x8c   :  { %v9664_v57 = vpop.permute.xlu0 %1005  ;;  %v4229_v37 = vrot.slane %v4227_v32, 1  ;;  %v4261_v23 = vshrl.u32 %v9785_v19, 16  ;;  %v4263_v13 = vshll.u32 %v9785_v19, 16 }
  0x8d   :  { %7985 = vmatmul.mubr.msk.bf16.gmra.mrb[8].mxu0 %vm1490_vm2, %v9528_v25  ;;  %882 = vrot.lane.b32.xlu1 %v799_v52, %s8649_s22  ;;  %v9719_v24 = vrot.slane %v4184_v45, 1 }
  0x8e   :  { %7988 = vmatprep.mubr.msk.bf16.mxu0 %vm1490_vm2, %v9593_v8 }
  0x8f   :  { %v9678_v0 = vpop.permute.xlu1 %1011  ;;  %4440 = vrot.lane.b32.xlu0 %v4127_v40, %s8648_s9  ;;  %v4217_v40 = vrot.slane %v4215_v17, 1  ;;  %v8399_v17 = vld [vmem:[%s13262_s1 + $0xbc] ss:$0 sps:$4 sm:$0x11]  }
  0x90   :  { %v9698_v42 = vpop.permute.xlu0 %1009 }
  0x91   :  { %884 = vrot.lane.b32.xlu1 %v811_v50, %s8649_s22  ;;  %v4208_v50 = vshll.u32 %v8395_v30, 16  ;;  %v4182_v30 = vor.u32 %v4181_v1, %v4177_v48  ;;  %v4199_v1 = vsel %vm439_vm1, %v4194_v12, %v9707_v20  ;;  %v4218_v63 = vor.u32 %v4217_v40, %v4213_v2  ;;  %v8405_v12 = vld [vmem:[%s13262_s1 + $0x110] ss:$0 sps:$4 sm:$0x11]  }
  0x92   :  { %v4206_v2 = vor.u32 %v4205_v14, %v4201_v16  ;;  %v8406_v16 = vld [vmem:[%s13262_s1 + $0xfc] sm:$0xff]   ;;  %v8407_v14 = vld [vmem:[%s13262_s1 + $0x104] ss:$0 sps:$4 sm:$0x11]  }
  0x93   :  { %v9712_v52 = vpop.permute.xlu1 %1013  ;;  %4442 = vrot.lane.b32.xlu0 %v4139_v62, %s8648_s9  ;;  %v4239_v62 = vshll.u32 %v9729_v7, 16  ;;  %v9780_v22 = vrot.slane %v4208_v50, 1  ;;  %v4175_v7 = vsel %vm439_vm1, %v4170_v61, %v9673_v34  ;;  %v9813_v34 = vld [vmem:[%s13262_s1 + $0xe4] sm:$0xff]   ;;  %v4265_v61 = vrot.slane %v4263_v13, 1 }
  0x94   :  { %v827_v36 = vpop.permute.xlu0 %826  ;;  %v4249_v47 = vshrl.u32 %v9813_v34, 16  ;;  %v8403_v50 = vld [vmem:[%s13262_s1 + $0xec] ss:$0 sps:$4 sm:$0x11]   ;;  %v4187_v5 = vsel %vm439_vm1, %v4182_v30, %v9719_v24  ;;  %v4223_v24 = vsel %vm439_vm1, %v4218_v63, %v9742_v27  ;;  %v8408_v27 = vld [vmem:[%s13263_s2 + $0x110] sm:$0xff]   ;;  %v4275_v30 = vshll.u32 %v8406_v16, 16 }
  0x95   :  { %7989 = vmatmul.mubr.msk.bf16.gmra.mrb[12].mxu0 %vm1490_vm2, %v9569_v56  ;;  %886 = vrot.lane.b32.xlu1 %v823_v15, %s8649_s22  ;;  %v9753_v44 = vsel %vm1146_vm3, %v827_v36, %v9512_v33  ;;  %v9759_v21 = vsel %vm1049_vm4, %v8511_v10, %v827_v36  ;;  %v4241_v6 = vrot.slane %v4239_v62, 1  ;;  %v4244_v15 = vshll.u32 %v8397_v4, 16  ;;  %v8410_v63 = vld [vmem:[%s13262_s1 + $0x128] ss:$0 sps:$4 sm:$0x11]  }
  0x96   :  { %7992 = vmatprep.mubr.msk.bf16.mxu0 %vm1490_vm2, %v9628_v43  ;;  %1587 = vmatprep.mubr.bf16.mxu1 %v9753_v44  ;;  %v4232_v36 = vshll.u32 %v8399_v17, 16  ;;  %v4251_v4 = vshll.u32 %v9813_v34, 16  ;;  %v4285_v62 = vshrl.u32 %v9822_v18, 16  ;;  %v4292_v34 = vshll.u32 %v8405_v12, 16 }
  0x97   :  { %4444 = vrot.lane.b32.xlu0 %v4151_v26, %s8648_s9  ;;  %v829_v31 = vpop.permute.xlu1 %828  ;;  %1588 = vmatmul.mubr.bf16.vlgmr.msra.gmra.mrb[0].mxu1 %v9759_v21  ;;  %v4246_v53 = vrot.slane %v4244_v15, 1  ;;  %v4287_v15 = vshll.u32 %v9822_v18, 16  ;;  %v4242_v29 = vor.u32 %v4241_v6, %v4237_v51  ;;  %v4211_v51 = vsel %vm439_vm1, %v4206_v2, %v9780_v22 }
  0x98   :  { %v9778_v54 = vsel %vm1146_vm3, %v829_v31, %v9461_v49  ;;  %v9787_v45 = vpop.permute.xlu0 %1015  ;;  %v9833_v48 = vsel %vm1049_vm4, %v8512_v60, %v829_v31  ;;  %v4234_v10 = vrot.slane %v4232_v36, 1  ;;  %v4253_v40 = vrot.slane %v4251_v4, 1  ;;  %7904 = vmatprep.subr.bf16.mxu1 %v8408_v27 }
  0x99   :  { %13520 = vst [vmem:[#allocation5_spill] sm:$0xff] %v9778_v54  ;;  %1321 = vrot.lane.b32.xlu1 %v1318_v3, %s8649_s22  ;;  %1595 = vmatprep.mubr.bf16.mxu1 %v9778_v54  ;;  %13522 = vst [vmem:[#allocation7_spill] sm:$0xff] %v9833_v48  ;;  %v4268_v3 = vshll.u32 %v8401_v38, 16  ;;  %v4289_v38 = vrot.slane %v4287_v15, 1  ;;  %v4273_v6 = vshrl.u32 %v8406_v16, 16  ;;  %v4266_v13 = vor.u32 %v4265_v61, %v4261_v23  ;;  %v8411_v23 = vld [vmem:[%s13262_s1 + $0x114] sm:$0xff]  }
  0x9a   :  { %v4294_v18 = vrot.slane %v4292_v34, 1  ;;  %v4280_v60 = vshll.u32 %v8407_v14, 16  ;;  %v4247_v22 = vsel %vm439_vm1, %v4242_v29, %v4246_v53  ;;  %7905 = vmatpush3.bf16.msra.mxu1 %v8408_v27  ;;  %v4316_v12 = vshll.u32 %v8410_v63, 16  ;;  %v8412_v15 = vld [vmem:[%s13262_s1 + $0x11c] ss:$0 sps:$4 sm:$0x11]  }
  0x9b   :  { %4446 = vrot.lane.b32.xlu0 %v4163_v41, %s8648_s9  ;;  %v9800_v26 = vpop.permute.xlu1 %1019  ;;  %v4270_v31 = vrot.slane %v4268_v3, 1  ;;  %v4256_v41 = vshll.u32 %v8403_v50, 16  ;;  %v8409_v3 = vld [vmem:[%s13262_s1 + $0x120] sm:$0xff]   ;;  %v4254_v50 = vor.u32 %v4253_v40, %v4249_v47  ;;  %v8415_v47 = vld [vmem:[%s13262_s1 + $0x12c] sm:$0xff]   ;;  %v4299_v29 = vshll.u32 %v8411_v23, 16 }
  0x9c   :  { %v9824_v59 = vpop.permute.xlu0 %1017  ;;  %v4282_v4 = vrot.slane %v4280_v60, 1  ;;  %v4290_v14 = vor.u32 %v4289_v38, %v4285_v62  ;;  %v4318_v27 = vrot.slane %v4316_v12, 1  ;;  %v8514_v62 = vld [vmem:[%s13261_s0 + $0x30] sm:$0xff]  }
  0x9d   :  { %13521 = vst [vmem:[#allocation6_spill] sm:$0xff] %v9824_v59  ;;  %7993 = vmatmul.mubr.msk.bf16.gmra.mrb[16].mxu0 %vm1490_vm2, %v9617_v11  ;;  %4448 = vrot.lane.b32.xlu1 %v4175_v7, %s8648_s9  ;;  %v4230_v7 = vor.u32 %v4229_v37, %v4225_v35  ;;  %v8513_v35 = vld [vmem:[%s13261_s0 + $0x24] sm:$0xff]   ;;  %v4271_v40 = vsel %vm439_vm1, %v4266_v13, %v4270_v31  ;;  %v8414_v13 = vld [vmem:[%s13262_s1 + $0x140] ss:$0 sps:$4 sm:$0x11]  }
  0x9e   :  { %7996 = vmatprep.mubr.msk.bf16.mxu0 %vm1490_vm2, %v9664_v57 }
  0x9f   :  { %1331 = vrot.lane.b32.xlu0 %v1328_v9, %s8648_s9  ;;  %v9847_v20 = vpop.permute.xlu1 %1021  ;;  %1596 = vmatmul.mubr.bf16.gmra.mrb[4].mxu1 %v9833_v48  ;;  %v4258_v9 = vrot.slane %v4256_v41, 1  ;;  %v4235_v61 = vsel %vm439_vm1, %v4230_v7, %v4234_v10  ;;  %v4309_v41 = vshrl.u32 %v8409_v3, 16 }
  0xa0   :  { %v831_v19 = vpop.permute.xlu0 %830 }
  0xa1   :  { %4452 = vrot.lane.b32.xlu1 %v4199_v1, %s8648_s9  ;;  %v9862_v17 = vsel %vm1146_vm3, %v831_v19, %v9494_v55  ;;  %v9890_v37 = vsel %vm1049_vm4, %v8513_v35, %v831_v19  ;;  %v4277_v1 = vrot.slane %v4275_v30, 1  ;;  %v4311_v19 = vshll.u32 %v8409_v3, 16 }
  0xa2   :  { %13523 = vst [vmem:[#allocation8_spill] sm:$0xff] %v9862_v17  ;;  %1603 = vmatprep.mubr.bf16.mxu1 %v9862_v17  ;;  %13524 = vst [vmem:[#allocation9_spill] sm:$0xff] %v9890_v37  ;;  %v4301_v30 = vrot.slane %v4299_v29, 1  ;;  %v4304_v35 = vshll.u32 %v8412_v15, 16  ;;  %v4259_v31 = vsel %vm439_vm1, %v4254_v50, %v4258_v9  ;;  %v4323_v3 = vshll.u32 %v8415_v47, 16  ;;  %v8418_v29 = vld [vmem:[%s13262_s1 + $0x150] sm:$0xff]  }
  0xa3   :  { %4450 = vrot.lane.b32.xlu0 %v4187_v5, %s8648_s9  ;;  %v9874_v32 = vpop.permute.xlu1 %832  ;;  %v8413_v5 = vld [vmem:[%s13262_s1 + $0x138] sm:$0xff]   ;;  %v4278_v7 = vor.u32 %v4277_v1, %v4273_v6  ;;  %v4313_v34 = vrot.slane %v4311_v19, 1  ;;  %v4295_v1 = vsel %vm439_vm1, %v4290_v14, %v4294_v18  ;;  %v8416_v50 = vld [vmem:[%s13262_s1 + $0x134] ss:$0 sps:$4 sm:$0x11]  }
  0xa4   :  { %v9881_v36 = vpop.permute.xlu0 %1023  ;;  %v9915_v2 = vsel %vm1146_vm3, %v9874_v32, %v9556_v28  ;;  %v4333_v16 = vshrl.u32 %v8413_v5, 16  ;;  %v4335_v60 = vshll.u32 %v8413_v5, 16  ;;  %v9943_v38 = vsel %vm1049_vm4, %v8514_v62, %v9874_v32  ;;  %v8417_v32 = vld [vmem:[%s13263_s2 + $0x1a8] sm:$0xff]   ;;  %v8419_v14 = vld [vmem:[%s13262_s1 + $0x158] ss:$0 sps:$4 sm:$0x11]  }
  0xa5   :  { %7997 = vmatmul.mubr.msk.bf16.gmra.mrb[20].mxu0 %vm1490_vm2, %v9643_v39  ;;  %4456 = vrot.lane.b32.xlu1 %v4223_v24, %s8648_s9  ;;  %13525 = vst [vmem:[#allocation10_spill] sm:$0xff] %v9915_v2  ;;  %v4297_v24 = vshrl.u32 %v8411_v23, 16  ;;  %13526 = vst [vmem:[#allocation11_spill] sm:$0xff] %v9943_v38  ;;  %v4306_v9 = vrot.slane %v4304_v35, 1  ;;  %v4314_v23 = vor.u32 %v4313_v34, %v4309_v41  ;;  %v4325_v19 = vrot.slane %v4323_v3, 1 }
  0xa6   :  { %8000 = vmatprep.mubr.msk.bf16.mxu0 %vm1490_vm2, %v9698_v42  ;;  %v4337_v6 = vrot.slane %v4335_v60, 1  ;;  %v4283_v5 = vsel %vm439_vm1, %v4278_v7, %v4282_v4  ;;  %8042 = vmatprep.subr.bf16.mxu0 %v8417_v32  ;;  %v4357_v60 = vshrl.u32 %v8418_v29, 16 }
  0xa7   :  { %4454 = vrot.lane.b32.xlu0 %v4211_v51, %s8648_s9  ;;  %v9905_v53 = vpop.permute.xlu1 %1027  ;;  %1604 = vmatmul.mubr.bf16.gmra.mrb[8].mxu1 %v9890_v37  ;;  %v4302_v12 = vor.u32 %v4301_v30, %v4297_v24  ;;  %v4319_v7 = vsel %vm439_vm1, %v4314_v23, %v4318_v27  ;;  %v8420_v30 = vld [vmem:[%s13262_s1 + $0x144] sm:$0xff]   ;;  %v4364_v27 = vshll.u32 %v8419_v14, 16 }
  0xa8   :  { %1611 = vmatprep.mubr.bf16.mxu1 %v9915_v2  ;;  %v9921_v10 = vpop.permute.xlu0 %1025  ;;  %v4338_v4 = vor.u32 %v4337_v6, %v4333_v16  ;;  %v8515_v16 = vld [vmem:[%s13261_s0 + $0x3c] sm:$0xff]   ;;  %8043 = vmatpush3.bf16.msra.mxu0 %v8417_v32  ;;  %v4345_v62 = vshrl.u32 %v8420_v30, 16  ;;  %v4347_v6 = vshll.u32 %v8420_v30, 16 }
  0xa9   :  { %4460 = vrot.lane.b32.xlu1 %v4247_v22, %s8648_s9  ;;  %v4321_v22 = vshrl.u32 %v8415_v47, 16  ;;  %4876 = vmatprep.subr.bf16.mxu0 %v13516_v58 }
  0xaa   :  { %v4349_v32 = vrot.slane %v4347_v6, 1 }
  0xab   :  { %4458 = vrot.lane.b32.xlu0 %v4235_v61, %s8648_s9  ;;  %v9929_v51 = vpop.permute.xlu1 %1029  ;;  %v4340_v61 = vshll.u32 %v8414_v13, 16  ;;  %v4326_v24 = vor.u32 %v4325_v19, %v4321_v22  ;;  %v8421_v22 = vld [vmem:[%s13262_s1 + $0x14c] ss:$0 sps:$4 sm:$0x11]   ;;  %v4307_v13 = vsel %vm439_vm1, %v4302_v12, %v4306_v9  ;;  %v4366_v9 = vrot.slane %v4364_v27, 1 }
  0xac   :  { %v835_v63 = vpop.permute.xlu0 %834  ;;  %v8423_v12 = vld [vmem:[%s13262_s1 + $0x164] ss:$0 sps:$4 sm:$0x11]   ;;  %v4350_v30 = vor.u32 %v4349_v32, %v4345_v62  ;;  %v8517_v27 = vld [vmem:[%s13261_s0 + $0x8] ss:$0 sps:$4 sm:$0x11]  }
  0xad   :  { %8001 = vmatmul.mubr.msk.bf16.gmra.mrb[24].mxu0 %vm1490_vm2, %v9678_v0  ;;  %4464 = vrot.lane.b32.xlu1 %v4271_v40, %s8648_s9  ;;  %v9961_v41 = vsel %vm1146_vm3, %v835_v63, %v9528_v25  ;;  %v4342_v47 = vrot.slane %v4340_v61, 1  ;;  %v4328_v40 = vshll.u32 %v8416_v50, 16  ;;  %v9982_v35 = vsel %vm1049_vm4, %v8515_v16, %v835_v63  ;;  %v8422_v50 = vld [vmem:[%s13262_s1 + $0x15c] sm:$0xff]  }
  0xae   :  { %8004 = vmatprep.mubr.msk.bf16.mxu0 %vm1490_vm2, %v9712_v52  ;;  %13527 = vst [vmem:[#allocation12_spill] sm:$0xff] %v9961_v41  ;;  %13528 = vst [vmem:[#allocation13_spill] sm:$0xff] %v9982_v35  ;;  %v4352_v61 = vshll.u32 %v8421_v22, 16  ;;  %v4376_v16 = vshll.u32 %v8423_v12, 16  ;;  %v448_v22 = vshll.u32 %v8517_v27, 16 }
  0xaf   :  { %4462 = vrot.lane.b32.xlu0 %v4259_v31, %s8648_s9  ;;  %1612 = vmatmul.mubr.bf16.gmra.mrb[12].mxu1 %v9943_v38  ;;  %v9957_v18 = vpop.permute.xlu1 %836  ;;  %v4330_v34 = vrot.slane %v4328_v40, 1  ;;  %v4359_v31 = vshll.u32 %v8418_v29, 16  ;;  %v8425_v62 = vld [vmem:[%s13262_s1 + $0x17c] ss:$0 sps:$4 sm:$0x11]  }
  0xb0   :  { %1619 = vmatprep.mubr.bf16.mxu1 %v9961_v41  ;;  %v9964_v15 = vpop.permute.xlu0 %1031  ;;  %v9991_v3 = vsel %vm1146_vm3, %v9957_v18, %v9593_v8  ;;  %v4354_v14 = vrot.slane %v4352_v61, 1  ;;  %v4378_v61 = vrot.slane %v4376_v16, 1  ;;  %v450_v12 = vrot.slane %v448_v22, 1 }
  0xb1   :  { %4468 = vrot.lane.b32.xlu1 %v4295_v1, %s8648_s9  ;;  %13529 = vst [vmem:[#allocation14_spill] sm:$0xff] %v9991_v3  ;;  %v4343_v1 = vsel %vm439_vm1, %v4338_v4, %v4342_v47  ;;  %v4361_v23 = vrot.slane %v4359_v31, 1  ;;  %v4331_v19 = vsel %vm439_vm1, %v4326_v24, %v4330_v34  ;;  %v8516_v47 = vld [vmem:[%s13261_s0] sm:$0xff]   ;;  %v4371_v24 = vshll.u32 %v8422_v50, 16  ;;  %v8424_v34 = vld [vmem:[%s13262_s1 + $0x174] sm:$0xff]  }
  0xb2   :  { %v441_v40 = vshrl.u32 %v8516_v47, 16  ;;  %v443_v4 = vshll.u32 %v8516_v47, 16  ;;  %v4393_v47 = vshrl.u32 %v8424_v34, 16 }
  0xb3   :  { %4466 = vrot.lane.b32.xlu0 %v4283_v5, %s8648_s9  ;;  %v10003_v5 = vpop.permute.xlu1 %1035  ;;  %v4362_v29 = vor.u32 %v4361_v23, %v4357_v60  ;;  %v8426_v60 = vld [vmem:[%s13262_s1 + $0x168] sm:$0xff]   ;;  %v4355_v23 = vsel %vm439_vm1, %v4350_v30, %v4354_v14  ;;  %v8430_v30 = vld [vmem:[%s13262_s1 + $0x180] sm:$0xff]  }
  0xb4   :  { %v9994_v63 = vpop.permute.xlu0 %1033  ;;  %v445_v31 = vrot.slane %v443_v4, 1  ;;  %v4395_v4 = vshll.u32 %v8424_v34, 16  ;;  %v4383_v14 = vshll.u32 %v8426_v60, 16 }
  0xb5   :  { %8005 = vmatmul.mubr.msk.bf16.gmra.mrb[28].mxu0 %vm1490_vm2, %v9787_v45  ;;  %4472 = vrot.lane.b32.xlu1 %v4319_v7, %s8648_s9  ;;  %v4369_v7 = vshrl.u32 %v8422_v50, 16  ;;  %v4367_v6 = vsel %vm439_vm1, %v4362_v29, %v4366_v9  ;;  %v8427_v9 = vld [vmem:[%s13262_s1 + $0x170] ss:$0 sps:$4 sm:$0x11]   ;;  %v4381_v29 = vshrl.u32 %v8426_v60, 16 }
  0xb6   :  { %8008 = vmatprep.mubr.msk.bf16.mxu0 %vm1490_vm2, %v9824_v59  ;;  %v446_v27 = vor.u32 %v445_v31, %v441_v40  ;;  %v4400_v59 = vshll.u32 %v8425_v62, 16  ;;  %v4397_v34 = vrot.slane %v4395_v4, 1  ;;  %v4385_v31 = vrot.slane %v4383_v14, 1 }
  0xb7   :  { %4470 = vrot.lane.b32.xlu0 %v4307_v13, %s8648_s9  ;;  %1620 = vmatmul.mubr.bf16.gmra.mrb[16].mxu1 %v9982_v35  ;;  %v4373_v13 = vrot.slane %v4371_v24, 1  ;;  %v10036_v24 = vpop.permute.xlu1 %1037  ;;  %v4388_v22 = vshll.u32 %v8427_v9, 16  ;;  %v4405_v9 = vshrl.u32 %v8430_v30, 16 }
  0xb8   :  { %1627 = vmatprep.mubr.bf16.mxu1 %v9991_v3  ;;  %v839_v50 = vpop.permute.xlu0 %838  ;;  %13530 = vst [vmem:[#allocation15_spill] sm:$0xff] %v10036_v24  ;;  %v4402_v16 = vrot.slane %v4400_v59, 1  ;;  %v4398_v62 = vor.u32 %v4397_v34, %v4393_v47  ;;  %v451_v59 = vsel %vm439_vm1, %v446_v27, %v450_v12  ;;  %v8519_v27 = vld [vmem:[%s13261_s0 + $0x54] sm:$0xff]  }
  0xb9   :  { %4476 = vrot.lane.b32.xlu1 %v4343_v1, %s8648_s9  ;;  %v4374_v32 = vor.u32 %v4373_v13, %v4369_v7  ;;  %v8428_v1 = vld [vmem:[%s13262_s1 + $0x18c] sm:$0xff]   ;;  %v8432_v13 = vld [vmem:[%s13262_s1 + $0xc0] sm:$0xff]   ;;  %v4390_v4 = vrot.slane %v4388_v22, 1 }
  0xba   :  { %v4417_v60 = vshrl.u32 %v8428_v1, 16 }
  0xbb   :  { %4474 = vrot.lane.b32.xlu0 %v4331_v19, %s8648_s9  ;;  %v8518_v19 = vld [vmem:[%s13261_s0 + $0x48] sm:$0xff]   ;;  %v4379_v40 = vsel %vm439_vm1, %v4374_v32, %v4378_v61  ;;  %v4419_v61 = vshll.u32 %v8428_v1, 16  ;;  %v4386_v32 = vor.u32 %v4385_v31, %v4381_v29  ;;  %v4407_v1 = vshll.u32 %v8430_v30, 16  ;;  %v841_v34 = vpop.permute.xlu1 %840 }
  0xbc   :  { %v10049_v7 = vsel %vm1049_vm4, %v8518_v19, %v9957_v18  ;;  %v10063_v18 = vsel %vm1146_vm3, %v839_v50, %v9569_v56  ;;  %v10070_v14 = vpop.permute.xlu0 %1039  ;;  %v8431_v19 = vld [vmem:[%s13262_s1 + $0x188] ss:$0 sps:$4 sm:$0x11]   ;;  %v10083_v29 = vsel %vm1049_vm4, %v8519_v27, %v839_v50  ;;  %v10097_v50 = vsel %vm1146_vm3, %v841_v34, %v9628_v43 }
  0xbd   :  { %8009 = vmatmul.mubr.msk.bf16.gmra.mrb[32].mxu0 %vm1490_vm2, %v9800_v26  ;;  %4480 = vrot.lane.b32.xlu1 %v4367_v6, %s8648_s9  ;;  %13531 = vst [vmem:[#allocation16_spill] sm:$0xff] %v10049_v7  ;;  %13532 = vst [vmem:[#allocation17_spill] sm:$0xff] %v10063_v18  ;;  %v8429_v6 = vld [vmem:[%s13262_s1 + $0x194] ss:$0 sps:$4 sm:$0x11]   ;;  %v4391_v12 = vsel %vm439_vm1, %v4386_v32, %v4390_v4  ;;  %v4409_v22 = vrot.slane %v4407_v1, 1 }
  0xbe   :  { %8012 = vmatprep.mubr.msk.bf16.mxu0 %vm1490_vm2, %v9847_v20  ;;  %13533 = vst [vmem:[#allocation18_spill] sm:$0xff] %v10070_v14  ;;  %v4424_v47 = vshll.u32 %v8429_v6, 16  ;;  %13534 = vst [vmem:[#allocation19_spill] sm:$0xff] %v10083_v29  ;;  %v4412_v6 = vshll.u32 %v8431_v19, 16 }
  0xbf   :  { %4478 = vrot.lane.b32.xlu0 %v4355_v23, %s8648_s9  ;;  %1628 = vmatmul.mubr.bf16.gmra.mrb[20].mxu1 %v10049_v7  ;;  %v4421_v23 = vrot.slane %v4419_v61, 1  ;;  %v4403_v7 = vsel %vm439_vm1, %v4398_v62, %v4402_v16  ;;  %v8433_v30 = vld [vmem:[%s13262_s1 + $0xc8] ss:$0 sps:$4 sm:$0x11]   ;;  %v5246_v16 = vshrl.u32 %v8432_v13, 16  ;;  %v5248_v62 = vshll.u32 %v8432_v13, 16 }
  0xc0   :  { %1635 = vmatprep.mubr.bf16.mxu1 %v10063_v18  ;;  %v4426_v31 = vrot.slane %v4424_v47, 1  ;;  %v8520_v61 = vld [vmem:[%s13261_s0 + $0xd8] sm:$0xff]   ;;  %13535 = vst [vmem:[#allocation20_spill] sm:$0xff] %v10097_v50  ;;  %v8521_v1 = vld [vmem:[%s13261_s0 + $0xe0] ss:$0 sps:$4 sm:$0x11]  }
  0xc1   :  { %4482 = vrot.lane.b32.xlu1 %v4379_v40, %s8648_s9  ;;  %v4422_v40 = vor.u32 %v4421_v23, %v4417_v60  ;;  %v633_v32 = vshrl.u32 %v8520_v61, 16  ;;  %v635_v4 = vshll.u32 %v8520_v61, 16  ;;  %v4410_v60 = vor.u32 %v4409_v22, %v4405_v9 }
  0xc2   :  { %v5253_v23 = vshll.u32 %v8433_v30, 16  ;;  %v5250_v47 = vrot.slane %v5248_v62, 1  ;;  %v640_v27 = vshll.u32 %v8521_v1, 16 }
  0xc3   :  { %824 = vrot.lane.b32.xlu0 %v451_v59, %s8649_s22  ;;  %v4414_v59 = vrot.slane %v4412_v6, 1  ;;  %v4427_v13 = vsel %vm439_vm1, %v4422_v40, %v4426_v31  ;;  %v637_v19 = vrot.slane %v635_v4, 1  ;;  %v8522_v40 = vld [vmem:[%s13261_s0 + $0xcc] sm:$0xff]   ;;  %v8523_v4 = vld [vmem:[%s13261_s0 + $0xd4] ss:$0 sps:$4 sm:$0x11]  }
  0xc4   :  { %v5255_v22 = vrot.slane %v5253_v23, 1  ;;  %v2840_v31 = vshrl.u32 %v8522_v40, 16  ;;  %v2842_v6 = vshll.u32 %v8522_v40, 16  ;;  %v5251_v30 = vor.u32 %v5250_v47, %v5246_v16 }
  0xc5   :  { %8013 = vmatmul.mubr.msk.bf16.gmra.mrb[36].mxu0 %vm1490_vm2, %v9881_v36  ;;  %4486 = vrot.lane.b32.xlu1 %v4403_v7, %s8648_s9  ;;  %v10105_v7 = vpop.permute.xlu0 %1041  ;;  %v4415_v9 = vsel %vm439_vm1, %v4410_v60, %v4414_v59  ;;  %v638_v62 = vor.u32 %v637_v19, %v633_v32  ;;  %v642_v61 = vrot.slane %v640_v27, 1  ;;  %v2847_v1 = vshll.u32 %v8523_v4, 16  ;;  %v8524_v19 = vld [vmem:[%s13261_s0 + $0x60] sm:$0xff]   ;;  %v8441_v27 = vld [vmem:[%s13263_s2 + $0x118] sm:$0xff]  }
  0xc6   :  { %8016 = vmatprep.mubr.msk.bf16.mxu0 %vm1490_vm2, %v9921_v10  ;;  %13536 = vst [vmem:[#allocation21_spill] sm:$0xff] %v10105_v7  ;;  %v2844_v60 = vrot.slane %v2842_v6, 1  ;;  %v5256_v59 = vsel %vm439_vm1, %v5251_v30, %v5255_v22  ;;  %7906 = vmatprep.subr.bf16.mxu1 %v8441_v27  ;;  %v8526_v4 = vld [vmem:[%s13261_s0 + $0x78] sm:$0xff]  }
  0xc7   :  { %4484 = vrot.lane.b32.xlu0 %v4391_v12, %s8648_s9  ;;  %1636 = vmatmul.mubr.bf16.gmra.mrb[24].mxu1 %v10083_v29  ;;  %v10116_v12 = vpop.permute.xlu1 %1043  ;;  %v2849_v23 = vrot.slane %v2847_v1, 1  ;;  %v643_v32 = vsel %vm439_vm1, %v638_v62, %v642_v61 }
  0xc8   :  { %13537 = vst [vmem:[#allocation22_spill] sm:$0xff] %v10116_v12  ;;  %1643 = vmatprep.mubr.bf16.mxu1 %v10097_v50  ;;  %v2845_v16 = vor.u32 %v2844_v60, %v2840_v31  ;;  %7907 = vmatpush3.bf16.msra.mxu1 %v8441_v27  ;;  %v8525_v31 = vld [vmem:[%s13261_s0 + $0x6c] sm:$0xff]  }
  0xc9   :  { %4490 = vrot.lane.b32.xlu1 %v4427_v13, %s8648_s9  ;;  %v843_v47 = vpop.permute.xlu0 %842  ;;  %v10130_v13 = vsel %vm1049_vm4, %v8524_v19, %v841_v34  ;;  %2245 = vmatprep.subr.bf16.mxu1 %v13516_v58  ;;  %v8528_v19 = vld [vmem:[%s13261_s0 + $0x90] sm:$0xff]  }
  0xca   :  { %13538 = vst [vmem:[#allocation23_spill] sm:$0xff] %v10130_v13  ;;  %v10144_v34 = vsel %vm1146_vm3, %v843_v47, %v9617_v11  ;;  %v10155_v6 = vsel %vm1049_vm4, %v8525_v31, %v843_v47  ;;  %v8529_v31 = vld [vmem:[%s13261_s0 + $0x9c] sm:$0xff]  }
  0xcb   :  { %4488 = vrot.lane.b32.xlu0 %v4415_v9, %s8648_s9  ;;  %v2850_v9 = vsel %vm439_vm1, %v2845_v16, %v2849_v23  ;;  %v10138_v22 = vpop.permute.xlu1 %1045  ;;  %13540 = vst [vmem:[#allocation25_spill] sm:$0xff] %v10144_v34  ;;  %13541 = vst [vmem:[#allocation26_spill] sm:$0xff] %v10155_v6  ;;  %v8527_v23 = vld [vmem:[%s13261_s0 + $0x84] sm:$0xff]  }
  0xcc   :  { %13539 = vst [vmem:[#allocation24_spill] sm:$0xff] %v10138_v22 }
  0xcd   :  { %8017 = vmatmul.mubr.msk.bf16.gmra.mrb[40].mxu0 %vm1490_vm2, %v9905_v53  ;;  %5269 = vrot.lane.b32.xlu1 %v5256_v59, %s8648_s9  ;;  %v10159_v30 = vpop.permute.xlu0 %1047 }
  0xce   :  { %8020 = vmatprep.mubr.msk.bf16.mxu0 %vm1490_vm2, %v9929_v51  ;;  %13542 = vst [vmem:[#allocation27_spill] sm:$0xff] %v10159_v30 }
  0xcf   :  { %856 = vrot.lane.b32.xlu0 %v643_v32, %s8649_s22  ;;  %1644 = vmatmul.mubr.bf16.gmra.mrb[28].mxu1 %v10130_v13  ;;  %v845_v40 = vpop.permute.xlu1 %844 }
  0xd0   :  { %1651 = vmatprep.mubr.bf16.mxu1 %v10144_v34  ;;  %v10164_v62 = vsel %vm1146_vm3, %v845_v40, %v9664_v57  ;;  %v10173_v1 = vsel %vm1049_vm4, %v8526_v4, %v845_v40 }
  0xd1   :  { %2863 = vrot.lane.b32.xlu1 %v2850_v9, %s8649_s22  ;;  %13543 = vst [vmem:[#allocation28_spill] sm:$0xff] %v10164_v62  ;;  %v847_v61 = vpop.permute.xlu0 %846  ;;  %13544 = vst [vmem:[#allocation29_spill] sm:$0xff] %v10173_v1 }
  0xd2   :  { %v10180_v60 = vsel %vm1146_vm3, %v847_v61, %v9643_v39  ;;  %v10189_v16 = vsel %vm1049_vm4, %v8527_v23, %v847_v61 }
  0xd3   :  { %13545 = vst [vmem:[#allocation30_spill] sm:$0xff] %v10180_v60  ;;  %v849_v59 = vpop.permute.xlu1 %848  ;;  %13546 = vst [vmem:[#allocation31_spill] sm:$0xff] %v10189_v16 }
  0xd4   :  { %v10196_v32 = vsel %vm1146_vm3, %v849_v59, %v9698_v42  ;;  %v10205_v27 = vsel %vm1049_vm4, %v8528_v19, %v849_v59  ;;  %v8434_v59 = vld [vmem:[%s13264_s3] sm:$0xff]  }
  0xd5   :  { %8021 = vmatmul.mubr.msk.bf16.gmra.mrb[44].mxu0 %vm1490_vm2, %v9964_v15  ;;  %13547 = vst [vmem:[#allocation32_spill] sm:$0xff] %v10196_v32  ;;  %v851_v47 = vpop.permute.xlu0 %850  ;;  %13548 = vst [vmem:[#allocation33_spill] sm:$0xff] %v10205_v27 }
  0xd6   :  { %8024 = vmatprep.mubr.msk.bf16.mxu0 %vm1490_vm2, %v9994_v63  ;;  %v10212_v9 = vsel %vm1146_vm3, %v851_v47, %v9678_v0  ;;  %v10221_v61 = vsel %vm1049_vm4, %v8529_v31, %v851_v47  ;;  %v8530_v47 = vld [vmem:[%s13261_s0 + $0xa8] sm:$0xff]  }
  0xd7   :  { %1652 = vmatmul.mubr.bf16.gmra.mrb[32].mxu1 %v10155_v6  ;;  %13549 = vst [vmem:[#allocation34_spill] sm:$0xff] %v10212_v9  ;;  %v853_v40 = vpop.permute.xlu1 %852  ;;  %13550 = vst [vmem:[#allocation35_spill] sm:$0xff] %v10221_v61  ;;  %v8435_v31 = vld [vmem:[%s13264_s3 + $0x8] sm:$0xff]  }
  0xd8   :  { %1659 = vmatprep.mubr.bf16.mxu1 %v10164_v62  ;;  %v10228_v4 = vsel %vm1146_vm3, %v853_v40, %v9712_v52  ;;  %v10240_v19 = vsel %vm1049_vm4, %v8530_v47, %v853_v40 }
  0xd9   :  { %13551 = vst [vmem:[#allocation36_spill] sm:$0xff] %v10228_v4  ;;  %v855_v23 = vpop.permute.xlu0 %854  ;;  %13552 = vst [vmem:[#allocation37_spill] sm:$0xff] %v10240_v19 }
  0xdd   :  { %8025 = vmatmul.mubr.msk.bf16.gmra.mrb[48].mxu0 %vm1490_vm2, %v10003_v5 }
  0xde   :  { %8028 = vmatprep.mubr.msk.bf16.mxu0 %vm1490_vm2, %v10036_v24 }
  0xdf   :  { %1660 = vmatmul.mubr.bf16.gmra.mrb[36].mxu1 %v10173_v1 }
  0xe0   :  { %1667 = vmatprep.mubr.bf16.mxu1 %v10180_v60 }
  0xe5   :  { %8029 = vmatmul.mubr.msk.bf16.gmra.mrb[52].mxu0 %vm1490_vm2, %v10070_v14 }
  0xe6   :  { %8032 = vmatprep.mubr.msk.bf16.mxu0 %vm1490_vm2, %v10105_v7 }
  0xe7   :  { %1668 = vmatmul.mubr.bf16.gmra.mrb[40].mxu1 %v10189_v16 }
  0xe8   :  { %1675 = vmatprep.mubr.bf16.mxu1 %v10196_v32 }
  0xed   :  { %8033 = vmatmul.mubr.msk.bf16.gmra.mrb[56].mxu0 %vm1490_vm2, %v10116_v12 }
  0xee   :  { %8036 = vmatprep.mubr.msk.bf16.mxu0 %vm1490_vm2, %v10138_v22 }
  0xef   :  { %1676 = vmatmul.mubr.bf16.gmra.mrb[44].mxu1 %v10205_v27 }
  0xf0   :  { %1683 = vmatprep.mubr.bf16.mxu1 %v10212_v9 }
  0xf5   :  { %8037 = vmatmul.mubr.msk.bf16.gmra.mrb[60].mxu0 %vm1490_vm2, %v10159_v30 }
  0xf6   :  { %8044 = vmatprep.mubr.msk.bf16.mxu0 %vm1490_vm2, %v9461_v49 }
  0xf7   :  { %1684 = vmatmul.mubr.bf16.gmra.mrb[48].mxu1 %v10221_v61 }
  0xf8   :  { %1691 = vmatprep.mubr.bf16.mxu1 %v10228_v4 }
  0xfd   :  { %8045 = vmatmul.mubr.msk.bf16.vlgmr.msra.gmra.mrb[64].mxu0 %vm1490_vm2, %v9494_v55 }
  0xfe   :  { %4877 = vmatpush1.bf16.msra.mxu0 %v8434_v59  ;;  %8048 = vmatprep.mubr.msk.bf16.mxu0 %vm1490_vm2, %v9556_v28 }
  0xff   :  { %11 = vsyncpa [#allocation3], 0  ;;  %4878 = vmatprep.subr.bf16.mxu0 %v13516_v58  ;;  %1692 = vmatmul.mubr.bf16.gmra.mrb[52].mxu1 %v10240_v19  ;;  %v10251_v4 = vsel %vm1146_vm3, %v855_v23, %v9787_v45  ;;  %v8436_v40 = vld [vmem:[%s13264_s3 + $0x10] sm:$0xff]   ;;  %v1320_v59 = vpop.permute.xlu1 %1319  ;;  %v10258_v47 = vpop.permute.xlu0 %1329  ;;  %v8542_v27 = vld [vmem:[%s13262_s1 + $0x8] ss:$0 sps:$4 sm:$0x11]  }
 0x100   :  { %13553 = vst [vmem:[#allocation38_spill] sm:$0xff] %v10251_v4  ;;  %1699 = vmatprep.mubr.bf16.mxu1 %v10251_v4  ;;  %v8531_v19 = vld [vmem:[%s13261_s0 + $0xb4] sm:$0xff]   ;;  %v4493_v32 = vrot.slane %v8542_v27, 1 }
 0x101   :  { %v10266_v61 = vsel %vm1049_vm4, %v8531_v19, %v855_v23  ;;  %v8437_v4 = vld [vmem:[%s13264_s3 + $0x18] sm:$0xff]   ;;  %v8438_v23 = vld [vmem:[%s13264_s3 + $0x20] sm:$0xff]  }
 0x102   :  { %4879 = vmatpush1.bf16.msra.mxu0 %v8435_v31  ;;  %13554 = vst [vmem:[#allocation39_spill] sm:$0xff] %v10266_v61  ;;  %v10272_v31 = vsel %vm1146_vm3, %v1320_v59, %v10258_v47 }
 0x103   :  { %4880 = vmatprep.subr.bf16.mxu0 %v13516_v58  ;;  %13555 = vst [vmem:[#allocation40_spill] sm:$0xff] %v10272_v31  ;;  %v859_v19 = vpop.permute.xlu1 %858 }
 0x105   :  { %8049 = vmatmul.mubr.msk.bf16.gmra.mrb[68].mxu0 %vm1490_vm2, %v9528_v25 }
 0x106   :  { %8052 = vmatprep.mubr.msk.bf16.mxu0 %vm1490_vm2, %v9593_v8  ;;  %4881 = vmatpush1.bf16.msra.mxu0 %v8436_v40  ;;  %v8532_v40 = vld [vmem:[%s13261_s0 + $0xc0] sm:$0xff]  }
 0x107   :  { %4882 = vmatprep.subr.bf16.mxu0 %v13516_v58  ;;  %1700 = vmatmul.mubr.bf16.gmra.mrb[56].mxu1 %v10266_v61  ;;  %v10290_v9 = vsel %vm1049_vm4, %v8532_v40, %v1320_v59  ;;  %v8440_v59 = vld [vmem:[%s13264_s3 + $0x30] sm:$0xff]   ;;  %v8533_v40 = vld [vmem:[%s13261_s0 + $0xe4] sm:$0xff]  }
 0x108   :  { %1707 = vmatprep.mubr.bf16.mxu1 %v10272_v31  ;;  %13556 = vst [vmem:[#allocation41_spill] sm:$0xff] %v10290_v9  ;;  %v10301_v31 = vsel %vm1146_vm3, %v859_v19, %v9800_v26 }
 0x109   :  { %13557 = vst [vmem:[#allocation42_spill] sm:$0xff] %v10301_v31 }
 0x10a   :  { %4883 = vmatpush1.bf16.msra.mxu0 %v8437_v4  ;;  %v8439_v4 = vld [vmem:[%s13264_s3 + $0x28] sm:$0xff]  }
 0x10b   :  { %4884 = vmatprep.subr.bf16.mxu0 %v13516_v58 }
 0x10d   :  { %8053 = vmatmul.mubr.msk.bf16.gmra.mrb[72].mxu0 %vm1490_vm2, %v9569_v56 }
 0x10e   :  { %8056 = vmatprep.mubr.msk.bf16.mxu0 %vm1490_vm2, %v9628_v43  ;;  %4885 = vmatpush1.bf16.msra.mxu0 %v8438_v23  ;;  %v861_v23 = vpop.permute.xlu1 %860 }
 0x10f   :  { %4886 = vmatprep.subr.bf16.mxu0 %v13516_v58  ;;  %1708 = vmatmul.mubr.bf16.gmra.mrb[60].mxu1 %v10290_v9  ;;  %v10314_v9 = vsel %vm1049_vm4, %v8533_v40, %v859_v19  ;;  %v10327_v61 = vsel %vm1146_vm3, %v861_v23, %v9847_v20  ;;  %v8443_v19 = vld [vmem:[%s13264_s3 + $0x40] sm:$0xff]   ;;  %v8534_v40 = vld [vmem:[%s13261_s0 + $0xf0] sm:$0xff]  }
 0x110   :  { %1715 = vmatprep.mubr.bf16.mxu1 %v10301_v31  ;;  %13558 = vst [vmem:[#allocation43_spill] sm:$0xff] %v10314_v9  ;;  %v10321_v31 = vpop.permute.xlu0 %2873  ;;  %13560 = vst [vmem:[#allocation45_spill] sm:$0xff] %v10327_v61 }
 0x111   :  { %13559 = vst [vmem:[#allocation44_spill] sm:$0xff] %v10321_v31 }
 0x112   :  { %4887 = vmatpush1.bf16.msra.mxu0 %v8439_v4  ;;  %v8442_v4 = vld [vmem:[%s13264_s3 + $0x38] sm:$0xff]  }
 0x113   :  { %4888 = vmatprep.subr.bf16.mxu0 %v13516_v58 }
 0x115   :  { %8057 = vmatmul.mubr.msk.bf16.gmra.mrb[76].mxu0 %vm1490_vm2, %v9617_v11 }
 0x116   :  { %8060 = vmatprep.mubr.msk.bf16.mxu0 %vm1490_vm2, %v9664_v57  ;;  %4889 = vmatpush1.bf16.msra.mxu0 %v8440_v59  ;;  %v863_v59 = vpop.permute.xlu0 %862 }
 0x117   :  { %4890 = vmatprep.subr.bf16.mxu0 %v13516_v58  ;;  %1716 = vmatmul.mubr.bf16.gmra.mrb[64].mxu1 %v10314_v9  ;;  %v10340_v9 = vsel %vm1049_vm4, %v8534_v40, %v861_v23  ;;  %v8445_v23 = vld [vmem:[%s13264_s3 + $0x50] sm:$0xff]   ;;  %v8535_v40 = vld [vmem:[%s13261_s0 + $0xfc] sm:$0xff]  }
 0x118   :  { %1723 = vmatprep.mubr.bf16.mxu1 %v10327_v61  ;;  %13561 = vst [vmem:[#allocation46_spill] sm:$0xff] %v10340_v9  ;;  %v10351_v61 = vsel %vm1146_vm3, %v863_v59, %v9881_v36 }
 0x119   :  { %13562 = vst [vmem:[#allocation47_spill] sm:$0xff] %v10351_v61 }
 0x11a   :  { %4891 = vmatpush1.bf16.msra.mxu0 %v8442_v4  ;;  %v8444_v4 = vld [vmem:[%s13264_s3 + $0x48] sm:$0xff]  }
 0x11b   :  { %4892 = vmatprep.subr.bf16.mxu0 %v13516_v58 }
 0x11d   :  { %8061 = vmatmul.mubr.msk.bf16.gmra.mrb[80].mxu0 %vm1490_vm2, %v9643_v39 }
 0x11e   :  { %8064 = vmatprep.mubr.msk.bf16.mxu0 %vm1490_vm2, %v9698_v42  ;;  %4893 = vmatpush1.bf16.msra.mxu0 %v8443_v19  ;;  %v865_v19 = vpop.permute.xlu1 %864 }
 0x11f   :  { %4894 = vmatprep.subr.bf16.mxu0 %v13516_v58  ;;  %1724 = vmatmul.mubr.bf16.gmra.mrb[68].mxu1 %v10340_v9  ;;  %v10364_v9 = vsel %vm1049_vm4, %v8535_v40, %v863_v59  ;;  %v867_v59 = vpop.permute.xlu0 %866 }
 0x120   :  { %1731 = vmatprep.mubr.bf16.mxu1 %v10351_v61  ;;  %13563 = vst [vmem:[#allocation48_spill] sm:$0xff] %v10364_v9  ;;  %v10375_v61 = vsel %vm1146_vm3, %v865_v19, %v9921_v10 }
 0x121   :  { %13564 = vst [vmem:[#allocation49_spill] sm:$0xff] %v10375_v61 }
 0x122   :  { %4895 = vmatpush1.bf16.msra.mxu0 %v8444_v4  ;;  %v8446_v4 = vld [vmem:[%s13264_s3 + $0x58] sm:$0xff]  }
 0x123   :  { %4896 = vmatprep.subr.bf16.mxu0 %v13516_v58 }
 0x125   :  { %8065 = vmatmul.mubr.msk.bf16.gmra.mrb[84].mxu0 %vm1490_vm2, %v9678_v0 }
 0x126   :  { %8068 = vmatprep.mubr.msk.bf16.mxu0 %vm1490_vm2, %v9712_v52  ;;  %4897 = vmatpush1.bf16.msra.mxu0 %v8445_v23  ;;  %v8536_v23 = vld [vmem:[%s13261_s0 + $0x108] sm:$0xff]  }
 0x127   :  { %4898 = vmatprep.subr.bf16.mxu0 %v13516_v58  ;;  %1732 = vmatmul.mubr.bf16.gmra.mrb[72].mxu1 %v10364_v9  ;;  %v10385_v40 = vsel %vm1049_vm4, %v8536_v23, %v865_v19  ;;  %v8537_v19 = vld [vmem:[%s13261_s0 + $0x114] sm:$0xff]  }
 0x128   :  { %1739 = vmatprep.mubr.bf16.mxu1 %v10375_v61  ;;  %13565 = vst [vmem:[#allocation50_spill] sm:$0xff] %v10385_v40  ;;  %v869_v61 = vpop.permute.xlu1 %868  ;;  %v10401_v23 = vsel %vm1049_vm4, %v8537_v19, %v867_v59 }
 0x129   :  { %13567 = vst [vmem:[#allocation52_spill] sm:$0xff] %v10401_v23 }
 0x12a   :  { %4899 = vmatpush1.bf16.msra.mxu0 %v8446_v4  ;;  %v10392_v4 = vsel %vm1146_vm3, %v867_v59, %v9905_v53  ;;  %v8538_v59 = vld [vmem:[%s13261_s0 + $0x120] sm:$0xff]  }
 0x12b   :  { %5388 = vmatprep.subr.bf16.mxu0 %v13516_v58  ;;  %13566 = vst [vmem:[#allocation51_spill] sm:$0xff] %v10392_v4  ;;  %v10417_v19 = vsel %vm1049_vm4, %v8538_v59, %v869_v61 }
 0x12c   :  { %13569 = vst [vmem:[#allocation54_spill] sm:$0xff] %v10417_v19 }
 0x12d   :  { %8069 = vmatmul.mubr.msk.bf16.gmra.mrb[88].mxu0 %vm1490_vm2, %v9787_v45 }
 0x12e   :  { %8072 = vmatprep.mubr.msk.bf16.mxu0 %vm1490_vm2, %v10258_v47 }
 0x12f   :  { %1740 = vmatmul.mubr.bf16.gmra.mrb[76].mxu1 %v10385_v40  ;;  %v10408_v40 = vsel %vm1146_vm3, %v869_v61, %v9929_v51  ;;  %v8539_v61 = vld [vmem:[%s13261_s0 + $0x12c] sm:$0xff]  }
 0x130   :  { %1747 = vmatprep.mubr.bf16.mxu1 %v10392_v4  ;;  %13568 = vst [vmem:[#allocation53_spill] sm:$0xff] %v10408_v40  ;;  %v871_v4 = vpop.permute.xlu1 %870 }
 0x131   :  { %v10433_v59 = vsel %vm1049_vm4, %v8539_v61, %v871_v4 }
 0x132   :  { %13571 = vst [vmem:[#allocation56_spill] sm:$0xff] %v10433_v59 }
 0x135   :  { %8073 = vmatmul.mubr.msk.bf16.gmra.mrb[92].mxu0 %vm1490_vm2, %v10321_v31  ;;  %v10424_v31 = vsel %vm1146_vm3, %v871_v4, %v9964_v15  ;;  %v8540_v4 = vld [vmem:[%s13261_s0 + $0x138] sm:$0xff]  }
 0x136   :  { %8076 = vmatprep.mubr.msk.bf16.mxu0 %vm1490_vm2, %v9847_v20  ;;  %13570 = vst [vmem:[#allocation55_spill] sm:$0xff] %v10424_v31 }
 0x137   :  { %1748 = vmatmul.mubr.bf16.gmra.mrb[80].mxu1 %v10401_v23 }
 0x138   :  { %1755 = vmatprep.mubr.bf16.mxu1 %v10408_v40  ;;  %v873_v40 = vpop.permute.xlu1 %872 }
 0x139   :  { %v10449_v61 = vsel %vm1049_vm4, %v8540_v4, %v873_v40 }
 0x13a   :  { %13573 = vst [vmem:[#allocation58_spill] sm:$0xff] %v10449_v61 }
 0x13c   :  { %v875_v23 = vpop.permute.xlu1 %874 }
 0x13d   :  { %8077 = vmatmul.mubr.msk.bf16.gmra.mrb[96].mxu0 %vm1490_vm2, %v9881_v36 }
 0x13e   :  { %8080 = vmatprep.mubr.msk.bf16.mxu0 %vm1490_vm2, %v9921_v10 }
 0x13f   :  { %1756 = vmatmul.mubr.bf16.gmra.mrb[84].mxu1 %v10417_v19  ;;  %v4429_v19 = vpop.permute.xlu0 %4428 }
 0x140   :  { %1763 = vmatprep.mubr.bf16.mxu1 %v10424_v31  ;;  %v10440_v31 = vsel %vm1146_vm3, %v873_v40, %v9994_v63  ;;  %v10462_v40 = vsel %vm1146_vm3, %v875_v23, %v10003_v5  ;;  %v877_v27 = vpop.permute.xlu1 %876 }
 0x141   :  { %13572 = vst [vmem:[#allocation57_spill] sm:$0xff] %v10440_v31  ;;  %13574 = vst [vmem:[#allocation59_spill] sm:$0xff] %v10462_v40 }
 0x143   :  { %v4431_v9 = vpop.permute.xlu0 %4430 }
 0x145   :  { %8081 = vmatmul.mubr.msk.bf16.gmra.mrb[100].mxu0 %vm1490_vm2, %v9905_v53 }
 0x146   :  { %8084 = vmatprep.mubr.msk.bf16.mxu0 %vm1490_vm2, %v9929_v51 }
 0x147   :  { %1764 = vmatmul.mubr.bf16.gmra.mrb[88].mxu1 %v10433_v59  ;;  %v8541_v59 = vld [vmem:[%s13262_s1] sm:$0xff]   ;;  %v10474_v6 = vpop.permute.xlu0 %4432 }
 0x148   :  { %1771 = vmatprep.mubr.bf16.mxu1 %v10440_v31  ;;  %v4492_v31 = vrot.slane %v8541_v59, 1 }
 0x14a   :  { %v4494_v62 = vsel %vm888_vm0, %v4492_v31, %v4493_v32  ;;  %v8545_v31 = vld [vmem:[%s13262_s1 + $0x14] ss:$0 sps:$4 sm:$0x11]  }
 0x14d   :  { %8085 = vmatmul.mubr.msk.bf16.gmra.mrb[104].mxu0 %vm1490_vm2, %v9964_v15 }
 0x14e   :  { %8088 = vmatprep.mubr.msk.bf16.mxu0 %vm1490_vm2, %v9994_v63 }
 0x14f   :  { %1772 = vmatmul.mubr.bf16.gmra.mrb[92].mxu1 %v10449_v61  ;;  %v10502_v61 = vpop.permute.xlu0 %4434 }
 0x150   :  { %v10464_v4 = vpop.f32.mrb[0].mxu0  ;;  %1779 = vmatprep.mubr.bf16.mxu1 %v10462_v40 }
 0x151   :  { %13575 = vst [vmem:[#allocation60_spill] sm:$0xff] %v10464_v4  ;;  %v10467_v16 = vpop.f32.mrb[1].mxu0  ;;  %v8543_v4 = vld [vmem:[%s13261_s0 + $0x144] sm:$0xff]  }
 0x152   :  { %13576 = vst [vmem:[#allocation61_spill] sm:$0xff] %v10467_v16  ;;  %v10469_v60 = vpop.f32.mrb[2].mxu0  ;;  %v10482_v40 = vsel %vm1049_vm4, %v8543_v4, %v875_v23  ;;  %v10494_v16 = vsel %vm1146_vm3, %v877_v27, %v10036_v24  ;;  %v4589_v4 = vsel %vm1146_vm3, %v8541_v59, %v4429_v19  ;;  %v8448_v59 = vld [vmem:[%s13264_s3 + $0x68] sm:$0xff]  }
 0x153   :  { %13577 = vst [vmem:[#allocation62_spill] sm:$0xff] %v10469_v60  ;;  %v10471_v1 = vpop.f32.mrb[3].mxu0  ;;  %13579 = vst [vmem:[#allocation64_spill] sm:$0xff] %v10482_v40  ;;  %v8544_v60 = vld [vmem:[%s13262_s1 + $0xc] sm:$0xff]  }
 0x154   :  { %13578 = vst [vmem:[#allocation63_spill] sm:$0xff] %v10471_v1  ;;  %v4495_v32 = vrot.slane %v8544_v60, 1  ;;  %v4496_v1 = vrot.slane %v8545_v31, 1  ;;  %13580 = vst [vmem:[#allocation65_spill] sm:$0xff] %v10494_v16  ;;  %v8447_v31 = vld [vmem:[%s13264_s3 + $0x60] sm:$0xff]  }
 0x155   :  { %8089 = vmatmul.mubr.msk.bf16.gmra.mrb[108].mxu0 %vm1490_vm2, %v10003_v5 }
 0x156   :  { %7305 = vmatprep.mubr.msk.bf16.mxu0 %vm1146_vm3, %v4494_v62  ;;  %v10512_v13 = vsel %vm888_vm0, %v4495_v32, %v4496_v1  ;;  %v8547_v1 = vld [vmem:[%s13262_s1 + $0x18] sm:$0xff]  }
 0x157   :  { %1780 = vmatmul.mubr.bf16.gmra.mrb[96].mxu1 %v10482_v40  ;;  %13585 = vst [vmem:[#allocation70_spill] sm:$0xff] %v10512_v13  ;;  %v4498_v32 = vrot.slane %v8547_v1, 1 }
 0x158   :  { %v10496_v23 = vpop.f32.mrb[4].mxu0  ;;  %1787 = vmatprep.mubr.bf16.mxu1 %v10494_v16 }
 0x159   :  { %13581 = vst [vmem:[#allocation66_spill] sm:$0xff] %v10496_v23  ;;  %v10499_v62 = vpop.f32.mrb[5].mxu0  ;;  %v879_v23 = vpop.permute.xlu1 %878 }
 0x15a   :  { %13582 = vst [vmem:[#allocation67_spill] sm:$0xff] %v10499_v62  ;;  %v10504_v34 = vpop.f32.mrb[6].mxu0  ;;  %v8546_v62 = vld [vmem:[%s13261_s0 + $0x150] sm:$0xff]  }
 0x15b   :  { %13583 = vst [vmem:[#allocation68_spill] sm:$0xff] %v10504_v34  ;;  %v10509_v40 = vpop.f32.mrb[7].mxu0  ;;  %v10518_v19 = vsel %vm1049_vm4, %v8546_v62, %v877_v27  ;;  %v10532_v27 = vpop.permute.xlu0 %4436  ;;  %v10537_v62 = vsel %vm1146_vm3, %v879_v23, %v10070_v14 }
 0x15c   :  { %13584 = vst [vmem:[#allocation69_spill] sm:$0xff] %v10509_v40  ;;  %13586 = vst [vmem:[#allocation71_spill] sm:$0xff] %v10518_v19 }
 0x15d   :  { %4909 = vmatmul.mubr.bf16.vlgmr.msra.gmra.mrb[112].mxu0 %v4589_v4  ;;  %v8548_v4 = vld [vmem:[%s13262_s1 + $0x20] ss:$0 sps:$4 sm:$0x11]   ;;  %13587 = vst [vmem:[#allocation72_spill] sm:$0xff] %v10537_v62 }
 0x15e   :  { %5389 = vmatpush1.bf16.msra.mxu0 %v8447_v31  ;;  %7306 = vmatprep.mubr.msk.bf16.mxu0 %vm1146_vm3, %v10512_v13  ;;  %v4499_v34 = vrot.slane %v8548_v4, 1  ;;  %v10547_v4 = vsel %vm1146_vm3, %v8544_v60, %v4431_v9  ;;  %v8549_v60 = vld [vmem:[%s13261_s0 + $0x15c] sm:$0xff]  }
 0x15f   :  { %5390 = vmatprep.subr.bf16.mxu0 %v13516_v58  ;;  %1788 = vmatmul.mubr.bf16.gmra.mrb[100].mxu1 %v10518_v19  ;;  %13591 = vst [vmem:[#allocation76_spill] sm:$0xff] %v10547_v4  ;;  %v8449_v19 = vld [vmem:[%s13264_s3 + $0x70] sm:$0xff]   ;;  %v10563_v9 = vsel %vm1049_vm4, %v8549_v60, %v879_v23  ;;  %v8551_v23 = vld [vmem:[%s13262_s1 + $0x2c] ss:$0 sps:$4 sm:$0x11]  }
 0x160   :  { %v10539_v31 = vpop.f32.mrb[8].mxu0  ;;  %1795 = vmatprep.mubr.bf16.mxu1 %v10537_v62  ;;  %v10555_v50 = vsel %vm888_vm0, %v4498_v32, %v4499_v34  ;;  %13594 = vst [vmem:[#allocation79_spill] sm:$0xff] %v10563_v9  ;;  %v8450_v34 = vld [vmem:[%s13264_s3 + $0x78] sm:$0xff]   ;;  %v8550_v32 = vld [vmem:[%s13262_s1 + $0x24] sm:$0xff]   ;;  %v4502_v60 = vrot.slane %v8551_v23, 1 }
 0x161   :  { %13588 = vst [vmem:[#allocation73_spill] sm:$0xff] %v10539_v31  ;;  %v10542_v40 = vpop.f32.mrb[9].mxu0  ;;  %13593 = vst [vmem:[#allocation78_spill] sm:$0xff] %v10555_v50  ;;  %v881_v31 = vpop.permute.xlu1 %880  ;;  %v8451_v23 = vld [vmem:[%s13264_s3 + $0x80] sm:$0xff]  }
 0x162   :  { %13589 = vst [vmem:[#allocation74_spill] sm:$0xff] %v10542_v40  ;;  %v10544_v16 = vpop.f32.mrb[10].mxu0  ;;  %5391 = vmatpush1.bf16.msra.mxu0 %v8448_v59  ;;  %v10565_v59 = vpop.permute.xlu0 %4438 }
 0x163   :  { %13590 = vst [vmem:[#allocation75_spill] sm:$0xff] %v10544_v16  ;;  %v10552_v13 = vpop.f32.mrb[11].mxu0  ;;  %5392 = vmatprep.subr.bf16.mxu0 %v13516_v58  ;;  %v4501_v16 = vrot.slane %v8550_v32, 1 }
 0x164   :  { %13592 = vst [vmem:[#allocation77_spill] sm:$0xff] %v10552_v13 }
 0x165   :  { %4917 = vmatmul.mubr.bf16.gmra.mrb[116].mxu0 %v10547_v4  ;;  %v10601_v4 = vsel %vm888_vm0, %v4501_v16, %v4502_v60  ;;  %v8553_v60 = vld [vmem:[%s13262_s1 + $0x30] sm:$0xff]  }
 0x166   :  { %7307 = vmatprep.mubr.msk.bf16.mxu0 %vm1146_vm3, %v10555_v50  ;;  %5393 = vmatpush1.bf16.msra.mxu0 %v8449_v19  ;;  %v10582_v19 = vsel %vm1146_vm3, %v881_v31, %v10105_v7  ;;  %v10593_v50 = vsel %vm1146_vm3, %v8547_v1, %v10474_v6  ;;  %13601 = vst [vmem:[#allocation86_spill] sm:$0xff] %v10601_v4  ;;  %v8552_v6 = vld [vmem:[%s13261_s0 + $0x168] sm:$0xff]  }
 0x167   :  { %5394 = vmatprep.subr.bf16.mxu0 %v13516_v58  ;;  %1796 = vmatmul.mubr.bf16.gmra.mrb[104].mxu1 %v10563_v9  ;;  %13595 = vst [vmem:[#allocation80_spill] sm:$0xff] %v10582_v19  ;;  %13599 = vst [vmem:[#allocation84_spill] sm:$0xff] %v10593_v50  ;;  %v10613_v1 = vsel %vm1049_vm4, %v8552_v6, %v881_v31  ;;  %v8554_v31 = vld [vmem:[%s13262_s1 + $0x38] ss:$0 sps:$4 sm:$0x11]  }
 0x168   :  { %v10584_v13 = vpop.f32.mrb[12].mxu0  ;;  %1803 = vmatprep.mubr.bf16.mxu1 %v10582_v19  ;;  %v883_v19 = vpop.permute.xlu1 %882  ;;  %13603 = vst [vmem:[#allocation88_spill] sm:$0xff] %v10613_v1  ;;  %v4505_v6 = vrot.slane %v8554_v31, 1  ;;  %v10645_v31 = vsel %vm1146_vm3, %v8550_v32, %v10502_v61  ;;  %v8555_v61 = vld [vmem:[%s13261_s0 + $0x174] sm:$0xff]  }
 0x169   :  { %13596 = vst [vmem:[#allocation81_spill] sm:$0xff] %v10584_v13  ;;  %v10587_v40 = vpop.f32.mrb[13].mxu0  ;;  %13609 = vst [vmem:[#allocation94_spill] sm:$0xff] %v10645_v31  ;;  %v10663_v32 = vsel %vm1049_vm4, %v8555_v61, %v883_v19 }
 0x16a   :  { %13597 = vst [vmem:[#allocation82_spill] sm:$0xff] %v10587_v40  ;;  %v10589_v62 = vpop.f32.mrb[14].mxu0  ;;  %5395 = vmatpush1.bf16.msra.mxu0 %v8450_v34  ;;  %v10603_v13 = vpop.f32.mrb[0].mxu1  ;;  %13613 = vst [vmem:[#allocation98_spill] sm:$0xff] %v10663_v32 }
 0x16b   :  { %13598 = vst [vmem:[#allocation83_spill] sm:$0xff] %v10589_v62  ;;  %v10598_v9 = vpop.f32.mrb[15].mxu0  ;;  %13602 = vst [vmem:[#allocation87_spill] sm:$0xff] %v10603_v13  ;;  %5396 = vmatprep.subr.bf16.mxu0 %v13516_v58  ;;  %v10606_v40 = vpop.permute.xlu0 %4440 }
 0x16c   :  { %13600 = vst [vmem:[#allocation85_spill] sm:$0xff] %v10598_v9  ;;  %v1591_v62 = vpop.f32.mrb[1].mxu1  ;;  %v4504_v9 = vrot.slane %v8553_v60, 1 }
 0x16d   :  { %4925 = vmatmul.mubr.bf16.gmra.mrb[120].mxu0 %v10593_v50  ;;  %v10615_v34 = vpop.f32.mrb[2].mxu1  ;;  %v8455_v62 = vld [vmem:[%s13264_s3 + $0x88] sm:$0xff]  }
 0x16e   :  { %13604 = vst [vmem:[#allocation89_spill] sm:$0xff] %v10615_v34  ;;  %7308 = vmatprep.mubr.msk.bf16.mxu0 %vm1146_vm3, %v10601_v4  ;;  %v1594_v16 = vpop.f32.mrb[3].mxu1  ;;  %5397 = vmatpush1.bf16.msra.mxu0 %v8451_v23  ;;  %v10632_v23 = vsel %vm1146_vm3, %v883_v19, %v10116_v12  ;;  %v8557_v19 = vld [vmem:[%s13262_s1 + $0x44] ss:$0 sps:$4 sm:$0x11]  }
 0x16f   :  { %5398 = vmatprep.subr.bf16.mxu0 %v13516_v58  ;;  %1804 = vmatmul.mubr.bf16.gmra.mrb[108].mxu1 %v10613_v1  ;;  %13605 = vst [vmem:[#allocation90_spill] sm:$0xff] %v10632_v23  ;;  %v10639_v13 = vpop.permute.xlu0 %4442  ;;  %v8459_v1 = vld [vmem:[%s13264_s3 + $0x90] sm:$0xff]   ;;  %v4508_v61 = vrot.slane %v8557_v19, 1  ;;  %v10695_v19 = vsel %vm1146_vm3, %v8553_v60, %v10532_v27 }
 0x170   :  { %v10634_v16 = vpop.f32.mrb[16].mxu0  ;;  %1811 = vmatprep.mubr.bf16.mxu1 %v10632_v23  ;;  %13619 = vst [vmem:[#allocation104_spill] sm:$0xff] %v10695_v19 }
 0x171   :  { %13606 = vst [vmem:[#allocation91_spill] sm:$0xff] %v10634_v16  ;;  %v10637_v34 = vpop.f32.mrb[17].mxu0  ;;  %v10653_v16 = vsel %vm888_vm0, %v4504_v9, %v4505_v6  ;;  %v8556_v6 = vld [vmem:[%s13262_s1 + $0x3c] sm:$0xff]  }
 0x172   :  { %13607 = vst [vmem:[#allocation92_spill] sm:$0xff] %v10637_v34  ;;  %v10641_v4 = vpop.f32.mrb[18].mxu0  ;;  %5399 = vmatpush1.bf16.msra.mxu0 %v8455_v62  ;;  %13611 = vst [vmem:[#allocation96_spill] sm:$0xff] %v10653_v16  ;;  %v10655_v23 = vpop.f32.mrb[4].mxu1 }
 0x173   :  { %13608 = vst [vmem:[#allocation93_spill] sm:$0xff] %v10641_v4  ;;  %v10650_v50 = vpop.f32.mrb[19].mxu0  ;;  %13612 = vst [vmem:[#allocation97_spill] sm:$0xff] %v10655_v23  ;;  %5400 = vmatprep.subr.bf16.mxu0 %v13516_v58  ;;  %v1599_v34 = vpop.f32.mrb[5].mxu1 }
 0x174   :  { %13610 = vst [vmem:[#allocation95_spill] sm:$0xff] %v10650_v50  ;;  %v885_v4 = vpop.permute.xlu1 %884  ;;  %v10665_v62 = vpop.f32.mrb[6].mxu1  ;;  %v8462_v34 = vld [vmem:[%s13264_s3 + $0x98] sm:$0xff]   ;;  %v4507_v50 = vrot.slane %v8556_v6, 1 }
 0x175   :  { %4933 = vmatmul.mubr.bf16.gmra.mrb[124].mxu0 %v10645_v31  ;;  %13614 = vst [vmem:[#allocation99_spill] sm:$0xff] %v10665_v62  ;;  %v1602_v9 = vpop.f32.mrb[7].mxu1 }
 0x176   :  { %7309 = vmatprep.mubr.msk.bf16.mxu0 %vm1146_vm3, %v10653_v16  ;;  %5401 = vmatpush1.bf16.msra.mxu0 %v8459_v1  ;;  %v10682_v1 = vsel %vm1146_vm3, %v885_v4, %v10138_v22  ;;  %v10686_v16 = vpop.permute.xlu0 %4444  ;;  %v10700_v23 = vsel %vm888_vm0, %v4507_v50, %v4508_v61  ;;  %v8559_v61 = vld [vmem:[%s13262_s1 + $0x48] sm:$0xff]  }
 0x177   :  { %5402 = vmatprep.subr.bf16.mxu0 %v13516_v58  ;;  %1812 = vmatmul.mubr.bf16.gmra.mrb[112].mxu1 %v10663_v32  ;;  %13615 = vst [vmem:[#allocation100_spill] sm:$0xff] %v10682_v1  ;;  %13621 = vst [vmem:[#allocation106_spill] sm:$0xff] %v10700_v23 }
 0x178   :  { %v10684_v9 = vpop.f32.mrb[20].mxu0  ;;  %1819 = vmatprep.mubr.bf16.mxu1 %v10682_v1  ;;  %v887_v1 = vpop.permute.xlu1 %886 }
 0x179   :  { %13616 = vst [vmem:[#allocation101_spill] sm:$0xff] %v10684_v9  ;;  %v10689_v62 = vpop.f32.mrb[21].mxu0 }
 0x17a   :  { %13617 = vst [vmem:[#allocation102_spill] sm:$0xff] %v10689_v62  ;;  %v10691_v31 = vpop.f32.mrb[22].mxu0  ;;  %5403 = vmatpush1.bf16.msra.mxu0 %v8462_v34  ;;  %v10702_v29 = vpop.f32.mrb[8].mxu1 }
 0x17b   :  { %13618 = vst [vmem:[#allocation103_spill] sm:$0xff] %v10691_v31  ;;  %v10697_v32 = vpop.f32.mrb[23].mxu0  ;;  %13622 = vst [vmem:[#allocation107_spill] sm:$0xff] %v10702_v29  ;;  %5404 = vmatprep.subr.bf16.mxu0 %v13516_v58  ;;  %v1607_v9 = vpop.f32.mrb[9].mxu1  ;;  %v8558_v31 = vld [vmem:[%s13261_s0 + $0x180] sm:$0xff]  }
 0x17c   :  { %13620 = vst [vmem:[#allocation105_spill] sm:$0xff] %v10697_v32  ;;  %v10710_v27 = vsel %vm1049_vm4, %v8558_v31, %v885_v4  ;;  %v10712_v60 = vpop.f32.mrb[10].mxu1  ;;  %v10716_v34 = vpop.permute.xlu0 %4446  ;;  %v4510_v9 = vrot.slane %v8559_v61, 1  ;;  %v8560_v32 = vld [vmem:[%s13262_s1 + $0x50] ss:$0 sps:$4 sm:$0x11]   ;;  %v10727_v4 = vsel %vm1146_vm3, %v887_v1, %v10159_v30 }
 0x17d   :  { %4941 = vmatmul.mubr.bf16.gmra.mrb[128].mxu0 %v10695_v19  ;;  %13623 = vst [vmem:[#allocation108_spill] sm:$0xff] %v10710_v27  ;;  %13624 = vst [vmem:[#allocation109_spill] sm:$0xff] %v10712_v60  ;;  %v1610_v50 = vpop.f32.mrb[11].mxu1  ;;  %v4511_v62 = vrot.slane %v8560_v32, 1  ;;  %v1322_v29 = vpop.permute.xlu1 %1321 }
 0x17e   :  { %7310 = vmatprep.mubr.msk.bf16.mxu0 %vm1146_vm3, %v10700_v23  ;;  %13625 = vst [vmem:[#allocation110_spill] sm:$0xff] %v10727_v4  ;;  %v10738_v23 = vsel %vm1146_vm3, %v8556_v6, %v10565_v59 }
 0x17f   :  { %1820 = vmatmul.mubr.bf16.gmra.mrb[116].mxu1 %v10710_v27  ;;  %13629 = vst [vmem:[#allocation114_spill] sm:$0xff] %v10738_v23  ;;  %v10743_v32 = vsel %vm888_vm0, %v4510_v9, %v4511_v62  ;;  %v8562_v9 = vld [vmem:[%s13262_s1 + $0x54] sm:$0xff]  }
 0x180   :  { %v10729_v31 = vpop.f32.mrb[24].mxu0  ;;  %1827 = vmatprep.mubr.bf16.mxu1 %v10727_v4  ;;  %13631 = vst [vmem:[#allocation116_spill] sm:$0xff] %v10743_v32 }
 0x181   :  { %13626 = vst [vmem:[#allocation111_spill] sm:$0xff] %v10729_v31  ;;  %v10732_v50 = vpop.f32.mrb[25].mxu0  ;;  %v10747_v31 = vpop.permute.xlu0 %1331 }
 0x182   :  { %13627 = vst [vmem:[#allocation112_spill] sm:$0xff] %v10732_v50  ;;  %v10734_v60 = vpop.f32.mrb[26].mxu0  ;;  %v10745_v27 = vpop.f32.mrb[12].mxu1  ;;  %13632 = vst [vmem:[#allocation117_spill] sm:$0xff] %v10747_v31  ;;  %v10762_v62 = vsel %vm1146_vm3, %v1322_v29, %v10747_v31 }
 0x183   :  { %13628 = vst [vmem:[#allocation113_spill] sm:$0xff] %v10734_v60  ;;  %v10740_v19 = vpop.f32.mrb[27].mxu0  ;;  %v1615_v18 = vpop.f32.mrb[13].mxu1  ;;  %v8561_v60 = vld [vmem:[%s13261_s0 + $0x18c] sm:$0xff]   ;;  %13635 = vst [vmem:[#allocation120_spill] sm:$0xff] %v10762_v62 }
 0x184   :  { %13630 = vst [vmem:[#allocation115_spill] sm:$0xff] %v10740_v19  ;;  %v10754_v59 = vsel %vm1049_vm4, %v8561_v60, %v887_v1  ;;  %v10756_v6 = vpop.f32.mrb[14].mxu1  ;;  %v4513_v19 = vrot.slane %v8562_v9, 1  ;;  %v8563_v1 = vld [vmem:[%s13262_s1 + $0x5c] ss:$0 sps:$4 sm:$0x11]  }
 0x185   :  { %4949 = vmatmul.mubr.bf16.gmra.mrb[132].mxu0 %v10738_v23  ;;  %13633 = vst [vmem:[#allocation118_spill] sm:$0xff] %v10754_v59  ;;  %13634 = vst [vmem:[#allocation119_spill] sm:$0xff] %v10756_v6  ;;  %v1618_v18 = vpop.f32.mrb[15].mxu1  ;;  %v4514_v60 = vrot.slane %v8563_v1, 1  ;;  %v10783_v23 = vsel %vm1146_vm3, %v8559_v61, %v10606_v40 }
 0x186   :  { %7311 = vmatprep.mubr.msk.bf16.mxu0 %vm1146_vm3, %v10743_v32  ;;  %v8468_v18 = vld [vmem:[%s13264_s3 + $0xa0] sm:$0xff]   ;;  %13639 = vst [vmem:[#allocation124_spill] sm:$0xff] %v10783_v23 }
 0x187   :  { %1828 = vmatmul.mubr.bf16.gmra.mrb[120].mxu1 %v10754_v59  ;;  %v10788_v1 = vsel %vm888_vm0, %v4513_v19, %v4514_v60  ;;  %5405 = vmatpush1.bf16.msra.mxu0 %v8468_v18  ;;  %v8566_v18 = vld [vmem:[%s13262_s1 + $0x68] ss:$0 sps:$4 sm:$0x11]  }
 0x188   :  { %v10771_v50 = vpop.f32.mrb[28].mxu0  ;;  %1835 = vmatprep.mubr.bf16.mxu1 %v10762_v62  ;;  %13641 = vst [vmem:[#allocation126_spill] sm:$0xff] %v10788_v1  ;;  %5406 = vmatprep.subr.bf16.mxu0 %v13516_v58  ;;  %v8564_v62 = vld [vmem:[%s13261_s0 + $0x198] sm:$0xff]  }
 0x189   :  { %13636 = vst [vmem:[#allocation121_spill] sm:$0xff] %v10771_v50  ;;  %v10773_v4 = vpop.f32.mrb[29].mxu0  ;;  %v10798_v40 = vsel %vm1049_vm4, %v8564_v62, %v1322_v29 }
 0x18a   :  { %13637 = vst [vmem:[#allocation122_spill] sm:$0xff] %v10773_v4  ;;  %v10779_v32 = vpop.f32.mrb[30].mxu0  ;;  %v10790_v50 = vpop.f32.mrb[16].mxu1  ;;  %13642 = vst [vmem:[#allocation127_spill] sm:$0xff] %v10798_v40 }
 0x18b   :  { %13638 = vst [vmem:[#allocation123_spill] sm:$0xff] %v10779_v32  ;;  %v10785_v6 = vpop.f32.mrb[31].mxu0  ;;  %v1623_v4 = vpop.f32.mrb[17].mxu1  ;;  %v4517_v32 = vrot.slane %v8566_v18, 1 }
 0x18c   :  { %13640 = vst [vmem:[#allocation125_spill] sm:$0xff] %v10785_v6  ;;  %v10800_v61 = vpop.f32.mrb[18].mxu1  ;;  %v8565_v4 = vld [vmem:[%s13262_s1 + $0x60] sm:$0xff]   ;;  %v10821_v6 = vsel %vm1146_vm3, %v8562_v9, %v10639_v13 }
 0x18d   :  { %4957 = vmatmul.mubr.bf16.gmra.mrb[136].mxu0 %v10783_v23  ;;  %v1626_v19 = vpop.f32.mrb[19].mxu1  ;;  %v4516_v60 = vrot.slane %v8565_v4, 1  ;;  %13646 = vst [vmem:[#allocation131_spill] sm:$0xff] %v10821_v6 }
 0x18e   :  { %7312 = vmatprep.mubr.msk.bf16.mxu0 %vm1146_vm3, %v10788_v1 }
 0x18f   :  { %1836 = vmatmul.mubr.bf16.gmra.mrb[124].mxu1 %v10798_v40  ;;  %v10826_v1 = vsel %vm888_vm0, %v4516_v60, %v4517_v32  ;;  %v8567_v32 = vld [vmem:[%s13262_s1 + $0x6c] sm:$0xff]  }
 0x190   :  { %v10811_v29 = vpop.f32.mrb[32].mxu0  ;;  %7908 = vmatprep.mubr.msk.bf16.mxu1 %vm1490_vm2, %v9512_v33  ;;  %13648 = vst [vmem:[#allocation133_spill] sm:$0xff] %v10826_v1  ;;  %v8452_v33 = vld [vmem:[%s13263_s2] sm:$0xff]   ;;  %v4519_v9 = vrot.slane %v8567_v32, 1 }
 0x191   :  { %13643 = vst [vmem:[#allocation128_spill] sm:$0xff] %v10811_v29  ;;  %v10815_v62 = vpop.f32.mrb[33].mxu0 }
 0x192   :  { %13644 = vst [vmem:[#allocation129_spill] sm:$0xff] %v10815_v62  ;;  %v10817_v19 = vpop.f32.mrb[34].mxu0  ;;  %v10828_v18 = vpop.f32.mrb[20].mxu1 }
 0x193   :  { %13645 = vst [vmem:[#allocation130_spill] sm:$0xff] %v10817_v19  ;;  %v10823_v59 = vpop.f32.mrb[35].mxu0  ;;  %v1631_v40 = vpop.f32.mrb[21].mxu1 }
 0x194   :  { %13647 = vst [vmem:[#allocation132_spill] sm:$0xff] %v10823_v59  ;;  %v10831_v29 = vpop.f32.mrb[22].mxu1  ;;  %v8568_v40 = vld [vmem:[%s13262_s1 + $0x74] ss:$0 sps:$4 sm:$0x11]  }
 0x195   :  { %4965 = vmatmul.mubr.bf16.gmra.mrb[140].mxu0 %v10821_v6  ;;  %v1634_v13 = vpop.f32.mrb[23].mxu1  ;;  %v4520_v60 = vrot.slane %v8568_v40, 1  ;;  %v10859_v40 = vsel %vm1146_vm3, %v8565_v4, %v10686_v16  ;;  %v8454_v16 = vld [vmem:[%s13263_s2 + $0x10] sm:$0xff]   ;;  %v8472_v4 = vld [vmem:[%s13264_s3 + $0xa8] sm:$0xff]  }
 0x196   :  { %7313 = vmatprep.mubr.msk.bf16.mxu0 %vm1146_vm3, %v10826_v1  ;;  %v8453_v13 = vld [vmem:[%s13263_s2 + $0x8] sm:$0xff]   ;;  %13652 = vst [vmem:[#allocation137_spill] sm:$0xff] %v10859_v40  ;;  %5407 = vmatpush1.bf16.msra.mxu0 %v8472_v4  ;;  %v10903_v4 = vsel %vm1146_vm3, %v8567_v32, %v10716_v34  ;;  %v8457_v34 = vld [vmem:[%s13263_s2 + $0x20] sm:$0xff]  }
 0x197   :  { %7909 = vmatmul.mubr.msk.bf16.vlgmr.msra.gmra.mrb[128].mxu1 %vm1490_vm2, %v9461_v49  ;;  %5408 = vmatprep.subr.bf16.mxu0 %v13516_v58  ;;  %13658 = vst [vmem:[#allocation143_spill] sm:$0xff] %v10903_v4 }
 0x198   :  { %v10846_v19 = vpop.f32.mrb[36].mxu0  ;;  %7912 = vmatprep.mubr.msk.bf16.mxu1 %vm1490_vm2, %v9494_v55  ;;  %2246 = vmatpush1.bf16.msra.mxu1 %v8452_v33 }
 0x199   :  { %13649 = vst [vmem:[#allocation134_spill] sm:$0xff] %v10846_v19  ;;  %v10850_v59 = vpop.f32.mrb[37].mxu0  ;;  %2247 = vmatprep.subr.bf16.mxu1 %v13516_v58  ;;  %v10865_v19 = vsel %vm888_vm0, %v4519_v9, %v4520_v60  ;;  %v8569_v60 = vld [vmem:[%s13262_s1 + $0x78] sm:$0xff]  }
 0x19a   :  { %13650 = vst [vmem:[#allocation135_spill] sm:$0xff] %v10850_v59  ;;  %v10855_v62 = vpop.f32.mrb[38].mxu0  ;;  %13654 = vst [vmem:[#allocation139_spill] sm:$0xff] %v10865_v19  ;;  %v10867_v55 = vpop.f32.mrb[24].mxu1 }
 0x19b   :  { %13651 = vst [vmem:[#allocation136_spill] sm:$0xff] %v10855_v62  ;;  %v10862_v49 = vpop.f32.mrb[39].mxu0  ;;  %v1639_v33 = vpop.f32.mrb[25].mxu1 }
 0x19c   :  { %13653 = vst [vmem:[#allocation138_spill] sm:$0xff] %v10862_v49  ;;  %v10870_v59 = vpop.f32.mrb[26].mxu1  ;;  %2248 = vmatpush1.bf16.msra.mxu1 %v8453_v13  ;;  %v4522_v33 = vrot.slane %v8569_v60, 1  ;;  %v8570_v13 = vld [vmem:[%s13262_s1 + $0x80] ss:$0 sps:$4 sm:$0x11]  }
 0x19d   :  { %4973 = vmatmul.mubr.bf16.gmra.mrb[144].mxu0 %v10859_v40  ;;  %v1642_v9 = vpop.f32.mrb[27].mxu1  ;;  %2249 = vmatprep.subr.bf16.mxu1 %v13516_v58  ;;  %v4523_v62 = vrot.slane %v8570_v13, 1 }
 0x19e   :  { %7314 = vmatprep.mubr.msk.bf16.mxu0 %vm1146_vm3, %v10865_v19  ;;  %v8456_v19 = vld [vmem:[%s13263_s2 + $0x18] sm:$0xff]  }
 0x19f   :  { %7913 = vmatmul.mubr.msk.bf16.gmra.mrb[132].mxu1 %vm1490_vm2, %v9556_v28  ;;  %v10909_v13 = vsel %vm888_vm0, %v4522_v33, %v4523_v62  ;;  %v8571_v62 = vld [vmem:[%s13262_s1 + $0x84] sm:$0xff]  }
 0x1a0   :  { %v10889_v49 = vpop.f32.mrb[40].mxu0  ;;  %7916 = vmatprep.mubr.msk.bf16.mxu1 %vm1490_vm2, %v9528_v25  ;;  %2250 = vmatpush1.bf16.msra.mxu1 %v8454_v16  ;;  %13660 = vst [vmem:[#allocation145_spill] sm:$0xff] %v10909_v13  ;;  %v4525_v33 = vrot.slane %v8571_v62, 1 }
 0x1a1   :  { %13655 = vst [vmem:[#allocation140_spill] sm:$0xff] %v10889_v49  ;;  %v10894_v9 = vpop.f32.mrb[41].mxu0  ;;  %2251 = vmatprep.subr.bf16.mxu1 %v13516_v58 }
 0x1a2   :  { %13656 = vst [vmem:[#allocation141_spill] sm:$0xff] %v10894_v9  ;;  %v10899_v40 = vpop.f32.mrb[42].mxu0  ;;  %v10911_v25 = vpop.f32.mrb[28].mxu1  ;;  %v8458_v9 = vld [vmem:[%s13263_s2 + $0x28] sm:$0xff]  }
 0x1a3   :  { %13657 = vst [vmem:[#allocation142_spill] sm:$0xff] %v10899_v40  ;;  %v10906_v28 = vpop.f32.mrb[43].mxu0  ;;  %v1647_v16 = vpop.f32.mrb[29].mxu1 }
 0x1a4   :  { %13659 = vst [vmem:[#allocation144_spill] sm:$0xff] %v10906_v28  ;;  %v10914_v49 = vpop.f32.mrb[30].mxu1  ;;  %2252 = vmatpush1.bf16.msra.mxu1 %v8456_v19  ;;  %v8572_v16 = vld [vmem:[%s13262_s1 + $0x8c] ss:$0 sps:$4 sm:$0x11]   ;;  %v4449_v28 = vpop.permute.xlu1 %4448 }
 0x1a5   :  { %4981 = vmatmul.mubr.bf16.gmra.mrb[148].mxu0 %v10903_v4  ;;  %v1650_v32 = vpop.f32.mrb[31].mxu1  ;;  %2253 = vmatprep.subr.bf16.mxu1 %v13516_v58  ;;  %v4526_v19 = vrot.slane %v8572_v16, 1  ;;  %v10942_v16 = vsel %vm1146_vm3, %v8569_v60, %v4449_v28  ;;  %v8460_v60 = vld [vmem:[%s13263_s2 + $0x30] sm:$0xff]  }
 0x1a6   :  { %7315 = vmatprep.mubr.msk.bf16.mxu0 %vm1146_vm3, %v10909_v13  ;;  %13664 = vst [vmem:[#allocation149_spill] sm:$0xff] %v10942_v16 }
 0x1a7   :  { %7917 = vmatmul.mubr.msk.bf16.gmra.mrb[136].mxu1 %vm1490_vm2, %v9593_v8 }
 0x1a8   :  { %v10930_v40 = vpop.f32.mrb[44].mxu0  ;;  %7920 = vmatprep.mubr.msk.bf16.mxu1 %vm1490_vm2, %v9569_v56  ;;  %2254 = vmatpush1.bf16.msra.mxu1 %v8457_v34 }
 0x1a9   :  { %13661 = vst [vmem:[#allocation146_spill] sm:$0xff] %v10930_v40  ;;  %v10934_v32 = vpop.f32.mrb[45].mxu0  ;;  %2255 = vmatprep.subr.bf16.mxu1 %v13516_v58  ;;  %v10948_v40 = vsel %vm888_vm0, %v4525_v33, %v4526_v19  ;;  %v8573_v33 = vld [vmem:[%s13262_s1 + $0x90] sm:$0xff]  }
 0x1aa   :  { %13662 = vst [vmem:[#allocation147_spill] sm:$0xff] %v10934_v32  ;;  %v10939_v13 = vpop.f32.mrb[46].mxu0  ;;  %13666 = vst [vmem:[#allocation151_spill] sm:$0xff] %v10948_v40  ;;  %v10950_v56 = vpop.f32.mrb[32].mxu1  ;;  %v4528_v19 = vrot.slane %v8573_v33, 1 }
 0x1ab   :  { %13663 = vst [vmem:[#allocation148_spill] sm:$0xff] %v10939_v13  ;;  %v10945_v8 = vpop.f32.mrb[47].mxu0  ;;  %v1655_v32 = vpop.f32.mrb[33].mxu1 }
 0x1ac   :  { %13665 = vst [vmem:[#allocation150_spill] sm:$0xff] %v10945_v8  ;;  %v10953_v34 = vpop.f32.mrb[34].mxu1  ;;  %2256 = vmatpush1.bf16.msra.mxu1 %v8458_v9  ;;  %v8574_v32 = vld [vmem:[%s13262_s1 + $0x98] ss:$0 sps:$4 sm:$0x11]   ;;  %v4451_v8 = vpop.permute.xlu0 %4450 }
 0x1ad   :  { %4989 = vmatmul.mubr.bf16.gmra.mrb[152].mxu0 %v10942_v16  ;;  %v1658_v28 = vpop.f32.mrb[35].mxu1  ;;  %2257 = vmatprep.subr.bf16.mxu1 %v13516_v58  ;;  %v4529_v9 = vrot.slane %v8574_v32, 1  ;;  %v8473_v32 = vld [vmem:[%s13264_s3 + $0xb0] sm:$0xff]  }
 0x1ae   :  { %7316 = vmatprep.mubr.msk.bf16.mxu0 %vm1146_vm3, %v10948_v40  ;;  %v8461_v40 = vld [vmem:[%s13263_s2 + $0x38] sm:$0xff]   ;;  %5409 = vmatpush1.bf16.msra.mxu0 %v8473_v32 }
 0x1af   :  { %7921 = vmatmul.mubr.msk.bf16.gmra.mrb[140].mxu1 %vm1490_vm2, %v9628_v43  ;;  %v10984_v43 = vsel %vm1146_vm3, %v8571_v62, %v4451_v8  ;;  %5410 = vmatprep.subr.bf16.mxu0 %v13516_v58  ;;  %v8463_v62 = vld [vmem:[%s13263_s2 + $0x40] sm:$0xff]  }
 0x1b0   :  { %v10969_v13 = vpop.f32.mrb[48].mxu0  ;;  %7924 = vmatprep.mubr.msk.bf16.mxu1 %vm1490_vm2, %v9617_v11  ;;  %2258 = vmatpush1.bf16.msra.mxu1 %v8460_v60  ;;  %13670 = vst [vmem:[#allocation155_spill] sm:$0xff] %v10984_v43  ;;  %v10990_v11 = vsel %vm888_vm0, %v4528_v19, %v4529_v9  ;;  %v8575_v19 = vld [vmem:[%s13262_s1 + $0x9c] sm:$0xff]  }
 0x1b1   :  { %13667 = vst [vmem:[#allocation152_spill] sm:$0xff] %v10969_v13  ;;  %v10973_v28 = vpop.f32.mrb[49].mxu0  ;;  %2259 = vmatprep.subr.bf16.mxu1 %v13516_v58  ;;  %13672 = vst [vmem:[#allocation157_spill] sm:$0xff] %v10990_v11  ;;  %v4531_v9 = vrot.slane %v8575_v19, 1 }
 0x1b2   :  { %13668 = vst [vmem:[#allocation153_spill] sm:$0xff] %v10973_v28  ;;  %v10981_v16 = vpop.f32.mrb[50].mxu0  ;;  %v10992_v60 = vpop.f32.mrb[36].mxu1 }
 0x1b3   :  { %13669 = vst [vmem:[#allocation154_spill] sm:$0xff] %v10981_v16  ;;  %v10987_v13 = vpop.f32.mrb[51].mxu0  ;;  %v1663_v28 = vpop.f32.mrb[37].mxu1 }
 0x1b4   :  { %13671 = vst [vmem:[#allocation156_spill] sm:$0xff] %v10987_v13  ;;  %v10996_v4 = vpop.f32.mrb[38].mxu1  ;;  %2260 = vmatpush1.bf16.msra.mxu1 %v8461_v40  ;;  %v8576_v28 = vld [vmem:[%s13262_s1 + $0xa4] ss:$0 sps:$4 sm:$0x11]   ;;  %v4453_v16 = vpop.permute.xlu1 %4452  ;;  %v8464_v13 = vld [vmem:[%s13263_s2 + $0x48] sm:$0xff]  }
 0x1b5   :  { %4997 = vmatmul.mubr.bf16.gmra.mrb[156].mxu0 %v10984_v43  ;;  %v1666_v8 = vpop.f32.mrb[39].mxu1  ;;  %2261 = vmatprep.subr.bf16.mxu1 %v13516_v58  ;;  %v4532_v40 = vrot.slane %v8576_v28, 1  ;;  %v11024_v28 = vsel %vm1146_vm3, %v8573_v33, %v4453_v16  ;;  %v8465_v16 = vld [vmem:[%s13263_s2 + $0x50] sm:$0xff]  }
 0x1b6   :  { %7317 = vmatprep.mubr.msk.bf16.mxu0 %vm1146_vm3, %v10990_v11  ;;  %13676 = vst [vmem:[#allocation161_spill] sm:$0xff] %v11024_v28 }
 0x1b7   :  { %7925 = vmatmul.mubr.msk.bf16.gmra.mrb[144].mxu1 %vm1490_vm2, %v9664_v57 }
 0x1b8   :  { %v11012_v32 = vpop.f32.mrb[52].mxu0  ;;  %7928 = vmatprep.mubr.msk.bf16.mxu1 %vm1490_vm2, %v9643_v39  ;;  %2262 = vmatpush1.bf16.msra.mxu1 %v8463_v62 }
 0x1b9   :  { %13673 = vst [vmem:[#allocation158_spill] sm:$0xff] %v11012_v32  ;;  %v11016_v8 = vpop.f32.mrb[53].mxu0  ;;  %2263 = vmatprep.subr.bf16.mxu1 %v13516_v58  ;;  %v11030_v32 = vsel %vm888_vm0, %v4531_v9, %v4532_v40  ;;  %v8577_v9 = vld [vmem:[%s13262_s1 + $0xa8] sm:$0xff]  }
 0x1ba   :  { %13674 = vst [vmem:[#allocation159_spill] sm:$0xff] %v11016_v8  ;;  %v11021_v11 = vpop.f32.mrb[54].mxu0  ;;  %13678 = vst [vmem:[#allocation163_spill] sm:$0xff] %v11030_v32  ;;  %v11032_v39 = vpop.f32.mrb[40].mxu1  ;;  %v4534_v40 = vrot.slane %v8577_v9, 1 }
 0x1bb   :  { %13675 = vst [vmem:[#allocation160_spill] sm:$0xff] %v11021_v11  ;;  %v11027_v57 = vpop.f32.mrb[55].mxu0  ;;  %v1671_v8 = vpop.f32.mrb[41].mxu1 }
 0x1bc   :  { %13677 = vst [vmem:[#allocation162_spill] sm:$0xff] %v11027_v57  ;;  %v11035_v62 = vpop.f32.mrb[42].mxu1  ;;  %2264 = vmatpush1.bf16.msra.mxu1 %v8464_v13  ;;  %v8578_v8 = vld [vmem:[%s13262_s1 + $0xb0] ss:$0 sps:$4 sm:$0x11]   ;;  %v4455_v57 = vpop.permute.xlu0 %4454 }
 0x1bd   :  { %5005 = vmatmul.mubr.bf16.gmra.mrb[160].mxu0 %v11024_v28  ;;  %v1674_v33 = vpop.f32.mrb[43].mxu1  ;;  %2265 = vmatprep.subr.bf16.mxu1 %v13516_v58  ;;  %v4535_v13 = vrot.slane %v8578_v8, 1  ;;  %v11063_v8 = vsel %vm1146_vm3, %v8575_v19, %v4455_v57  ;;  %v8467_v19 = vld [vmem:[%s13263_s2 + $0x60] sm:$0xff]  }
 0x1be   :  { %7318 = vmatprep.mubr.msk.bf16.mxu0 %vm1146_vm3, %v11030_v32  ;;  %v8466_v32 = vld [vmem:[%s13263_s2 + $0x58] sm:$0xff]   ;;  %13682 = vst [vmem:[#allocation167_spill] sm:$0xff] %v11063_v8 }
 0x1bf   :  { %7929 = vmatmul.mubr.msk.bf16.gmra.mrb[148].mxu1 %vm1490_vm2, %v9698_v42 }
 0x1c0   :  { %v11051_v11 = vpop.f32.mrb[56].mxu0  ;;  %7932 = vmatprep.mubr.msk.bf16.mxu1 %vm1490_vm2, %v9678_v0  ;;  %2266 = vmatpush1.bf16.msra.mxu1 %v8465_v16 }
 0x1c1   :  { %13679 = vst [vmem:[#allocation164_spill] sm:$0xff] %v11051_v11  ;;  %v11055_v33 = vpop.f32.mrb[57].mxu0  ;;  %2267 = vmatprep.subr.bf16.mxu1 %v13516_v58  ;;  %v11069_v11 = vsel %vm888_vm0, %v4534_v40, %v4535_v13  ;;  %v8579_v40 = vld [vmem:[%s13262_s1 + $0xb4] sm:$0xff]  }
 0x1c2   :  { %13680 = vst [vmem:[#allocation165_spill] sm:$0xff] %v11055_v33  ;;  %v11060_v28 = vpop.f32.mrb[58].mxu0  ;;  %13684 = vst [vmem:[#allocation169_spill] sm:$0xff] %v11069_v11  ;;  %v11071_v0 = vpop.f32.mrb[44].mxu1  ;;  %v4537_v13 = vrot.slane %v8579_v40, 1 }
 0x1c3   :  { %13681 = vst [vmem:[#allocation166_spill] sm:$0xff] %v11060_v28  ;;  %v11066_v42 = vpop.f32.mrb[59].mxu0  ;;  %v1679_v33 = vpop.f32.mrb[45].mxu1 }
 0x1c4   :  { %13683 = vst [vmem:[#allocation168_spill] sm:$0xff] %v11066_v42  ;;  %v11074_v16 = vpop.f32.mrb[46].mxu1  ;;  %2268 = vmatpush1.bf16.msra.mxu1 %v8466_v32  ;;  %v8580_v33 = vld [vmem:[%s13262_s1 + $0xbc] ss:$0 sps:$4 sm:$0x11]   ;;  %v4457_v42 = vpop.permute.xlu1 %4456 }
 0x1c5   :  { %5013 = vmatmul.mubr.bf16.gmra.mrb[164].mxu0 %v11063_v8  ;;  %v1682_v57 = vpop.f32.mrb[47].mxu1  ;;  %2269 = vmatprep.subr.bf16.mxu1 %v13516_v58  ;;  %v4538_v32 = vrot.slane %v8580_v33, 1  ;;  %v8476_v33 = vld [vmem:[%s13264_s3 + $0xb8] sm:$0xff]  }
 0x1c6   :  { %7319 = vmatprep.mubr.msk.bf16.mxu0 %vm1146_vm3, %v11069_v11  ;;  %v8469_v11 = vld [vmem:[%s13263_s2 + $0x68] sm:$0xff]   ;;  %5411 = vmatpush1.bf16.msra.mxu0 %v8476_v33 }
 0x1c7   :  { %7933 = vmatmul.mubr.msk.bf16.gmra.mrb[152].mxu1 %vm1490_vm2, %v9712_v52  ;;  %v11105_v52 = vsel %vm1146_vm3, %v8577_v9, %v4457_v42  ;;  %5900 = vmatprep.subr.bf16.mxu0 %v13516_v58  ;;  %v8470_v9 = vld [vmem:[%s13263_s2 + $0x70] sm:$0xff]  }
 0x1c8   :  { %v11090_v28 = vpop.f32.mrb[60].mxu0  ;;  %7936 = vmatprep.mubr.msk.bf16.mxu1 %vm1490_vm2, %v9787_v45  ;;  %2270 = vmatpush1.bf16.msra.mxu1 %v8467_v19  ;;  %13688 = vst [vmem:[#allocation173_spill] sm:$0xff] %v11105_v52  ;;  %v11111_v45 = vsel %vm888_vm0, %v4537_v13, %v4538_v32  ;;  %v8581_v13 = vld [vmem:[%s13262_s1 + $0xd8] sm:$0xff]  }
 0x1c9   :  { %13685 = vst [vmem:[#allocation170_spill] sm:$0xff] %v11090_v28  ;;  %v11094_v57 = vpop.f32.mrb[61].mxu0  ;;  %2271 = vmatprep.subr.bf16.mxu1 %v13516_v58  ;;  %13690 = vst [vmem:[#allocation175_spill] sm:$0xff] %v11111_v45  ;;  %v4540_v32 = vrot.slane %v8581_v13, 1 }
 0x1ca   :  { %13686 = vst [vmem:[#allocation171_spill] sm:$0xff] %v11094_v57  ;;  %v11102_v8 = vpop.f32.mrb[62].mxu0  ;;  %v11113_v19 = vpop.f32.mrb[48].mxu1 }
 0x1cb   :  { %13687 = vst [vmem:[#allocation172_spill] sm:$0xff] %v11102_v8  ;;  %v11108_v28 = vpop.f32.mrb[63].mxu0  ;;  %v1687_v57 = vpop.f32.mrb[49].mxu1 }
 0x1cc   :  { %13689 = vst [vmem:[#allocation174_spill] sm:$0xff] %v11108_v28  ;;  %v11117_v43 = vpop.f32.mrb[50].mxu1  ;;  %2272 = vmatpush1.bf16.msra.mxu1 %v8469_v11  ;;  %v8582_v57 = vld [vmem:[%s13262_s1 + $0xe0] ss:$0 sps:$4 sm:$0x11]   ;;  %v4459_v8 = vpop.permute.xlu0 %4458  ;;  %v8471_v28 = vld [vmem:[%s13263_s2 + $0x78] sm:$0xff]  }
 0x1cd   :  { %5021 = vmatmul.mubr.bf16.gmra.mrb[168].mxu0 %v11105_v52  ;;  %v1690_v42 = vpop.f32.mrb[51].mxu1  ;;  %2273 = vmatprep.subr.bf16.mxu1 %v13516_v58  ;;  %v4541_v11 = vrot.slane %v8582_v57, 1  ;;  %v11145_v57 = vsel %vm1146_vm3, %v8579_v40, %v4459_v8  ;;  %v8583_v8 = vld [vmem:[%s13262_s1 + $0xe4] sm:$0xff]  }
 0x1ce   :  { %7320 = vmatprep.mubr.msk.bf16.mxu0 %vm1146_vm3, %v11111_v45  ;;  %13694 = vst [vmem:[#allocation179_spill] sm:$0xff] %v11145_v57  ;;  %v4543_v40 = vrot.slane %v8583_v8, 1 }
 0x1cf   :  { %7937 = vmatmul.mubr.msk.bf16.gmra.mrb[156].mxu1 %vm1490_vm2, %v10258_v47 }
 0x1d0   :  { %v11133_v33 = vpop.f32.mrb[64].mxu0  ;;  %7940 = vmatprep.mubr.msk.bf16.mxu1 %vm1490_vm2, %v9800_v26  ;;  %2274 = vmatpush1.bf16.msra.mxu1 %v8470_v9 }
 0x1d1   :  { %13691 = vst [vmem:[#allocation176_spill] sm:$0xff] %v11133_v33  ;;  %v11137_v42 = vpop.f32.mrb[65].mxu0  ;;  %2275 = vmatprep.subr.bf16.mxu1 %v13516_v58  ;;  %v4542_v33 = vsel %vm888_vm0, %v4540_v32, %v4541_v11  ;;  %v8584_v32 = vld [vmem:[%s13262_s1 + $0xec] ss:$0 sps:$4 sm:$0x11]  }
 0x1d2   :  { %13692 = vst [vmem:[#allocation177_spill] sm:$0xff] %v11137_v42  ;;  %v11142_v45 = vpop.f32.mrb[66].mxu0  ;;  %v11151_v52 = vpop.f32.mrb[52].mxu1  ;;  %v4544_v11 = vrot.slane %v8584_v32, 1 }
 0x1d3   :  { %13693 = vst [vmem:[#allocation178_spill] sm:$0xff] %v11142_v45  ;;  %v11148_v47 = vpop.f32.mrb[67].mxu0  ;;  %v1695_v26 = vpop.f32.mrb[53].mxu1 }
 0x1d4   :  { %13695 = vst [vmem:[#allocation180_spill] sm:$0xff] %v11148_v47  ;;  %v11154_v9 = vpop.f32.mrb[54].mxu1  ;;  %2276 = vmatpush1.bf16.msra.mxu1 %v8471_v28  ;;  %v4461_v28 = vpop.permute.xlu1 %4460 }
 0x1d5   :  { %5029 = vmatmul.mubr.bf16.gmra.mrb[172].mxu0 %v11145_v57  ;;  %v1698_v45 = vpop.f32.mrb[55].mxu1  ;;  %3038 = vmatprep.subr.bf16.mxu1 %v13516_v58  ;;  %v4637_v47 = vsel %vm1146_vm3, %v8581_v13, %v4461_v28  ;;  %v11178_v57 = vsel %vm888_vm0, %v4543_v40, %v4544_v11  ;;  %v8586_v40 = vld [vmem:[%s13262_s1 + $0xf8] ss:$0 sps:$4 sm:$0x11]   ;;  %v4463_v28 = vpop.permute.xlu0 %4462 }
 0x1d6   :  { %7321 = vmatprep.mubr.msk.bf16.mxu0 %vm1146_vm3, %v4542_v33  ;;  %13700 = vst [vmem:[#allocation185_spill] sm:$0xff] %v11178_v57  ;;  %v4547_v11 = vrot.slane %v8586_v40, 1 }
 0x1d7   :  { %7941 = vmatmul.mubr.msk.bf16.gmra.mrb[160].mxu1 %vm1490_vm2, %v9847_v20 }
 0x1d8   :  { %v11166_v26 = vpop.f32.mrb[68].mxu0  ;;  %7944 = vmatprep.mubr.msk.bf16.mxu1 %vm1490_vm2, %v9881_v36 }
 0x1d9   :  { %13696 = vst [vmem:[#allocation181_spill] sm:$0xff] %v11166_v26  ;;  %v11170_v45 = vpop.f32.mrb[69].mxu0 }
 0x1da   :  { %13697 = vst [vmem:[#allocation182_spill] sm:$0xff] %v11170_v45  ;;  %v11172_v33 = vpop.f32.mrb[70].mxu0  ;;  %v11180_v32 = vpop.f32.mrb[56].mxu1 }
 0x1db   :  { %13698 = vst [vmem:[#allocation183_spill] sm:$0xff] %v11172_v33  ;;  %v11175_v42 = vpop.f32.mrb[71].mxu0  ;;  %v1703_v20 = vpop.f32.mrb[57].mxu1  ;;  %v8585_v33 = vld [vmem:[%s13262_s1 + $0xf0] sm:$0xff]  }
 0x1dc   :  { %13699 = vst [vmem:[#allocation184_spill] sm:$0xff] %v11175_v42  ;;  %v11182_v26 = vpop.f32.mrb[58].mxu1  ;;  %v4546_v13 = vrot.slane %v8585_v33, 1  ;;  %v11203_v42 = vsel %vm1146_vm3, %v8583_v8, %v4463_v28  ;;  %v8587_v8 = vld [vmem:[%s13262_s1 + $0xfc] sm:$0xff]  }
 0x1dd   :  { %5037 = vmatmul.mubr.bf16.gmra.mrb[176].mxu0 %v4637_v47  ;;  %v1706_v36 = vpop.f32.mrb[59].mxu1  ;;  %13704 = vst [vmem:[#allocation189_spill] sm:$0xff] %v11203_v42  ;;  %v4549_v28 = vrot.slane %v8587_v8, 1 }
 0x1de   :  { %7322 = vmatprep.mubr.msk.bf16.mxu0 %vm1146_vm3, %v11178_v57  ;;  %v11208_v40 = vsel %vm888_vm0, %v4546_v13, %v4547_v11  ;;  %v8588_v13 = vld [vmem:[%s13262_s1 + $0x104] ss:$0 sps:$4 sm:$0x11]  }
 0x1df   :  { %7945 = vmatmul.mubr.msk.bf16.gmra.mrb[164].mxu1 %vm1490_vm2, %v9921_v10  ;;  %13706 = vst [vmem:[#allocation191_spill] sm:$0xff] %v11208_v40  ;;  %v4550_v11 = vrot.slane %v8588_v13, 1 }
 0x1e0   :  { %v11194_v47 = vpop.f32.mrb[72].mxu0  ;;  %7948 = vmatprep.mubr.msk.bf16.mxu1 %vm1490_vm2, %v9905_v53 }
 0x1e1   :  { %13701 = vst [vmem:[#allocation186_spill] sm:$0xff] %v11194_v47  ;;  %v11198_v20 = vpop.f32.mrb[73].mxu0  ;;  %v11239_v13 = vsel %vm888_vm0, %v4549_v28, %v4550_v11  ;;  %v8590_v28 = vld [vmem:[%s13262_s1 + $0x110] ss:$0 sps:$4 sm:$0x11]  }
 0x1e2   :  { %13702 = vst [vmem:[#allocation187_spill] sm:$0xff] %v11198_v20  ;;  %v11200_v36 = vpop.f32.mrb[74].mxu0  ;;  %v11210_v57 = vpop.f32.mrb[60].mxu1  ;;  %13712 = vst [vmem:[#allocation197_spill] sm:$0xff] %v11239_v13  ;;  %v4553_v11 = vrot.slane %v8590_v28, 1 }
 0x1e3   :  { %13703 = vst [vmem:[#allocation188_spill] sm:$0xff] %v11200_v36  ;;  %v11205_v45 = vpop.f32.mrb[75].mxu0  ;;  %v1711_v10 = vpop.f32.mrb[61].mxu1 }
 0x1e4   :  { %13705 = vst [vmem:[#allocation190_spill] sm:$0xff] %v11205_v45  ;;  %v11213_v47 = vpop.f32.mrb[62].mxu1  ;;  %v4465_v36 = vpop.permute.xlu1 %4464 }
 0x1e5   :  { %5045 = vmatmul.mubr.bf16.gmra.mrb[180].mxu0 %v11203_v42  ;;  %v1714_v53 = vpop.f32.mrb[63].mxu1  ;;  %v11234_v20 = vsel %vm1146_vm3, %v8585_v33, %v4465_v36  ;;  %v8589_v33 = vld [vmem:[%s13262_s1 + $0x108] sm:$0xff]  }
 0x1e6   :  { %7323 = vmatprep.mubr.msk.bf16.mxu0 %vm1146_vm3, %v11208_v40  ;;  %13710 = vst [vmem:[#allocation195_spill] sm:$0xff] %v11234_v20  ;;  %v4552_v36 = vrot.slane %v8589_v33, 1 }
 0x1e7   :  { %7949 = vmatmul.mubr.msk.bf16.gmra.mrb[168].mxu1 %vm1490_vm2, %v9929_v51 }
 0x1e8   :  { %v11225_v10 = vpop.f32.mrb[76].mxu0  ;;  %7952 = vmatprep.mubr.msk.bf16.mxu1 %vm1490_vm2, %v9964_v15  ;;  %v11270_v28 = vsel %vm888_vm0, %v4552_v36, %v4553_v11  ;;  %v8592_v36 = vld [vmem:[%s13262_s1 + $0x11c] ss:$0 sps:$4 sm:$0x11]  }
 0x1e9   :  { %13707 = vst [vmem:[#allocation192_spill] sm:$0xff] %v11225_v10  ;;  %v11229_v53 = vpop.f32.mrb[77].mxu0  ;;  %13719 = vst [vmem:[#allocation204_spill] sm:$0xff] %v11270_v28  ;;  %v4556_v11 = vrot.slane %v8592_v36, 1 }
 0x1ea   :  { %13708 = vst [vmem:[#allocation193_spill] sm:$0xff] %v11229_v53  ;;  %v11231_v45 = vpop.f32.mrb[78].mxu0  ;;  %v11241_v42 = vpop.f32.mrb[64].mxu1 }
 0x1eb   :  { %13709 = vst [vmem:[#allocation194_spill] sm:$0xff] %v11231_v45  ;;  %v11236_v40 = vpop.f32.mrb[79].mxu0  ;;  %v1719_v51 = vpop.f32.mrb[65].mxu1 }
 0x1ec   :  { %13711 = vst [vmem:[#allocation196_spill] sm:$0xff] %v11236_v40  ;;  %v11244_v10 = vpop.f32.mrb[66].mxu1  ;;  %v4467_v45 = vpop.permute.xlu0 %4466 }
 0x1ed   :  { %5053 = vmatmul.mubr.bf16.gmra.mrb[184].mxu0 %v11234_v20  ;;  %13713 = vst [vmem:[#allocation198_spill] sm:$0xff] %v11244_v10  ;;  %v1722_v15 = vpop.f32.mrb[67].mxu1  ;;  %v11265_v53 = vsel %vm1146_vm3, %v8587_v8, %v4467_v45  ;;  %v8591_v45 = vld [vmem:[%s13262_s1 + $0x114] sm:$0xff]  }
 0x1ee   :  { %7324 = vmatprep.mubr.msk.bf16.mxu0 %vm1146_vm3, %v11239_v13  ;;  %13717 = vst [vmem:[#allocation202_spill] sm:$0xff] %v11265_v53  ;;  %v4555_v8 = vrot.slane %v8591_v45, 1 }
 0x1ef   :  { %7953 = vmatmul.mubr.msk.bf16.gmra.mrb[172].mxu1 %vm1490_vm2, %v9994_v63 }
 0x1f0   :  { %v11256_v51 = vpop.f32.mrb[80].mxu0  ;;  %7956 = vmatprep.mubr.msk.bf16.mxu1 %vm1490_vm2, %v10003_v5  ;;  %v11301_v36 = vsel %vm888_vm0, %v4555_v8, %v4556_v11  ;;  %v8594_v8 = vld [vmem:[%s13262_s1 + $0x128] ss:$0 sps:$4 sm:$0x11]  }
 0x1f1   :  { %13714 = vst [vmem:[#allocation199_spill] sm:$0xff] %v11256_v51  ;;  %v11260_v15 = vpop.f32.mrb[81].mxu0  ;;  %13725 = vst [vmem:[#allocation210_spill] sm:$0xff] %v11301_v36  ;;  %v4559_v11 = vrot.slane %v8594_v8, 1 }
 0x1f2   :  { %13715 = vst [vmem:[#allocation200_spill] sm:$0xff] %v11260_v15  ;;  %v11262_v40 = vpop.f32.mrb[82].mxu0  ;;  %v11272_v20 = vpop.f32.mrb[68].mxu1 }
 0x1f3   :  { %13716 = vst [vmem:[#allocation201_spill] sm:$0xff] %v11262_v40  ;;  %v11267_v13 = vpop.f32.mrb[83].mxu0  ;;  %v1727_v63 = vpop.f32.mrb[69].mxu1 }
 0x1f4   :  { %13718 = vst [vmem:[#allocation203_spill] sm:$0xff] %v11267_v13  ;;  %v11275_v51 = vpop.f32.mrb[70].mxu1  ;;  %v4469_v40 = vpop.permute.xlu1 %4468 }
 0x1f5   :  { %5061 = vmatmul.mubr.bf16.gmra.mrb[188].mxu0 %v11265_v53  ;;  %v1730_v5 = vpop.f32.mrb[71].mxu1  ;;  %v4471_v13 = vpop.permute.xlu0 %4470 }
 0x1f6   :  { %7325 = vmatprep.mubr.msk.bf16.mxu0 %vm1146_vm3, %v11270_v28  ;;  %v11296_v28 = vsel %vm1146_vm3, %v8589_v33, %v4469_v40  ;;  %v8593_v40 = vld [vmem:[%s13262_s1 + $0x120] sm:$0xff]  }
 0x1f7   :  { %7957 = vmatmul.mubr.msk.bf16.gmra.mrb[176].mxu1 %vm1490_vm2, %v10036_v24  ;;  %13723 = vst [vmem:[#allocation208_spill] sm:$0xff] %v11296_v28  ;;  %v4558_v33 = vrot.slane %v8593_v40, 1 }
 0x1f8   :  { %v11287_v63 = vpop.f32.mrb[84].mxu0  ;;  %7960 = vmatprep.mubr.msk.bf16.mxu1 %vm1490_vm2, %v10070_v14  ;;  %v11327_v14 = vsel %vm1146_vm3, %v8591_v45, %v4471_v13  ;;  %v8595_v13 = vld [vmem:[%s13262_s1 + $0x12c] sm:$0xff]  }
 0x1f9   :  { %13720 = vst [vmem:[#allocation205_spill] sm:$0xff] %v11287_v63  ;;  %v11291_v5 = vpop.f32.mrb[85].mxu0  ;;  %13730 = vst [vmem:[#allocation215_spill] sm:$0xff] %v11327_v14  ;;  %v11332_v8 = vsel %vm888_vm0, %v4558_v33, %v4559_v11  ;;  %v4561_v45 = vrot.slane %v8595_v13, 1 }
 0x1fa   :  { %13721 = vst [vmem:[#allocation206_spill] sm:$0xff] %v11291_v5  ;;  %v11293_v15 = vpop.f32.mrb[86].mxu0  ;;  %v11303_v24 = vpop.f32.mrb[72].mxu1  ;;  %13732 = vst [vmem:[#allocation217_spill] sm:$0xff] %v11332_v8 }
 0x1fb   :  { %13722 = vst [vmem:[#allocation207_spill] sm:$0xff] %v11293_v15  ;;  %v11298_v53 = vpop.f32.mrb[87].mxu0  ;;  %v1735_v63 = vpop.f32.mrb[73].mxu1  ;;  %v8596_v33 = vld [vmem:[%s13262_s1 + $0x134] ss:$0 sps:$4 sm:$0x11]  }
 0x1fc   :  { %13724 = vst [vmem:[#allocation209_spill] sm:$0xff] %v11298_v53  ;;  %v11306_v10 = vpop.f32.mrb[74].mxu1  ;;  %v4475_v15 = vpop.permute.xlu0 %4474 }
 0x1fd   :  { %5069 = vmatmul.mubr.bf16.gmra.mrb[192].mxu0 %v11296_v28  ;;  %13726 = vst [vmem:[#allocation211_spill] sm:$0xff] %v11306_v10  ;;  %v1738_v5 = vpop.f32.mrb[75].mxu1 }
 0x1fe   :  { %7326 = vmatprep.mubr.msk.bf16.mxu0 %vm1146_vm3, %v11301_v36 }
 0x1ff   :  { %7961 = vmatmul.mubr.msk.bf16.gmra.mrb[180].mxu1 %vm1490_vm2, %v10105_v7 }
 0x200   :  { %v11318_v63 = vpop.f32.mrb[88].mxu0  ;;  %7964 = vmatprep.mubr.msk.bf16.mxu1 %vm1490_vm2, %v10116_v12 }
 0x201   :  { %13727 = vst [vmem:[#allocation212_spill] sm:$0xff] %v11318_v63  ;;  %v11322_v5 = vpop.f32.mrb[89].mxu0 }
 0x202   :  { %13728 = vst [vmem:[#allocation213_spill] sm:$0xff] %v11322_v5  ;;  %v11324_v53 = vpop.f32.mrb[90].mxu0  ;;  %v11334_v28 = vpop.f32.mrb[76].mxu1 }
 0x203   :  { %13729 = vst [vmem:[#allocation214_spill] sm:$0xff] %v11324_v53  ;;  %v11329_v36 = vpop.f32.mrb[91].mxu0  ;;  %v1743_v7 = vpop.f32.mrb[77].mxu1 }
 0x204   :  { %13731 = vst [vmem:[#allocation216_spill] sm:$0xff] %v11329_v36  ;;  %v11337_v63 = vpop.f32.mrb[78].mxu1  ;;  %v11341_v53 = vpop.permute.xlu0 %4478  ;;  %v4562_v7 = vrot.slane %v8596_v33, 1 }
 0x205   :  { %5077 = vmatmul.mubr.bf16.gmra.mrb[196].mxu0 %v11327_v14  ;;  %13733 = vst [vmem:[#allocation218_spill] sm:$0xff] %v11337_v63  ;;  %v1746_v5 = vpop.f32.mrb[79].mxu1  ;;  %v4473_v36 = vpop.permute.xlu1 %4472 }
 0x206   :  { %7327 = vmatprep.mubr.msk.bf16.mxu0 %vm1146_vm3, %v11332_v8  ;;  %v11360_v8 = vsel %vm1146_vm3, %v8593_v40, %v4473_v36  ;;  %v11365_v33 = vsel %vm888_vm0, %v4561_v45, %v4562_v7  ;;  %v8597_v36 = vld [vmem:[%s13262_s1 + $0x138] sm:$0xff]   ;;  %v8598_v45 = vld [vmem:[%s13262_s1 + $0x140] ss:$0 sps:$4 sm:$0x11]  }
 0x207   :  { %7965 = vmatmul.mubr.msk.bf16.gmra.mrb[184].mxu1 %vm1490_vm2, %v10138_v22  ;;  %13737 = vst [vmem:[#allocation222_spill] sm:$0xff] %v11360_v8  ;;  %13739 = vst [vmem:[#allocation224_spill] sm:$0xff] %v11365_v33  ;;  %v4564_v40 = vrot.slane %v8597_v36, 1  ;;  %v4565_v7 = vrot.slane %v8598_v45, 1 }
 0x208   :  { %v11351_v11 = vpop.f32.mrb[92].mxu0  ;;  %7968 = vmatprep.mubr.msk.bf16.mxu1 %vm1490_vm2, %v10159_v30  ;;  %v11391_v30 = vsel %vm1146_vm3, %v8595_v13, %v4475_v15  ;;  %v8474_v15 = vld [vmem:[%s13263_s2 + $0x120] sm:$0xff]  }
 0x209   :  { %13734 = vst [vmem:[#allocation219_spill] sm:$0xff] %v11351_v11  ;;  %v11355_v5 = vpop.f32.mrb[93].mxu0  ;;  %v825_v11 = vpop.permute.xlu0 %824  ;;  %13743 = vst [vmem:[#allocation228_spill] sm:$0xff] %v11391_v30  ;;  %v11396_v45 = vsel %vm888_vm0, %v4564_v40, %v4565_v7 }
 0x20a   :  { %13735 = vst [vmem:[#allocation220_spill] sm:$0xff] %v11355_v5  ;;  %v11357_v12 = vpop.f32.mrb[94].mxu0  ;;  %v11367_v10 = vpop.f32.mrb[80].mxu1  ;;  %13745 = vst [vmem:[#allocation230_spill] sm:$0xff] %v11396_v45 }
 0x20b   :  { %13736 = vst [vmem:[#allocation221_spill] sm:$0xff] %v11357_v12  ;;  %v11362_v14 = vpop.f32.mrb[95].mxu0  ;;  %v1751_v22 = vpop.f32.mrb[81].mxu1 }
 0x20c   :  { %13738 = vst [vmem:[#allocation223_spill] sm:$0xff] %v11362_v14  ;;  %v11370_v63 = vpop.f32.mrb[82].mxu1  ;;  %v1148_v22 = vsel %vm1146_vm3, %v825_v11, %v9472_v46  ;;  %v8599_v46 = vld [vmem:[%s13261_s0] sm:$0xff]  }
 0x20d   :  { %5085 = vmatmul.mubr.bf16.gmra.mrb[200].mxu0 %v11360_v8  ;;  %v1754_v12 = vpop.f32.mrb[83].mxu1 }
 0x20e   :  { %7328 = vmatprep.mubr.msk.bf16.mxu0 %vm1146_vm3, %v11365_v33 }
 0x20f   :  { %7969 = vmatmul.mubr.msk.bf16.gmra.mrb[188].mxu1 %vm1490_vm2, %v10747_v31 }
 0x210   :  { %v11384_v14 = vpop.f32.mrb[96].mxu0  ;;  %2277 = vmatprep.mubr.bf16.mxu1 %v1148_v22  ;;  %v1051_v22 = vsel %vm1049_vm4, %v8599_v46, %v825_v11  ;;  %v8601_v11 = vld [vmem:[%s13262_s1 + $0x14c] ss:$0 sps:$4 sm:$0x11]  }
 0x211   :  { %13740 = vst [vmem:[#allocation225_spill] sm:$0xff] %v11384_v14  ;;  %v11386_v12 = vpop.f32.mrb[97].mxu0  ;;  %v4568_v7 = vrot.slane %v8601_v11, 1  ;;  %v4477_v14 = vpop.permute.xlu1 %4476 }
 0x212   :  { %13741 = vst [vmem:[#allocation226_spill] sm:$0xff] %v11386_v12  ;;  %v11388_v5 = vpop.f32.mrb[98].mxu0  ;;  %v11398_v8 = vpop.f32.mrb[84].mxu1 }
 0x213   :  { %13742 = vst [vmem:[#allocation227_spill] sm:$0xff] %v11388_v5  ;;  %v11393_v33 = vpop.f32.mrb[99].mxu0  ;;  %v1759_v31 = vpop.f32.mrb[85].mxu1 }
 0x214   :  { %13744 = vst [vmem:[#allocation229_spill] sm:$0xff] %v11393_v33  ;;  %v11405_v5 = vpop.f32.mrb[86].mxu1  ;;  %v8600_v31 = vld [vmem:[%s13262_s1 + $0x144] sm:$0xff]  }
 0x215   :  { %5093 = vmatmul.mubr.bf16.gmra.mrb[204].mxu0 %v11391_v30  ;;  %v1762_v13 = vpop.f32.mrb[87].mxu1  ;;  %v4567_v40 = vrot.slane %v8600_v31, 1 }
 0x216   :  { %7329 = vmatprep.mubr.msk.bf16.mxu0 %vm1146_vm3, %v11396_v45  ;;  %v8475_v13 = vld [vmem:[%s13263_s2 + $0x128] sm:$0xff]   ;;  %v11429_v45 = vsel %vm1146_vm3, %v8597_v36, %v4477_v14  ;;  %v8477_v14 = vld [vmem:[%s13263_s2 + $0x130] sm:$0xff]  }
 0x217   :  { %2278 = vmatmul.mubr.bf16.vlgmr.msra.gmra.mrb[192].mxu1 %v1051_v22  ;;  %13749 = vst [vmem:[#allocation234_spill] sm:$0xff] %v11429_v45  ;;  %v11435_v11 = vsel %vm888_vm0, %v4567_v40, %v4568_v7  ;;  %v8602_v40 = vld [vmem:[%s13262_s1 + $0x150] sm:$0xff]  }
 0x218   :  { %v11418_v46 = vpop.f32.mrb[100].mxu0  ;;  %2285 = vmatprep.mubr.bf16.mxu1 %v9753_v44  ;;  %3039 = vmatpush1.bf16.msra.mxu1 %v8474_v15  ;;  %13751 = vst [vmem:[#allocation236_spill] sm:$0xff] %v11435_v11  ;;  %v4570_v7 = vrot.slane %v8602_v40, 1 }
 0x219   :  { %13746 = vst [vmem:[#allocation231_spill] sm:$0xff] %v11418_v46  ;;  %v11421_v33 = vpop.f32.mrb[101].mxu0  ;;  %3040 = vmatprep.subr.bf16.mxu1 %v13516_v58 }
 0x21a   :  { %13747 = vst [vmem:[#allocation232_spill] sm:$0xff] %v11421_v33  ;;  %v11426_v12 = vpop.f32.mrb[102].mxu0  ;;  %v11437_v44 = vpop.f32.mrb[88].mxu1 }
 0x21b   :  { %13748 = vst [vmem:[#allocation233_spill] sm:$0xff] %v11426_v12  ;;  %v11432_v22 = vpop.f32.mrb[103].mxu0  ;;  %v1767_v46 = vpop.f32.mrb[89].mxu1 }
 0x21c   :  { %13750 = vst [vmem:[#allocation235_spill] sm:$0xff] %v11432_v22  ;;  %v11440_v15 = vpop.f32.mrb[90].mxu1  ;;  %3041 = vmatpush1.bf16.msra.mxu1 %v8475_v13  ;;  %v8603_v46 = vld [vmem:[%s13262_s1 + $0x158] ss:$0 sps:$4 sm:$0x11]  }
 0x21d   :  { %5101 = vmatmul.mubr.bf16.gmra.mrb[208].mxu0 %v11429_v45  ;;  %v1770_v36 = vpop.f32.mrb[91].mxu1  ;;  %3042 = vmatprep.subr.bf16.mxu1 %v13516_v58  ;;  %v4571_v13 = vrot.slane %v8603_v46, 1 }
 0x21e   :  { %7330 = vmatprep.mubr.msk.bf16.mxu0 %vm1146_vm3, %v11435_v11  ;;  %v8479_v36 = vld [vmem:[%s13263_s2 + $0x138] sm:$0xff]   ;;  %v11467_v11 = vsel %vm1146_vm3, %v8600_v31, %v11341_v53  ;;  %v8481_v53 = vld [vmem:[%s13263_s2 + $0x140] sm:$0xff]  }
 0x21f   :  { %2286 = vmatmul.mubr.bf16.gmra.mrb[196].mxu1 %v9759_v21  ;;  %13755 = vst [vmem:[#allocation240_spill] sm:$0xff] %v11467_v11  ;;  %v11473_v46 = vsel %vm888_vm0, %v4570_v7, %v4571_v13  ;;  %v8604_v7 = vld [vmem:[%s13262_s1 + $0x15c] sm:$0xff]  }
 0x220   :  { %v11455_v12 = vpop.f32.mrb[104].mxu0  ;;  %2293 = vmatprep.mubr.bf16.mxu1 %v9778_v54  ;;  %3043 = vmatpush1.bf16.msra.mxu1 %v8477_v14  ;;  %13757 = vst [vmem:[#allocation242_spill] sm:$0xff] %v11473_v46  ;;  %v4573_v13 = vrot.slane %v8604_v7, 1 }
 0x221   :  { %13752 = vst [vmem:[#allocation237_spill] sm:$0xff] %v11455_v12  ;;  %v11458_v22 = vpop.f32.mrb[105].mxu0  ;;  %3044 = vmatprep.subr.bf16.mxu1 %v13516_v58 }
 0x222   :  { %13753 = vst [vmem:[#allocation238_spill] sm:$0xff] %v11458_v22  ;;  %v11463_v33 = vpop.f32.mrb[106].mxu0  ;;  %v11475_v12 = vpop.f32.mrb[92].mxu1 }
 0x223   :  { %13754 = vst [vmem:[#allocation239_spill] sm:$0xff] %v11463_v33  ;;  %v11470_v21 = vpop.f32.mrb[107].mxu0  ;;  %v1775_v14 = vpop.f32.mrb[93].mxu1 }
 0x224   :  { %13756 = vst [vmem:[#allocation241_spill] sm:$0xff] %v11470_v21  ;;  %v11478_v22 = vpop.f32.mrb[94].mxu1  ;;  %3045 = vmatpush1.bf16.msra.mxu1 %v8479_v36  ;;  %v8605_v14 = vld [vmem:[%s13262_s1 + $0x164] ss:$0 sps:$4 sm:$0x11]   ;;  %v4481_v21 = vpop.permute.xlu1 %4480 }
 0x225   :  { %5109 = vmatmul.mubr.bf16.gmra.mrb[212].mxu0 %v11467_v11  ;;  %v1778_v31 = vpop.f32.mrb[95].mxu1  ;;  %3046 = vmatprep.subr.bf16.mxu1 %v13516_v58  ;;  %v4574_v36 = vrot.slane %v8605_v14, 1  ;;  %v11504_v45 = vsel %vm1146_vm3, %v8602_v40, %v4481_v21  ;;  %v8484_v40 = vld [vmem:[%s13263_s2 + $0x150] sm:$0xff]  }
 0x226   :  { %7331 = vmatprep.mubr.msk.bf16.mxu0 %vm1146_vm3, %v11473_v46  ;;  %v8482_v46 = vld [vmem:[%s13263_s2 + $0x148] sm:$0xff]   ;;  %13761 = vst [vmem:[#allocation246_spill] sm:$0xff] %v11504_v45 }
 0x227   :  { %2294 = vmatmul.mubr.bf16.gmra.mrb[200].mxu1 %v9833_v48 }
 0x228   :  { %v11493_v33 = vpop.f32.mrb[108].mxu0  ;;  %2301 = vmatprep.mubr.bf16.mxu1 %v9862_v17  ;;  %3047 = vmatpush1.bf16.msra.mxu1 %v8481_v53 }
 0x229   :  { %13758 = vst [vmem:[#allocation243_spill] sm:$0xff] %v11493_v33  ;;  %v11496_v31 = vpop.f32.mrb[109].mxu0  ;;  %3048 = vmatprep.subr.bf16.mxu1 %v13516_v58  ;;  %v11510_v33 = vsel %vm888_vm0, %v4573_v13, %v4574_v36  ;;  %v8606_v13 = vld [vmem:[%s13262_s1 + $0x168] sm:$0xff]  }
 0x22a   :  { %13759 = vst [vmem:[#allocation244_spill] sm:$0xff] %v11496_v31  ;;  %v11501_v11 = vpop.f32.mrb[110].mxu0  ;;  %13763 = vst [vmem:[#allocation248_spill] sm:$0xff] %v11510_v33  ;;  %v11512_v17 = vpop.f32.mrb[96].mxu1  ;;  %v4576_v36 = vrot.slane %v8606_v13, 1 }
 0x22b   :  { %13760 = vst [vmem:[#allocation245_spill] sm:$0xff] %v11501_v11  ;;  %v11507_v14 = vpop.f32.mrb[111].mxu0  ;;  %v1783_v31 = vpop.f32.mrb[97].mxu1 }
 0x22c   :  { %13762 = vst [vmem:[#allocation247_spill] sm:$0xff] %v11507_v14  ;;  %v11515_v53 = vpop.f32.mrb[98].mxu1  ;;  %3049 = vmatpush1.bf16.msra.mxu1 %v8482_v46  ;;  %v8607_v31 = vld [vmem:[%s13262_s1 + $0x170] ss:$0 sps:$4 sm:$0x11]   ;;  %v4483_v11 = vpop.permute.xlu1 %4482 }
 0x22d   :  { %5117 = vmatmul.mubr.bf16.gmra.mrb[216].mxu0 %v11504_v45  ;;  %v1786_v21 = vpop.f32.mrb[99].mxu1  ;;  %3050 = vmatprep.subr.bf16.mxu1 %v13516_v58  ;;  %v4577_v46 = vrot.slane %v8607_v31, 1  ;;  %v11535_v14 = vsel %vm1146_vm3, %v8604_v7, %v4483_v11  ;;  %v8488_v11 = vld [vmem:[%s13263_s2 + $0x160] sm:$0xff]   ;;  %v8608_v7 = vld [vmem:[%s13262_s1 + $0x174] sm:$0xff]  }
 0x22e   :  { %7332 = vmatprep.mubr.msk.bf16.mxu0 %vm1146_vm3, %v11510_v33  ;;  %v8486_v21 = vld [vmem:[%s13263_s2 + $0x158] sm:$0xff]   ;;  %13764 = vst [vmem:[#allocation249_spill] sm:$0xff] %v11535_v14 }
 0x22f   :  { %2302 = vmatmul.mubr.bf16.gmra.mrb[204].mxu1 %v9890_v37  ;;  %v11539_v33 = vsel %vm888_vm0, %v4576_v36, %v4577_v46  ;;  %v4579_v36 = vrot.slane %v8608_v7, 1  ;;  %v8609_v46 = vld [vmem:[%s13262_s1 + $0x17c] ss:$0 sps:$4 sm:$0x11]  }
 0x230   :  { %2309 = vmatprep.mubr.bf16.mxu1 %v9915_v2  ;;  %3051 = vmatpush1.bf16.msra.mxu1 %v8484_v40  ;;  %13765 = vst [vmem:[#allocation250_spill] sm:$0xff] %v11539_v33 }
 0x231   :  { %3052 = vmatprep.subr.bf16.mxu1 %v13516_v58 }
 0x232   :  { %v11541_v45 = vpop.f32.mrb[100].mxu1 }
 0x233   :  { %v1791_v31 = vpop.f32.mrb[101].mxu1 }
 0x234   :  { %v11544_v37 = vpop.f32.mrb[102].mxu1  ;;  %3053 = vmatpush1.bf16.msra.mxu1 %v8486_v21  ;;  %v4580_v21 = vrot.slane %v8609_v46, 1 }
 0x235   :  { %5125 = vmatmul.mubr.bf16.gmra.mrb[220].mxu0 %v11535_v14  ;;  %v1794_v40 = vpop.f32.mrb[103].mxu1  ;;  %3054 = vmatprep.subr.bf16.mxu1 %v13516_v58 }
 0x236   :  { %7333 = vmatprep.mubr.msk.bf16.mxu0 %vm1146_vm3, %v11539_v33  ;;  %v4485_v40 = vpop.permute.xlu0 %4484  ;;  %v11569_v54 = vsel %vm888_vm0, %v4579_v36, %v4580_v21 }
 0x237   :  { %2310 = vmatmul.mubr.bf16.gmra.mrb[208].mxu1 %v9943_v38  ;;  %v11565_v2 = vsel %vm1146_vm3, %v8606_v13, %v4485_v40  ;;  %13769 = vst [vmem:[#allocation254_spill] sm:$0xff] %v11569_v54  ;;  %v8610_v13 = vld [vmem:[%s13262_s1 + $0x180] sm:$0xff]  }
 0x238   :  { %v11559_v31 = vpop.f32.mrb[116].mxu0  ;;  %2317 = vmatprep.mubr.bf16.mxu1 %v9961_v41  ;;  %3055 = vmatpush1.bf16.msra.mxu1 %v8488_v11  ;;  %13768 = vst [vmem:[#allocation253_spill] sm:$0xff] %v11565_v2  ;;  %v4582_v11 = vrot.slane %v8610_v13, 1 }
 0x239   :  { %13766 = vst [vmem:[#allocation251_spill] sm:$0xff] %v11559_v31  ;;  %v4920_v33 = vpop.f32.mrb[117].mxu0  ;;  %3056 = vmatprep.subr.bf16.mxu1 %v13516_v58 }
 0x23a   :  { %v11562_v14 = vpop.f32.mrb[118].mxu0  ;;  %v11571_v46 = vpop.f32.mrb[104].mxu1 }
 0x23b   :  { %13767 = vst [vmem:[#allocation252_spill] sm:$0xff] %v11562_v14  ;;  %v4923_v48 = vpop.f32.mrb[119].mxu0  ;;  %v1799_v38 = vpop.f32.mrb[105].mxu1 }
 0x23c   :  { %v11574_v31 = vpop.f32.mrb[106].mxu1  ;;  %v8611_v48 = vld [vmem:[%s13262_s1 + $0x188] ss:$0 sps:$4 sm:$0x11]   ;;  %v4487_v38 = vpop.permute.xlu1 %4486 }
 0x23d   :  { %5133 = vmatmul.mubr.bf16.gmra.mrb[224].mxu0 %v11565_v2  ;;  %13770 = vst [vmem:[#allocation255_spill] sm:$0xff] %v11574_v31  ;;  %v1802_v33 = vpop.f32.mrb[107].mxu1  ;;  %v4583_v36 = vrot.slane %v8611_v48, 1  ;;  %v11587_v21 = vsel %vm1146_vm3, %v8608_v7, %v4487_v38  ;;  %v8489_v2 = vld [vmem:[%s13263_s2 + $0x168] sm:$0xff]  }
 0x23e   :  { %7334 = vmatprep.mubr.msk.bf16.mxu0 %vm1146_vm3, %v11569_v54  ;;  %13771 = vst [vmem:[#allocation256_spill] sm:$0xff] %v11587_v21  ;;  %v8612_v7 = vld [vmem:[%s13262_s1 + $0x18c] sm:$0xff]   ;;  %3057 = vmatpush1.bf16.msra.mxu1 %v8489_v2 }
 0x23f   :  { %2318 = vmatmul.mubr.bf16.gmra.mrb[212].mxu1 %v9982_v35  ;;  %v11590_v40 = vsel %vm888_vm0, %v4582_v11, %v4583_v36  ;;  %v4585_v11 = vrot.slane %v8612_v7, 1  ;;  %v13773_v38 = vld [vmem:[#allocation16_spill] sm:$0xff]  ;;  %3058 = vmatprep.subr.bf16.mxu1 %v13516_v58 }
 0x240   :  { %2325 = vmatprep.mubr.bf16.mxu1 %v9991_v3  ;;  %13772 = vst [vmem:[#allocation257_spill] sm:$0xff] %v11590_v40 }
 0x242   :  { %v11592_v33 = vpop.f32.mrb[108].mxu1 }
 0x243   :  { %v1807_v14 = vpop.f32.mrb[109].mxu1 }
 0x244   :  { %v11595_v54 = vpop.f32.mrb[110].mxu1  ;;  %v8613_v14 = vld [vmem:[%s13262_s1 + $0x194] ss:$0 sps:$4 sm:$0x11]  }
 0x245   :  { %5141 = vmatmul.mubr.bf16.gmra.mrb[228].mxu0 %v11587_v21  ;;  %v1810_v48 = vpop.f32.mrb[111].mxu1  ;;  %v4586_v36 = vrot.slane %v8613_v14, 1 }
 0x246   :  { %7335 = vmatprep.mubr.msk.bf16.mxu0 %vm1146_vm3, %v11590_v40  ;;  %v4489_v40 = vpop.permute.xlu0 %4488  ;;  %v13775_v48 = vld [vmem:[#allocation17_spill] sm:$0xff] }
 0x247   :  { %2326 = vmatmul.mubr.bf16.gmra.mrb[216].mxu1 %v13773_v38  ;;  %v11615_v41 = vsel %vm1146_vm3, %v8610_v13, %v4489_v40  ;;  %v11619_v31 = vsel %vm888_vm0, %v4585_v11, %v4586_v36  ;;  %v4491_v13 = vpop.permute.xlu1 %4490  ;;  %v13782_v40 = vld [vmem:[#allocation20_spill] sm:$0xff] }
 0x248   :  { %v11609_v21 = vpop.f32.mrb[124].mxu0  ;;  %2333 = vmatprep.mubr.bf16.mxu1 %v13775_v48  ;;  %13777 = vst [vmem:[#allocation260_spill] sm:$0xff] %v11615_v41  ;;  %13778 = vst [vmem:[#allocation261_spill] sm:$0xff] %v11619_v31 }
 0x249   :  { %13774 = vst [vmem:[#allocation258_spill] sm:$0xff] %v11609_v21  ;;  %v4936_v3 = vpop.f32.mrb[125].mxu0 }
 0x24a   :  { %v11612_v35 = vpop.f32.mrb[126].mxu0  ;;  %v11621_v14 = vpop.f32.mrb[112].mxu1  ;;  %v13781_v3 = vld [vmem:[#allocation19_spill] sm:$0xff] }
 0x24b   :  { %13776 = vst [vmem:[#allocation259_spill] sm:$0xff] %v11612_v35  ;;  %v4939_v30 = vpop.f32.mrb[127].mxu0  ;;  %13779 = vst [vmem:[#allocation262_spill] sm:$0xff] %v11621_v14  ;;  %v1815_v38 = vpop.f32.mrb[113].mxu1  ;;  %v13785_v35 = vld [vmem:[#allocation70_spill] sm:$0xff] }
 0x24c   :  { %v11624_v21 = vpop.f32.mrb[114].mxu1  ;;  %v11631_v30 = vsel %vm1146_vm3, %v8612_v7, %v4491_v13  ;;  %v13788_v7 = vld [vmem:[#allocation25_spill] sm:$0xff]  ;;  %v13796_v14 = vld [vmem:[#allocation26_spill] sm:$0xff] }
 0x24d   :  { %5149 = vmatmul.mubr.bf16.gmra.mrb[232].mxu0 %v11615_v41  ;;  %13780 = vst [vmem:[#allocation263_spill] sm:$0xff] %v11624_v21  ;;  %v1818_v2 = vpop.f32.mrb[115].mxu1  ;;  %13783 = vst [vmem:[#allocation264_spill] sm:$0xff] %v11631_v30  ;;  %v13786_v41 = vld [vmem:[#allocation23_spill] sm:$0xff] }
 0x24e   :  { %7336 = vmatprep.mubr.msk.bf16.mxu0 %vm1146_vm3, %v11619_v31  ;;  %v8491_v2 = vld [vmem:[%s13263_s2 + $0x170] sm:$0xff]  }
 0x24f   :  { %2334 = vmatmul.mubr.bf16.gmra.mrb[220].mxu1 %v13781_v3 }
 0x250   :  { %2341 = vmatprep.mubr.bf16.mxu1 %v13782_v40  ;;  %3059 = vmatpush1.bf16.msra.mxu1 %v8491_v2  ;;  %v11663_v2 = vld [vmem:[%s13262_s1 + $0x1a0] ss:$0 sps:$4 sm:$0x11]  }
 0x251   :  { %3060 = vmatprep.subr.bf16.mxu1 %v13516_v58  ;;  %13792 = vst [vmem:[#allocation269_spill] sm:$0xff] %v11663_v2  ;;  %v5265_v21 = vshll.u32 %v11663_v2, 16 }
 0x252   :  { %v11633_v11 = vpop.f32.mrb[116].mxu1 }
 0x253   :  { %v1823_v36 = vpop.f32.mrb[117].mxu1 }
 0x254   :  { %v11636_v38 = vpop.f32.mrb[118].mxu1  ;;  %v11650_v36 = vld [vmem:[%s13262_s1 + $0x198] sm:$0xff]  }
 0x255   :  { %5157 = vmatmul.mubr.bf16.gmra.mrb[236].mxu0 %v11631_v30  ;;  %13784 = vst [vmem:[#allocation265_spill] sm:$0xff] %v11636_v38  ;;  %v1826_v31 = vpop.f32.mrb[119].mxu1  ;;  %13789 = vst [vmem:[#allocation266_spill] sm:$0xff] %v11650_v36  ;;  %v5258_v3 = vshrl.u32 %v11650_v36, 16  ;;  %v8480_v38 = vld [vmem:[%s13264_s3 + $0xc8] sm:$0xff]  }
 0x256   :  { %7377 = vmatprep.mubr.msk.bf16.mxu0 %vm1146_vm3, %v13785_v35  ;;  %v8478_v35 = vld [vmem:[%s13264_s3 + $0xc0] sm:$0xff]  }
 0x257   :  { %2342 = vmatmul.mubr.bf16.gmra.mrb[224].mxu1 %v13786_v41 }
 0x258   :  { %v11644_v40 = vpop.f32.mrb[132].mxu0  ;;  %2349 = vmatprep.mubr.bf16.mxu1 %v13788_v7  ;;  %v13793_v7 = vld [vmem:[#allocation76_spill] sm:$0xff] }
 0x259   :  { %13787 = vst [vmem:[#allocation70_spill] sm:$0xff] %v11644_v40  ;;  %v4952_v13 = vpop.f32.mrb[133].mxu0 }
 0x25a   :  { %v11652_v30 = vpop.f32.mrb[134].mxu0  ;;  %v11658_v41 = vpop.f32.mrb[120].mxu1  ;;  %v5260_v13 = vshll.u32 %v11650_v36, 16 }
 0x25b   :  { %13790 = vst [vmem:[#allocation267_spill] sm:$0xff] %v11652_v30  ;;  %v4955_v31 = vpop.f32.mrb[135].mxu0  ;;  %13791 = vst [vmem:[#allocation268_spill] sm:$0xff] %v11658_v41  ;;  %v1831_v40 = vpop.f32.mrb[121].mxu1 }
 0x25c   :  { %v11667_v30 = vpop.f32.mrb[122].mxu1  ;;  %v5262_v48 = vrot.slane %v5260_v13, 1  ;;  %v13795_v31 = vld [vmem:[#allocation78_spill] sm:$0xff] }
 0x25d   :  { %5421 = vmatmul.mubr.bf16.vlgmr.msra.gmra.mrb[112].mxu0 %v13793_v7  ;;  %13794 = vst [vmem:[#allocation76_spill] sm:$0xff] %v11667_v30  ;;  %v1834_v41 = vpop.f32.mrb[123].mxu1  ;;  %v5267_v7 = vrot.slane %v5265_v21, 1  ;;  %v13797_v30 = vld [vmem:[#allocation28_spill] sm:$0xff] }
 0x25e   :  { %5901 = vmatpush1.bf16.msra.mxu0 %v8478_v35  ;;  %7378 = vmatprep.mubr.msk.bf16.mxu0 %vm1146_vm3, %v13795_v31  ;;  %v5263_v40 = vor.u32 %v5262_v48, %v5258_v3  ;;  %v8483_v35 = vld [vmem:[%s13264_s3 + $0xd0] sm:$0xff]   ;;  %v13799_v48 = vld [vmem:[#allocation84_spill] sm:$0xff] }
 0x25f   :  { %5902 = vmatprep.subr.bf16.mxu0 %v13516_v58  ;;  %2350 = vmatmul.mubr.bf16.gmra.mrb[228].mxu1 %v13796_v14 }
 0x260   :  { %2357 = vmatprep.mubr.bf16.mxu1 %v13797_v30  ;;  %v5268_v13 = vsel %vm439_vm1, %v5263_v40, %v5267_v7  ;;  %v13801_v30 = vld [vmem:[#allocation86_spill] sm:$0xff] }
 0x261   :  { %5271 = vrot.lane.b32.xlu0 %v5268_v13, %s8648_s9  ;;  %v8495_v40 = vld [vmem:[%s13263_s2 + $0x178] sm:$0xff]  }
 0x262   :  { %5903 = vmatpush1.bf16.msra.mxu0 %v8480_v38  ;;  %v11684_v41 = vpop.f32.mrb[124].mxu1  ;;  %v8485_v38 = vld [vmem:[%s13264_s3 + $0xd8] sm:$0xff]   ;;  %3061 = vmatpush1.bf16.msra.mxu1 %v8495_v40 }
 0x263   :  { %13798 = vst [vmem:[#allocation270_spill] sm:$0xff] %v11684_v41  ;;  %5904 = vmatprep.subr.bf16.mxu0 %v13516_v58  ;;  %v1839_v31 = vpop.f32.mrb[125].mxu1  ;;  %v13804_v13 = vld [vmem:[#allocation30_spill] sm:$0xff]  ;;  %3062 = vmatprep.subr.bf16.mxu1 %v13516_v58  ;;  %v13812_v41 = vld [vmem:[#allocation96_spill] sm:$0xff] }
 0x264   :  { %v11688_v21 = vpop.f32.mrb[126].mxu1  ;;  %v13802_v31 = vld [vmem:[#allocation29_spill] sm:$0xff] }
 0x265   :  { %5429 = vmatmul.mubr.bf16.gmra.mrb[240].mxu0 %v13799_v48  ;;  %13800 = vst [vmem:[#allocation271_spill] sm:$0xff] %v11688_v21  ;;  %v1842_v3 = vpop.f32.mrb[127].mxu1 }
 0x266   :  { %7379 = vmatprep.mubr.msk.bf16.mxu0 %vm1146_vm3, %v13801_v30  ;;  %5905 = vmatpush1.bf16.msra.mxu0 %v8483_v35  ;;  %v8487_v35 = vld [vmem:[%s13264_s3 + $0xe0] sm:$0xff]  }
 0x267   :  { %5906 = vmatprep.subr.bf16.mxu0 %v13516_v58  ;;  %2358 = vmatmul.mubr.bf16.gmra.mrb[232].mxu1 %v13802_v31  ;;  %v13806_v31 = vld [vmem:[#allocation97_spill] sm:$0xff] }
 0x268   :  { %v11700_v7 = vpop.f32.mrb[140].mxu0  ;;  %2365 = vmatprep.mubr.bf16.mxu1 %v13804_v13  ;;  %v13808_v13 = vld [vmem:[#allocation87_spill] sm:$0xff] }
 0x269   :  { %13803 = vst [vmem:[#allocation272_spill] sm:$0xff] %v11700_v7  ;;  %v4968_v3 = vpop.f32.mrb[141].mxu0 }
 0x26a   :  { %v11703_v30 = vpop.f32.mrb[142].mxu0  ;;  %5907 = vmatpush1.bf16.msra.mxu0 %v8485_v38  ;;  %v7910_v48 = vpop.f32.mrb[128].mxu1  ;;  %v13810_v38 = vld [vmem:[#allocation99_spill] sm:$0xff] }
 0x26b   :  { %13805 = vst [vmem:[#allocation273_spill] sm:$0xff] %v11703_v30  ;;  %v4971_v14 = vpop.f32.mrb[143].mxu0  ;;  %5908 = vmatprep.subr.bf16.mxu0 %v13516_v58  ;;  %v11711_v2 = vadd.f32 %v7910_v48, %v13806_v31  ;;  %v1878_v7 = vpop.f32.mrb[129].mxu1  ;;  %v13809_v30 = vld [vmem:[#allocation94_spill] sm:$0xff]  ;;  %v13813_v48 = vld [vmem:[#allocation89_spill] sm:$0xff] }
 0x26c   :  { %v11714_v3 = vadd.f32 %v1878_v7, %v13808_v13  ;;  %v7911_v40 = vpop.f32.mrb[130].mxu1  ;;  %v8490_v14 = vld [vmem:[%s13264_s3 + $0xe8] sm:$0xff]   ;;  %v13814_v7 = vld [vmem:[#allocation31_spill] sm:$0xff] }
 0x26d   :  { %13807 = vst [vmem:[#allocation97_spill] sm:$0xff] %v11711_v2  ;;  %5437 = vmatmul.mubr.bf16.gmra.mrb[120].mxu0 %v13809_v30  ;;  %v11718_v36 = vadd.f32 %v7911_v40, %v13810_v38  ;;  %v1881_v21 = vpop.f32.mrb[131].mxu1  ;;  %v13815_v13 = vld [vmem:[#allocation32_spill] sm:$0xff]  ;;  %v8492_v40 = vld [vmem:[%s13264_s3 + $0xf0] sm:$0xff]   ;;  %v13821_v2 = vld [vmem:[#allocation106_spill] sm:$0xff] }
 0x26e   :  { %7380 = vmatprep.mubr.msk.bf16.mxu0 %vm1146_vm3, %v13812_v41  ;;  %5909 = vmatpush1.bf16.msra.mxu0 %v8487_v35  ;;  %v11726_v31 = vadd.f32 %v1881_v21, %v13813_v48  ;;  %v13817_v21 = vld [vmem:[#allocation107_spill] sm:$0xff] }
 0x26f   :  { %13811 = vst [vmem:[#allocation87_spill] sm:$0xff] %v11718_v36  ;;  %5910 = vmatprep.subr.bf16.mxu0 %v13516_v58  ;;  %2366 = vmatmul.mubr.bf16.gmra.mrb[236].mxu1 %v13814_v7  ;;  %v13818_v36 = vld [vmem:[#allocation104_spill] sm:$0xff]  ;;  %v13819_v7 = vld [vmem:[#allocation119_spill] sm:$0xff] }
 0x270   :  { %2373 = vmatprep.mubr.bf16.mxu1 %v13815_v13 }
 0x272   :  { %5911 = vmatpush1.bf16.msra.mxu0 %v8490_v14  ;;  %v7914_v38 = vpop.f32.mrb[132].mxu1 }
 0x273   :  { %5912 = vmatprep.subr.bf16.mxu0 %v13516_v58  ;;  %v11736_v35 = vadd.f32 %v7914_v38, %v10745_v27  ;;  %v1894_v41 = vpop.f32.mrb[133].mxu1  ;;  %v8496_v27 = vld [vmem:[%s13264_s3 + $0xf8] sm:$0xff]   ;;  %v13822_v38 = vld [vmem:[#allocation109_spill] sm:$0xff] }
 0x274   :  { %v11739_v48 = vadd.f32 %v1894_v41, %v13817_v21  ;;  %v7915_v30 = vpop.f32.mrb[134].mxu1  ;;  %v8497_v41 = vld [vmem:[%s13263_s2 + $0x180] sm:$0xff]  }
 0x275   :  { %13816 = vst [vmem:[#allocation99_spill] sm:$0xff] %v11736_v35  ;;  %5445 = vmatmul.mubr.bf16.gmra.mrb[244].mxu0 %v13818_v36  ;;  %v11743_v13 = vadd.f32 %v7915_v30, %v13819_v7  ;;  %v1897_v14 = vpop.f32.mrb[135].mxu1  ;;  %v13824_v30 = vld [vmem:[#allocation33_spill] sm:$0xff]  ;;  %v13826_v36 = vld [vmem:[#allocation34_spill] sm:$0xff]  ;;  %3063 = vmatpush1.bf16.msra.mxu1 %v8497_v41 }
 0x276   :  { %7381 = vmatprep.mubr.msk.bf16.mxu0 %vm1146_vm3, %v13821_v2  ;;  %5913 = vmatpush1.bf16.msra.mxu0 %v8492_v40  ;;  %v11754_v21 = vadd.f32 %v1897_v14, %v13822_v38 }
 0x277   :  { %13820 = vst [vmem:[#allocation89_spill] sm:$0xff] %v11743_v13  ;;  %5914 = vmatprep.subr.bf16.mxu0 %v13516_v58  ;;  %2374 = vmatmul.mubr.bf16.gmra.mrb[240].mxu1 %v13824_v30 }
 0x278   :  { %13823 = vst [vmem:[#allocation107_spill] sm:$0xff] %v11754_v21  ;;  %v11758_v7 = vpop.f32.mrb[148].mxu0  ;;  %2381 = vmatprep.mubr.bf16.mxu1 %v13826_v36  ;;  %3064 = vmatprep.subr.bf16.mxu1 %v13516_v58  ;;  %v13828_v21 = vld [vmem:[#allocation114_spill] sm:$0xff] }
 0x279   :  { %13825 = vst [vmem:[#allocation119_spill] sm:$0xff] %v11758_v7  ;;  %v4984_v40 = vpop.f32.mrb[149].mxu0 }
 0x27a   :  { %v11761_v2 = vpop.f32.mrb[150].mxu0  ;;  %5915 = vmatpush1.bf16.msra.mxu0 %v8496_v27  ;;  %v7918_v13 = vpop.f32.mrb[136].mxu1  ;;  %v13829_v40 = vld [vmem:[#allocation116_spill] sm:$0xff] }
 0x27b   :  { %13827 = vst [vmem:[#allocation109_spill] sm:$0xff] %v11761_v2  ;;  %v4987_v35 = vpop.f32.mrb[151].mxu0  ;;  %5916 = vmatprep.subr.bf16.mxu0 %v13516_v58  ;;  %v1910_v14 = vpop.f32.mrb[137].mxu1  ;;  %v11766_v38 = vadd.f32 %v7918_v13, %v10828_v18  ;;  %v13830_v2 = vld [vmem:[#allocation35_spill] sm:$0xff]  ;;  %v13831_v18 = vld [vmem:[#allocation36_spill] sm:$0xff] }
 0x27c   :  { %v7919_v30 = vpop.f32.mrb[138].mxu1  ;;  %v11770_v7 = vadd.f32 %v1910_v14, %v10790_v50 }
 0x27d   :  { %5453 = vmatmul.mubr.bf16.gmra.mrb[128].mxu0 %v13828_v21  ;;  %v1913_v41 = vpop.f32.mrb[139].mxu1  ;;  %v11775_v27 = vadd.f32 %v7919_v30, %v10831_v29  ;;  %v13832_v30 = vld [vmem:[#allocation126_spill] sm:$0xff] }
 0x27e   :  { %7382 = vmatprep.mubr.msk.bf16.mxu0 %vm1146_vm3, %v13829_v40  ;;  %v11778_v35 = vadd.f32 %v1913_v41, %v10800_v61  ;;  %v8498_v61 = vld [vmem:[%s13263_s2 + $0x188] sm:$0xff]  }
 0x27f   :  { %2382 = vmatmul.mubr.bf16.gmra.mrb[244].mxu1 %v13830_v2 }
 0x280   :  { %2389 = vmatprep.mubr.bf16.mxu1 %v13831_v18  ;;  %3065 = vmatpush1.bf16.msra.mxu1 %v8498_v61 }
 0x281   :  { %3066 = vmatprep.subr.bf16.mxu1 %v13516_v58 }
 0x282   :  { %v7922_v13 = vpop.f32.mrb[140].mxu1 }
 0x283   :  { %v1926_v36 = vpop.f32.mrb[141].mxu1  ;;  %v11783_v21 = vadd.f32 %v7922_v13, %v10911_v25  ;;  %v13833_v13 = vld [vmem:[#allocation37_spill] sm:$0xff] }
 0x284   :  { %v7923_v50 = vpop.f32.mrb[142].mxu1  ;;  %v11787_v14 = vadd.f32 %v1926_v36, %v10867_v55  ;;  %v13835_v55 = vld [vmem:[#allocation38_spill] sm:$0xff] }
 0x285   :  { %5461 = vmatmul.mubr.bf16.gmra.mrb[248].mxu0 %v10783_v23  ;;  %v1929_v29 = vpop.f32.mrb[143].mxu1  ;;  %v11795_v41 = vadd.f32 %v7923_v50, %v10914_v49 }
 0x286   :  { %7383 = vmatprep.mubr.msk.bf16.mxu0 %vm1146_vm3, %v13832_v30  ;;  %v11798_v25 = vadd.f32 %v1929_v29, %v10870_v59  ;;  %v8499_v30 = vld [vmem:[%s13264_s3 + $0x100] sm:$0xff]  }
 0x287   :  { %2390 = vmatmul.mubr.bf16.gmra.mrb[248].mxu1 %v13833_v13  ;;  %5917 = vmatpush1.bf16.msra.mxu0 %v8499_v30  ;;  %v8500_v30 = vld [vmem:[%s13263_s2 + $0x190] sm:$0xff]  }
 0x288   :  { %v11801_v23 = vpop.f32.mrb[156].mxu0  ;;  %2397 = vmatprep.mubr.bf16.mxu1 %v13835_v55  ;;  %5918 = vmatprep.subr.bf16.mxu0 %v13516_v58 }
 0x289   :  { %13834 = vst [vmem:[#allocation274_spill] sm:$0xff] %v11801_v23  ;;  %v5000_v36 = vpop.f32.mrb[157].mxu0  ;;  %v857_v23 = vpop.permute.xlu0 %856  ;;  %3067 = vmatpush1.bf16.msra.mxu1 %v8500_v30 }
 0x28a   :  { %v11807_v40 = vpop.f32.mrb[158].mxu0  ;;  %v7926_v49 = vpop.f32.mrb[144].mxu1  ;;  %3068 = vmatprep.subr.bf16.mxu1 %v13516_v58 }
 0x28b   :  { %13836 = vst [vmem:[#allocation275_spill] sm:$0xff] %v11807_v40  ;;  %v5003_v50 = vpop.f32.mrb[159].mxu0  ;;  %v1942_v59 = vpop.f32.mrb[145].mxu1  ;;  %v11812_v29 = vadd.f32 %v7926_v49, %v10992_v60  ;;  %v13837_v49 = vld [vmem:[#allocation39_spill] sm:$0xff]  ;;  %v13838_v40 = vld [vmem:[#allocation6_spill] sm:$0xff] }
 0x28c   :  { %v7927_v36 = vpop.f32.mrb[146].mxu1  ;;  %v11816_v61 = vadd.f32 %v1942_v59, %v10950_v56  ;;  %v1196_v56 = vsel %vm1146_vm3, %v857_v23, %v13838_v40 }
 0x28d   :  { %5469 = vmatmul.mubr.bf16.gmra.mrb[136].mxu0 %v10821_v6  ;;  %v1945_v55 = vpop.f32.mrb[147].mxu1  ;;  %v11821_v50 = vadd.f32 %v7927_v36, %v10996_v4  ;;  %v8501_v4 = vld [vmem:[%s13263_s2 + $0x198] sm:$0xff]  }
 0x28e   :  { %7384 = vmatprep.mubr.msk.bf16.mxu0 %vm1146_vm3, %v10826_v1  ;;  %v11827_v60 = vadd.f32 %v1945_v55, %v10953_v34  ;;  %v8614_v34 = vld [vmem:[%s13261_s0 + $0xd8] sm:$0xff]   ;;  %3069 = vmatpush1.bf16.msra.mxu1 %v8501_v4 }
 0x28f   :  { %2398 = vmatmul.mubr.bf16.gmra.mrb[252].mxu1 %v13837_v49  ;;  %v1099_v55 = vsel %vm1049_vm4, %v8614_v34, %v857_v23  ;;  %v13840_v49 = vld [vmem:[#allocation139_spill] sm:$0xff]  ;;  %v13842_v4 = vld [vmem:[#allocation42_spill] sm:$0xff] }
 0x290   :  { %2405 = vmatprep.mubr.bf16.mxu1 %v1196_v56  ;;  %v13839_v56 = vld [vmem:[#allocation137_spill] sm:$0xff] }
 0x292   :  { %v7930_v59 = vpop.f32.mrb[148].mxu1 }
 0x293   :  { %v1958_v36 = vpop.f32.mrb[149].mxu1  ;;  %v11837_v1 = vadd.f32 %v7930_v59, %v11071_v0  ;;  %v11852_v0 = vld [vmem:[%s13263_s2 + $0x1a0] sm:$0xff]  }
 0x294   :  { %v7931_v40 = vpop.f32.mrb[150].mxu1  ;;  %v11845_v30 = vadd.f32 %v1958_v36, %v11032_v39  ;;  %8108 = vmatprep.subr.bf16.mxu1 %v11852_v0 }
 0x295   :  { %5477 = vmatmul.mubr.bf16.gmra.mrb[252].mxu0 %v13839_v56  ;;  %v1961_v6 = vpop.f32.mrb[151].mxu1  ;;  %v11856_v23 = vadd.f32 %v7931_v40, %v11074_v16  ;;  %v13844_v16 = vld [vmem:[#allocation143_spill] sm:$0xff] }
 0x296   :  { %7385 = vmatprep.mubr.msk.bf16.mxu0 %vm1146_vm3, %v13840_v49  ;;  %v11859_v59 = vadd.f32 %v1961_v6, %v11035_v62 }
 0x297   :  { %2406 = vmatmul.mubr.bf16.gmra.mrb[0].mxu1 %v1099_v55  ;;  %v13845_v55 = vld [vmem:[#allocation145_spill] sm:$0xff] }
 0x298   :  { %v11861_v39 = vpop.f32.mrb[164].mxu0  ;;  %2413 = vmatprep.mubr.bf16.mxu1 %v13842_v4 }
 0x299   :  { %13841 = vst [vmem:[#allocation6_spill] sm:$0xff] %v11861_v39  ;;  %v5016_v36 = vpop.f32.mrb[165].mxu0  ;;  %v13850_v39 = vld [vmem:[#allocation46_spill] sm:$0xff] }
 0x29a   :  { %v11864_v34 = vpop.f32.mrb[166].mxu0  ;;  %v7934_v49 = vpop.f32.mrb[152].mxu1 }
 0x29b   :  { %13843 = vst [vmem:[#allocation42_spill] sm:$0xff] %v11864_v34  ;;  %v5019_v56 = vpop.f32.mrb[167].mxu0  ;;  %v1974_v13 = vpop.f32.mrb[153].mxu1  ;;  %v11867_v18 = vadd.f32 %v7934_v49, %v11151_v52  ;;  %v8502_v52 = vld [vmem:[%s13264_s3 + $0x108] sm:$0xff]   ;;  %v13847_v49 = vld [vmem:[#allocation45_spill] sm:$0xff] }
 0x29c   :  { %v7935_v2 = vpop.f32.mrb[154].mxu1  ;;  %v11871_v6 = vadd.f32 %v1974_v13, %v11113_v19  ;;  %v13846_v56 = vld [vmem:[#allocation43_spill] sm:$0xff]  ;;  %5919 = vmatpush1.bf16.msra.mxu0 %v8502_v52 }
 0x29d   :  { %5485 = vmatmul.mubr.bf16.gmra.mrb[144].mxu0 %v13844_v16  ;;  %v1977_v62 = vpop.f32.mrb[155].mxu1  ;;  %v11876_v40 = vadd.f32 %v7935_v2, %v11154_v9  ;;  %5920 = vmatprep.subr.bf16.mxu0 %v13516_v58  ;;  %v13848_v2 = vld [vmem:[#allocation149_spill] sm:$0xff] }
 0x29e   :  { %7386 = vmatprep.mubr.msk.bf16.mxu0 %vm1146_vm3, %v13845_v55  ;;  %v11879_v4 = vadd.f32 %v1977_v62, %v11117_v43 }
 0x29f   :  { %2414 = vmatmul.mubr.bf16.gmra.mrb[4].mxu1 %v13846_v56  ;;  %v13849_v56 = vld [vmem:[#allocation151_spill] sm:$0xff] }
 0x2a0   :  { %2421 = vmatprep.mubr.bf16.mxu1 %v13847_v49 }
 0x2a2   :  { %v7938_v19 = vpop.f32.mrb[156].mxu1 }
 0x2a3   :  { %v1990_v13 = vpop.f32.mrb[157].mxu1  ;;  %v11888_v36 = vadd.f32 %v7938_v19, %v11210_v57  ;;  %v13852_v19 = vld [vmem:[#allocation47_spill] sm:$0xff] }
 0x2a4   :  { %v7939_v9 = vpop.f32.mrb[158].mxu1  ;;  %v11892_v43 = vadd.f32 %v1990_v13, %v11180_v32 }
 0x2a5   :  { %5493 = vmatmul.mubr.bf16.gmra.mrb[0].mxu0 %v13848_v2  ;;  %v1993_v62 = vpop.f32.mrb[159].mxu1  ;;  %v11897_v34 = vadd.f32 %v7939_v9, %v11213_v47  ;;  %v13854_v9 = vld [vmem:[#allocation155_spill] sm:$0xff] }
 0x2a6   :  { %7387 = vmatprep.mubr.msk.bf16.mxu0 %vm1146_vm3, %v13849_v56  ;;  %v11900_v52 = vadd.f32 %v1993_v62, %v11182_v26 }
 0x2a7   :  { %2422 = vmatmul.mubr.bf16.gmra.mrb[8].mxu1 %v13850_v39  ;;  %v13855_v39 = vld [vmem:[#allocation157_spill] sm:$0xff] }
 0x2a8   :  { %v11903_v57 = vpop.f32.mrb[172].mxu0  ;;  %2429 = vmatprep.mubr.bf16.mxu1 %v13852_v19 }
 0x2a9   :  { %13851 = vst [vmem:[#allocation43_spill] sm:$0xff] %v11903_v57  ;;  %v5032_v2 = vpop.f32.mrb[173].mxu0 }
 0x2aa   :  { %v11906_v55 = vpop.f32.mrb[174].mxu0  ;;  %v7942_v32 = vpop.f32.mrb[160].mxu1 }
 0x2ab   :  { %13853 = vst [vmem:[#allocation276_spill] sm:$0xff] %v11906_v55  ;;  %v5035_v13 = vpop.f32.mrb[175].mxu0  ;;  %v2006_v16 = vpop.f32.mrb[161].mxu1  ;;  %v11909_v56 = vadd.f32 %v7942_v32, %v11272_v20  ;;  %v13856_v55 = vld [vmem:[#allocation198_spill] sm:$0xff]  ;;  %v13858_v20 = vld [vmem:[#allocation49_spill] sm:$0xff] }
 0x2ac   :  { %v7943_v47 = vpop.f32.mrb[162].mxu1  ;;  %v11913_v26 = vadd.f32 %v2006_v16, %v11241_v42  ;;  %v13857_v13 = vld [vmem:[#allocation48_spill] sm:$0xff]  ;;  %v13860_v16 = vld [vmem:[#allocation161_spill] sm:$0xff] }
 0x2ad   :  { %5501 = vmatmul.mubr.bf16.gmra.mrb[152].mxu0 %v13854_v9  ;;  %v2009_v62 = vpop.f32.mrb[163].mxu1  ;;  %v11918_v2 = vadd.f32 %v7943_v47, %v11275_v51  ;;  %v13862_v47 = vld [vmem:[#allocation163_spill] sm:$0xff] }
 0x2ae   :  { %7388 = vmatprep.mubr.msk.bf16.mxu0 %vm1146_vm3, %v13855_v39  ;;  %v11921_v57 = vadd.f32 %v2009_v62, %v13856_v55  ;;  %v8503_v55 = vld [vmem:[%s13264_s3 + $0x110] sm:$0xff]   ;;  %v13863_v62 = vld [vmem:[#allocation218_spill] sm:$0xff] }
 0x2af   :  { %2430 = vmatmul.mubr.bf16.gmra.mrb[12].mxu1 %v13857_v13  ;;  %v13864_v13 = vld [vmem:[#allocation211_spill] sm:$0xff]  ;;  %5921 = vmatpush1.bf16.msra.mxu0 %v8503_v55 }
 0x2b0   :  { %2437 = vmatprep.mubr.bf16.mxu1 %v13858_v20  ;;  %5922 = vmatprep.subr.bf16.mxu0 %v13516_v58 }
 0x2b2   :  { %v7946_v32 = vpop.f32.mrb[164].mxu1 }
 0x2b3   :  { %v2022_v19 = vpop.f32.mrb[165].mxu1  ;;  %v11926_v9 = vadd.f32 %v7946_v32, %v11334_v28  ;;  %v13865_v32 = vld [vmem:[#allocation50_spill] sm:$0xff] }
 0x2b4   :  { %v7947_v42 = vpop.f32.mrb[166].mxu1  ;;  %v11930_v39 = vadd.f32 %v2022_v19, %v11303_v24  ;;  %v13867_v24 = vld [vmem:[#allocation51_spill] sm:$0xff] }
 0x2b5   :  { %13859 = vst [vmem:[#allocation198_spill] sm:$0xff] %v11926_v9  ;;  %5509 = vmatmul.mubr.bf16.gmra.mrb[4].mxu0 %v13860_v16  ;;  %v2025_v51 = vpop.f32.mrb[167].mxu1  ;;  %v11938_v20 = vadd.f32 %v7947_v42, %v13863_v62 }
 0x2b6   :  { %13861 = vst [vmem:[#allocation277_spill] sm:$0xff] %v11930_v39  ;;  %7389 = vmatprep.mubr.msk.bf16.mxu0 %vm1146_vm3, %v13862_v47  ;;  %v11941_v28 = vadd.f32 %v2025_v51, %v13864_v13  ;;  %v13869_v51 = vld [vmem:[#allocation167_spill] sm:$0xff] }
 0x2b7   :  { %2438 = vmatmul.mubr.bf16.gmra.mrb[16].mxu1 %v13865_v32 }
 0x2b8   :  { %v11944_v16 = vpop.f32.mrb[180].mxu0  ;;  %2445 = vmatprep.mubr.bf16.mxu1 %v13867_v24 }
 0x2b9   :  { %13866 = vst [vmem:[#allocation218_spill] sm:$0xff] %v11944_v16  ;;  %v5048_v19 = vpop.f32.mrb[181].mxu0  ;;  %v13870_v16 = vld [vmem:[#allocation169_spill] sm:$0xff] }
 0x2ba   :  { %v11948_v47 = vpop.f32.mrb[182].mxu0  ;;  %v7950_v49 = vpop.f32.mrb[168].mxu1 }
 0x2bb   :  { %13868 = vst [vmem:[#allocation211_spill] sm:$0xff] %v11948_v47  ;;  %v5051_v9 = vpop.f32.mrb[183].mxu0  ;;  %v2038_v39 = vpop.f32.mrb[169].mxu1  ;;  %v11951_v42 = vadd.f32 %v7950_v49, %v11398_v8  ;;  %v13872_v8 = vld [vmem:[#allocation53_spill] sm:$0xff] }
 0x2bc   :  { %v7951_v13 = vpop.f32.mrb[170].mxu1  ;;  %v11955_v62 = vadd.f32 %v2038_v39, %v11367_v10  ;;  %v13871_v9 = vld [vmem:[#allocation52_spill] sm:$0xff]  ;;  %v13873_v39 = vld [vmem:[#allocation173_spill] sm:$0xff] }
 0x2bd   :  { %5517 = vmatmul.mubr.bf16.gmra.mrb[160].mxu0 %v13869_v51  ;;  %v2041_v55 = vpop.f32.mrb[171].mxu1  ;;  %v11960_v58 = vadd.f32 %v7951_v13, %v11405_v5  ;;  %v13874_v13 = vld [vmem:[#allocation175_spill] sm:$0xff] }
 0x2be   :  { %7390 = vmatprep.mubr.msk.bf16.mxu0 %vm1146_vm3, %v13870_v16  ;;  %v11963_v19 = vadd.f32 %v2041_v55, %v11370_v63  ;;  %v8616_v55 = vld [vmem:[%s13262_s1 + $0xc0] sm:$0xff]  }
 0x2bf   :  { %2446 = vmatmul.mubr.bf16.gmra.mrb[20].mxu1 %v13871_v9 }
 0x2c0   :  { %2453 = vmatprep.mubr.bf16.mxu1 %v13872_v8  ;;  %v5273_v8 = vrot.slane %v8616_v55, 1 }
 0x2c2   :  { %v7954_v49 = vpop.f32.mrb[172].mxu1 }
 0x2c3   :  { %v2054_v47 = vpop.f32.mrb[173].mxu1  ;;  %v11968_v51 = vadd.f32 %v7954_v49, %v11475_v12  ;;  %v8617_v12 = vld [vmem:[%s13262_s1 + $0xc8] ss:$0 sps:$4 sm:$0x11]  }
 0x2c4   :  { %v7955_v10 = vpop.f32.mrb[174].mxu1  ;;  %v11972_v16 = vadd.f32 %v2054_v47, %v11437_v44  ;;  %v5274_v49 = vrot.slane %v8617_v12, 1  ;;  %v13875_v47 = vld [vmem:[#allocation54_spill] sm:$0xff] }
 0x2c5   :  { %5525 = vmatmul.mubr.bf16.gmra.mrb[8].mxu0 %v13873_v39  ;;  %v2057_v5 = vpop.f32.mrb[175].mxu1  ;;  %v11977_v63 = vadd.f32 %v7955_v10, %v11478_v22  ;;  %v8504_v10 = vld [vmem:[%s13264_s3 + $0x118] sm:$0xff]  }
 0x2c6   :  { %7391 = vmatprep.mubr.msk.bf16.mxu0 %vm1146_vm3, %v13874_v13  ;;  %v11986_v44 = vadd.f32 %v2057_v5, %v11440_v15  ;;  %v13877_v13 = vld [vmem:[#allocation55_spill] sm:$0xff]  ;;  %v11998_v12 = vsel %vm888_vm0, %v5273_v8, %v5274_v49  ;;  %5923 = vmatpush1.bf16.msra.mxu0 %v8504_v10  ;;  %v13882_v49 = vld [vmem:[#allocation56_spill] sm:$0xff] }
 0x2c7   :  { %2454 = vmatmul.mubr.bf16.gmra.mrb[24].mxu1 %v13875_v47  ;;  %13879 = vst [vmem:[#allocation280_spill] sm:$0xff] %v11998_v12  ;;  %v13880_v47 = vld [vmem:[#allocation179_spill] sm:$0xff] }
 0x2c8   :  { %v11989_v39 = vpop.f32.mrb[188].mxu0  ;;  %2461 = vmatprep.mubr.bf16.mxu1 %v13877_v13 }
 0x2c9   :  { %13876 = vst [vmem:[#allocation278_spill] sm:$0xff] %v11989_v39  ;;  %v5064_v22 = vpop.f32.mrb[189].mxu0 }
 0x2ca   :  { %v11995_v9 = vpop.f32.mrb[190].mxu0  ;;  %v7958_v24 = vpop.f32.mrb[176].mxu1 }
 0x2cb   :  { %13878 = vst [vmem:[#allocation279_spill] sm:$0xff] %v11995_v9  ;;  %v5067_v32 = vpop.f32.mrb[191].mxu0  ;;  %v2070_v15 = vpop.f32.mrb[177].mxu1  ;;  %v12001_v5 = vadd.f32 %v7958_v24, %v11541_v45  ;;  %v13883_v24 = vld [vmem:[#allocation57_spill] sm:$0xff] }
 0x2cc   :  { %v7959_v39 = vpop.f32.mrb[178].mxu1  ;;  %v12005_v22 = vadd.f32 %v2070_v15, %v11512_v17  ;;  %v5270_v45 = vpop.permute.xlu1 %5269 }
 0x2cd   :  { %5533 = vmatmul.mubr.bf16.gmra.mrb[168].mxu0 %v13880_v47  ;;  %v2073_v13 = vpop.f32.mrb[179].mxu1  ;;  %v12010_v32 = vadd.f32 %v7959_v39, %v11544_v37  ;;  %v12018_v10 = vsel %vm1146_vm3, %v8616_v55, %v5270_v45  ;;  %v13887_v39 = vld [vmem:[#allocation185_spill] sm:$0xff]  ;;  %v13889_v55 = vld [vmem:[#allocation255_spill] sm:$0xff]  ;;  %v13891_v47 = vld [vmem:[#allocation58_spill] sm:$0xff] }
 0x2ce   :  { %7392 = vmatprep.mubr.msk.bf16.mxu0 %vm1146_vm3, %v11998_v12  ;;  %v12013_v8 = vadd.f32 %v2073_v13, %v11515_v53  ;;  %13884 = vst [vmem:[#allocation282_spill] sm:$0xff] %v12018_v10 }
 0x2cf   :  { %13881 = vst [vmem:[#allocation281_spill] sm:$0xff] %v12010_v32  ;;  %2462 = vmatmul.mubr.bf16.gmra.mrb[28].mxu1 %v13882_v49  ;;  %v13900_v49 = vld [vmem:[#allocation191_spill] sm:$0xff] }
 0x2d0   :  { %2469 = vmatprep.mubr.bf16.mxu1 %v13883_v24 }
 0x2d2   :  { %v7962_v17 = vpop.f32.mrb[180].mxu1 }
 0x2d3   :  { %v2086_v15 = vpop.f32.mrb[181].mxu1  ;;  %v12021_v9 = vadd.f32 %v7962_v17, %v11592_v33  ;;  %v13893_v17 = vld [vmem:[#allocation59_spill] sm:$0xff] }
 0x2d4   :  { %v7963_v12 = vpop.f32.mrb[182].mxu1  ;;  %v12025_v37 = vadd.f32 %v2086_v15, %v11571_v46  ;;  %v12042_v46 = vld [vmem:[%s13262_s1 + $0xcc] sm:$0xff]  }
 0x2d5   :  { %13885 = vst [vmem:[#allocation283_spill] sm:$0xff] %v12021_v9  ;;  %5541 = vmatmul.mubr.bf16.gmra.mrb[12].mxu0 %v12018_v10  ;;  %v2089_v53 = vpop.f32.mrb[183].mxu1  ;;  %v12030_v13 = vadd.f32 %v7963_v12, %v11595_v54  ;;  %v12049_v12 = vld [vmem:[%s13262_s1 + $0xd4] ss:$0 sps:$4 sm:$0x11]  }
 0x2d6   :  { %13886 = vst [vmem:[#allocation284_spill] sm:$0xff] %v12025_v37  ;;  %7393 = vmatprep.mubr.msk.bf16.mxu0 %vm1146_vm3, %v13887_v39  ;;  %v12033_v45 = vadd.f32 %v2089_v53, %v13889_v55  ;;  %13895 = vst [vmem:[#allocation287_spill] sm:$0xff] %v12049_v12  ;;  %v5760_v53 = vshll.u32 %v12042_v46, 16 }
 0x2d7   :  { %13888 = vst [vmem:[#allocation185_spill] sm:$0xff] %v12030_v13  ;;  %2470 = vmatmul.mubr.bf16.gmra.mrb[32].mxu1 %v13891_v47  ;;  %v5758_v47 = vshrl.u32 %v12042_v46, 16 }
 0x2d8   :  { %13890 = vst [vmem:[#allocation255_spill] sm:$0xff] %v12033_v45  ;;  %v12036_v33 = vpop.f32.mrb[196].mxu0  ;;  %2477 = vmatprep.mubr.bf16.mxu1 %v13893_v17  ;;  %v13897_v17 = vld [vmem:[#allocation189_spill] sm:$0xff]  ;;  %v5762_v13 = vrot.slane %v5760_v53, 1 }
 0x2d9   :  { %13892 = vst [vmem:[#allocation285_spill] sm:$0xff] %v12036_v33  ;;  %v5080_v10 = vpop.f32.mrb[197].mxu0  ;;  %v13901_v45 = vld [vmem:[#allocation265_spill] sm:$0xff] }
 0x2da   :  { %v12044_v15 = vpop.f32.mrb[198].mxu0  ;;  %v7966_v39 = vpop.f32.mrb[184].mxu1  ;;  %v13905_v53 = vld [vmem:[#allocation65_spill] sm:$0xff] }
 0x2db   :  { %13894 = vst [vmem:[#allocation286_spill] sm:$0xff] %v12044_v15  ;;  %v5083_v54 = vpop.f32.mrb[199].mxu0  ;;  %v2102_v55 = vpop.f32.mrb[185].mxu1  ;;  %v12053_v33 = vadd.f32 %v7966_v39, %v11633_v11  ;;  %v5765_v15 = vshll.u32 %v12049_v12, 16  ;;  %v5763_v11 = vor.u32 %v5762_v13, %v5758_v47  ;;  %v13909_v47 = vld [vmem:[#allocation268_spill] sm:$0xff] }
 0x2dc   :  { %v7967_v10 = vpop.f32.mrb[186].mxu1  ;;  %v13898_v54 = vld [vmem:[#allocation262_spill] sm:$0xff] }
 0x2dd   :  { %13896 = vst [vmem:[#allocation288_spill] sm:$0xff] %v12053_v33  ;;  %5549 = vmatmul.mubr.bf16.gmra.mrb[176].mxu0 %v13897_v17  ;;  %v12059_v9 = vadd.f32 %v2102_v55, %v13898_v54  ;;  %v2105_v24 = vpop.f32.mrb[187].mxu1  ;;  %v12064_v37 = vadd.f32 %v7967_v10, %v13901_v45  ;;  %v5767_v39 = vrot.slane %v5765_v15, 1  ;;  %v13903_v33 = vld [vmem:[#allocation263_spill] sm:$0xff]  ;;  %v13904_v17 = vld [vmem:[#allocation64_spill] sm:$0xff] }
 0x2de   :  { %7394 = vmatprep.mubr.msk.bf16.mxu0 %vm1146_vm3, %v13900_v49  ;;  %v12067_v32 = vadd.f32 %v2105_v24, %v13903_v33  ;;  %v13908_v10 = vld [vmem:[#allocation195_spill] sm:$0xff]  ;;  %v13911_v33 = vld [vmem:[#allocation197_spill] sm:$0xff] }
 0x2df   :  { %13899 = vst [vmem:[#allocation189_spill] sm:$0xff] %v12059_v9  ;;  %13902 = vst [vmem:[#allocation262_spill] sm:$0xff] %v12064_v37  ;;  %2478 = vmatmul.mubr.bf16.gmra.mrb[36].mxu1 %v13904_v17  ;;  %v5768_v12 = vsel %vm439_vm1, %v5763_v11, %v5767_v39  ;;  %v13906_v9 = vld [vmem:[#allocation270_spill] sm:$0xff]  ;;  %v13912_v15 = vld [vmem:[#allocation271_spill] sm:$0xff] }
 0x2e0   :  { %2485 = vmatprep.mubr.bf16.mxu1 %v13905_v53  ;;  %5781 = vrot.lane.b32.xlu0 %v5768_v12, %s8648_s9  ;;  %v13914_v11 = vld [vmem:[#allocation76_spill] sm:$0xff]  ;;  %v13916_v39 = vld [vmem:[#allocation71_spill] sm:$0xff] }
 0x2e2   :  { %v7970_v55 = vpop.f32.mrb[188].mxu1 }
 0x2e3   :  { %v2118_v54 = vpop.f32.mrb[189].mxu1  ;;  %v12074_v49 = vadd.f32 %v7970_v55, %v13906_v9  ;;  %v13918_v55 = vld [vmem:[#allocation72_spill] sm:$0xff] }
 0x2e4   :  { %v7971_v45 = vpop.f32.mrb[190].mxu1  ;;  %v12078_v13 = vadd.f32 %v2118_v54, %v13909_v47 }
 0x2e5   :  { %13907 = vst [vmem:[#allocation265_spill] sm:$0xff] %v12074_v49  ;;  %5557 = vmatmul.mubr.bf16.gmra.mrb[16].mxu0 %v13908_v10  ;;  %v2121_v24 = vpop.f32.mrb[191].mxu1  ;;  %v12083_v37 = vadd.f32 %v7971_v45, %v13912_v15  ;;  %v13920_v45 = vld [vmem:[#allocation202_spill] sm:$0xff] }
 0x2e6   :  { %13910 = vst [vmem:[#allocation263_spill] sm:$0xff] %v12078_v13  ;;  %7395 = vmatprep.mubr.msk.bf16.mxu0 %vm1146_vm3, %v13911_v33  ;;  %v12086_v12 = vadd.f32 %v2121_v24, %v13914_v11  ;;  %v13921_v11 = vld [vmem:[#allocation204_spill] sm:$0xff] }
 0x2e7   :  { %13913 = vst [vmem:[#allocation64_spill] sm:$0xff] %v12083_v37  ;;  %2486 = vmatmul.mubr.bf16.gmra.mrb[40].mxu1 %v13916_v39  ;;  %v13931_v39 = vld [vmem:[#allocation210_spill] sm:$0xff] }
 0x2e8   :  { %13915 = vst [vmem:[#allocation270_spill] sm:$0xff] %v12086_v12  ;;  %v12089_v9 = vpop.f32.mrb[204].mxu0  ;;  %2493 = vmatprep.mubr.bf16.mxu1 %v13918_v55 }
 0x2e9   :  { %13917 = vst [vmem:[#allocation268_spill] sm:$0xff] %v12089_v9  ;;  %v5096_v49 = vpop.f32.mrb[205].mxu0  ;;  %v13922_v9 = vld [vmem:[#allocation61_spill] sm:$0xff] }
 0x2ea   :  { %v12092_v10 = vpop.f32.mrb[206].mxu0  ;;  %v2279_v54 = vpop.f32.mrb[192].mxu1  ;;  %v13924_v49 = vld [vmem:[#allocation79_spill] sm:$0xff] }
 0x2eb   :  { %13919 = vst [vmem:[#allocation271_spill] sm:$0xff] %v12092_v10  ;;  %v5099_v47 = vpop.f32.mrb[207].mxu0  ;;  %v2280_v13 = vadd.f32 %v2279_v54, %v11714_v3  ;;  %v2281_v33 = vpop.f32.mrb[193].mxu1  ;;  %v13925_v10 = vld [vmem:[#allocation63_spill] sm:$0xff] }
 0x2ec   :  { %v2282_v53 = vpop.f32.mrb[194].mxu1  ;;  %v13927_v47 = vld [vmem:[#allocation80_spill] sm:$0xff]  ;;  %v13928_v33 = vld [vmem:[#allocation97_spill] sm:$0xff] }
 0x2ed   :  { %5565 = vmatmul.mubr.bf16.gmra.mrb[184].mxu0 %v13920_v45  ;;  %v2283_v24 = vadd.f32 %v2282_v53, %v11726_v31  ;;  %v2284_v15 = vpop.f32.mrb[195].mxu1  ;;  %v12100_v37 = vadd.f32 %v13922_v9, %v2280_v13  ;;  %v13929_v31 = vld [vmem:[#allocation208_spill] sm:$0xff]  ;;  %v13930_v53 = vld [vmem:[#allocation87_spill] sm:$0xff] }
 0x2ee   :  { %7396 = vmatprep.mubr.msk.bf16.mxu0 %vm1146_vm3, %v13921_v11  ;;  %v13932_v13 = vld [vmem:[#allocation60_spill] sm:$0xff] }
 0x2ef   :  { %13923 = vst [vmem:[#allocation76_spill] sm:$0xff] %v12100_v37  ;;  %2494 = vmatmul.mubr.bf16.gmra.mrb[44].mxu1 %v13924_v49  ;;  %v12104_v12 = vadd.f32 %v13925_v10, %v2283_v24  ;;  %v13934_v10 = vld [vmem:[#allocation88_spill] sm:$0xff] }
 0x2f0   :  { %2501 = vmatprep.mubr.bf16.mxu1 %v13927_v47  ;;  %v13952_v47 = vld [vmem:[#allocation224_spill] sm:$0xff] }
 0x2f1   :  { %13926 = vst [vmem:[#allocation61_spill] sm:$0xff] %v12104_v12  ;;  %v13936_v12 = vld [vmem:[#allocation62_spill] sm:$0xff] }
 0x2f2   :  { %v2287_v3 = vpop.f32.mrb[196].mxu1 }
 0x2f3   :  { %v2288_v54 = vadd.f32 %v2287_v3, %v13928_v33  ;;  %v2289_v45 = vpop.f32.mrb[197].mxu1 }
 0x2f4   :  { %v2290_v55 = vpop.f32.mrb[198].mxu1  ;;  %v13938_v45 = vld [vmem:[#allocation90_spill] sm:$0xff] }
 0x2f5   :  { %5573 = vmatmul.mubr.bf16.gmra.mrb[20].mxu0 %v13929_v31  ;;  %v2291_v15 = vadd.f32 %v2290_v55, %v13930_v53  ;;  %v2292_v11 = vpop.f32.mrb[199].mxu1  ;;  %v12113_v9 = vadd.f32 %v13932_v13, %v2288_v54  ;;  %v13940_v54 = vld [vmem:[#allocation215_spill] sm:$0xff] }
 0x2f6   :  { %7397 = vmatprep.mubr.msk.bf16.mxu0 %vm1146_vm3, %v13931_v39  ;;  %v13941_v13 = vld [vmem:[#allocation107_spill] sm:$0xff] }
 0x2f7   :  { %13933 = vst [vmem:[#allocation79_spill] sm:$0xff] %v12113_v9  ;;  %2502 = vmatmul.mubr.bf16.gmra.mrb[48].mxu1 %v13934_v10  ;;  %v12119_v37 = vadd.f32 %v13936_v12, %v2291_v15  ;;  %v13943_v12 = vld [vmem:[#allocation67_spill] sm:$0xff] }
 0x2f8   :  { %v12116_v24 = vpop.f32.mrb[212].mxu0  ;;  %2509 = vmatprep.mubr.bf16.mxu1 %v13938_v45 }
 0x2f9   :  { %13935 = vst [vmem:[#allocation63_spill] sm:$0xff] %v12116_v24  ;;  %13937 = vst [vmem:[#allocation97_spill] sm:$0xff] %v12119_v37  ;;  %v5112_v3 = vpop.f32.mrb[213].mxu0  ;;  %v13942_v24 = vld [vmem:[#allocation217_spill] sm:$0xff] }
 0x2fa   :  { %v12122_v33 = vpop.f32.mrb[214].mxu0  ;;  %v2295_v55 = vpop.f32.mrb[200].mxu1  ;;  %v13945_v3 = vld [vmem:[#allocation98_spill] sm:$0xff] }
 0x2fb   :  { %13939 = vst [vmem:[#allocation87_spill] sm:$0xff] %v12122_v33  ;;  %v5115_v11 = vpop.f32.mrb[215].mxu0  ;;  %v2296_v53 = vadd.f32 %v2295_v55, %v11739_v48  ;;  %v2297_v39 = vpop.f32.mrb[201].mxu1  ;;  %v13946_v33 = vld [vmem:[#allocation69_spill] sm:$0xff] }
 0x2fc   :  { %v2298_v31 = vpop.f32.mrb[202].mxu1  ;;  %v13948_v11 = vld [vmem:[#allocation100_spill] sm:$0xff]  ;;  %v13949_v39 = vld [vmem:[#allocation99_spill] sm:$0xff] }
 0x2fd   :  { %5581 = vmatmul.mubr.bf16.gmra.mrb[192].mxu0 %v13940_v54  ;;  %v2299_v9 = vadd.f32 %v2298_v31, %v13941_v13  ;;  %v2300_v10 = vpop.f32.mrb[203].mxu1  ;;  %v12130_v15 = vadd.f32 %v13943_v12, %v2296_v53  ;;  %v13950_v31 = vld [vmem:[#allocation222_spill] sm:$0xff] }
 0x2fe   :  { %7398 = vmatprep.mubr.msk.bf16.mxu0 %vm1146_vm3, %v13942_v24  ;;  %v13951_v10 = vld [vmem:[#allocation89_spill] sm:$0xff]  ;;  %v13953_v53 = vld [vmem:[#allocation66_spill] sm:$0xff] }
 0x2ff   :  { %13944 = vst [vmem:[#allocation60_spill] sm:$0xff] %v12130_v15  ;;  %2510 = vmatmul.mubr.bf16.gmra.mrb[52].mxu1 %v13945_v3  ;;  %v12134_v37 = vadd.f32 %v13946_v33, %v2299_v9  ;;  %v13955_v9 = vld [vmem:[#allocation108_spill] sm:$0xff] }
 0x300   :  { %2517 = vmatprep.mubr.bf16.mxu1 %v13948_v11 }
 0x301   :  { %13947 = vst [vmem:[#allocation62_spill] sm:$0xff] %v12134_v37  ;;  %v13957_v37 = vld [vmem:[#allocation68_spill] sm:$0xff] }
 0x302   :  { %v2303_v48 = vpop.f32.mrb[204].mxu1 }
 0x303   :  { %v2304_v55 = vadd.f32 %v2303_v48, %v13949_v39  ;;  %v2305_v54 = vpop.f32.mrb[205].mxu1 }
 0x304   :  { %v2306_v45 = vpop.f32.mrb[206].mxu1  ;;  %v13959_v54 = vld [vmem:[#allocation110_spill] sm:$0xff] }
 0x305   :  { %5589 = vmatmul.mubr.bf16.gmra.mrb[24].mxu0 %v13950_v31  ;;  %v2307_v13 = vadd.f32 %v2306_v45, %v13951_v10  ;;  %v2308_v24 = vpop.f32.mrb[207].mxu1  ;;  %v12143_v12 = vadd.f32 %v13953_v53, %v2304_v55  ;;  %v13961_v55 = vld [vmem:[#allocation228_spill] sm:$0xff]  ;;  %v13962_v53 = vld [vmem:[#allocation74_spill] sm:$0xff] }
 0x306   :  { %7399 = vmatprep.mubr.msk.bf16.mxu0 %vm1146_vm3, %v13952_v47 }
 0x307   :  { %13954 = vst [vmem:[#allocation107_spill] sm:$0xff] %v12143_v12  ;;  %2518 = vmatmul.mubr.bf16.gmra.mrb[56].mxu1 %v13955_v9  ;;  %v12149_v15 = vadd.f32 %v13957_v37, %v2307_v13  ;;  %v13964_v13 = vld [vmem:[#allocation230_spill] sm:$0xff] }
 0x308   :  { %v12146_v33 = vpop.f32.mrb[220].mxu0  ;;  %2525 = vmatprep.mubr.bf16.mxu1 %v13959_v54 }
 0x309   :  { %13956 = vst [vmem:[#allocation67_spill] sm:$0xff] %v12146_v33  ;;  %13958 = vst [vmem:[#allocation98_spill] sm:$0xff] %v12149_v15  ;;  %v5128_v48 = vpop.f32.mrb[221].mxu0 }
 0x30a   :  { %v12152_v39 = vpop.f32.mrb[222].mxu0  ;;  %v2311_v45 = vpop.f32.mrb[208].mxu1  ;;  %v13965_v48 = vld [vmem:[#allocation77_spill] sm:$0xff] }
 0x30b   :  { %13960 = vst [vmem:[#allocation69_spill] sm:$0xff] %v12152_v39  ;;  %v5131_v24 = vpop.f32.mrb[223].mxu0  ;;  %v2312_v10 = vadd.f32 %v2311_v45, %v11770_v7  ;;  %v2313_v47 = vpop.f32.mrb[209].mxu1  ;;  %v13967_v39 = vld [vmem:[#allocation118_spill] sm:$0xff]  ;;  %v12170_v7 = vld [vmem:[%s13261_s0 + $0x1a4] sm:$0xff]  }
 0x30c   :  { %v2314_v31 = vpop.f32.mrb[210].mxu1  ;;  %v13968_v24 = vld [vmem:[#allocation5_spill] sm:$0xff] }
 0x30d   :  { %5597 = vmatmul.mubr.bf16.gmra.mrb[200].mxu0 %v13961_v55  ;;  %v12157_v12 = vadd.f32 %v13962_v53, %v2312_v10  ;;  %v2315_v33 = vadd.f32 %v2314_v31, %v11778_v35  ;;  %v2316_v37 = vpop.f32.mrb[211].mxu1  ;;  %v8508_v31 = vld [vmem:[%s13261_s0 + $0x1ac] ss:$0 sps:$4 sm:$0x11]   ;;  %v13969_v53 = vld [vmem:[#allocation234_spill] sm:$0xff] }
 0x30e   :  { %7400 = vmatprep.mubr.msk.bf16.mxu0 %vm1146_vm3, %v13964_v13  ;;  %v13970_v37 = vld [vmem:[#allocation73_spill] sm:$0xff]  ;;  %v13973_v13 = vld [vmem:[#allocation75_spill] sm:$0xff] }
 0x30f   :  { %13963 = vst [vmem:[#allocation100_spill] sm:$0xff] %v12157_v12  ;;  %v12163_v15 = vadd.f32 %v13965_v48, %v2315_v33  ;;  %2526 = vmatmul.mubr.bf16.gmra.mrb[60].mxu1 %v13967_v39  ;;  %v2854_v33 = vshll.u32 %v12170_v7, 16  ;;  %v13972_v12 = vld [vmem:[#allocation236_spill] sm:$0xff]  ;;  %v13974_v39 = vld [vmem:[#allocation7_spill] sm:$0xff] }
 0x310   :  { %3070 = vmatprep.mubr.bf16.mxu1 %v13968_v24 }
 0x311   :  { %13966 = vst [vmem:[#allocation99_spill] sm:$0xff] %v12163_v15 }
 0x312   :  { %v2319_v47 = vpop.f32.mrb[212].mxu1 }
 0x313   :  { %v2320_v45 = vadd.f32 %v2319_v47, %v11766_v38  ;;  %v2321_v35 = vpop.f32.mrb[213].mxu1  ;;  %v2852_v38 = vshrl.u32 %v12170_v7, 16  ;;  %v2856_v47 = vrot.slane %v2854_v33, 1 }
 0x314   :  { %v2322_v10 = vpop.f32.mrb[214].mxu1  ;;  %v2859_v35 = vshll.u32 %v8508_v31, 16 }
 0x315   :  { %5605 = vmatmul.mubr.bf16.gmra.mrb[28].mxu0 %v13969_v53  ;;  %v12179_v48 = vadd.f32 %v13970_v37, %v2320_v45  ;;  %v2323_v24 = vadd.f32 %v2322_v10, %v11775_v27  ;;  %v2324_v15 = vpop.f32.mrb[215].mxu1  ;;  %v2857_v53 = vor.u32 %v2856_v47, %v2852_v38  ;;  %v2870_v45 = vrot.slane %v12170_v7, 1  ;;  %v13976_v27 = vld [vmem:[#allocation8_spill] sm:$0xff] }
 0x316   :  { %7401 = vmatprep.mubr.msk.bf16.mxu0 %vm1146_vm3, %v13972_v12  ;;  %v2871_v37 = vrot.slane %v8508_v31, 1  ;;  %v2861_v10 = vrot.slane %v2859_v35, 1  ;;  %v13978_v35 = vld [vmem:[#allocation240_spill] sm:$0xff] }
 0x317   :  { %13971 = vst [vmem:[#allocation89_spill] sm:$0xff] %v12179_v48  ;;  %v12186_v55 = vadd.f32 %v13973_v13, %v2323_v24  ;;  %3071 = vmatmul.mubr.bf16.vlgmr.msra.gmra.mrb[64].mxu1 %v13974_v39  ;;  %v8618_v39 = vld [vmem:[%s13263_s2 + $0x1a8] sm:$0xff]  }
 0x318   :  { %v12189_v54 = vpop.f32.mrb[228].mxu0  ;;  %3078 = vmatprep.mubr.bf16.mxu1 %v13976_v27  ;;  %8110 = vmatpush3.bf16.msra.mxu1 %v11852_v0  ;;  %v2872_v33 = vsel %vm888_vm0, %v2870_v45, %v2871_v37  ;;  %v2862_v38 = vsel %vm439_vm1, %v2857_v53, %v2861_v10  ;;  %v13979_v45 = vld [vmem:[#allocation82_spill] sm:$0xff]  ;;  %v13981_v53 = vld [vmem:[#allocation85_spill] sm:$0xff] }
 0x319   :  { %13975 = vst [vmem:[#allocation66_spill] sm:$0xff] %v12189_v54  ;;  %v5144_v15 = vpop.f32.mrb[229].mxu0  ;;  %8109 = vmatprep.subr.bf16.mxu1 %v8618_v39  ;;  %2875 = vrot.lane.b32.xlu0 %v2872_v33, %s8648_s9  ;;  %v13983_v33 = vld [vmem:[#allocation10_spill] sm:$0xff]  ;;  %v13994_v54 = vld [vmem:[#allocation249_spill] sm:$0xff] }
 0x31a   :  { %v12194_v48 = vpop.f32.mrb[230].mxu0  ;;  %v2327_v13 = vpop.f32.mrb[216].mxu1  ;;  %2865 = vrot.lane.b32.xlu1 %v2862_v38, %s8649_s22 }
 0x31b   :  { %13977 = vst [vmem:[#allocation108_spill] sm:$0xff] %v12194_v48  ;;  %v5147_v24 = vpop.f32.mrb[231].mxu0  ;;  %v2328_v31 = vadd.f32 %v2327_v13, %v11787_v14  ;;  %v2329_v47 = vpop.f32.mrb[217].mxu1  ;;  %v13982_v14 = vld [vmem:[#allocation9_spill] sm:$0xff]  ;;  %v13987_v48 = vld [vmem:[#allocation248_spill] sm:$0xff] }
 0x31c   :  { %v2330_v0 = vpop.f32.mrb[218].mxu1  ;;  %8111 = vmatpush3.bf16.msra.mxu1 %v8618_v39  ;;  %v13980_v24 = vld [vmem:[#allocation242_spill] sm:$0xff] }
 0x31d   :  { %5613 = vmatmul.mubr.bf16.gmra.mrb[208].mxu0 %v13978_v35  ;;  %v12206_v37 = vadd.f32 %v13979_v45, %v2328_v31  ;;  %v2331_v27 = vadd.f32 %v2330_v0, %v11798_v25  ;;  %v2332_v15 = vpop.f32.mrb[219].mxu1  ;;  %v13984_v31 = vld [vmem:[#allocation246_spill] sm:$0xff]  ;;  %v13985_v45 = vld [vmem:[#allocation81_spill] sm:$0xff] }
 0x31e   :  { %7402 = vmatprep.mubr.msk.bf16.mxu0 %vm1146_vm3, %v13980_v24 }
 0x31f   :  { %v12212_v10 = vadd.f32 %v13981_v53, %v2331_v27  ;;  %3079 = vmatmul.mubr.bf16.gmra.mrb[68].mxu1 %v13982_v14  ;;  %v13988_v27 = vld [vmem:[#allocation83_spill] sm:$0xff] }
 0x320   :  { %3086 = vmatprep.mubr.bf16.mxu1 %v13983_v33  ;;  %v13990_v14 = vld [vmem:[#allocation11_spill] sm:$0xff] }
 0x322   :  { %v2335_v13 = vpop.f32.mrb[220].mxu1 }
 0x323   :  { %v2336_v38 = vadd.f32 %v2335_v13, %v11783_v21  ;;  %v2337_v39 = vpop.f32.mrb[221].mxu1  ;;  %v13992_v21 = vld [vmem:[#allocation12_spill] sm:$0xff] }
 0x324   :  { %v2338_v47 = vpop.f32.mrb[222].mxu1 }
 0x325   :  { %5621 = vmatmul.mubr.bf16.gmra.mrb[32].mxu0 %v13984_v31  ;;  %v12219_v25 = vadd.f32 %v13985_v45, %v2336_v38  ;;  %v2339_v0 = vadd.f32 %v2338_v47, %v11795_v41  ;;  %v2340_v15 = vpop.f32.mrb[223].mxu1 }
 0x326   :  { %7403 = vmatprep.mubr.msk.bf16.mxu0 %vm1146_vm3, %v13987_v48 }
 0x327   :  { %13986 = vst [vmem:[#allocation68_spill] sm:$0xff] %v12219_v25  ;;  %v12225_v53 = vadd.f32 %v13988_v27, %v2339_v0  ;;  %3087 = vmatmul.mubr.bf16.gmra.mrb[72].mxu1 %v13990_v14  ;;  %v13995_v25 = vld [vmem:[#allocation92_spill] sm:$0xff] }
 0x328   :  { %v12228_v33 = vpop.f32.mrb[236].mxu0  ;;  %3094 = vmatprep.mubr.bf16.mxu1 %v13992_v21  ;;  %v13998_v21 = vld [vmem:[#allocation95_spill] sm:$0xff] }
 0x329   :  { %13989 = vst [vmem:[#allocation74_spill] sm:$0xff] %v12225_v53  ;;  %13991 = vst [vmem:[#allocation77_spill] sm:$0xff] %v12228_v33  ;;  %v5160_v13 = vpop.f32.mrb[237].mxu0  ;;  %v13997_v33 = vld [vmem:[#allocation250_spill] sm:$0xff] }
 0x32a   :  { %v12231_v39 = vpop.f32.mrb[238].mxu0  ;;  %v2343_v38 = vpop.f32.mrb[224].mxu1 }
 0x32b   :  { %13993 = vst [vmem:[#allocation5_spill] sm:$0xff] %v12231_v39  ;;  %v5163_v45 = vpop.f32.mrb[239].mxu0  ;;  %v2344_v41 = vadd.f32 %v2343_v38, %v11816_v61  ;;  %v2345_v47 = vpop.f32.mrb[225].mxu1  ;;  %v14000_v39 = vld [vmem:[#allocation13_spill] sm:$0xff] }
 0x32c   :  { %v2346_v15 = vpop.f32.mrb[226].mxu1  ;;  %v14001_v45 = vld [vmem:[#allocation14_spill] sm:$0xff] }
 0x32d   :  { %5629 = vmatmul.mubr.bf16.gmra.mrb[216].mxu0 %v13994_v54  ;;  %v12236_v0 = vadd.f32 %v13995_v25, %v2344_v41  ;;  %v2347_v27 = vadd.f32 %v2346_v15, %v11827_v60  ;;  %v2348_v14 = vpop.f32.mrb[227].mxu1  ;;  %v14002_v25 = vld [vmem:[#allocation253_spill] sm:$0xff]  ;;  %v14003_v41 = vld [vmem:[#allocation91_spill] sm:$0xff] }
 0x32e   :  { %7404 = vmatprep.mubr.msk.bf16.mxu0 %vm1146_vm3, %v13997_v33 }
 0x32f   :  { %13996 = vst [vmem:[#allocation73_spill] sm:$0xff] %v12236_v0  ;;  %v12242_v13 = vadd.f32 %v13998_v21, %v2347_v27  ;;  %3095 = vmatmul.mubr.bf16.gmra.mrb[76].mxu1 %v14000_v39  ;;  %v14005_v0 = vld [vmem:[#allocation254_spill] sm:$0xff]  ;;  %v14006_v27 = vld [vmem:[#allocation93_spill] sm:$0xff]  ;;  %v14008_v21 = vld [vmem:[#allocation16_spill] sm:$0xff] }
 0x330   :  { %3102 = vmatprep.mubr.bf16.mxu1 %v14001_v45 }
 0x331   :  { %13999 = vst [vmem:[#allocation236_spill] sm:$0xff] %v12242_v13  ;;  %v14011_v13 = vld [vmem:[#allocation102_spill] sm:$0xff] }
 0x332   :  { %v2351_v61 = vpop.f32.mrb[228].mxu1 }
 0x333   :  { %v2352_v38 = vadd.f32 %v2351_v61, %v11812_v29  ;;  %v2353_v47 = vpop.f32.mrb[229].mxu1  ;;  %v14009_v29 = vld [vmem:[#allocation17_spill] sm:$0xff] }
 0x334   :  { %v2354_v53 = vpop.f32.mrb[230].mxu1 }
 0x335   :  { %5637 = vmatmul.mubr.bf16.gmra.mrb[36].mxu0 %v14002_v25  ;;  %v12249_v60 = vadd.f32 %v14003_v41, %v2352_v38  ;;  %v2355_v15 = vadd.f32 %v2354_v53, %v11821_v50  ;;  %v2356_v14 = vpop.f32.mrb[231].mxu1 }
 0x336   :  { %7405 = vmatprep.mubr.msk.bf16.mxu0 %vm1146_vm3, %v14005_v0  ;;  %v14016_v0 = vld [vmem:[#allocation19_spill] sm:$0xff] }
 0x337   :  { %14004 = vst [vmem:[#allocation75_spill] sm:$0xff] %v12249_v60  ;;  %v12255_v39 = vadd.f32 %v14006_v27, %v2355_v15  ;;  %3103 = vmatmul.mubr.bf16.gmra.mrb[80].mxu1 %v14008_v21  ;;  %v14010_v60 = vld [vmem:[#allocation256_spill] sm:$0xff] }
 0x338   :  { %v12258_v45 = vpop.f32.mrb[240].mxu0  ;;  %3110 = vmatprep.mubr.bf16.mxu1 %v14009_v29  ;;  %v14014_v29 = vld [vmem:[#allocation105_spill] sm:$0xff] }
 0x339   :  { %14007 = vst [vmem:[#allocation7_spill] sm:$0xff] %v12255_v39  ;;  %v5432_v61 = vpop.f32.mrb[241].mxu0  ;;  %v14013_v39 = vld [vmem:[#allocation257_spill] sm:$0xff] }
 0x33a   :  { %v12261_v47 = vpop.f32.mrb[242].mxu0  ;;  %v2359_v38 = vpop.f32.mrb[232].mxu1 }
 0x33b   :  { %v5435_v41 = vpop.f32.mrb[243].mxu0  ;;  %v2360_v50 = vadd.f32 %v2359_v38, %v11845_v30  ;;  %v2361_v53 = vpop.f32.mrb[233].mxu1 }
 0x33c   :  { %v2362_v14 = vpop.f32.mrb[234].mxu1  ;;  %v14017_v41 = vld [vmem:[#allocation20_spill] sm:$0xff] }
 0x33d   :  { %5645 = vmatmul.mubr.bf16.gmra.mrb[224].mxu0 %v14010_v60  ;;  %v12266_v15 = vadd.f32 %v14011_v13, %v2360_v50  ;;  %v2363_v27 = vadd.f32 %v2362_v14, %v11859_v59  ;;  %v2364_v21 = vpop.f32.mrb[235].mxu1  ;;  %v14018_v13 = vld [vmem:[#allocation260_spill] sm:$0xff]  ;;  %v14019_v50 = vld [vmem:[#allocation101_spill] sm:$0xff] }
 0x33e   :  { %7406 = vmatprep.mubr.msk.bf16.mxu0 %vm1146_vm3, %v14013_v39 }
 0x33f   :  { %14012 = vst [vmem:[#allocation8_spill] sm:$0xff] %v12266_v15  ;;  %v12272_v61 = vadd.f32 %v14014_v29, %v2363_v27  ;;  %3111 = vmatmul.mubr.bf16.gmra.mrb[84].mxu1 %v14016_v0  ;;  %v14021_v15 = vld [vmem:[#allocation261_spill] sm:$0xff]  ;;  %v14022_v27 = vld [vmem:[#allocation266_spill] sm:$0xff] }
 0x340   :  { %3118 = vmatprep.mubr.bf16.mxu1 %v14017_v41  ;;  %v5276_v0 = vrot.slane %v14022_v27, 1  ;;  %v14023_v29 = vld [vmem:[#allocation269_spill] sm:$0xff] }
 0x341   :  { %14015 = vst [vmem:[#allocation240_spill] sm:$0xff] %v12272_v61  ;;  %v5277_v41 = vrot.slane %v14023_v29, 1  ;;  %v14024_v61 = vld [vmem:[#allocation103_spill] sm:$0xff] }
 0x342   :  { %v2367_v30 = vpop.f32.mrb[236].mxu1 }
 0x343   :  { %v2368_v38 = vadd.f32 %v2367_v30, %v11837_v1  ;;  %v2369_v53 = vpop.f32.mrb[237].mxu1  ;;  %v14026_v1 = vld [vmem:[#allocation23_spill] sm:$0xff] }
 0x344   :  { %v2370_v60 = vpop.f32.mrb[238].mxu1  ;;  %v14027_v53 = vld [vmem:[#allocation25_spill] sm:$0xff] }
 0x345   :  { %5653 = vmatmul.mubr.bf16.gmra.mrb[40].mxu0 %v14018_v13  ;;  %v12279_v59 = vadd.f32 %v14019_v50, %v2368_v38  ;;  %v2371_v14 = vadd.f32 %v2370_v60, %v11856_v23  ;;  %v2372_v21 = vpop.f32.mrb[239].mxu1 }
 0x346   :  { %7407 = vmatprep.mubr.msk.bf16.mxu0 %vm1146_vm3, %v14021_v15  ;;  %v12296_v21 = vsel %vm888_vm0, %v5276_v0, %v5277_v41  ;;  %v14034_v0 = vld [vmem:[#allocation26_spill] sm:$0xff] }
 0x347   :  { %14020 = vst [vmem:[#allocation82_spill] sm:$0xff] %v12279_v59  ;;  %v12287_v39 = vadd.f32 %v14024_v61, %v2371_v14  ;;  %3119 = vmatmul.mubr.bf16.gmra.mrb[88].mxu1 %v14026_v1  ;;  %14028 = vst [vmem:[#allocation85_spill] sm:$0xff] %v12296_v21  ;;  %v14029_v61 = vld [vmem:[#allocation264_spill] sm:$0xff]  ;;  %v8619_v41 = vld [vmem:[%s13262_s1 + $0x198] sm:$0xff]  }
 0x348   :  { %v12290_v30 = vpop.f32.mrb[244].mxu0  ;;  %3126 = vmatprep.mubr.bf16.mxu1 %v14027_v53  ;;  %v14030_v14 = vld [vmem:[#allocation112_spill] sm:$0xff] }
 0x349   :  { %14025 = vst [vmem:[#allocation242_spill] sm:$0xff] %v12287_v39  ;;  %v5448_v38 = vpop.f32.mrb[245].mxu0 }
 0x34a   :  { %v12293_v50 = vpop.f32.mrb[246].mxu0  ;;  %v2375_v23 = vpop.f32.mrb[240].mxu1 }
 0x34b   :  { %v5451_v60 = vpop.f32.mrb[247].mxu0  ;;  %v2376_v27 = vadd.f32 %v2375_v23, %v11871_v6  ;;  %v2377_v29 = vpop.f32.mrb[241].mxu1  ;;  %v14035_v6 = vld [vmem:[#allocation28_spill] sm:$0xff] }
 0x34c   :  { %v2378_v59 = vpop.f32.mrb[242].mxu1  ;;  %v5272_v38 = vpop.permute.xlu0 %5271  ;;  %v14032_v60 = vld [vmem:[#allocation115_spill] sm:$0xff] }
 0x34d   :  { %5661 = vmatmul.mubr.bf16.gmra.mrb[232].mxu0 %v14029_v61  ;;  %v12301_v1 = vadd.f32 %v14030_v14, %v2376_v27  ;;  %v2379_v39 = vadd.f32 %v2378_v59, %v11879_v4  ;;  %v2380_v53 = vpop.f32.mrb[243].mxu1  ;;  %v12315_v23 = vsel %vm1146_vm3, %v8619_v41, %v5272_v38  ;;  %v14042_v38 = vld [vmem:[#allocation29_spill] sm:$0xff] }
 0x34e   :  { %7408 = vmatprep.mubr.msk.bf16.mxu0 %vm1146_vm3, %v12296_v21  ;;  %14036 = vst [vmem:[#allocation246_spill] sm:$0xff] %v12315_v23  ;;  %v14047_v21 = vld [vmem:[#allocation86_spill] sm:$0xff] }
 0x34f   :  { %14031 = vst [vmem:[#allocation9_spill] sm:$0xff] %v12301_v1  ;;  %v12307_v15 = vadd.f32 %v14032_v60, %v2379_v39  ;;  %3127 = vmatmul.mubr.bf16.gmra.mrb[92].mxu1 %v14034_v0  ;;  %v14037_v39 = vld [vmem:[#allocation111_spill] sm:$0xff]  ;;  %v14039_v0 = vld [vmem:[#allocation78_spill] sm:$0xff] }
 0x350   :  { %3134 = vmatprep.mubr.bf16.mxu1 %v14035_v6  ;;  %v14040_v6 = vld [vmem:[#allocation113_spill] sm:$0xff] }
 0x351   :  { %14033 = vst [vmem:[#allocation10_spill] sm:$0xff] %v12307_v15 }
 0x352   :  { %v2383_v4 = vpop.f32.mrb[244].mxu1 }
 0x353   :  { %v2384_v59 = vadd.f32 %v2383_v4, %v11867_v18  ;;  %v2385_v27 = vpop.f32.mrb[245].mxu1  ;;  %v14043_v18 = vld [vmem:[#allocation30_spill] sm:$0xff] }
 0x354   :  { %v2386_v29 = vpop.f32.mrb[246].mxu1 }
 0x355   :  { %5669 = vmatmul.mubr.bf16.gmra.mrb[44].mxu0 %v12315_v23  ;;  %v12320_v14 = vadd.f32 %v14037_v39, %v2384_v59  ;;  %v2387_v53 = vadd.f32 %v2386_v29, %v11876_v40  ;;  %v2388_v60 = vpop.f32.mrb[247].mxu1  ;;  %v12335_v59 = vld [vmem:[%s13262_s1 + $0x1a4] sm:$0xff]   ;;  %v12342_v39 = vld [vmem:[%s13262_s1 + $0x1ac] ss:$0 sps:$4 sm:$0x11]  }
 0x356   :  { %7449 = vmatprep.mubr.msk.bf16.mxu0 %vm1146_vm3, %v14039_v0  ;;  %14044 = vst [vmem:[#allocation83_spill] sm:$0xff] %v12335_v59 }
 0x357   :  { %14038 = vst [vmem:[#allocation81_spill] sm:$0xff] %v12320_v14  ;;  %v12326_v15 = vadd.f32 %v14040_v6, %v2387_v53  ;;  %3135 = vmatmul.mubr.bf16.gmra.mrb[96].mxu1 %v14042_v38  ;;  %v5772_v53 = vshll.u32 %v12335_v59, 16  ;;  %v14045_v38 = vld [vmem:[#allocation84_spill] sm:$0xff]  ;;  %v14046_v14 = vld [vmem:[#allocation122_spill] sm:$0xff] }
 0x358   :  { %v12329_v41 = vpop.f32.mrb[248].mxu0  ;;  %3142 = vmatprep.mubr.bf16.mxu1 %v14043_v18  ;;  %v5770_v18 = vshrl.u32 %v12335_v59, 16  ;;  %v14050_v59 = vld [vmem:[#allocation32_spill] sm:$0xff] }
 0x359   :  { %14041 = vst [vmem:[#allocation248_spill] sm:$0xff] %v12326_v15  ;;  %v5464_v4 = vpop.f32.mrb[249].mxu0  ;;  %v5777_v15 = vshll.u32 %v12342_v39, 16 }
 0x35a   :  { %v12337_v40 = vpop.f32.mrb[250].mxu0  ;;  %v2391_v27 = vpop.f32.mrb[248].mxu1  ;;  %v5774_v4 = vrot.slane %v5772_v53, 1 }
 0x35b   :  { %v5467_v29 = vpop.f32.mrb[251].mxu0  ;;  %v2392_v60 = vadd.f32 %v2391_v27, %v11892_v43  ;;  %v2393_v0 = vpop.f32.mrb[249].mxu1  ;;  %v5779_v43 = vrot.slane %v5777_v15, 1  ;;  %v14048_v27 = vld [vmem:[#allocation125_spill] sm:$0xff] }
 0x35c   :  { %v2394_v6 = vpop.f32.mrb[250].mxu1  ;;  %v5775_v61 = vor.u32 %v5774_v4, %v5770_v18  ;;  %v14053_v4 = vld [vmem:[#allocation96_spill] sm:$0xff] }
 0x35d   :  { %5933 = vmatmul.mubr.bf16.vlgmr.msra.gmra.mrb[112].mxu0 %v14045_v38  ;;  %v12350_v29 = vadd.f32 %v14046_v14, %v2392_v60  ;;  %v2395_v1 = vadd.f32 %v2394_v6, %v11900_v52  ;;  %v2396_v23 = vpop.f32.mrb[251].mxu1  ;;  %v14049_v38 = vld [vmem:[#allocation31_spill] sm:$0xff]  ;;  %v14051_v6 = vld [vmem:[#allocation94_spill] sm:$0xff] }
 0x35e   :  { %7450 = vmatprep.mubr.msk.bf16.mxu0 %vm1146_vm3, %v14047_v21  ;;  %v5780_v53 = vsel %vm439_vm1, %v5775_v61, %v5779_v43  ;;  %v14052_v21 = vld [vmem:[#allocation121_spill] sm:$0xff] }
 0x35f   :  { %v12356_v0 = vadd.f32 %v14048_v27, %v2395_v1  ;;  %3143 = vmatmul.mubr.bf16.gmra.mrb[100].mxu1 %v14049_v38  ;;  %5783 = vrot.lane.b32.xlu1 %v5780_v53, %s8648_s9  ;;  %v14055_v43 = vld [vmem:[#allocation33_spill] sm:$0xff] }
 0x360   :  { %3150 = vmatprep.mubr.bf16.mxu1 %v14050_v59  ;;  %v14054_v59 = vld [vmem:[#allocation123_spill] sm:$0xff] }
 0x362   :  { %v2399_v14 = vpop.f32.mrb[252].mxu1 }
 0x363   :  { %v2400_v52 = vadd.f32 %v2399_v14, %v11888_v36  ;;  %v2401_v23 = vpop.f32.mrb[253].mxu1  ;;  %v14056_v36 = vld [vmem:[#allocation34_spill] sm:$0xff] }
 0x364   :  { %v2402_v60 = vpop.f32.mrb[254].mxu1 }
 0x365   :  { %5941 = vmatmul.mubr.bf16.gmra.mrb[48].mxu0 %v14051_v6  ;;  %v12365_v15 = vadd.f32 %v14052_v21, %v2400_v52  ;;  %v2403_v1 = vadd.f32 %v2402_v60, %v11897_v34  ;;  %v2404_v18 = vpop.f32.mrb[255].mxu1  ;;  %v14057_v6 = vld [vmem:[#allocation104_spill] sm:$0xff]  ;;  %v14058_v21 = vld [vmem:[#allocation129_spill] sm:$0xff] }
 0x366   :  { %7451 = vmatprep.mubr.msk.bf16.mxu0 %vm1146_vm3, %v14053_v4 }
 0x367   :  { %v12371_v61 = vadd.f32 %v14054_v59, %v2403_v1  ;;  %3151 = vmatmul.mubr.bf16.gmra.mrb[104].mxu1 %v14055_v43  ;;  %v14060_v59 = vld [vmem:[#allocation106_spill] sm:$0xff]  ;;  %v14061_v43 = vld [vmem:[#allocation132_spill] sm:$0xff] }
 0x368   :  { %v12374_v27 = vpop.f32.mrb[252].mxu0  ;;  %3158 = vmatprep.mubr.bf16.mxu1 %v14056_v36 }
 0x369   :  { %v5480_v38 = vpop.f32.mrb[253].mxu0 }
 0x36a   :  { %v12377_v53 = vpop.f32.mrb[254].mxu0  ;;  %v2407_v14 = vpop.f32.mrb[0].mxu1  ;;  %v14063_v38 = vld [vmem:[#allocation35_spill] sm:$0xff] }
 0x36b   :  { %v5483_v52 = vpop.f32.mrb[255].mxu0  ;;  %v2408_v34 = vadd.f32 %v2407_v14, %v11913_v26  ;;  %v2409_v23 = vpop.f32.mrb[1].mxu1 }
 0x36c   :  { %v2410_v60 = vpop.f32.mrb[2].mxu1  ;;  %v14064_v52 = vld [vmem:[#allocation36_spill] sm:$0xff] }
 0x36d   :  { %5949 = vmatmul.mubr.bf16.gmra.mrb[120].mxu0 %v14057_v6  ;;  %v12382_v1 = vadd.f32 %v14058_v21, %v2408_v34  ;;  %v2411_v18 = vadd.f32 %v2410_v60, %v11921_v57  ;;  %v2412_v4 = vpop.f32.mrb[3].mxu1  ;;  %v14065_v34 = vld [vmem:[#allocation114_spill] sm:$0xff]  ;;  %v14066_v21 = vld [vmem:[#allocation128_spill] sm:$0xff] }
 0x36e   :  { %7452 = vmatprep.mubr.msk.bf16.mxu0 %vm1146_vm3, %v14060_v59  ;;  %v14068_v59 = vld [vmem:[#allocation116_spill] sm:$0xff] }
 0x36f   :  { %14059 = vst [vmem:[#allocation11_spill] sm:$0xff] %v12382_v1  ;;  %v12388_v36 = vadd.f32 %v14061_v43, %v2411_v18  ;;  %3159 = vmatmul.mubr.bf16.gmra.mrb[108].mxu1 %v14063_v38  ;;  %v14069_v18 = vld [vmem:[#allocation130_spill] sm:$0xff]  ;;  %v14071_v38 = vld [vmem:[#allocation37_spill] sm:$0xff]  ;;  %v2864_v1 = vpop.permute.xlu1 %2863 }
 0x370   :  { %3166 = vmatprep.mubr.bf16.mxu1 %v14064_v52 }
 0x371   :  { %14062 = vst [vmem:[#allocation12_spill] sm:$0xff] %v12388_v36  ;;  %v14079_v36 = vld [vmem:[#allocation39_spill] sm:$0xff] }
 0x372   :  { %v2415_v26 = vpop.f32.mrb[4].mxu1 }
 0x373   :  { %v2416_v14 = vadd.f32 %v2415_v26, %v11909_v56  ;;  %v2417_v23 = vpop.f32.mrb[5].mxu1  ;;  %v14072_v56 = vld [vmem:[#allocation38_spill] sm:$0xff] }
 0x374   :  { %v2418_v6 = vpop.f32.mrb[6].mxu1 }
 0x375   :  { %5957 = vmatmul.mubr.bf16.gmra.mrb[52].mxu0 %v14065_v34  ;;  %v12395_v57 = vadd.f32 %v14066_v21, %v2416_v14  ;;  %v2419_v60 = vadd.f32 %v2418_v6, %v11918_v2  ;;  %v2420_v4 = vpop.f32.mrb[7].mxu1  ;;  %v14073_v21 = vld [vmem:[#allocation277_spill] sm:$0xff] }
 0x376   :  { %7453 = vmatprep.mubr.msk.bf16.mxu0 %vm1146_vm3, %v14068_v59  ;;  %v14075_v59 = vld [vmem:[#allocation135_spill] sm:$0xff] }
 0x377   :  { %14067 = vst [vmem:[#allocation249_spill] sm:$0xff] %v12395_v57  ;;  %v12401_v43 = vadd.f32 %v14069_v18, %v2419_v60  ;;  %3167 = vmatmul.mubr.bf16.gmra.mrb[112].mxu1 %v14071_v38  ;;  %v14074_v57 = vld [vmem:[#allocation124_spill] sm:$0xff] }
 0x378   :  { %v12404_v52 = vpop.f32.mrb[0].mxu0  ;;  %3174 = vmatprep.mubr.bf16.mxu1 %v14072_v56  ;;  %v14077_v56 = vld [vmem:[#allocation138_spill] sm:$0xff] }
 0x379   :  { %14070 = vst [vmem:[#allocation92_spill] sm:$0xff] %v12401_v43  ;;  %v5496_v26 = vpop.f32.mrb[1].mxu0  ;;  %v14076_v43 = vld [vmem:[#allocation126_spill] sm:$0xff] }
 0x37a   :  { %v12407_v23 = vpop.f32.mrb[2].mxu0  ;;  %v2423_v14 = vpop.f32.mrb[8].mxu1 }
 0x37b   :  { %v5499_v34 = vpop.f32.mrb[3].mxu0  ;;  %v2424_v2 = vadd.f32 %v2423_v14, %v14073_v21  ;;  %v2425_v6 = vpop.f32.mrb[9].mxu1  ;;  %v14081_v21 = vld [vmem:[#allocation198_spill] sm:$0xff] }
 0x37c   :  { %v2426_v4 = vpop.f32.mrb[10].mxu1  ;;  %v14080_v34 = vld [vmem:[#allocation40_spill] sm:$0xff] }
 0x37d   :  { %5965 = vmatmul.mubr.bf16.gmra.mrb[128].mxu0 %v14074_v57  ;;  %v12412_v60 = vadd.f32 %v14075_v59, %v2424_v2  ;;  %v2427_v18 = vadd.f32 %v2426_v4, %v11941_v28  ;;  %v2428_v38 = vpop.f32.mrb[11].mxu1  ;;  %v14082_v59 = vld [vmem:[#allocation131_spill] sm:$0xff]  ;;  %v14083_v28 = vld [vmem:[#allocation134_spill] sm:$0xff] }
 0x37e   :  { %7454 = vmatprep.mubr.msk.bf16.mxu0 %vm1146_vm3, %v14076_v43 }
 0x37f   :  { %v12418_v26 = vadd.f32 %v14077_v56, %v2427_v18  ;;  %3175 = vmatmul.mubr.bf16.gmra.mrb[116].mxu1 %v14079_v36  ;;  %v14085_v18 = vld [vmem:[#allocation133_spill] sm:$0xff]  ;;  %v14086_v36 = vld [vmem:[#allocation136_spill] sm:$0xff] }
 0x380   :  { %3182 = vmatprep.mubr.bf16.mxu1 %v14080_v34  ;;  %v14088_v34 = vld [vmem:[#allocation41_spill] sm:$0xff] }
 0x381   :  { %14078 = vst [vmem:[#allocation250_spill] sm:$0xff] %v12418_v26  ;;  %v14096_v26 = vld [vmem:[#allocation143_spill] sm:$0xff] }
 0x382   :  { %v2431_v14 = vpop.f32.mrb[12].mxu1 }
 0x383   :  { %v2432_v6 = vadd.f32 %v2431_v14, %v14081_v21  ;;  %v2433_v57 = vpop.f32.mrb[13].mxu1  ;;  %v14089_v14 = vld [vmem:[#allocation44_spill] sm:$0xff] }
 0x384   :  { %v2434_v2 = vpop.f32.mrb[14].mxu1  ;;  %v2884_v21 = vsel %vm1146_vm3, %v2864_v1, %v14089_v14  ;;  %v14091_v14 = vld [vmem:[#allocation141_spill] sm:$0xff] }
 0x385   :  { %5973 = vmatmul.mubr.bf16.gmra.mrb[56].mxu0 %v14082_v59  ;;  %v12425_v4 = vadd.f32 %v14083_v28, %v2432_v6  ;;  %v2435_v43 = vadd.f32 %v2434_v2, %v11938_v20  ;;  %v2436_v38 = vpop.f32.mrb[15].mxu1 }
 0x386   :  { %7455 = vmatprep.mubr.msk.bf16.mxu0 %vm1146_vm3, %v14085_v18 }
 0x387   :  { %14084 = vst [vmem:[#allocation95_spill] sm:$0xff] %v12425_v4  ;;  %v12431_v56 = vadd.f32 %v14086_v36, %v2435_v43  ;;  %3183 = vmatmul.mubr.bf16.gmra.mrb[120].mxu1 %v14088_v34  ;;  %v8620_v43 = vld [vmem:[%s13261_s0 + $0xcc] sm:$0xff]   ;;  %v14092_v4 = vld [vmem:[#allocation139_spill] sm:$0xff] }
 0x388   :  { %v12436_v57 = vpop.f32.mrb[4].mxu0  ;;  %3190 = vmatprep.mubr.bf16.mxu1 %v2884_v21  ;;  %v2878_v18 = vsel %vm1049_vm4, %v8620_v43, %v2864_v1  ;;  %v14090_v34 = vld [vmem:[#allocation137_spill] sm:$0xff] }
 0x389   :  { %14087 = vst [vmem:[#allocation13_spill] sm:$0xff] %v12431_v56  ;;  %v5512_v59 = vpop.f32.mrb[5].mxu0 }
 0x38a   :  { %v12438_v6 = vpop.f32.mrb[6].mxu0  ;;  %v2439_v28 = vpop.f32.mrb[16].mxu1 }
 0x38b   :  { %v5515_v20 = vpop.f32.mrb[7].mxu0  ;;  %v2440_v2 = vadd.f32 %v2439_v28, %v11955_v62  ;;  %v2441_v38 = vpop.f32.mrb[17].mxu1  ;;  %v14093_v62 = vld [vmem:[#allocation144_spill] sm:$0xff] }
 0x38c   :  { %v2442_v36 = vpop.f32.mrb[18].mxu1  ;;  %v14095_v20 = vld [vmem:[#allocation45_spill] sm:$0xff] }
 0x38d   :  { %5981 = vmatmul.mubr.bf16.gmra.mrb[136].mxu0 %v14090_v34  ;;  %v12447_v56 = vadd.f32 %v14091_v14, %v2440_v2  ;;  %v2443_v21 = vadd.f32 %v2442_v36, %v11963_v19  ;;  %v2444_v59 = vpop.f32.mrb[19].mxu1  ;;  %v14097_v2 = vld [vmem:[#allocation140_spill] sm:$0xff] }
 0x38e   :  { %7456 = vmatprep.mubr.msk.bf16.mxu0 %vm1146_vm3, %v14092_v4  ;;  %v14099_v4 = vld [vmem:[#allocation145_spill] sm:$0xff]  ;;  %v14102_v59 = vld [vmem:[#allocation46_spill] sm:$0xff] }
 0x38f   :  { %v12453_v28 = vadd.f32 %v14093_v62, %v2443_v21  ;;  %3191 = vmatmul.mubr.bf16.gmra.mrb[124].mxu1 %v2878_v18  ;;  %v14100_v21 = vld [vmem:[#allocation142_spill] sm:$0xff] }
 0x390   :  { %3198 = vmatprep.mubr.bf16.mxu1 %v14095_v20 }
 0x391   :  { %14094 = vst [vmem:[#allocation14_spill] sm:$0xff] %v12453_v28 }
 0x392   :  { %v2447_v38 = vpop.f32.mrb[20].mxu1 }
 0x393   :  { %v2448_v1 = vadd.f32 %v2447_v38, %v11951_v42  ;;  %v2449_v43 = vpop.f32.mrb[21].mxu1  ;;  %v14103_v42 = vld [vmem:[#allocation47_spill] sm:$0xff] }
 0x394   :  { %v2450_v34 = vpop.f32.mrb[22].mxu1 }
 0x395   :  { %5989 = vmatmul.mubr.bf16.gmra.mrb[60].mxu0 %v14096_v26  ;;  %v12459_v14 = vadd.f32 %v14097_v2, %v2448_v1  ;;  %v2451_v19 = vadd.f32 %v2450_v34, %v11960_v58  ;;  %v2452_v36 = vpop.f32.mrb[23].mxu1  ;;  %v14104_v2 = vld [vmem:[#allocation149_spill] sm:$0xff] }
 0x396   :  { %7457 = vmatprep.mubr.msk.bf16.mxu0 %vm1146_vm3, %v14099_v4  ;;  %v14105_v36 = vld [vmem:[#allocation147_spill] sm:$0xff] }
 0x397   :  { %14098 = vst [vmem:[#allocation253_spill] sm:$0xff] %v12459_v14  ;;  %v12465_v18 = vadd.f32 %v14100_v21, %v2451_v19  ;;  %3199 = vmatmul.mubr.bf16.gmra.mrb[128].mxu1 %v14102_v59  ;;  %v14107_v59 = vld [vmem:[#allocation151_spill] sm:$0xff]  ;;  %v14159_v14 = vld [vmem:[#allocation282_spill] sm:$0xff] }
 0x398   :  { %v12468_v62 = vpop.f32.mrb[8].mxu0  ;;  %3206 = vmatprep.mubr.bf16.mxu1 %v14103_v42  ;;  %v14108_v42 = vld [vmem:[#allocation150_spill] sm:$0xff] }
 0x399   :  { %14101 = vst [vmem:[#allocation91_spill] sm:$0xff] %v12465_v18  ;;  %v5528_v20 = vpop.f32.mrb[9].mxu0  ;;  %v14110_v18 = vld [vmem:[#allocation48_spill] sm:$0xff] }
 0x39a   :  { %v12471_v26 = vpop.f32.mrb[10].mxu0  ;;  %v2455_v38 = vpop.f32.mrb[24].mxu1 }
 0x39b   :  { %v5531_v1 = vpop.f32.mrb[11].mxu0  ;;  %v2456_v58 = vadd.f32 %v2455_v38, %v11972_v16  ;;  %v2457_v43 = vpop.f32.mrb[25].mxu1 }
 0x39c   :  { %v2458_v34 = vpop.f32.mrb[26].mxu1  ;;  %v14111_v1 = vld [vmem:[#allocation49_spill] sm:$0xff] }
 0x39d   :  { %5997 = vmatmul.mubr.bf16.gmra.mrb[144].mxu0 %v14104_v2  ;;  %v12476_v19 = vadd.f32 %v14105_v36, %v2456_v58  ;;  %v2459_v4 = vadd.f32 %v2458_v34, %v11986_v44  ;;  %v2460_v21 = vpop.f32.mrb[27].mxu1  ;;  %v14112_v58 = vld [vmem:[#allocation155_spill] sm:$0xff]  ;;  %v14113_v36 = vld [vmem:[#allocation146_spill] sm:$0xff] }
 0x39e   :  { %7458 = vmatprep.mubr.msk.bf16.mxu0 %vm1146_vm3, %v14107_v59  ;;  %v14115_v59 = vld [vmem:[#allocation157_spill] sm:$0xff] }
 0x39f   :  { %14106 = vst [vmem:[#allocation93_spill] sm:$0xff] %v12476_v19  ;;  %v12482_v20 = vadd.f32 %v14108_v42, %v2459_v4  ;;  %3207 = vmatmul.mubr.bf16.gmra.mrb[132].mxu1 %v14110_v18  ;;  %v14116_v4 = vld [vmem:[#allocation148_spill] sm:$0xff]  ;;  %v14118_v42 = vld [vmem:[#allocation50_spill] sm:$0xff] }
 0x3a0   :  { %3214 = vmatprep.mubr.bf16.mxu1 %v14111_v1 }
 0x3a1   :  { %14109 = vst [vmem:[#allocation16_spill] sm:$0xff] %v12482_v20  ;;  %v14145_v20 = vld [vmem:[#allocation56_spill] sm:$0xff] }
 0x3a2   :  { %v2463_v16 = vpop.f32.mrb[28].mxu1 }
 0x3a3   :  { %v2464_v38 = vadd.f32 %v2463_v16, %v11968_v51  ;;  %v2465_v43 = vpop.f32.mrb[29].mxu1  ;;  %v14119_v51 = vld [vmem:[#allocation51_spill] sm:$0xff] }
 0x3a4   :  { %v2466_v2 = vpop.f32.mrb[30].mxu1 }
 0x3a5   :  { %6005 = vmatmul.mubr.bf16.gmra.mrb[64].mxu0 %v14112_v58  ;;  %v12489_v44 = vadd.f32 %v14113_v36, %v2464_v38  ;;  %v2467_v34 = vadd.f32 %v2466_v2, %v11977_v63  ;;  %v2468_v21 = vpop.f32.mrb[31].mxu1 }
 0x3a6   :  { %7459 = vmatprep.mubr.msk.bf16.mxu0 %vm1146_vm3, %v14115_v59  ;;  %v14120_v21 = vld [vmem:[#allocation161_spill] sm:$0xff] }
 0x3a7   :  { %14114 = vst [vmem:[#allocation17_spill] sm:$0xff] %v12489_v44  ;;  %v12495_v18 = vadd.f32 %v14116_v4, %v2467_v34  ;;  %3215 = vmatmul.mubr.bf16.gmra.mrb[136].mxu1 %v14118_v42  ;;  %v14121_v59 = vld [vmem:[#allocation153_spill] sm:$0xff]  ;;  %v14126_v44 = vld [vmem:[#allocation52_spill] sm:$0xff] }
 0x3a8   :  { %v12498_v1 = vpop.f32.mrb[12].mxu0  ;;  %3222 = vmatprep.mubr.bf16.mxu1 %v14119_v51  ;;  %v14124_v51 = vld [vmem:[#allocation156_spill] sm:$0xff] }
 0x3a9   :  { %14117 = vst [vmem:[#allocation102_spill] sm:$0xff] %v12495_v18  ;;  %v5544_v16 = vpop.f32.mrb[13].mxu0  ;;  %v14123_v18 = vld [vmem:[#allocation163_spill] sm:$0xff] }
 0x3aa   :  { %v12501_v43 = vpop.f32.mrb[14].mxu0  ;;  %v2471_v38 = vpop.f32.mrb[32].mxu1 }
 0x3ab   :  { %v5547_v58 = vpop.f32.mrb[15].mxu0  ;;  %v2472_v63 = vadd.f32 %v2471_v38, %v12005_v22  ;;  %v2473_v2 = vpop.f32.mrb[33].mxu1 }
 0x3ac   :  { %v2474_v36 = vpop.f32.mrb[34].mxu1  ;;  %v14127_v58 = vld [vmem:[#allocation53_spill] sm:$0xff] }
 0x3ad   :  { %6013 = vmatmul.mubr.bf16.gmra.mrb[152].mxu0 %v14120_v21  ;;  %v12506_v34 = vadd.f32 %v14121_v59, %v2472_v63  ;;  %v2475_v4 = vadd.f32 %v2474_v36, %v12013_v8  ;;  %v2476_v42 = vpop.f32.mrb[35].mxu1  ;;  %v14128_v63 = vld [vmem:[#allocation167_spill] sm:$0xff]  ;;  %v14129_v59 = vld [vmem:[#allocation152_spill] sm:$0xff]  ;;  %v14131_v36 = vld [vmem:[#allocation281_spill] sm:$0xff] }
 0x3ae   :  { %7460 = vmatprep.mubr.msk.bf16.mxu0 %vm1146_vm3, %v14123_v18 }
 0x3af   :  { %14122 = vst [vmem:[#allocation105_spill] sm:$0xff] %v12506_v34  ;;  %v12512_v16 = vadd.f32 %v14124_v51, %v2475_v4  ;;  %3223 = vmatmul.mubr.bf16.gmra.mrb[140].mxu1 %v14126_v44  ;;  %v14132_v34 = vld [vmem:[#allocation169_spill] sm:$0xff]  ;;  %v14133_v4 = vld [vmem:[#allocation154_spill] sm:$0xff] }
 0x3b0   :  { %3230 = vmatprep.mubr.bf16.mxu1 %v14127_v58  ;;  %v14135_v51 = vld [vmem:[#allocation54_spill] sm:$0xff] }
 0x3b1   :  { %14125 = vst [vmem:[#allocation19_spill] sm:$0xff] %v12512_v16  ;;  %v14138_v16 = vld [vmem:[#allocation173_spill] sm:$0xff] }
 0x3b2   :  { %v2479_v22 = vpop.f32.mrb[36].mxu1 }
 0x3b3   :  { %v2480_v38 = vadd.f32 %v2479_v22, %v12001_v5  ;;  %v2481_v2 = vpop.f32.mrb[37].mxu1  ;;  %v14136_v5 = vld [vmem:[#allocation55_spill] sm:$0xff] }
 0x3b4   :  { %v2482_v21 = vpop.f32.mrb[38].mxu1 }
 0x3b5   :  { %6021 = vmatmul.mubr.bf16.gmra.mrb[68].mxu0 %v14128_v63  ;;  %v12519_v8 = vadd.f32 %v14129_v59, %v2480_v38  ;;  %v2483_v42 = vadd.f32 %v2482_v21, %v14131_v36  ;;  %v2484_v18 = vpop.f32.mrb[39].mxu1  ;;  %v14137_v59 = vld [vmem:[#allocation284_spill] sm:$0xff] }
 0x3b6   :  { %7461 = vmatprep.mubr.msk.bf16.mxu0 %vm1146_vm3, %v14132_v34  ;;  %v14139_v34 = vld [vmem:[#allocation159_spill] sm:$0xff] }
 0x3b7   :  { %14130 = vst [vmem:[#allocation20_spill] sm:$0xff] %v12519_v8  ;;  %v12525_v44 = vadd.f32 %v14133_v4, %v2483_v42  ;;  %3231 = vmatmul.mubr.bf16.gmra.mrb[144].mxu1 %v14135_v51  ;;  %v14141_v4 = vld [vmem:[#allocation255_spill] sm:$0xff] }
 0x3b8   :  { %v12528_v58 = vpop.f32.mrb[16].mxu0  ;;  %3238 = vmatprep.mubr.bf16.mxu1 %v14136_v5  ;;  %v14142_v8 = vld [vmem:[#allocation175_spill] sm:$0xff]  ;;  %v14143_v5 = vld [vmem:[#allocation162_spill] sm:$0xff] }
 0x3b9   :  { %14134 = vst [vmem:[#allocation260_spill] sm:$0xff] %v12525_v44  ;;  %v5560_v22 = vpop.f32.mrb[17].mxu0 }
 0x3ba   :  { %v12531_v2 = vpop.f32.mrb[18].mxu0  ;;  %v2487_v38 = vpop.f32.mrb[40].mxu1 }
 0x3bb   :  { %v5563_v63 = vpop.f32.mrb[19].mxu0  ;;  %v2488_v21 = vadd.f32 %v2487_v38, %v14137_v59  ;;  %v2489_v36 = vpop.f32.mrb[41].mxu1  ;;  %v14147_v59 = vld [vmem:[#allocation283_spill] sm:$0xff] }
 0x3bc   :  { %v2490_v18 = vpop.f32.mrb[42].mxu1  ;;  %v14146_v63 = vld [vmem:[#allocation57_spill] sm:$0xff] }
 0x3bd   :  { %6029 = vmatmul.mubr.bf16.gmra.mrb[160].mxu0 %v14138_v16  ;;  %v12536_v42 = vadd.f32 %v14139_v34, %v2488_v21  ;;  %v2491_v51 = vadd.f32 %v2490_v18, %v14141_v4  ;;  %v2492_v44 = vpop.f32.mrb[43].mxu1  ;;  %v14148_v21 = vld [vmem:[#allocation179_spill] sm:$0xff]  ;;  %v14149_v34 = vld [vmem:[#allocation158_spill] sm:$0xff] }
 0x3be   :  { %7462 = vmatprep.mubr.msk.bf16.mxu0 %vm1146_vm3, %v14142_v8  ;;  %v14151_v44 = vld [vmem:[#allocation185_spill] sm:$0xff] }
 0x3bf   :  { %14140 = vst [vmem:[#allocation101_spill] sm:$0xff] %v12536_v42  ;;  %v12542_v22 = vadd.f32 %v14143_v5, %v2491_v51  ;;  %3239 = vmatmul.mubr.bf16.gmra.mrb[148].mxu1 %v14145_v20  ;;  %v14152_v42 = vld [vmem:[#allocation280_spill] sm:$0xff]  ;;  %v5785_v20 = vrot.slane %v12042_v46, 1  ;;  %v14153_v51 = vld [vmem:[#allocation287_spill] sm:$0xff] }
 0x3c0   :  { %3246 = vmatprep.mubr.bf16.mxu1 %v14146_v63  ;;  %v5786_v5 = vrot.slane %v14153_v51, 1  ;;  %v14154_v63 = vld [vmem:[#allocation160_spill] sm:$0xff] }
 0x3c1   :  { %14144 = vst [vmem:[#allocation266_spill] sm:$0xff] %v12542_v22 }
 0x3c2   :  { %v2495_v38 = vpop.f32.mrb[44].mxu1 }
 0x3c3   :  { %v2496_v36 = vadd.f32 %v2495_v38, %v14147_v59  ;;  %v2497_v16 = vpop.f32.mrb[45].mxu1  ;;  %v14156_v38 = vld [vmem:[#allocation58_spill] sm:$0xff] }
 0x3c4   :  { %v2498_v19 = vpop.f32.mrb[46].mxu1  ;;  %v14157_v16 = vld [vmem:[#allocation59_spill] sm:$0xff] }
 0x3c5   :  { %6037 = vmatmul.mubr.bf16.gmra.mrb[72].mxu0 %v14148_v21  ;;  %v12549_v18 = vadd.f32 %v14149_v34, %v2496_v36  ;;  %v2499_v4 = vadd.f32 %v2498_v19, %v14151_v44  ;;  %v2500_v8 = vpop.f32.mrb[47].mxu1  ;;  %v14158_v44 = vld [vmem:[#allocation189_spill] sm:$0xff] }
 0x3c6   :  { %7463 = vmatprep.mubr.msk.bf16.mxu0 %vm1146_vm3, %v14152_v42  ;;  %v5787_v42 = vsel %vm888_vm0, %v5785_v20, %v5786_v5  ;;  %v14164_v20 = vld [vmem:[#allocation65_spill] sm:$0xff]  ;;  %v14165_v5 = vld [vmem:[#allocation288_spill] sm:$0xff] }
 0x3c7   :  { %14150 = vst [vmem:[#allocation269_spill] sm:$0xff] %v12549_v18  ;;  %v12557_v22 = vadd.f32 %v14154_v63, %v2499_v4  ;;  %3247 = vmatmul.mubr.bf16.gmra.mrb[152].mxu1 %v14156_v38  ;;  %v14160_v4 = vld [vmem:[#allocation165_spill] sm:$0xff] }
 0x3c8   :  { %v12560_v59 = vpop.f32.mrb[20].mxu0  ;;  %3254 = vmatprep.mubr.bf16.mxu1 %v14157_v16  ;;  %v5782_v16 = vpop.permute.xlu0 %5781 }
 0x3c9   :  { %14155 = vst [vmem:[#allocation103_spill] sm:$0xff] %v12557_v22  ;;  %v5576_v36 = vpop.f32.mrb[21].mxu0 }
 0x3ca   :  { %v12563_v21 = vpop.f32.mrb[22].mxu0  ;;  %v2503_v19 = vpop.f32.mrb[48].mxu1  ;;  %v14162_v36 = vld [vmem:[#allocation168_spill] sm:$0xff] }
 0x3cb   :  { %v5579_v34 = vpop.f32.mrb[23].mxu0  ;;  %v2504_v8 = vadd.f32 %v2503_v19, %v14158_v44  ;;  %v2505_v18 = vpop.f32.mrb[49].mxu1 }
 0x3cc   :  { %v2506_v51 = vpop.f32.mrb[50].mxu1  ;;  %v5792_v18 = vsel %vm1146_vm3, %v12042_v46, %v5782_v16  ;;  %v14174_v16 = vld [vmem:[#allocation72_spill] sm:$0xff] }
 0x3cd   :  { %6045 = vmatmul.mubr.bf16.gmra.mrb[168].mxu0 %v14159_v14  ;;  %v12569_v63 = vadd.f32 %v14160_v4, %v2504_v8  ;;  %v2507_v38 = vadd.f32 %v2506_v51, %v12067_v32  ;;  %v2508_v22 = vpop.f32.mrb[51].mxu1  ;;  %v14166_v32 = vld [vmem:[#allocation164_spill] sm:$0xff]  ;;  %v14169_v4 = vld [vmem:[#allocation191_spill] sm:$0xff] }
 0x3ce   :  { %7464 = vmatprep.mubr.msk.bf16.mxu0 %vm1146_vm3, %v5787_v42  ;;  %v14168_v42 = vld [vmem:[#allocation262_spill] sm:$0xff] }
 0x3cf   :  { %14161 = vst [vmem:[#allocation23_spill] sm:$0xff] %v12569_v63  ;;  %v12574_v28 = vadd.f32 %v14162_v36, %v2507_v38  ;;  %3255 = vmatmul.mubr.bf16.gmra.mrb[156].mxu1 %v13904_v17  ;;  %v14170_v17 = vld [vmem:[#allocation166_spill] sm:$0xff]  ;;  %v14172_v36 = vld [vmem:[#allocation71_spill] sm:$0xff] }
 0x3d0   :  { %3262 = vmatprep.mubr.bf16.mxu1 %v14164_v20 }
 0x3d1   :  { %14163 = vst [vmem:[#allocation25_spill] sm:$0xff] %v12574_v28  ;;  %v14181_v28 = vld [vmem:[#allocation197_spill] sm:$0xff] }
 0x3d2   :  { %v2511_v14 = vpop.f32.mrb[52].mxu1 }
 0x3d3   :  { %v2512_v19 = vadd.f32 %v2511_v14, %v14165_v5  ;;  %v2513_v34 = vpop.f32.mrb[53].mxu1 }
 0x3d4   :  { %v2514_v44 = vpop.f32.mrb[54].mxu1 }
 0x3d5   :  { %6053 = vmatmul.mubr.bf16.gmra.mrb[76].mxu0 %v5792_v18  ;;  %v12582_v22 = vadd.f32 %v14166_v32, %v2512_v19  ;;  %v2515_v8 = vadd.f32 %v2514_v44, %v14168_v42  ;;  %v2516_v51 = vpop.f32.mrb[55].mxu1  ;;  %v14176_v19 = vld [vmem:[#allocation263_spill] sm:$0xff] }
 0x3d6   :  { %7465 = vmatprep.mubr.msk.bf16.mxu0 %vm1146_vm3, %v14169_v4  ;;  %v14177_v42 = vld [vmem:[#allocation195_spill] sm:$0xff]  ;;  %v14180_v4 = vld [vmem:[#allocation270_spill] sm:$0xff] }
 0x3d7   :  { %14167 = vst [vmem:[#allocation112_spill] sm:$0xff] %v12582_v22  ;;  %v12588_v38 = vadd.f32 %v14170_v17, %v2515_v8  ;;  %3263 = vmatmul.mubr.bf16.gmra.mrb[160].mxu1 %v14172_v36  ;;  %v14178_v51 = vld [vmem:[#allocation171_spill] sm:$0xff] }
 0x3d8   :  { %v12591_v46 = vpop.f32.mrb[24].mxu0  ;;  %3270 = vmatprep.mubr.bf16.mxu1 %v14174_v16  ;;  %v14182_v16 = vld [vmem:[#allocation174_spill] sm:$0xff] }
 0x3d9   :  { %14171 = vst [vmem:[#allocation115_spill] sm:$0xff] %v12588_v38  ;;  %14173 = vst [vmem:[#allocation26_spill] sm:$0xff] %v12591_v46  ;;  %v5592_v20 = vpop.f32.mrb[25].mxu0 }
 0x3da   :  { %v12594_v18 = vpop.f32.mrb[26].mxu0  ;;  %v2519_v14 = vpop.f32.mrb[56].mxu1 }
 0x3db   :  { %14175 = vst [vmem:[#allocation28_spill] sm:$0xff] %v12594_v18  ;;  %v5595_v5 = vpop.f32.mrb[27].mxu0  ;;  %v2520_v34 = vadd.f32 %v2519_v14, %v14176_v19  ;;  %v2521_v44 = vpop.f32.mrb[57].mxu1  ;;  %v14185_v19 = vld [vmem:[#allocation265_spill] sm:$0xff]  ;;  %v14231_v18 = vld [vmem:[#allocation187_spill] sm:$0xff] }
 0x3dc   :  { %v2522_v32 = vpop.f32.mrb[58].mxu1  ;;  %v14184_v5 = vld [vmem:[#allocation80_spill] sm:$0xff] }
 0x3dd   :  { %6061 = vmatmul.mubr.bf16.gmra.mrb[176].mxu0 %v14177_v42  ;;  %v12599_v8 = vadd.f32 %v14178_v51, %v2520_v34  ;;  %v2523_v17 = vadd.f32 %v2522_v32, %v14180_v4  ;;  %v2524_v36 = vpop.f32.mrb[59].mxu1  ;;  %v14186_v34 = vld [vmem:[#allocation202_spill] sm:$0xff]  ;;  %v14189_v4 = vld [vmem:[#allocation64_spill] sm:$0xff] }
 0x3de   :  { %7466 = vmatprep.mubr.msk.bf16.mxu0 %vm1146_vm3, %v14181_v28  ;;  %v14187_v51 = vld [vmem:[#allocation170_spill] sm:$0xff] }
 0x3df   :  { %14179 = vst [vmem:[#allocation111_spill] sm:$0xff] %v12599_v8  ;;  %v12605_v20 = vadd.f32 %v14182_v16, %v2523_v17  ;;  %3271 = vmatmul.mubr.bf16.gmra.mrb[164].mxu1 %v13924_v49  ;;  %v14190_v8 = vld [vmem:[#allocation204_spill] sm:$0xff] }
 0x3e0   :  { %3278 = vmatprep.mubr.bf16.mxu1 %v14184_v5  ;;  %v14191_v17 = vld [vmem:[#allocation172_spill] sm:$0xff] }
 0x3e1   :  { %14183 = vst [vmem:[#allocation78_spill] sm:$0xff] %v12605_v20  ;;  %v14193_v16 = vld [vmem:[#allocation88_spill] sm:$0xff] }
 0x3e2   :  { %v2527_v14 = vpop.f32.mrb[60].mxu1  ;;  %v14198_v20 = vld [vmem:[#allocation208_spill] sm:$0xff] }
 0x3e3   :  { %v2528_v44 = vadd.f32 %v2527_v14, %v14185_v19  ;;  %v2529_v42 = vpop.f32.mrb[61].mxu1  ;;  %v14195_v14 = vld [vmem:[#allocation90_spill] sm:$0xff] }
 0x3e4   :  { %v2530_v63 = vpop.f32.mrb[62].mxu1 }
 0x3e5   :  { %6069 = vmatmul.mubr.bf16.gmra.mrb[80].mxu0 %v14186_v34  ;;  %v12612_v32 = vadd.f32 %v14187_v51, %v2528_v44  ;;  %v2531_v36 = vadd.f32 %v2530_v63, %v14189_v4  ;;  %v2532_v28 = vpop.f32.mrb[63].mxu1  ;;  %v14197_v51 = vld [vmem:[#allocation177_spill] sm:$0xff] }
 0x3e6   :  { %7467 = vmatprep.mubr.msk.bf16.mxu0 %vm1146_vm3, %v14190_v8  ;;  %v14199_v8 = vld [vmem:[#allocation180_spill] sm:$0xff] }
 0x3e7   :  { %14188 = vst [vmem:[#allocation113_spill] sm:$0xff] %v12612_v32  ;;  %v12618_v49 = vadd.f32 %v14191_v17, %v2531_v36  ;;  %3279 = vmatmul.mubr.bf16.gmra.mrb[168].mxu1 %v14193_v16  ;;  %v14201_v16 = vld [vmem:[#allocation76_spill] sm:$0xff] }
 0x3e8   :  { %v12621_v5 = vpop.f32.mrb[28].mxu0  ;;  %3286 = vmatprep.mubr.bf16.mxu1 %v14195_v14  ;;  %v14202_v14 = vld [vmem:[#allocation61_spill] sm:$0xff] }
 0x3e9   :  { %14192 = vst [vmem:[#allocation29_spill] sm:$0xff] %v12618_v49  ;;  %14194 = vst [vmem:[#allocation30_spill] sm:$0xff] %v12621_v5  ;;  %v5608_v19 = vpop.f32.mrb[29].mxu0  ;;  %v14200_v49 = vld [vmem:[#allocation210_spill] sm:$0xff]  ;;  %v14228_v5 = vld [vmem:[#allocation127_spill] sm:$0xff] }
 0x3ea   :  { %v12624_v42 = vpop.f32.mrb[30].mxu0  ;;  %v3072_v44 = vpop.f32.mrb[64].mxu1 }
 0x3eb   :  { %14196 = vst [vmem:[#allocation84_spill] sm:$0xff] %v12624_v42  ;;  %v5611_v34 = vpop.f32.mrb[31].mxu0  ;;  %v3362_v63 = vadd.f32 %v14197_v51, %v3072_v44  ;;  %v3074_v4 = vpop.f32.mrb[65].mxu1  ;;  %v14226_v42 = vld [vmem:[#allocation230_spill] sm:$0xff] }
 0x3ec   :  { %v3075_v28 = vpop.f32.mrb[66].mxu1  ;;  %v14203_v34 = vld [vmem:[#allocation176_spill] sm:$0xff] }
 0x3ed   :  { %6077 = vmatmul.mubr.bf16.gmra.mrb[184].mxu0 %v14198_v20  ;;  %v3365_v36 = vadd.f32 %v14199_v8, %v3075_v28  ;;  %v3077_v17 = vpop.f32.mrb[67].mxu1  ;;  %v12632_v32 = vadd.f32 %v3362_v63, %v14201_v16  ;;  %v14204_v28 = vld [vmem:[#allocation215_spill] sm:$0xff]  ;;  %v14207_v16 = vld [vmem:[#allocation217_spill] sm:$0xff] }
 0x3ee   :  { %7468 = vmatprep.mubr.msk.bf16.mxu0 %vm1146_vm3, %v14200_v49  ;;  %v14205_v8 = vld [vmem:[#allocation79_spill] sm:$0xff]  ;;  %v14206_v49 = vld [vmem:[#allocation178_spill] sm:$0xff] }
 0x3ef   :  { %3287 = vmatmul.mubr.bf16.gmra.mrb[172].mxu1 %v13945_v3  ;;  %v12636_v19 = vadd.f32 %v3365_v36, %v14202_v14  ;;  %v14208_v3 = vld [vmem:[#allocation97_spill] sm:$0xff]  ;;  %v14210_v14 = vld [vmem:[#allocation251_spill] sm:$0xff] }
 0x3f0   :  { %3294 = vmatprep.mubr.bf16.mxu1 %v13948_v11 }
 0x3f2   :  { %v3080_v44 = vpop.f32.mrb[68].mxu1 }
 0x3f3   :  { %v3370_v51 = vadd.f32 %v14203_v34, %v3080_v44  ;;  %v3082_v20 = vpop.f32.mrb[69].mxu1  ;;  %v14211_v34 = vld [vmem:[#allocation110_spill] sm:$0xff] }
 0x3f4   :  { %v3083_v4 = vpop.f32.mrb[70].mxu1 }
 0x3f5   :  { %6085 = vmatmul.mubr.bf16.gmra.mrb[84].mxu0 %v14204_v28  ;;  %v3618_v17 = vadd.f32 %v3370_v51, %v14205_v8  ;;  %v3373_v38 = vadd.f32 %v14206_v49, %v3083_v4  ;;  %v3085_v63 = vpop.f32.mrb[71].mxu1  ;;  %v14213_v4 = vld [vmem:[#allocation252_spill] sm:$0xff] }
 0x3f6   :  { %7469 = vmatprep.mubr.msk.bf16.mxu0 %vm1146_vm3, %v14207_v16  ;;  %v14214_v16 = vld [vmem:[#allocation182_spill] sm:$0xff] }
 0x3f7   :  { %v3619_v36 = vadd.f32 %v3373_v38, %v14208_v3  ;;  %3295 = vmatmul.mubr.bf16.gmra.mrb[176].mxu1 %v13955_v9  ;;  %v5167_v44 = vadd.f32 %v14210_v14, %v3618_v17  ;;  %v14215_v17 = vld [vmem:[#allocation222_spill] sm:$0xff]  ;;  %v14216_v14 = vld [vmem:[#allocation184_spill] sm:$0xff] }
 0x3f8   :  { %v12647_v11 = vpop.f32.mrb[32].mxu0  ;;  %3302 = vmatprep.mubr.bf16.mxu1 %v14211_v34 }
 0x3f9   :  { %14209 = vst [vmem:[#allocation122_spill] sm:$0xff] %v12647_v11  ;;  %v5624_v20 = vpop.f32.mrb[33].mxu0  ;;  %v12654_v51 = vadd.f32 %v12258_v45, %v5167_v44  ;;  %v5168_v8 = vadd.f32 %v14213_v4, %v3619_v36  ;;  %v14218_v45 = vld [vmem:[#allocation60_spill] sm:$0xff]  ;;  %v14219_v36 = vld [vmem:[#allocation118_spill] sm:$0xff] }
 0x3fa   :  { %v12651_v28 = vpop.f32.mrb[34].mxu0  ;;  %v3088_v49 = vpop.f32.mrb[72].mxu1  ;;  %v14220_v4 = vld [vmem:[#allocation62_spill] sm:$0xff] }
 0x3fb   :  { %14212 = vst [vmem:[#allocation86_spill] sm:$0xff] %v12651_v28  ;;  %v5627_v63 = vpop.f32.mrb[35].mxu0  ;;  %v3378_v38 = vadd.f32 %v14214_v16, %v3088_v49  ;;  %v3090_v3 = vpop.f32.mrb[73].mxu1  ;;  %v12659_v9 = vadd.f32 %v12261_v47, %v5168_v8  ;;  %v14217_v28 = vld [vmem:[#allocation224_spill] sm:$0xff] }
 0x3fc   :  { %v3091_v22 = vpop.f32.mrb[74].mxu1  ;;  %v14221_v63 = vld [vmem:[#allocation120_spill] sm:$0xff]  ;;  %v12673_v47 = vpop.permute.xlu0 %2875  ;;  %v14222_v3 = vld [vmem:[#allocation181_spill] sm:$0xff] }
 0x3fd   :  { %6093 = vmatmul.mubr.bf16.gmra.mrb[192].mxu0 %v14215_v17  ;;  %v3381_v34 = vadd.f32 %v14216_v14, %v3091_v22  ;;  %v3093_v20 = vpop.f32.mrb[75].mxu1  ;;  %v12666_v44 = vadd.f32 %v3378_v38, %v14218_v45  ;;  %v2866_v16 = vpop.permute.xlu1 %2865  ;;  %v14225_v45 = vld [vmem:[#allocation183_spill] sm:$0xff] }
 0x3fe   :  { %7470 = vmatprep.mubr.msk.bf16.mxu0 %vm1146_vm3, %v14217_v28  ;;  %v14223_v20 = vld [vmem:[#allocation228_spill] sm:$0xff]  ;;  %v14224_v28 = vld [vmem:[#allocation107_spill] sm:$0xff] }
 0x3ff   :  { %3303 = vmatmul.mubr.bf16.gmra.mrb[180].mxu1 %v14219_v36  ;;  %v12670_v49 = vadd.f32 %v3381_v34, %v14220_v4  ;;  %v2887_v34 = vsel %vm1146_vm3, %v2866_v16, %v12673_v47  ;;  %v14227_v4 = vld [vmem:[#allocation98_spill] sm:$0xff] }
 0x400   :  { %3310 = vmatprep.mubr.bf16.mxu1 %v14221_v63 }
 0x402   :  { %v3096_v8 = vpop.f32.mrb[76].mxu1 }
 0x403   :  { %v3386_v22 = vadd.f32 %v14222_v3, %v3096_v8  ;;  %v3098_v17 = vpop.f32.mrb[77].mxu1  ;;  %v14229_v3 = vld [vmem:[#allocation258_spill] sm:$0xff] }
 0x404   :  { %v3099_v14 = vpop.f32.mrb[78].mxu1 }
 0x405   :  { %6101 = vmatmul.mubr.bf16.gmra.mrb[88].mxu0 %v14223_v20  ;;  %v3622_v38 = vadd.f32 %v3386_v22, %v14224_v28  ;;  %v3389_v11 = vadd.f32 %v14225_v45, %v3099_v14  ;;  %v3101_v36 = vpop.f32.mrb[79].mxu1  ;;  %v14230_v28 = vld [vmem:[#allocation259_spill] sm:$0xff] }
 0x406   :  { %7471 = vmatprep.mubr.msk.bf16.mxu0 %vm1146_vm3, %v14226_v42 }
 0x407   :  { %v3623_v63 = vadd.f32 %v3389_v11, %v14227_v4  ;;  %3311 = vmatmul.mubr.bf16.gmra.mrb[184].mxu1 %v14228_v5  ;;  %v5171_v17 = vadd.f32 %v14229_v3, %v3622_v38  ;;  %v2881_v38 = vsel %vm1049_vm4, %v12170_v7, %v2866_v16  ;;  %v14233_v3 = vld [vmem:[#allocation190_spill] sm:$0xff] }
 0x408   :  { %v12685_v8 = vpop.f32.mrb[36].mxu0  ;;  %3318 = vmatprep.mubr.bf16.mxu1 %v2887_v34  ;;  %v14232_v34 = vld [vmem:[#allocation234_spill] sm:$0xff] }
 0x409   :  { %v5640_v20 = vpop.f32.mrb[37].mxu0  ;;  %v12691_v14 = vadd.f32 %v12290_v30, %v5171_v17  ;;  %v5172_v42 = vadd.f32 %v14230_v28, %v3623_v63  ;;  %v14234_v63 = vld [vmem:[#allocation100_spill] sm:$0xff]  ;;  %v14237_v16 = vld [vmem:[#allocation186_spill] sm:$0xff] }
 0x40a   :  { %v12688_v22 = vpop.f32.mrb[38].mxu0  ;;  %v3104_v45 = vpop.f32.mrb[80].mxu1 }
 0x40b   :  { %v5643_v36 = vpop.f32.mrb[39].mxu0  ;;  %v3394_v46 = vadd.f32 %v14231_v18, %v3104_v45  ;;  %v3106_v11 = vpop.f32.mrb[81].mxu1  ;;  %v12696_v5 = vadd.f32 %v12293_v50, %v5172_v42  ;;  %v14235_v18 = vld [vmem:[#allocation99_spill] sm:$0xff] }
 0x40c   :  { %v3107_v4 = vpop.f32.mrb[82].mxu1  ;;  %v14236_v50 = vld [vmem:[#allocation15_spill] sm:$0xff]  ;;  %v14238_v11 = vld [vmem:[#allocation89_spill] sm:$0xff] }
 0x40d   :  { %6109 = vmatmul.mubr.bf16.gmra.mrb[200].mxu0 %v14232_v34  ;;  %v3397_v20 = vadd.f32 %v14233_v3, %v3107_v4  ;;  %v3109_v30 = vpop.f32.mrb[83].mxu1  ;;  %v12705_v17 = vadd.f32 %v3394_v46, %v14234_v63  ;;  %v14240_v3 = vld [vmem:[#allocation18_spill] sm:$0xff] }
 0x40e   :  { %7472 = vmatprep.mubr.msk.bf16.mxu0 %vm1146_vm3, %v13972_v12  ;;  %v14239_v12 = vld [vmem:[#allocation188_spill] sm:$0xff]  ;;  %v14241_v30 = vld [vmem:[#allocation70_spill] sm:$0xff] }
 0x40f   :  { %3319 = vmatmul.mubr.bf16.gmra.mrb[188].mxu1 %v2881_v38  ;;  %v12708_v28 = vadd.f32 %v3397_v20, %v14235_v18  ;;  %v14242_v18 = vld [vmem:[#allocation21_spill] sm:$0xff] }
 0x410   :  { %8092 = vmatprep.mubr.msk.bf16.mxu1 %vm1490_vm2, %v14236_v50 }
 0x412   :  { %v3112_v7 = vpop.f32.mrb[84].mxu1 }
 0x413   :  { %v3402_v42 = vadd.f32 %v14237_v16, %v3112_v7  ;;  %v3114_v45 = vpop.f32.mrb[85].mxu1  ;;  %v14244_v16 = vld [vmem:[#allocation267_spill] sm:$0xff] }
 0x414   :  { %v3115_v36 = vpop.f32.mrb[86].mxu1  ;;  %v14245_v45 = vld [vmem:[#allocation193_spill] sm:$0xff] }
 0x415   :  { %6117 = vmatmul.mubr.bf16.gmra.mrb[92].mxu0 %v13978_v35  ;;  %v3626_v4 = vadd.f32 %v3402_v42, %v14238_v11  ;;  %v3405_v34 = vadd.f32 %v14239_v12, %v3115_v36  ;;  %v3117_v46 = vpop.f32.mrb[87].mxu1 }
 0x416   :  { %7473 = vmatprep.mubr.msk.bf16.mxu0 %vm1146_vm3, %v13980_v24 }
 0x417   :  { %v3627_v38 = vadd.f32 %v3405_v34, %v12186_v55  ;;  %8093 = vmatmul.mubr.msk.bf16.vlgmr.msra.gmra.mrb[192].mxu1 %vm1490_vm2, %v14240_v3  ;;  %v5175_v63 = vadd.f32 %v14241_v30, %v3626_v4  ;;  %v14246_v34 = vld [vmem:[#allocation196_spill] sm:$0xff] }
 0x418   :  { %v12721_v20 = vpop.f32.mrb[40].mxu0  ;;  %8096 = vmatprep.mubr.msk.bf16.mxu1 %vm1490_vm2, %v14242_v18 }
 0x419   :  { %v5656_v35 = vpop.f32.mrb[41].mxu0  ;;  %v12729_v7 = vadd.f32 %v12329_v41, %v5175_v63  ;;  %v5176_v24 = vadd.f32 %v14244_v16, %v3627_v38  ;;  %v14247_v38 = vld [vmem:[#allocation22_spill] sm:$0xff] }
 0x41a   :  { %v12726_v50 = vpop.f32.mrb[42].mxu0  ;;  %v3120_v42 = vpop.f32.mrb[88].mxu1 }
 0x41b   :  { %14243 = vst [vmem:[#allocation125_spill] sm:$0xff] %v12726_v50  ;;  %v5659_v55 = vpop.f32.mrb[43].mxu0  ;;  %v3410_v36 = vadd.f32 %v14245_v45, %v3120_v42  ;;  %v3122_v11 = vpop.f32.mrb[89].mxu1  ;;  %v12734_v12 = vadd.f32 %v12337_v40, %v5176_v24  ;;  %v14248_v40 = vld [vmem:[#allocation24_spill] sm:$0xff] }
 0x41c   :  { %v3123_v4 = vpop.f32.mrb[90].mxu1 }
 0x41d   :  { %6125 = vmatmul.mubr.bf16.gmra.mrb[208].mxu0 %v13984_v31  ;;  %v3413_v46 = vadd.f32 %v14246_v34, %v3123_v4  ;;  %v3125_v3 = vpop.f32.mrb[91].mxu1  ;;  %v12741_v41 = vadd.f32 %v3410_v36, %v12206_v37  ;;  %v14249_v31 = vld [vmem:[#allocation192_spill] sm:$0xff]  ;;  %v14251_v37 = vld [vmem:[#allocation194_spill] sm:$0xff]  ;;  %v14253_v36 = vld [vmem:[#allocation27_spill] sm:$0xff] }
 0x41e   :  { %7474 = vmatprep.mubr.msk.bf16.mxu0 %vm1146_vm3, %v13987_v48  ;;  %v14250_v48 = vld [vmem:[#allocation68_spill] sm:$0xff] }
 0x41f   :  { %8097 = vmatmul.mubr.msk.bf16.gmra.mrb[196].mxu1 %vm1490_vm2, %v14247_v38  ;;  %v12746_v30 = vadd.f32 %v3413_v46, %v12212_v10  ;;  %v14252_v10 = vld [vmem:[#allocation74_spill] sm:$0xff]  ;;  %v14255_v4 = vld [vmem:[#allocation272_spill] sm:$0xff]  ;;  %v14256_v46 = vld [vmem:[#allocation117_spill] sm:$0xff] }
 0x420   :  { %8100 = vmatprep.mubr.msk.bf16.mxu1 %vm1490_vm2, %v14248_v40  ;;  %v14258_v40 = vld [vmem:[#allocation273_spill] sm:$0xff] }
 0x422   :  { %v3128_v63 = vpop.f32.mrb[92].mxu1 }
 0x423   :  { %v3418_v18 = vadd.f32 %v14249_v31, %v3128_v63  ;;  %v3130_v35 = vpop.f32.mrb[93].mxu1 }
 0x424   :  { %v3131_v16 = vpop.f32.mrb[94].mxu1 }
 0x425   :  { %6133 = vmatmul.mubr.bf16.gmra.mrb[96].mxu0 %v13994_v54  ;;  %v3630_v24 = vadd.f32 %v3418_v18, %v14250_v48  ;;  %v3421_v42 = vadd.f32 %v14251_v37, %v3131_v16  ;;  %v3133_v55 = vpop.f32.mrb[95].mxu1  ;;  %v14259_v18 = vld [vmem:[#allocation200_spill] sm:$0xff]  ;;  %v14260_v37 = vld [vmem:[#allocation203_spill] sm:$0xff] }
 0x426   :  { %7475 = vmatprep.mubr.msk.bf16.mxu0 %vm1146_vm3, %v13997_v33 }
 0x427   :  { %v3631_v45 = vadd.f32 %v3421_v42, %v14252_v10  ;;  %8101 = vmatmul.mubr.msk.bf16.gmra.mrb[200].mxu1 %vm1490_vm2, %v14253_v36  ;;  %v5179_v34 = vadd.f32 %v14255_v4, %v3630_v24  ;;  %v14261_v10 = vld [vmem:[#allocation254_spill] sm:$0xff]  ;;  %v14263_v4 = vld [vmem:[#allocation236_spill] sm:$0xff] }
 0x428   :  { %v12759_v11 = vpop.f32.mrb[44].mxu0  ;;  %8104 = vmatprep.mubr.msk.bf16.mxu1 %vm1490_vm2, %v14256_v46 }
 0x429   :  { %14254 = vst [vmem:[#allocation31_spill] sm:$0xff] %v12759_v11  ;;  %v5672_v54 = vpop.f32.mrb[45].mxu0  ;;  %v12767_v38 = vadd.f32 %v12374_v27, %v5179_v34  ;;  %v5180_v33 = vadd.f32 %v14258_v40, %v3631_v45  ;;  %v14262_v27 = vld [vmem:[#allocation73_spill] sm:$0xff] }
 0x42a   :  { %v12764_v3 = vpop.f32.mrb[46].mxu0  ;;  %v3136_v63 = vpop.f32.mrb[96].mxu1  ;;  %v12795_v54 = vld [vmem:[%s13266_s5] ss:$0 sm:$0xff] }
 0x42b   :  { %14257 = vst [vmem:[#allocation32_spill] sm:$0xff] %v12764_v3  ;;  %v5675_v31 = vpop.f32.mrb[47].mxu0  ;;  %v3426_v35 = vadd.f32 %v14259_v18, %v3136_v63  ;;  %v3138_v16 = vpop.f32.mrb[97].mxu1  ;;  %v12772_v48 = vadd.f32 %v12377_v53, %v5180_v33  ;;  %v12786_v53 = vld [vmem:[%s13265_s4] ss:$0 sm:$0xff] }
 0x42c   :  { %v3139_v24 = vpop.f32.mrb[98].mxu1  ;;  %v14264_v18 = vld [vmem:[#allocation199_spill] sm:$0xff] }
 0x42d   :  { %6141 = vmatmul.mubr.bf16.gmra.mrb[216].mxu0 %v14002_v25  ;;  %v3429_v42 = vadd.f32 %v14260_v37, %v3139_v24  ;;  %v3141_v55 = vpop.f32.mrb[99].mxu1  ;;  %v12779_v36 = vadd.f32 %v3426_v35, %v14262_v27  ;;  %v14267_v27 = vld [vmem:[#allocation201_spill] sm:$0xff] }
 0x42e   :  { %7476 = vmatprep.mubr.msk.bf16.mxu0 %vm1146_vm3, %v14261_v10  ;;  %v14266_v55 = vld [vmem:[#allocation75_spill] sm:$0xff] }
 0x42f   :  { %8105 = vmatmul.mubr.msk.bf16.gmra.mrb[204].mxu1 %vm1490_vm2, %v12673_v47  ;;  %v12789_v25 = vadd.f32 %v3429_v42, %v14263_v4  ;;  %v14265_v42 = vld [vmem:[#allocation256_spill] sm:$0xff] }
 0x430   :  { %v5934_v45 = vpop.f32.mrb[112].mxu0 }
 0x431   :  { %v8112_v34 = vadd.f32 %v5934_v45, %v12632_v32  ;;  %v5936_v46 = vpop.f32.mrb[113].mxu0 }
 0x432   :  { %v5937_v40 = vpop.f32.mrb[114].mxu0  ;;  %v3144_v33 = vpop.f32.mrb[100].mxu1 }
 0x433   :  { %v6260_v47 = vmul.f32 %v8112_v34, %v12786_v53  ;;  %v8113_v63 = vadd.f32 %v5937_v40, %v12636_v19  ;;  %v5939_v31 = vpop.f32.mrb[115].mxu0  ;;  %v3434_v35 = vadd.f32 %v14264_v18, %v3144_v33  ;;  %v3146_v16 = vpop.f32.mrb[101].mxu1  ;;  %v14268_v34 = vld [vmem:[#allocation257_spill] sm:$0xff]  ;;  %v14269_v40 = vld [vmem:[#allocation7_spill] sm:$0xff] }
 0x434   :  { %v3147_v37 = vpop.f32.mrb[102].mxu1  ;;  %v14270_v31 = vld [vmem:[#allocation119_spill] sm:$0xff] }
 0x435   :  { %v6331_v24 = vadd.f32 %v12795_v54, %v6260_v47  ;;  %v6261_v32 = vmul.f32 %v8113_v63, %v12786_v53  ;;  %6149 = vmatmul.mubr.bf16.gmra.mrb[100].mxu0 %v14265_v42  ;;  %v3634_v10 = vadd.f32 %v3434_v35, %v14266_v55  ;;  %v3437_v45 = vadd.f32 %v14267_v27, %v3147_v37  ;;  %v3149_v4 = vpop.f32.mrb[103].mxu1  ;;  %v14271_v55 = vld [vmem:[#allocation109_spill] sm:$0xff] }
 0x436   :  { %7477 = vmatprep.mubr.msk.bf16.mxu0 %vm1146_vm3, %v14268_v34 }
 0x437   :  { %v6459_v19 = vmul.f32 0.01, %v6331_v24  ;;  %v6332_v46 = vadd.f32 %v12795_v54, %v6261_v32  ;;  %vm6395_vm5 = vcmp.gt.f32.partialorder %v6331_v24, 0.0  ;;  %v3635_v33 = vadd.f32 %v3437_v45, %v14269_v40 }
 0x438   :  { %v5942_v47 = vpop.f32.mrb[48].mxu0  ;;  %v5183_v63 = vadd.f32 %v14270_v31, %v3634_v10  ;;  %v14272_v31 = vld [vmem:[#allocation206_spill] sm:$0xff] }
 0x439   :  { %vm6396_vm6 = vcmp.gt.f32.partialorder %v6332_v46, 0.0  ;;  %v6460_v18 = vmul.f32 0.01, %v6332_v46  ;;  %v6191_v16 = vadd.f32 %v5942_v47, %v12654_v51  ;;  %v5944_v35 = vpop.f32.mrb[49].mxu0  ;;  %v5184_v27 = vadd.f32 %v14271_v55, %v3635_v33 }
 0x43a   :  { %v5945_v42 = vpop.f32.mrb[50].mxu0  ;;  %v12812_v37 = vadd.f32 %v12404_v52, %v5183_v63  ;;  %v6523_v4 = vsel %vm6395_vm5, %v6331_v24, %v6459_v19  ;;  %v3152_v3 = vpop.f32.mrb[104].mxu1  ;;  %v14273_v24 = vld [vmem:[#allocation209_spill] sm:$0xff]  ;;  %v14275_v63 = vld [vmem:[#allocation8_spill] sm:$0xff] }
 0x43b   :  { %v6524_v34 = vsel %vm6396_vm6, %v6332_v46, %v6460_v18  ;;  %v6262_v32 = vmul.f32 %v12786_v53, %v6191_v16  ;;  %v6192_v45 = vadd.f32 %v5945_v42, %v12659_v9  ;;  %v5947_v40 = vpop.f32.mrb[51].mxu0  ;;  %v3442_v11 = vadd.f32 %v14272_v31, %v3152_v3  ;;  %v3154_v50 = vpop.f32.mrb[105].mxu1  ;;  %v14274_v9 = vld [vmem:[#allocation261_spill] sm:$0xff]  ;;  %v14276_v16 = vld [vmem:[#allocation240_spill] sm:$0xff] }
 0x43c   :  { %v7614_v10 = vpack.c.bf16 %v6524_v34, %v6523_v4  ;;  %v12819_v51 = vadd.f32 %v12407_v23, %v5184_v27  ;;  %v3155_v33 = vpop.f32.mrb[106].mxu1  ;;  %v14277_v31 = vld [vmem:[#allocation205_spill] sm:$0xff] }
 0x43d   :  { %v6333_v52 = vadd.f32 %v12795_v54, %v6262_v32  ;;  %v6263_v47 = vmul.f32 %v12786_v53, %v6192_v45  ;;  %6157 = vmatmul.mubr.bf16.gmra.mrb[224].mxu0 %v14018_v13  ;;  %v3445_v19 = vadd.f32 %v14273_v24, %v3155_v33  ;;  %v3157_v46 = vpop.f32.mrb[107].mxu1  ;;  %v12828_v3 = vadd.f32 %v3442_v11, %v14275_v63  ;;  %v14280_v63 = vld [vmem:[#allocation207_spill] sm:$0xff] }
 0x43e   :  { %7615 = vst [vmem:[#allocation2] sm:$0xff] %v7614_v10   ;;  %7478 = vmatprep.mubr.msk.bf16.mxu0 %vm1146_vm3, %v14274_v9 }
 0x43f   :  { %v6461_v50 = vmul.f32 0.01, %v6333_v52  ;;  %v6334_v23 = vadd.f32 %v12795_v54, %v6263_v47  ;;  %vm6397_vm7 = vcmp.gt.f32.partialorder %v6333_v52, 0.0  ;;  %v12832_v35 = vadd.f32 %v3445_v19, %v14276_v16 }
 0x440   :  { %v5950_v18 = vpop.f32.mrb[120].mxu0 }
 0x441   :  { %vm6398_vm8 = vcmp.gt.f32.partialorder %v6334_v23, 0.0  ;;  %v6462_v13 = vmul.f32 0.01, %v6334_v23  ;;  %v8114_v42 = vadd.f32 %v5950_v18, %v12666_v44  ;;  %v5952_v55 = vpop.f32.mrb[121].mxu0  ;;  %v6525_v4 = vsel %vm6397_vm7, %v6333_v52, %v6461_v50  ;;  %v14278_v44 = vld [vmem:[#allocation264_spill] sm:$0xff]  ;;  %v14279_v52 = vld [vmem:[#allocation82_spill] sm:$0xff] }
 0x442   :  { %v5953_v27 = vpop.f32.mrb[122].mxu0  ;;  %v3160_v11 = vpop.f32.mrb[108].mxu1  ;;  %v14281_v18 = vld [vmem:[#allocation85_spill] sm:$0xff] }
 0x443   :  { %v6526_v34 = vsel %vm6398_vm8, %v6334_v23, %v6462_v13  ;;  %v6264_v32 = vmul.f32 %v8114_v42, %v12786_v53  ;;  %v8115_v45 = vadd.f32 %v5953_v27, %v12670_v49  ;;  %v5955_v40 = vpop.f32.mrb[123].mxu0  ;;  %v3450_v47 = vadd.f32 %v14277_v31, %v3160_v11  ;;  %v3162_v33 = vpop.f32.mrb[109].mxu1  ;;  %v14282_v49 = vld [vmem:[#allocation83_spill] sm:$0xff]  ;;  %v14283_v27 = vld [vmem:[#allocation242_spill] sm:$0xff] }
 0x444   :  { %v7619_v10 = vpack.c.bf16 %v6526_v34, %v6525_v4  ;;  %v3163_v46 = vpop.f32.mrb[110].mxu1  ;;  %v5788_v16 = vrot.slane %v14282_v49, 1  ;;  %v5789_v13 = vrot.slane %v12342_v39, 1  ;;  %v14285_v39 = vld [vmem:[#allocation275_spill] sm:$0xff] }
 0x445   :  { %v6335_v24 = vadd.f32 %v12795_v54, %v6264_v32  ;;  %v6265_v19 = vmul.f32 %v8115_v45, %v12786_v53  ;;  %6165 = vmatmul.mubr.bf16.gmra.mrb[104].mxu0 %v14278_v44  ;;  %v3638_v9 = vadd.f32 %v3450_v47, %v14279_v52  ;;  %v3453_v50 = vadd.f32 %v14280_v63, %v3163_v46  ;;  %v3165_v23 = vpop.f32.mrb[111].mxu1  ;;  %v14284_v32 = vld [vmem:[#allocation274_spill] sm:$0xff] }
 0x446   :  { %7771 = vst [vmem:[#allocation2 + $0x8] sm:$0xff] %v7619_v10   ;;  %7479 = vmatprep.mubr.msk.bf16.mxu0 %vm1146_vm3, %v14281_v18  ;;  %v5790_v47 = vsel %vm888_vm0, %v5788_v16, %v5789_v13  ;;  %v14286_v18 = vld [vmem:[#allocation213_spill] sm:$0xff] }
 0x447   :  { %v6463_v42 = vmul.f32 0.01, %v6335_v24  ;;  %v6336_v55 = vadd.f32 %v12795_v54, %v6265_v19  ;;  %vm6399_vm9 = vcmp.gt.f32.partialorder %v6335_v24, 0.0  ;;  %v3639_v4 = vadd.f32 %v3453_v50, %v14283_v27 }
 0x448   :  { %v5958_v34 = vpop.f32.mrb[52].mxu0  ;;  %v5187_v11 = vadd.f32 %v14284_v32, %v3638_v9 }
 0x449   :  { %vm6400_vm10 = vcmp.gt.f32.partialorder %v6336_v55, 0.0  ;;  %v6464_v45 = vmul.f32 0.01, %v6336_v55  ;;  %v6195_v40 = vadd.f32 %v5958_v34, %v12691_v14  ;;  %v5960_v10 = vpop.f32.mrb[53].mxu0  ;;  %v5188_v46 = vadd.f32 %v14285_v39, %v3639_v4 }
 0x44a   :  { %v5961_v31 = vpop.f32.mrb[54].mxu0  ;;  %v12853_v33 = vadd.f32 %v12436_v57, %v5187_v11  ;;  %v6527_v19 = vsel %vm6399_vm9, %v6335_v24, %v6463_v42  ;;  %v3168_v63 = vpop.f32.mrb[112].mxu1  ;;  %v14287_v24 = vld [vmem:[#allocation246_spill] sm:$0xff]  ;;  %v14288_v42 = vld [vmem:[#allocation216_spill] sm:$0xff] }
 0x44b   :  { %v6528_v44 = vsel %vm6400_vm10, %v6336_v55, %v6464_v45  ;;  %v6266_v52 = vmul.f32 %v12786_v53, %v6195_v40  ;;  %v6196_v9 = vadd.f32 %v5961_v31, %v12696_v5  ;;  %v5963_v50 = vpop.f32.mrb[55].mxu0  ;;  %v3458_v14 = vadd.f32 %v14286_v18, %v3168_v63  ;;  %v3170_v49 = vpop.f32.mrb[113].mxu1  ;;  %v14289_v5 = vld [vmem:[#allocation9_spill] sm:$0xff]  ;;  %v14290_v40 = vld [vmem:[#allocation10_spill] sm:$0xff] }
 0x44c   :  { %v7624_v23 = vpack.c.bf16 %v6528_v44, %v6527_v19  ;;  %v12860_v27 = vadd.f32 %v12438_v6, %v5188_v46  ;;  %v3171_v13 = vpop.f32.mrb[114].mxu1  ;;  %v5784_v11 = vpop.permute.xlu1 %5783  ;;  %v14291_v49 = vld [vmem:[#allocation212_spill] sm:$0xff] }
 0x44d   :  { %v6337_v57 = vadd.f32 %v12795_v54, %v6266_v52  ;;  %v6267_v16 = vmul.f32 %v12786_v53, %v6196_v9  ;;  %6173 = vmatmul.mubr.bf16.gmra.mrb[232].mxu0 %v14287_v24  ;;  %v3461_v55 = vadd.f32 %v14288_v42, %v3171_v13  ;;  %v3173_v4 = vpop.f32.mrb[115].mxu1  ;;  %v12868_v34 = vadd.f32 %v3458_v14, %v14289_v5 }
 0x44e   :  { %7772 = vst [vmem:[#allocation2 + $0x10] sm:$0xff] %v7624_v23   ;;  %7480 = vmatprep.mubr.msk.bf16.mxu0 %vm1146_vm3, %v5790_v47  ;;  %v8621_v47 = vld [vmem:[%s13262_s1 + $0x1a4] sm:$0xff]   ;;  %v14293_v4 = vld [vmem:[#allocation214_spill] sm:$0xff] }
 0x44f   :  { %v6465_v32 = vmul.f32 0.01, %v6337_v57  ;;  %v6338_v6 = vadd.f32 %v12795_v54, %v6267_v16  ;;  %vm6401_vm11 = vcmp.gt.f32.partialorder %v6337_v57, 0.0  ;;  %v12872_v10 = vadd.f32 %v3461_v55, %v14290_v40  ;;  %v14292_v55 = vld [vmem:[#allocation81_spill] sm:$0xff] }
 0x450   :  { %v5966_v45 = vpop.f32.mrb[128].mxu0  ;;  %v5795_v44 = vsel %vm1146_vm3, %v8621_v47, %v5784_v11  ;;  %v14294_v11 = vld [vmem:[#allocation248_spill] sm:$0xff] }
 0x451   :  { %vm6402_vm12 = vcmp.gt.f32.partialorder %v6338_v6, 0.0  ;;  %v6466_v31 = vmul.f32 0.01, %v6338_v6  ;;  %v8116_v39 = vadd.f32 %v5966_v45, %v12705_v17  ;;  %v5968_v46 = vpop.f32.mrb[129].mxu0  ;;  %v6529_v52 = vsel %vm6401_vm11, %v6337_v57, %v6465_v32 }
 0x452   :  { %v5969_v19 = vpop.f32.mrb[130].mxu0  ;;  %v3176_v50 = vpop.f32.mrb[116].mxu1 }
 0x453   :  { %v6530_v63 = vsel %vm6402_vm12, %v6338_v6, %v6466_v31  ;;  %v6268_v9 = vmul.f32 %v8116_v39, %v12786_v53  ;;  %v8117_v23 = vadd.f32 %v5969_v19, %v12708_v28  ;;  %v5971_v18 = vpop.f32.mrb[131].mxu0  ;;  %v3466_v16 = vadd.f32 %v14291_v49, %v3176_v50  ;;  %v3178_v17 = vpop.f32.mrb[117].mxu1  ;;  %v14295_v31 = vld [vmem:[#allocation6_spill] sm:$0xff] }
 0x454   :  { %v7629_v14 = vpack.c.bf16 %v6530_v63, %v6529_v52  ;;  %v3179_v42 = vpop.f32.mrb[118].mxu1  ;;  %v14296_v63 = vld [vmem:[#allocation42_spill] sm:$0xff] }
 0x455   :  { %v6339_v13 = vadd.f32 %v12795_v54, %v6268_v9  ;;  %v6269_v24 = vmul.f32 %v8117_v23, %v12786_v53  ;;  %6181 = vmatmul.mubr.bf16.gmra.mrb[108].mxu0 %v5795_v44  ;;  %v3642_v57 = vadd.f32 %v3466_v16, %v14292_v55  ;;  %v3469_v5 = vadd.f32 %v14293_v4, %v3179_v42  ;;  %v3181_v32 = vpop.f32.mrb[119].mxu1 }
 0x456   :  { %7773 = vst [vmem:[#allocation2 + $0x18] sm:$0xff] %v7629_v14  }
 0x457   :  { %v6467_v6 = vmul.f32 0.01, %v6339_v13  ;;  %v6340_v28 = vadd.f32 %v12795_v54, %v6269_v24  ;;  %vm6403_vm13 = vcmp.gt.f32.partialorder %v6339_v13, 0.0  ;;  %v3643_v45 = vadd.f32 %v3469_v5, %v14294_v11  ;;  %v14297_v24 = vld [vmem:[#allocation220_spill] sm:$0xff] }
 0x458   :  { %v5974_v40 = vpop.f32.mrb[56].mxu0  ;;  %v5191_v39 = vadd.f32 %v14295_v31, %v3642_v57 }
 0x459   :  { %vm6404_vm14 = vcmp.gt.f32.partialorder %v6340_v28, 0.0  ;;  %v6468_v46 = vmul.f32 0.01, %v6340_v28  ;;  %v6199_v19 = vadd.f32 %v5974_v40, %v12729_v7  ;;  %v5976_v47 = vpop.f32.mrb[57].mxu0  ;;  %v5192_v9 = vadd.f32 %v14296_v63, %v3643_v45 }
 0x45a   :  { %v5977_v44 = vpop.f32.mrb[58].mxu0  ;;  %v12891_v52 = vadd.f32 %v12468_v62, %v5191_v39  ;;  %v6531_v50 = vsel %vm6403_vm13, %v6339_v13, %v6467_v6  ;;  %v3184_v14 = vpop.f32.mrb[120].mxu1  ;;  %v14298_v13 = vld [vmem:[#allocation223_spill] sm:$0xff] }
 0x45b   :  { %v6532_v23 = vsel %vm6404_vm14, %v6340_v28, %v6468_v46  ;;  %v6270_v18 = vmul.f32 %v12786_v53, %v6199_v19  ;;  %v6200_v49 = vadd.f32 %v5977_v44, %v12734_v12  ;;  %v5979_v16 = vpop.f32.mrb[59].mxu0  ;;  %v3474_v42 = vadd.f32 %v14297_v24, %v3184_v14  ;;  %v3186_v55 = vpop.f32.mrb[121].mxu1 }
 0x45c   :  { %v7634_v17 = vpack.c.bf16 %v6532_v23, %v6531_v50  ;;  %v12898_v7 = vadd.f32 %v12471_v26, %v5192_v9  ;;  %v3187_v4 = vpop.f32.mrb[122].mxu1  ;;  %v14299_v50 = vld [vmem:[#allocation219_spill] sm:$0xff]  ;;  %v14300_v16 = vld [vmem:[#allocation221_spill] sm:$0xff] }
 0x45d   :  { %v6341_v62 = vadd.f32 %v12795_v54, %v6270_v18  ;;  %v6271_v57 = vmul.f32 %v12786_v53, %v6200_v49  ;;  %v3477_v5 = vadd.f32 %v14298_v13, %v3187_v4  ;;  %v3189_v32 = vpop.f32.mrb[123].mxu1  ;;  %v12904_v6 = vadd.f32 %v3474_v42, %v12350_v29 }
 0x45e   :  { %7774 = vst [vmem:[#allocation2 + $0x20] sm:$0xff] %v7634_v17  }
 0x45f   :  { %v6469_v12 = vmul.f32 0.01, %v6341_v62  ;;  %v6342_v28 = vadd.f32 %v12795_v54, %v6271_v57  ;;  %vm6405_vm15 = vcmp.gt.f32.partialorder %v6341_v62, 0.0  ;;  %v12908_v26 = vadd.f32 %v3477_v5, %v12356_v0  ;;  %v14301_v57 = vld [vmem:[#allocation43_spill] sm:$0xff] }
 0x460   :  { %v5982_v11 = vpop.f32.mrb[136].mxu0 }
 0x461   :  { %vm6406_vm0 = vcmp.gt.f32.partialorder %v6342_v28, 0.0  ;;  %v6470_v45 = vmul.f32 0.01, %v6342_v28  ;;  %v8118_v40 = vadd.f32 %v5982_v11, %v12741_v41  ;;  %v5984_v31 = vpop.f32.mrb[137].mxu0  ;;  %v6533_v46 = vsel %vm6405_vm15, %v6341_v62, %v6469_v12 }
 0x462   :  { %v5985_v39 = vpop.f32.mrb[138].mxu0  ;;  %v3192_v29 = vpop.f32.mrb[124].mxu1 }
 0x463   :  { %v6534_v19 = vsel %vm6406_vm0, %v6342_v28, %v6470_v45  ;;  %v6272_v47 = vmul.f32 %v8118_v40, %v12786_v53  ;;  %v8119_v44 = vadd.f32 %v5985_v39, %v12746_v30  ;;  %v5987_v63 = vpop.f32.mrb[139].mxu0  ;;  %v3482_v23 = vadd.f32 %v14299_v50, %v3192_v29  ;;  %v3194_v18 = vpop.f32.mrb[125].mxu1  ;;  %v14302_v28 = vld [vmem:[#allocation276_spill] sm:$0xff]  ;;  %v14304_v50 = vld [vmem:[#allocation229_spill] sm:$0xff] }
 0x464   :  { %v7639_v9 = vpack.c.bf16 %v6534_v19, %v6533_v46  ;;  %v3195_v49 = vpop.f32.mrb[126].mxu1 }
 0x465   :  { %v6343_v0 = vadd.f32 %v12795_v54, %v6272_v47  ;;  %v6273_v14 = vmul.f32 %v8119_v44, %v12786_v53  ;;  %v3646_v41 = vadd.f32 %v3482_v23, %v12365_v15  ;;  %v3485_v17 = vadd.f32 %v14300_v16, %v3195_v49  ;;  %v3197_v24 = vpop.f32.mrb[127].mxu1  ;;  %v14303_v47 = vld [vmem:[#allocation226_spill] sm:$0xff]  ;;  %v14306_v16 = vld [vmem:[#allocation12_spill] sm:$0xff] }
 0x466   :  { %7775 = vst [vmem:[#allocation2 + $0x28] sm:$0xff] %v7639_v9  }
 0x467   :  { %v6471_v42 = vmul.f32 0.01, %v6343_v0  ;;  %v6344_v55 = vadd.f32 %v12795_v54, %v6273_v14  ;;  %vm6407_vm1 = vcmp.gt.f32.partialorder %v6343_v0, 0.0  ;;  %v3647_v30 = vadd.f32 %v3485_v17, %v12371_v61 }
 0x468   :  { %v5990_v62 = vpop.f32.mrb[60].mxu0  ;;  %v5195_v4 = vadd.f32 %v14301_v57, %v3646_v41 }
 0x469   :  { %vm6408_vm2 = vcmp.gt.f32.partialorder %v6344_v55, 0.0  ;;  %v6472_v13 = vmul.f32 0.01, %v6344_v55  ;;  %v6203_v5 = vadd.f32 %v5990_v62, %v12767_v38  ;;  %v5992_v32 = vpop.f32.mrb[61].mxu0  ;;  %v5196_v11 = vadd.f32 %v14302_v28, %v3647_v30 }
 0x46a   :  { %v5993_v12 = vpop.f32.mrb[62].mxu0  ;;  %v12923_v15 = vadd.f32 %v12498_v1, %v5195_v4  ;;  %v6535_v45 = vsel %vm6407_vm1, %v6343_v0, %v6471_v42  ;;  %v3200_v39 = vpop.f32.mrb[128].mxu1  ;;  %v14305_v0 = vld [vmem:[#allocation11_spill] sm:$0xff] }
 0x46b   :  { %v6536_v40 = vsel %vm6408_vm2, %v6344_v55, %v6472_v13  ;;  %v6274_v31 = vmul.f32 %v12786_v53, %v6203_v5  ;;  %v6204_v61 = vadd.f32 %v5993_v12, %v12772_v48  ;;  %v5995_v46 = vpop.f32.mrb[63].mxu0  ;;  %v3490_v29 = vadd.f32 %v14303_v47, %v3200_v39  ;;  %v3202_v44 = vpop.f32.mrb[129].mxu1  ;;  %v14307_v12 = vld [vmem:[#allocation225_spill] sm:$0xff] }
 0x46c   :  { %v7644_v19 = vpack.c.bf16 %v6536_v40, %v6535_v45  ;;  %v12930_v38 = vadd.f32 %v12501_v43, %v5196_v11  ;;  %v3203_v9 = vpop.f32.mrb[130].mxu1 }
 0x46d   :  { %v6345_v1 = vadd.f32 %v12795_v54, %v6274_v31  ;;  %v6275_v63 = vmul.f32 %v12786_v53, %v6204_v61  ;;  %v3493_v23 = vadd.f32 %v14304_v50, %v3203_v9  ;;  %v3205_v18 = vpop.f32.mrb[131].mxu1  ;;  %v12936_v14 = vadd.f32 %v3490_v29, %v14305_v0  ;;  %v14309_v61 = vld [vmem:[#allocation227_spill] sm:$0xff] }
 0x46e   :  { %7776 = vst [vmem:[#allocation2 + $0x30] sm:$0xff] %v7644_v19  }
 0x46f   :  { %v6473_v48 = vmul.f32 0.01, %v6345_v1  ;;  %v6346_v49 = vadd.f32 %v12795_v54, %v6275_v63  ;;  %vm6409_vm3 = vcmp.gt.f32.partialorder %v6345_v1, 0.0  ;;  %v12940_v43 = vadd.f32 %v3493_v23, %v14306_v16  ;;  %v14311_v63 = vld [vmem:[#allocation218_spill] sm:$0xff] }
 0x470   :  { %v5998_v41 = vpop.f32.mrb[144].mxu0 }
 0x471   :  { %vm6410_vm4 = vcmp.gt.f32.partialorder %v6346_v49, 0.0  ;;  %v6474_v17 = vmul.f32 0.01, %v6346_v49  ;;  %v8120_v24 = vadd.f32 %v5998_v41, %v12779_v36  ;;  %v6000_v42 = vpop.f32.mrb[145].mxu0  ;;  %v6537_v30 = vsel %vm6409_vm3, %v6345_v1, %v6473_v48  ;;  %v14308_v36 = vld [vmem:[#allocation249_spill] sm:$0xff] }
 0x472   :  { %v6001_v55 = vpop.f32.mrb[146].mxu0  ;;  %v3208_v4 = vpop.f32.mrb[132].mxu1 }
 0x473   :  { %v6538_v62 = vsel %vm6410_vm4, %v6346_v49, %v6474_v17  ;;  %v6276_v57 = vmul.f32 %v8120_v24, %v12786_v53  ;;  %v8121_v13 = vadd.f32 %v6001_v55, %v12789_v25  ;;  %v6003_v5 = vpop.f32.mrb[147].mxu0  ;;  %v3498_v28 = vadd.f32 %v14307_v12, %v3208_v4  ;;  %v3210_v11 = vpop.f32.mrb[133].mxu1  ;;  %v14310_v25 = vld [vmem:[#allocation92_spill] sm:$0xff]  ;;  %v14312_v49 = vld [vmem:[#allocation211_spill] sm:$0xff] }
 0x474   :  { %v7649_v32 = vpack.c.bf16 %v6538_v62, %v6537_v30  ;;  %v3211_v31 = vpop.f32.mrb[134].mxu1  ;;  %v14314_v12 = vld [vmem:[#allocation235_spill] sm:$0xff] }
 0x475   :  { %v6347_v45 = vadd.f32 %v12795_v54, %v6276_v57  ;;  %v6277_v40 = vmul.f32 %v8121_v13, %v12786_v53  ;;  %v3650_v39 = vadd.f32 %v3498_v28, %v14308_v36  ;;  %v3501_v46 = vadd.f32 %v14309_v61, %v3211_v31  ;;  %v3213_v19 = vpop.f32.mrb[135].mxu1  ;;  %v14313_v57 = vld [vmem:[#allocation232_spill] sm:$0xff]  ;;  %v14315_v36 = vld [vmem:[#allocation250_spill] sm:$0xff] }
 0x476   :  { %7777 = vst [vmem:[#allocation2 + $0x38] sm:$0xff] %v7649_v32  }
 0x477   :  { %v6475_v47 = vmul.f32 0.01, %v6347_v45  ;;  %v6348_v29 = vadd.f32 %v12795_v54, %v6277_v40  ;;  %vm6411_vm5 = vcmp.gt.f32.partialorder %v6347_v45, 0.0  ;;  %v3651_v44 = vadd.f32 %v3501_v46, %v14310_v25 }
 0x478   :  { %v6006_v1 = vpop.f32.mrb[64].mxu0  ;;  %v5199_v9 = vadd.f32 %v14311_v63, %v3650_v39 }
 0x479   :  { %vm6412_vm6 = vcmp.gt.f32.partialorder %v6348_v29, 0.0  ;;  %v6476_v50 = vmul.f32 0.01, %v6348_v29  ;;  %v6207_v23 = vadd.f32 %v6006_v1, %v12812_v37  ;;  %v6008_v18 = vpop.f32.mrb[65].mxu0  ;;  %v5200_v41 = vadd.f32 %v14312_v49, %v3651_v44 }
 0x47a   :  { %v6009_v0 = vpop.f32.mrb[66].mxu0  ;;  %v12955_v48 = vadd.f32 %v12528_v58, %v5199_v9  ;;  %v6539_v16 = vsel %vm6411_vm5, %v6347_v45, %v6475_v47  ;;  %v3216_v42 = vpop.f32.mrb[136].mxu1  ;;  %v14316_v9 = vld [vmem:[#allocation231_spill] sm:$0xff] }
 0x47b   :  { %v6540_v17 = vsel %vm6412_vm6, %v6348_v29, %v6476_v50  ;;  %v6278_v24 = vmul.f32 %v12786_v53, %v6207_v23  ;;  %v6208_v55 = vadd.f32 %v6009_v0, %v12819_v51  ;;  %v6011_v30 = vpop.f32.mrb[67].mxu0  ;;  %v3506_v4 = vadd.f32 %v14313_v57, %v3216_v42  ;;  %v3218_v13 = vpop.f32.mrb[137].mxu1  ;;  %v14320_v57 = vld [vmem:[#allocation278_spill] sm:$0xff] }
 0x47c   :  { %v7654_v62 = vpack.c.bf16 %v6540_v17, %v6539_v16  ;;  %v12962_v37 = vadd.f32 %v12531_v2, %v5200_v41  ;;  %v3219_v32 = vpop.f32.mrb[138].mxu1  ;;  %v14318_v16 = vld [vmem:[#allocation233_spill] sm:$0xff] }
 0x47d   :  { %v6349_v58 = vadd.f32 %v12795_v54, %v6278_v24  ;;  %v6279_v5 = vmul.f32 %v12786_v53, %v6208_v55  ;;  %v3509_v28 = vadd.f32 %v14314_v12, %v3219_v32  ;;  %v3221_v11 = vpop.f32.mrb[139].mxu1  ;;  %v12968_v45 = vadd.f32 %v3506_v4, %v12412_v60 }
 0x47e   :  { %7778 = vst [vmem:[#allocation2 + $0x40] sm:$0xff] %v7654_v62  }
 0x47f   :  { %v6477_v51 = vmul.f32 0.01, %v6349_v58  ;;  %v6350_v40 = vadd.f32 %v12795_v54, %v6279_v5  ;;  %vm6413_vm7 = vcmp.gt.f32.partialorder %v6349_v58, 0.0  ;;  %v12972_v2 = vadd.f32 %v3509_v28, %v14315_v36  ;;  %v14321_v28 = vld [vmem:[#allocation279_spill] sm:$0xff] }
 0x480   :  { %v6014_v31 = vpop.f32.mrb[152].mxu0 }
 0x481   :  { %vm6414_vm8 = vcmp.gt.f32.partialorder %v6350_v40, 0.0  ;;  %v6478_v39 = vmul.f32 0.01, %v6350_v40  ;;  %v8122_v61 = vadd.f32 %v6014_v31, %v12828_v3  ;;  %v6016_v46 = vpop.f32.mrb[153].mxu0  ;;  %v6541_v47 = vsel %vm6413_vm7, %v6349_v58, %v6477_v51  ;;  %v14317_v3 = vld [vmem:[#allocation95_spill] sm:$0xff] }
 0x482   :  { %v6017_v19 = vpop.f32.mrb[154].mxu0  ;;  %v3224_v60 = vpop.f32.mrb[140].mxu1 }
 0x483   :  { %v6542_v29 = vsel %vm6414_vm8, %v6350_v40, %v6478_v39  ;;  %v6280_v25 = vmul.f32 %v8122_v61, %v12786_v53  ;;  %v8123_v44 = vadd.f32 %v6017_v19, %v12832_v35  ;;  %v6019_v1 = vpop.f32.mrb[155].mxu0  ;;  %v3514_v50 = vadd.f32 %v14316_v9, %v3224_v60  ;;  %v3226_v23 = vpop.f32.mrb[141].mxu1  ;;  %v14319_v35 = vld [vmem:[#allocation13_spill] sm:$0xff]  ;;  %v14322_v19 = vld [vmem:[#allocation238_spill] sm:$0xff] }
 0x484   :  { %v7659_v63 = vpack.c.bf16 %v6542_v29, %v6541_v47  ;;  %v3227_v49 = vpop.f32.mrb[142].mxu1 }
 0x485   :  { %v6351_v18 = vadd.f32 %v12795_v54, %v6280_v25  ;;  %v6281_v0 = vmul.f32 %v8123_v44, %v12786_v53  ;;  %v3654_v41 = vadd.f32 %v3514_v50, %v14317_v3  ;;  %v3517_v17 = vadd.f32 %v14318_v16, %v3227_v49  ;;  %v3229_v24 = vpop.f32.mrb[143].mxu1  ;;  %v14323_v44 = vld [vmem:[#allocation241_spill] sm:$0xff] }
 0x486   :  { %7779 = vst [vmem:[#allocation2 + $0x48] sm:$0xff] %v7659_v63  }
 0x487   :  { %v6479_v42 = vmul.f32 0.01, %v6351_v18  ;;  %v6352_v55 = vadd.f32 %v12795_v54, %v6281_v0  ;;  %vm6415_vm9 = vcmp.gt.f32.partialorder %v6351_v18, 0.0  ;;  %v3655_v30 = vadd.f32 %v3517_v17, %v14319_v35 }
 0x488   :  { %v6022_v62 = vpop.f32.mrb[68].mxu0  ;;  %v5203_v4 = vadd.f32 %v14320_v57, %v3654_v41 }
 0x489   :  { %vm6416_vm10 = vcmp.gt.f32.partialorder %v6352_v55, 0.0  ;;  %v6480_v13 = vmul.f32 0.01, %v6352_v55  ;;  %v6211_v58 = vadd.f32 %v6022_v62, %v12853_v33  ;;  %v6024_v5 = vpop.f32.mrb[69].mxu0  ;;  %v5204_v11 = vadd.f32 %v14321_v28, %v3655_v30  ;;  %v14325_v30 = vld [vmem:[#allocation237_spill] sm:$0xff] }
 0x48a   :  { %v6025_v32 = vpop.f32.mrb[70].mxu0  ;;  %v12987_v12 = vadd.f32 %v12560_v59, %v5203_v4  ;;  %v6543_v51 = vsel %vm6415_vm9, %v6351_v18, %v6479_v42  ;;  %v3232_v36 = vpop.f32.mrb[144].mxu1  ;;  %v14324_v18 = vld [vmem:[#allocation14_spill] sm:$0xff] }
 0x48b   :  { %v6544_v40 = vsel %vm6416_vm10, %v6352_v55, %v6480_v13  ;;  %v6282_v31 = vmul.f32 %v12786_v53, %v6211_v58  ;;  %v6212_v39 = vadd.f32 %v6025_v32, %v12860_v27  ;;  %v6027_v61 = vpop.f32.mrb[71].mxu0  ;;  %v3522_v47 = vadd.f32 %v14322_v19, %v3232_v36  ;;  %v3234_v29 = vpop.f32.mrb[145].mxu1  ;;  %v14327_v32 = vld [vmem:[#allocation239_spill] sm:$0xff] }
 0x48c   :  { %v7664_v46 = vpack.c.bf16 %v6544_v40, %v6543_v51  ;;  %v12994_v33 = vadd.f32 %v12563_v21, %v5204_v11  ;;  %v3235_v60 = vpop.f32.mrb[146].mxu1 }
 0x48d   :  { %v6353_v59 = vadd.f32 %v12795_v54, %v6282_v31  ;;  %v6283_v25 = vmul.f32 %v12786_v53, %v6212_v39  ;;  %v3525_v1 = vadd.f32 %v14323_v44, %v3235_v60  ;;  %v3237_v63 = vpop.f32.mrb[147].mxu1  ;;  %v13000_v9 = vadd.f32 %v3522_v47, %v12447_v56  ;;  %v14329_v39 = vld [vmem:[#allocation285_spill] sm:$0xff]  ;;  %v14331_v60 = vld [vmem:[#allocation286_spill] sm:$0xff] }
 0x48e   :  { %7780 = vst [vmem:[#allocation2 + $0x50] sm:$0xff] %v7664_v46  }
 0x48f   :  { %v6481_v27 = vmul.f32 0.01, %v6353_v59  ;;  %v6354_v50 = vadd.f32 %v12795_v54, %v6283_v25  ;;  %vm6417_vm11 = vcmp.gt.f32.partialorder %v6353_v59, 0.0  ;;  %v13004_v21 = vadd.f32 %v3525_v1, %v14324_v18 }
 0x490   :  { %v6030_v23 = vpop.f32.mrb[160].mxu0 }
 0x491   :  { %vm6418_vm12 = vcmp.gt.f32.partialorder %v6354_v50, 0.0  ;;  %v6482_v0 = vmul.f32 0.01, %v6354_v50  ;;  %v8124_v49 = vadd.f32 %v6030_v23, %v12868_v34  ;;  %v6032_v3 = vpop.f32.mrb[161].mxu0  ;;  %v6545_v16 = vsel %vm6417_vm11, %v6353_v59, %v6481_v27  ;;  %v14326_v34 = vld [vmem:[#allocation253_spill] sm:$0xff]  ;;  %v14330_v59 = vld [vmem:[#allocation26_spill] sm:$0xff] }
 0x492   :  { %v6033_v41 = vpop.f32.mrb[162].mxu0  ;;  %v3240_v56 = vpop.f32.mrb[148].mxu1 }
 0x493   :  { %v6546_v17 = vsel %vm6418_vm12, %v6354_v50, %v6482_v0  ;;  %v6284_v24 = vmul.f32 %v8124_v49, %v12786_v53  ;;  %v8125_v42 = vadd.f32 %v6033_v41, %v12872_v10  ;;  %v6035_v55 = vpop.f32.mrb[163].mxu0  ;;  %v3530_v62 = vadd.f32 %v14325_v30, %v3240_v56  ;;  %v3242_v57 = vpop.f32.mrb[149].mxu1  ;;  %v14328_v10 = vld [vmem:[#allocation91_spill] sm:$0xff]  ;;  %v14332_v49 = vld [vmem:[#allocation244_spill] sm:$0xff]  ;;  %v14335_v30 = vld [vmem:[#allocation93_spill] sm:$0xff] }
 0x494   :  { %v7669_v35 = vpack.c.bf16 %v6546_v17, %v6545_v16  ;;  %v3243_v58 = vpop.f32.mrb[150].mxu1 }
 0x495   :  { %v6355_v4 = vadd.f32 %v12795_v54, %v6284_v24  ;;  %v6285_v13 = vmul.f32 %v8125_v42, %v12786_v53  ;;  %v3658_v5 = vadd.f32 %v3530_v62, %v14326_v34  ;;  %v3533_v28 = vadd.f32 %v14327_v32, %v3243_v58  ;;  %v3245_v11 = vpop.f32.mrb[151].mxu1  ;;  %v14334_v42 = vld [vmem:[#allocation247_spill] sm:$0xff] }
 0x496   :  { %7781 = vst [vmem:[#allocation2 + $0x58] sm:$0xff] %v7669_v35  }
 0x497   :  { %v6483_v51 = vmul.f32 0.01, %v6355_v4  ;;  %v6356_v40 = vadd.f32 %v12795_v54, %v6285_v13  ;;  %vm6419_vm13 = vcmp.gt.f32.partialorder %v6355_v4, 0.0  ;;  %v3659_v31 = vadd.f32 %v3533_v28, %v14328_v10  ;;  %v14336_v13 = vld [vmem:[#allocation16_spill] sm:$0xff] }
 0x498   :  { %v6038_v36 = vpop.f32.mrb[72].mxu0  ;;  %v5207_v61 = vadd.f32 %v14329_v39, %v3658_v5 }
 0x499   :  { %vm6420_vm14 = vcmp.gt.f32.partialorder %v6356_v40, 0.0  ;;  %v6484_v46 = vmul.f32 0.01, %v6356_v40  ;;  %v6215_v19 = vadd.f32 %v6038_v36, %v12891_v52  ;;  %v6040_v47 = vpop.f32.mrb[73].mxu0  ;;  %v5208_v44 = vadd.f32 %v14331_v60, %v3659_v31  ;;  %v14333_v52 = vld [vmem:[#allocation28_spill] sm:$0xff] }
 0x49a   :  { %v6041_v29 = vpop.f32.mrb[74].mxu0  ;;  %v13019_v25 = vadd.f32 %v14330_v59, %v5207_v61  ;;  %v6547_v1 = vsel %vm6419_vm13, %v6355_v4, %v6483_v51  ;;  %v3248_v50 = vpop.f32.mrb[152].mxu1  ;;  %v14337_v61 = vld [vmem:[#allocation243_spill] sm:$0xff] }
 0x49b   :  { %v6548_v63 = vsel %vm6420_vm14, %v6356_v40, %v6484_v46  ;;  %v6286_v27 = vmul.f32 %v12786_v53, %v6215_v19  ;;  %v6216_v23 = vadd.f32 %v6041_v29, %v12898_v7  ;;  %v6043_v18 = vpop.f32.mrb[75].mxu0  ;;  %v3538_v3 = vadd.f32 %v14332_v49, %v3248_v50  ;;  %v3250_v41 = vpop.f32.mrb[153].mxu1 }
 0x49c   :  { %v7674_v0 = vpack.c.bf16 %v6548_v63, %v6547_v1  ;;  %v13026_v16 = vadd.f32 %v14333_v52, %v5208_v44  ;;  %v3251_v56 = vpop.f32.mrb[154].mxu1  ;;  %v14339_v44 = vld [vmem:[#allocation245_spill] sm:$0xff] }
 0x49d   :  { %v6357_v17 = vadd.f32 %v12795_v54, %v6286_v27  ;;  %v6287_v24 = vmul.f32 %v12786_v53, %v6216_v23  ;;  %v3541_v55 = vadd.f32 %v14334_v42, %v3251_v56  ;;  %v3253_v35 = vpop.f32.mrb[155].mxu1  ;;  %v13032_v62 = vadd.f32 %v3538_v3, %v14335_v30  ;;  %v14343_v42 = vld [vmem:[#allocation271_spill] sm:$0xff] }
 0x49e   :  { %7782 = vst [vmem:[#allocation2 + $0x60] sm:$0xff] %v7674_v0   ;;  %v14341_v0 = vld [vmem:[#allocation268_spill] sm:$0xff] }
 0x49f   :  { %v6485_v7 = vmul.f32 0.01, %v6357_v17  ;;  %v6358_v57 = vadd.f32 %v12795_v54, %v6287_v24  ;;  %vm6421_vm15 = vcmp.gt.f32.partialorder %v6357_v17, 0.0  ;;  %v13036_v58 = vadd.f32 %v3541_v55, %v14336_v13  ;;  %v14342_v24 = vld [vmem:[#allocation30_spill] sm:$0xff] }
 0x4a0   :  { %v6046_v4 = vpop.f32.mrb[168].mxu0 }
 0x4a1   :  { %vm6422_vm0 = vcmp.gt.f32.partialorder %v6358_v57, 0.0  ;;  %v6486_v34 = vmul.f32 0.01, %v6358_v57  ;;  %v8126_v5 = vadd.f32 %v6046_v4, %v12904_v6  ;;  %v6048_v32 = vpop.f32.mrb[169].mxu0  ;;  %v6549_v11 = vsel %vm6421_vm15, %v6357_v17, %v6485_v7  ;;  %v14338_v6 = vld [vmem:[#allocation17_spill] sm:$0xff] }
 0x4a2   :  { %v6049_v28 = vpop.f32.mrb[170].mxu0  ;;  %v3256_v10 = vpop.f32.mrb[156].mxu1  ;;  %v14344_v32 = vld [vmem:[#allocation84_spill] sm:$0xff] }
 0x4a3   :  { %v6550_v51 = vsel %vm6422_vm0, %v6358_v57, %v6486_v34  ;;  %v6288_v40 = vmul.f32 %v8126_v5, %v12786_v53  ;;  %v8127_v31 = vadd.f32 %v6049_v28, %v12908_v26  ;;  %v6051_v36 = vpop.f32.mrb[171].mxu0  ;;  %v3546_v46 = vadd.f32 %v14337_v61, %v3256_v10  ;;  %v3258_v19 = vpop.f32.mrb[157].mxu1  ;;  %v14340_v26 = vld [vmem:[#allocation102_spill] sm:$0xff] }
 0x4a4   :  { %v7679_v39 = vpack.c.bf16 %v6550_v51, %v6549_v11  ;;  %v3259_v59 = vpop.f32.mrb[158].mxu1 }
 0x4a5   :  { %v6359_v47 = vadd.f32 %v12795_v54, %v6288_v40  ;;  %v6289_v29 = vmul.f32 %v8127_v31, %v12786_v53  ;;  %v3662_v60 = vadd.f32 %v3546_v46, %v14338_v6  ;;  %v3549_v1 = vadd.f32 %v14339_v44, %v3259_v59  ;;  %v3261_v63 = vpop.f32.mrb[159].mxu1 }
 0x4a6   :  { %7783 = vst [vmem:[#allocation2 + $0x68] sm:$0xff] %v7679_v39  }
 0x4a7   :  { %v6487_v27 = vmul.f32 0.01, %v6359_v47  ;;  %v6360_v50 = vadd.f32 %v12795_v54, %v6289_v29  ;;  %vm6423_vm1 = vcmp.gt.f32.partialorder %v6359_v47, 0.0  ;;  %v3663_v23 = vadd.f32 %v3549_v1, %v14340_v26 }
 0x4a8   :  { %v6054_v18 = vpop.f32.mrb[76].mxu0  ;;  %v5211_v49 = vadd.f32 %v14341_v0, %v3662_v60 }
 0x4a9   :  { %vm6424_vm2 = vcmp.gt.f32.partialorder %v6360_v50, 0.0  ;;  %v6488_v3 = vmul.f32 0.01, %v6360_v50  ;;  %v6219_v41 = vadd.f32 %v6054_v18, %v12923_v15  ;;  %v6056_v52 = vpop.f32.mrb[77].mxu0  ;;  %v5212_v55 = vadd.f32 %v14343_v42, %v3663_v23 }
 0x4aa   :  { %v6057_v17 = vpop.f32.mrb[78].mxu0  ;;  %v13051_v56 = vadd.f32 %v14342_v24, %v5211_v49  ;;  %v6551_v35 = vsel %vm6423_vm1, %v6359_v47, %v6487_v27  ;;  %v13055_v57 = vpop.f32.mrb[160].mxu1 }
 0x4ab   :  { %v6552_v30 = vsel %vm6424_vm2, %v6360_v50, %v6488_v3  ;;  %v6290_v7 = vmul.f32 %v12786_v53, %v6219_v41  ;;  %v6220_v4 = vadd.f32 %v6057_v17, %v12930_v38  ;;  %v6059_v13 = vpop.f32.mrb[79].mxu0  ;;  %v3266_v5 = vpop.f32.mrb[161].mxu1  ;;  %v13059_v15 = vadd.f32 %v14344_v32, %v5212_v55 }
 0x4ac   :  { %v7684_v34 = vpack.c.bf16 %v6552_v30, %v6551_v35  ;;  %v13063_v51 = vpop.f32.mrb[162].mxu1 }
 0x4ad   :  { %v6361_v28 = vadd.f32 %v12795_v54, %v6290_v7  ;;  %v6291_v11 = vmul.f32 %v12786_v53, %v6220_v4  ;;  %v3269_v40 = vpop.f32.mrb[163].mxu1 }
 0x4ae   :  { %7784 = vst [vmem:[#allocation2 + $0x70] sm:$0xff] %v7684_v34  }
 0x4af   :  { %v6489_v10 = vmul.f32 0.01, %v6361_v28  ;;  %v6362_v31 = vadd.f32 %v12795_v54, %v6291_v11  ;;  %vm6425_vm3 = vcmp.gt.f32.partialorder %v6361_v28, 0.0 }
 0x4b0   :  { %v6062_v36 = vpop.f32.mrb[176].mxu0 }
 0x4b1   :  { %vm6426_vm4 = vcmp.gt.f32.partialorder %v6362_v31, 0.0  ;;  %v6490_v38 = vmul.f32 0.01, %v6362_v31  ;;  %v8128_v39 = vadd.f32 %v6062_v36, %v12936_v14  ;;  %v6064_v61 = vpop.f32.mrb[177].mxu0  ;;  %v6553_v19 = vsel %vm6425_vm3, %v6361_v28, %v6489_v10 }
 0x4b2   :  { %v6065_v46 = vpop.f32.mrb[178].mxu0  ;;  %v13068_v59 = vpop.f32.mrb[164].mxu1 }
 0x4b3   :  { %v6554_v47 = vsel %vm6426_vm4, %v6362_v31, %v6490_v38  ;;  %v6292_v29 = vmul.f32 %v8128_v39, %v12786_v53  ;;  %v8129_v6 = vadd.f32 %v6065_v46, %v12940_v43  ;;  %v6067_v60 = vpop.f32.mrb[179].mxu0  ;;  %v3274_v1 = vpop.f32.mrb[165].mxu1 }
 0x4b4   :  { %v7689_v44 = vpack.c.bf16 %v6554_v47, %v6553_v19  ;;  %v13073_v50 = vpop.f32.mrb[166].mxu1 }
 0x4b5   :  { %v6363_v63 = vadd.f32 %v12795_v54, %v6292_v29  ;;  %v6293_v27 = vmul.f32 %v8129_v6, %v12786_v53  ;;  %v3277_v14 = vpop.f32.mrb[167].mxu1  ;;  %v13095_v29 = vld [vmem:[%s13265_s4] ss:$0 sm:$0xff]  ;;  %s8651_s4 = smov [#allocation2]  }
 0x4b6   :  { %7785 = vst [vmem:[#allocation2 + $0x78] sm:$0xff] %v7689_v44  }
 0x4b7   :  { %v6491_v26 = vmul.f32 0.01, %v6363_v63  ;;  %v6364_v23 = vadd.f32 %v12795_v54, %v6293_v27  ;;  %vm6427_vm5 = vcmp.gt.f32.partialorder %v6363_v63, 0.0 }
 0x4b8   :  { %v6070_v18 = vpop.f32.mrb[80].mxu0 }
 0x4b9   :  { %vm6428_vm6 = vcmp.gt.f32.partialorder %v6364_v23, 0.0  ;;  %v6492_v0 = vmul.f32 0.01, %v6364_v23  ;;  %v6223_v43 = vadd.f32 %v6070_v18, %v12955_v48  ;;  %v6072_v49 = vpop.f32.mrb[81].mxu0  ;;  %v6555_v41 = vsel %vm6427_vm5, %v6363_v63, %v6491_v26 }
 0x4ba   :  { %v6073_v3 = vpop.f32.mrb[82].mxu0  ;;  %v13078_v24 = vpop.f32.mrb[168].mxu1 }
 0x4bb   :  { %v6556_v52 = vsel %vm6428_vm6, %v6364_v23, %v6492_v0  ;;  %v6294_v17 = vmul.f32 %v12786_v53, %v6223_v43  ;;  %v6224_v42 = vadd.f32 %v6073_v3, %v12962_v37  ;;  %v6075_v55 = vpop.f32.mrb[83].mxu0  ;;  %v3282_v30 = vpop.f32.mrb[169].mxu1 }
 0x4bc   :  { %v7694_v35 = vpack.c.bf16 %v6556_v52, %v6555_v41  ;;  %v13083_v13 = vpop.f32.mrb[170].mxu1 }
 0x4bd   :  { %v6365_v7 = vadd.f32 %v12795_v54, %v6294_v17  ;;  %v6295_v4 = vmul.f32 %v12786_v53, %v6224_v42  ;;  %v3285_v48 = vpop.f32.mrb[171].mxu1 }
 0x4be   :  { %7786 = vst [vmem:[#allocation2 + $0x80] sm:$0xff] %v7694_v35  }
 0x4bf   :  { %v6493_v34 = vmul.f32 0.01, %v6365_v7  ;;  %v6366_v5 = vadd.f32 %v12795_v54, %v6295_v4  ;;  %vm6429_vm7 = vcmp.gt.f32.partialorder %v6365_v7, 0.0 }
 0x4c0   :  { %v6078_v32 = vpop.f32.mrb[184].mxu0 }
 0x4c1   :  { %vm6430_vm8 = vcmp.gt.f32.partialorder %v6366_v5, 0.0  ;;  %v6494_v28 = vmul.f32 0.01, %v6366_v5  ;;  %v8130_v37 = vadd.f32 %v6078_v32, %v12968_v45  ;;  %v6080_v11 = vpop.f32.mrb[185].mxu0  ;;  %v6557_v10 = vsel %vm6429_vm7, %v6365_v7, %v6493_v34 }
 0x4c2   :  { %v6081_v40 = vpop.f32.mrb[186].mxu0  ;;  %v13088_v38 = vpop.f32.mrb[172].mxu1 }
 0x4c3   :  { %v6558_v31 = vsel %vm6430_vm8, %v6366_v5, %v6494_v28  ;;  %v6296_v36 = vmul.f32 %v8130_v37, %v12786_v53  ;;  %v8131_v39 = vadd.f32 %v6081_v40, %v12972_v2  ;;  %v6083_v61 = vpop.f32.mrb[187].mxu0  ;;  %v3290_v19 = vpop.f32.mrb[173].mxu1  ;;  %v13103_v2 = vld [vmem:[%s13266_s5] ss:$0 sm:$0xff]  ;;  %s6912_s5 = sshll.u32 %s8651_s4, 4  ;;  %s6913_s5 = int_to_ptr.vmem [resolvable:$true] %s6912_s5 }
 0x4c4   :  { %v7699_v46 = vpack.c.bf16 %v6558_v31, %v6557_v10  ;;  %v13098_v6 = vpop.f32.mrb[174].mxu1  ;;  %s8624_s29 = scalar_lea.vmem %s6913_s5, 4096  ;;  %p8629_p1 = scmp.lt.s32.totalorder %s6913_s5, %s6913_s5 }
 0x4c5   :  { %v6367_v47 = vadd.f32 %v12795_v54, %v6296_v36  ;;  %v6297_v45 = vmul.f32 %v13095_v29, %v8131_v39  ;;  %v3293_v53 = vpop.f32.mrb[175].mxu1  ;;  %p8625_p0 = scmp.ne.s32.totalorder %s6913_s5, %s8624_s29  ;;  %p8630_p2 = scmp.lt.s32.totalorder %s8624_s29, %s8624_s29 }
 0x4c6   :  { %7787 = vst [vmem:[#allocation2 + $0x88] sm:$0xff] %v7699_v46  }
 0x4c7   :  { %v6495_v60 = vmul.f32 0.01, %v6367_v47  ;;  %v6368_v44 = vadd.f32 %v13103_v2, %v6297_v45  ;;  %vm6431_vm9 = vcmp.gt.f32.partialorder %v6367_v47, 0.0  ;;  %p8631_p3 = por %p8630_p2, %p8629_p1 }
 0x4c8   :  { %v6086_v54 = vpop.f32.mrb[84].mxu0 }
 0x4c9   :  { %vm6432_vm10 = vcmp.gt.f32.partialorder %v6368_v44, 0.0  ;;  %v6496_v1 = vmul.f32 0.01, %v6368_v44  ;;  %v6227_v63 = vadd.f32 %v6086_v54, %v12987_v12  ;;  %v6088_v27 = vpop.f32.mrb[85].mxu0  ;;  %v6559_v26 = vsel %vm6431_vm9, %v6367_v47, %v6495_v60  ;;  %p8632_p4 = pnand %p8631_p3, %p8625_p0 }
 0x4ca   :  { %v6089_v14 = vpop.f32.mrb[86].mxu0  ;;  %v13108_v0 = vpop.f32.mrb[176].mxu1 }
 0x4cb   :  { %v6560_v23 = vsel %vm6432_vm10, %v6368_v44, %v6496_v1  ;;  %v6298_v18 = vmul.f32 %v13095_v29, %v6227_v63  ;;  %v6228_v43 = vadd.f32 %v6089_v14, %v12994_v33  ;;  %v6091_v49 = vpop.f32.mrb[87].mxu0  ;;  %v3298_v41 = vpop.f32.mrb[177].mxu1 }
 0x4cc   :  { %v7704_v3 = vpack.c.bf16 %v6560_v23, %v6559_v26  ;;  %v13113_v42 = vpop.f32.mrb[178].mxu1 }
 0x4cd   :  { %v6369_v52 = vadd.f32 %v13103_v2, %v6298_v18  ;;  %v6299_v17 = vmul.f32 %v13095_v29, %v6228_v43  ;;  %v3301_v12 = vpop.f32.mrb[179].mxu1 }
 0x4ce   :  { %7788 = vst [vmem:[#allocation2 + $0x90] sm:$0xff] %v7704_v3  }
 0x4cf   :  { %v6497_v55 = vmul.f32 0.01, %v6369_v52  ;;  %v6370_v35 = vadd.f32 %v13103_v2, %v6299_v17  ;;  %vm6433_vm11 = vcmp.gt.f32.partialorder %v6369_v52, 0.0 }
 0x4d0   :  { %v6094_v30 = vpop.f32.mrb[192].mxu0 }
 0x4d1   :  { %vm6434_vm12 = vcmp.gt.f32.partialorder %v6370_v35, 0.0  ;;  %v6498_v7 = vmul.f32 0.01, %v6370_v35  ;;  %v8132_v33 = vadd.f32 %v6094_v30, %v13000_v9  ;;  %v6096_v4 = vpop.f32.mrb[193].mxu0  ;;  %v6561_v34 = vsel %vm6433_vm11, %v6369_v52, %v6497_v55 }
 0x4d2   :  { %v6097_v48 = vpop.f32.mrb[194].mxu0  ;;  %v13118_v28 = vpop.f32.mrb[180].mxu1 }
 0x4d3   :  { %v6562_v5 = vsel %vm6434_vm12, %v6370_v35, %v6498_v7  ;;  %v6300_v32 = vmul.f32 %v13095_v29, %v8132_v33  ;;  %v8133_v37 = vadd.f32 %v6097_v48, %v13004_v21  ;;  %v6099_v11 = vpop.f32.mrb[195].mxu0  ;;  %v3306_v10 = vpop.f32.mrb[181].mxu1 }
 0x4d4   :  { %v7709_v40 = vpack.c.bf16 %v6562_v5, %v6561_v34  ;;  %v13123_v39 = vpop.f32.mrb[182].mxu1 }
 0x4d5   :  { %v6371_v31 = vadd.f32 %v13103_v2, %v6300_v32  ;;  %v6301_v36 = vmul.f32 %v13095_v29, %v8133_v37  ;;  %v3309_v9 = vpop.f32.mrb[183].mxu1 }
 0x4d6   :  { %7789 = vst [vmem:[#allocation2 + $0x98] sm:$0xff] %v7709_v40  }
 0x4d7   :  { %v6499_v61 = vmul.f32 0.01, %v6371_v31  ;;  %v6372_v46 = vadd.f32 %v13103_v2, %v6301_v36  ;;  %vm6435_vm13 = vcmp.gt.f32.partialorder %v6371_v31, 0.0 }
 0x4d8   :  { %v6102_v19 = vpop.f32.mrb[88].mxu0 }
 0x4d9   :  { %vm6436_vm14 = vcmp.gt.f32.partialorder %v6372_v46, 0.0  ;;  %v6500_v47 = vmul.f32 0.01, %v6372_v46  ;;  %v6231_v21 = vadd.f32 %v6102_v19, %v13019_v25  ;;  %v6104_v45 = vpop.f32.mrb[89].mxu0  ;;  %v6563_v60 = vsel %vm6435_vm13, %v6371_v31, %v6499_v61 }
 0x4da   :  { %v6105_v53 = vpop.f32.mrb[90].mxu0  ;;  %v13128_v1 = vpop.f32.mrb[184].mxu1 }
 0x4db   :  { %v6564_v44 = vsel %vm6436_vm14, %v6372_v46, %v6500_v47  ;;  %v6302_v54 = vmul.f32 %v13095_v29, %v6231_v21  ;;  %v6232_v63 = vadd.f32 %v6105_v53, %v13026_v16  ;;  %v6107_v27 = vpop.f32.mrb[91].mxu0  ;;  %v3314_v26 = vpop.f32.mrb[185].mxu1 }
 0x4dc   :  { %v7714_v14 = vpack.c.bf16 %v6564_v44, %v6563_v60  ;;  %v13133_v43 = vpop.f32.mrb[186].mxu1 }
 0x4dd   :  { %v6373_v23 = vadd.f32 %v13103_v2, %v6302_v54  ;;  %v6303_v18 = vmul.f32 %v13095_v29, %v6232_v63  ;;  %v3317_v25 = vpop.f32.mrb[187].mxu1 }
 0x4de   :  { %7790 = vst [vmem:[#allocation2 + $0xa0] sm:$0xff] %v7714_v14   ;;  %v14345_v14 = vld [vmem:[#allocation20_spill] sm:$0xff] }
 0x4df   :  { %v6501_v49 = vmul.f32 0.01, %v6373_v23  ;;  %v6374_v3 = vadd.f32 %v13103_v2, %v6303_v18  ;;  %vm6437_vm15 = vcmp.gt.f32.partialorder %v6373_v23, 0.0 }
 0x4e0   :  { %v6110_v41 = vpop.f32.mrb[200].mxu0 }
 0x4e1   :  { %vm6438_vm0 = vcmp.gt.f32.partialorder %v6374_v3, 0.0  ;;  %v6502_v52 = vmul.f32 0.01, %v6374_v3  ;;  %v8134_v16 = vadd.f32 %v6110_v41, %v13032_v62  ;;  %v6112_v17 = vpop.f32.mrb[201].mxu0  ;;  %v6565_v55 = vsel %vm6437_vm15, %v6373_v23, %v6501_v49  ;;  %v14347_v41 = vld [vmem:[#allocation105_spill] sm:$0xff] }
 0x4e2   :  { %v6113_v12 = vpop.f32.mrb[202].mxu0  ;;  %v13139_v4 = vpop.f32.mrb[188].mxu1  ;;  %v14348_v17 = vld [vmem:[#allocation63_spill] sm:$0xff] }
 0x4e3   :  { %v6566_v35 = vsel %vm6438_vm0, %v6374_v3, %v6502_v52  ;;  %v6304_v30 = vmul.f32 %v13095_v29, %v8134_v16  ;;  %v8135_v7 = vadd.f32 %v6113_v12, %v13036_v58  ;;  %v6115_v33 = vpop.f32.mrb[203].mxu0  ;;  %v3322_v34 = vpop.f32.mrb[189].mxu1 }
 0x4e4   :  { %v7719_v48 = vpack.c.bf16 %v6566_v35, %v6565_v55  ;;  %v13143_v37 = vpop.f32.mrb[190].mxu1  ;;  %v14349_v35 = vld [vmem:[#allocation19_spill] sm:$0xff]  ;;  %v14350_v33 = vld [vmem:[#allocation122_spill] sm:$0xff] }
 0x4e5   :  { %v6375_v5 = vadd.f32 %v13103_v2, %v6304_v30  ;;  %v6305_v32 = vmul.f32 %v13095_v29, %v8135_v7  ;;  %v3325_v62 = vpop.f32.mrb[191].mxu1  ;;  %v14351_v34 = vld [vmem:[#allocation87_spill] sm:$0xff] }
 0x4e6   :  { %7791 = vst [vmem:[#allocation2 + $0xa8] sm:$0xff] %v7719_v48  }
 0x4e7   :  { %v6503_v11 = vmul.f32 0.01, %v6375_v5  ;;  %v6376_v40 = vadd.f32 %v13103_v2, %v6305_v32  ;;  %vm6439_vm1 = vcmp.gt.f32.partialorder %v6375_v5, 0.0 }
 0x4e8   :  { %v6118_v10 = vpop.f32.mrb[92].mxu0 }
 0x4e9   :  { %vm6440_vm2 = vcmp.gt.f32.partialorder %v6376_v40, 0.0  ;;  %v6504_v58 = vmul.f32 0.01, %v6376_v40  ;;  %v6235_v31 = vadd.f32 %v6118_v10, %v13051_v56  ;;  %v6120_v36 = vpop.f32.mrb[93].mxu0  ;;  %v6567_v61 = vsel %vm6439_vm1, %v6375_v5, %v6503_v11 }
 0x4ea   :  { %v6121_v9 = vpop.f32.mrb[94].mxu0  ;;  %v8094_v47 = vpop.f32.mrb[192].mxu1 }
 0x4eb   :  { %v6568_v46 = vsel %vm6440_vm2, %v6376_v40, %v6504_v58  ;;  %v6306_v19 = vmul.f32 %v13095_v29, %v6235_v31  ;;  %v6236_v21 = vadd.f32 %v6121_v9, %v13059_v15  ;;  %v6123_v45 = vpop.f32.mrb[95].mxu0  ;;  %v3562_v60 = vadd.f32 %v8094_v47, %v13068_v59  ;;  %v3553_v44 = vpop.f32.mrb[193].mxu1  ;;  %v14346_v59 = vld [vmem:[#allocation260_spill] sm:$0xff]  ;;  %v14352_v9 = vld [vmem:[#allocation86_spill] sm:$0xff] }
 0x4ec   :  { %v7724_v53 = vpack.c.bf16 %v6568_v46, %v6567_v61  ;;  %v3554_v56 = vadd.f32 %v3553_v44, %v13055_v57  ;;  %v8095_v27 = vpop.f32.mrb[194].mxu1  ;;  %v14353_v45 = vld [vmem:[#allocation269_spill] sm:$0xff] }
 0x4ed   :  { %v6377_v54 = vadd.f32 %v13103_v2, %v6306_v19  ;;  %v6307_v63 = vmul.f32 %v13095_v29, %v6236_v21  ;;  %v3666_v26 = vadd.f32 %v3562_v60, %v14345_v14  ;;  %v3565_v23 = vadd.f32 %v8095_v27, %v13073_v50  ;;  %v3556_v18 = vpop.f32.mrb[195].mxu1  ;;  %v14355_v14 = vld [vmem:[#allocation103_spill] sm:$0xff] }
 0x4ee   :  { %7792 = vst [vmem:[#allocation2 + $0xb0] sm:$0xff] %v7724_v53   ;;  %v3557_v49 = vadd.f32 %v3556_v18, %v13063_v51  ;;  %v3664_v52 = vadd.f32 %v3554_v56, %v14347_v41 }
 0x4ef   :  { %v6505_v25 = vmul.f32 0.01, %v6377_v54  ;;  %v6378_v15 = vadd.f32 %v13103_v2, %v6307_v63  ;;  %vm6441_vm3 = vcmp.gt.f32.partialorder %v6377_v54, 0.0  ;;  %v3667_v3 = vadd.f32 %v3565_v23, %v14346_v59  ;;  %v14354_v63 = vld [vmem:[#allocation101_spill] sm:$0xff]  ;;  %v14356_v23 = vld [vmem:[#allocation67_spill] sm:$0xff]  ;;  %v14357_v59 = vld [vmem:[#allocation266_spill] sm:$0xff] }
 0x4f0   :  { %v6126_v16 = vpop.f32.mrb[208].mxu0  ;;  %v5215_v57 = vadd.f32 %v14348_v17, %v3666_v26  ;;  %v3665_v30 = vadd.f32 %v3557_v49, %v14349_v35 }
 0x4f1   :  { %vm6442_vm4 = vcmp.gt.f32.partialorder %v6378_v15, 0.0  ;;  %v6506_v12 = vmul.f32 0.01, %v6378_v15  ;;  %v6128_v55 = vpop.f32.mrb[209].mxu0  ;;  %v8136_v50 = vadd.f32 %v6126_v16, %v3664_v52  ;;  %v5216_v5 = vadd.f32 %v14351_v34, %v3667_v3 }
 0x4f2   :  { %v6129_v7 = vpop.f32.mrb[210].mxu0  ;;  %v5727_v48 = vadd.f32 %v14350_v33, %v5215_v57  ;;  %v6569_v51 = vsel %vm6441_vm3, %v6377_v54, %v6505_v25  ;;  %v8098_v62 = vpop.f32.mrb[196].mxu1 }
 0x4f3   :  { %v6570_v32 = vsel %vm6442_vm4, %v6378_v15, %v6506_v12  ;;  %v8137_v11 = vadd.f32 %v6129_v7, %v3665_v30  ;;  %v6131_v40 = vpop.f32.mrb[211].mxu0  ;;  %v6308_v58 = vmul.f32 %v13095_v29, %v8136_v50  ;;  %v3578_v31 = vadd.f32 %v8098_v62, %v13088_v38  ;;  %v3569_v36 = vpop.f32.mrb[197].mxu1 }
 0x4f4   :  { %v7729_v10 = vpack.c.bf16 %v6570_v32, %v6569_v51  ;;  %v5728_v61 = vadd.f32 %v14352_v9, %v5216_v5  ;;  %v3570_v19 = vadd.f32 %v3569_v36, %v13078_v24  ;;  %v8099_v47 = vpop.f32.mrb[198].mxu1  ;;  %v14359_v51 = vld [vmem:[#allocation112_spill] sm:$0xff]  ;;  %v14361_v36 = vld [vmem:[#allocation23_spill] sm:$0xff] }
 0x4f5   :  { %v6309_v46 = vmul.f32 %v13095_v29, %v8137_v11  ;;  %v6379_v21 = vadd.f32 %v13103_v2, %v6308_v58  ;;  %v3670_v53 = vadd.f32 %v3578_v31, %v14353_v45  ;;  %v3581_v60 = vadd.f32 %v8099_v47, %v13098_v6  ;;  %v3572_v44 = vpop.f32.mrb[199].mxu1 }
 0x4f6   :  { %7793 = vst [vmem:[#allocation2 + $0xb8] sm:$0xff] %v7729_v10   ;;  %v3573_v38 = vadd.f32 %v3572_v44, %v13083_v13  ;;  %v3668_v56 = vadd.f32 %v3570_v19, %v14354_v63  ;;  %v14358_v13 = vld [vmem:[#allocation69_spill] sm:$0xff] }
 0x4f7   :  { %v6380_v54 = vadd.f32 %v13103_v2, %v6309_v46  ;;  %vm6443_vm5 = vcmp.gt.f32.partialorder %v6379_v21, 0.0  ;;  %v6507_v27 = vmul.f32 0.01, %v6379_v21  ;;  %v3671_v26 = vadd.f32 %v3581_v60, %v14355_v14  ;;  %v14364_v60 = vld [vmem:[#allocation108_spill] sm:$0xff] }
 0x4f8   :  { %v6134_v24 = vpop.f32.mrb[96].mxu0  ;;  %v5219_v18 = vadd.f32 %v14356_v23, %v3670_v53  ;;  %v3669_v6 = vadd.f32 %v3573_v38, %v14357_v59  ;;  %v14365_v23 = vld [vmem:[#allocation125_spill] sm:$0xff] }
 0x4f9   :  { %vm6444_vm6 = vcmp.gt.f32.partialorder %v6380_v54, 0.0  ;;  %v6508_v25 = vmul.f32 0.01, %v6380_v54  ;;  %v6239_v15 = vadd.f32 %v6134_v24, %v5727_v48  ;;  %v6136_v49 = vpop.f32.mrb[97].mxu0  ;;  %v5220_v52 = vadd.f32 %v14358_v13, %v3671_v26  ;;  %v14366_v59 = vld [vmem:[#allocation113_spill] sm:$0xff] }
 0x4fa   :  { %v6137_v3 = vpop.f32.mrb[98].mxu0  ;;  %v13178_v41 = vadd.f32 %v12685_v8, %v5219_v18  ;;  %v6571_v16 = vsel %vm6443_vm5, %v6379_v21, %v6507_v27  ;;  %v8102_v12 = vpop.f32.mrb[200].mxu1 }
 0x4fb   :  { %v6572_v17 = vsel %vm6444_vm6, %v6380_v54, %v6508_v25  ;;  %v6310_v57 = vmul.f32 %v13095_v29, %v6239_v15  ;;  %v6240_v55 = vadd.f32 %v6137_v3, %v5728_v61  ;;  %v6139_v35 = vpop.f32.mrb[99].mxu0  ;;  %v3594_v50 = vadd.f32 %v8102_v12, %v13118_v28  ;;  %v3585_v7 = vpop.f32.mrb[201].mxu1  ;;  %v14362_v61 = vld [vmem:[#allocation66_spill] sm:$0xff] }
 0x4fc   :  { %v7734_v30 = vpack.c.bf16 %v6572_v17, %v6571_v16  ;;  %v5732_v33 = vadd.f32 %v12688_v22, %v5220_v52  ;;  %v3586_v34 = vadd.f32 %v3585_v7, %v13108_v0  ;;  %v8103_v5 = vpop.f32.mrb[202].mxu1  ;;  %v14360_v22 = vld [vmem:[#allocation115_spill] sm:$0xff]  ;;  %v14367_v17 = vld [vmem:[#allocation29_spill] sm:$0xff] }
 0x4fd   :  { %v6381_v48 = vadd.f32 %v13103_v2, %v6310_v57  ;;  %v6311_v8 = vmul.f32 %v13095_v29, %v6240_v55  ;;  %v3674_v32 = vadd.f32 %v3594_v50, %v14359_v51  ;;  %v3597_v62 = vadd.f32 %v8103_v5, %v13123_v39  ;;  %v3588_v11 = vpop.f32.mrb[203].mxu1  ;;  %v14363_v39 = vld [vmem:[#allocation25_spill] sm:$0xff]  ;;  %v14368_v55 = vld [vmem:[#allocation111_spill] sm:$0xff] }
 0x4fe   :  { %7794 = vst [vmem:[#allocation2 + $0xc0] sm:$0xff] %v7734_v30   ;;  %v3589_v28 = vadd.f32 %v3588_v11, %v13113_v42  ;;  %v3672_v9 = vadd.f32 %v3586_v34, %v14361_v36  ;;  %v14369_v30 = vld [vmem:[#allocation77_spill] sm:$0xff]  ;;  %v14371_v5 = vld [vmem:[#allocation31_spill] sm:$0xff] }
 0x4ff   :  { %v6509_v40 = vmul.f32 0.01, %v6381_v48  ;;  %v6382_v10 = vadd.f32 %v13103_v2, %v6311_v8  ;;  %vm6445_vm7 = vcmp.gt.f32.partialorder %v6381_v48, 0.0  ;;  %v3675_v58 = vadd.f32 %v3597_v62, %v14360_v22  ;;  %v14370_v8 = vld [vmem:[#allocation78_spill] sm:$0xff] }
 0x500   :  { %v6142_v31 = vpop.f32.mrb[216].mxu0  ;;  %v5223_v0 = vadd.f32 %v14362_v61, %v3674_v32  ;;  %v3673_v45 = vadd.f32 %v3589_v28, %v14363_v39 }
 0x501   :  { %vm6446_vm8 = vcmp.gt.f32.partialorder %v6382_v10, 0.0  ;;  %v6510_v46 = vmul.f32 0.01, %v6382_v10  ;;  %v8138_v19 = vadd.f32 %v6142_v31, %v3668_v56  ;;  %v6144_v47 = vpop.f32.mrb[217].mxu0  ;;  %v5224_v42 = vadd.f32 %v14364_v60, %v3675_v58  ;;  %v14373_v58 = vld [vmem:[#allocation32_spill] sm:$0xff] }
 0x502   :  { %v6145_v21 = vpop.f32.mrb[218].mxu0  ;;  %v13196_v53 = vadd.f32 %v12721_v20, %v5223_v0  ;;  %v6573_v44 = vsel %vm6445_vm7, %v6381_v48, %v6509_v40  ;;  %v8106_v63 = vpop.f32.mrb[204].mxu1 }
 0x503   :  { %v6574_v54 = vsel %vm6446_vm8, %v6382_v10, %v6510_v46  ;;  %v6312_v38 = vmul.f32 %v13095_v29, %v8138_v19  ;;  %v8139_v27 = vadd.f32 %v6145_v21, %v3669_v6  ;;  %v6147_v14 = vpop.f32.mrb[219].mxu0  ;;  %v3610_v24 = vadd.f32 %v8106_v63, %v13139_v4  ;;  %v3601_v56 = vpop.f32.mrb[205].mxu1 }
 0x504   :  { %v7739_v26 = vpack.c.bf16 %v6574_v54, %v6573_v44  ;;  %v13202_v18 = vadd.f32 %v14365_v23, %v5224_v42  ;;  %v3602_v15 = vadd.f32 %v3601_v56, %v13128_v1  ;;  %v8107_v49 = vpop.f32.mrb[206].mxu1 }
 0x505   :  { %v6383_v25 = vadd.f32 %v13103_v2, %v6312_v38  ;;  %v6313_v20 = vmul.f32 %v13095_v29, %v8139_v27  ;;  %v3678_v3 = vadd.f32 %v3610_v24, %v14366_v59  ;;  %v3613_v6 = vadd.f32 %v8107_v49, %v13143_v37  ;;  %v3604_v13 = vpop.f32.mrb[207].mxu1 }
 0x506   :  { %7795 = vst [vmem:[#allocation2 + $0xc8] sm:$0xff] %v7739_v26   ;;  %v3605_v16 = vadd.f32 %v3604_v13, %v13133_v43  ;;  %v3676_v35 = vadd.f32 %v3602_v15, %v14368_v55  ;;  %v14372_v43 = vld [vmem:[#allocation5_spill] sm:$0xff] }
 0x507   :  { %v6511_v52 = vmul.f32 0.01, %v6383_v25  ;;  %v6384_v4 = vadd.f32 %v13103_v2, %v6313_v20  ;;  %vm6447_vm9 = vcmp.gt.f32.partialorder %v6383_v25, 0.0  ;;  %v3679_v57 = vadd.f32 %v3613_v6, %v14367_v17 }
 0x508   :  { %v6150_v12 = vpop.f32.mrb[100].mxu0  ;;  %v5227_v1 = vadd.f32 %v14369_v30, %v3678_v3  ;;  %v3677_v34 = vadd.f32 %v3605_v16, %v14370_v8 }
 0x509   :  { %vm6448_vm10 = vcmp.gt.f32.partialorder %v6384_v4, 0.0  ;;  %v6512_v50 = vmul.f32 0.01, %v6384_v4  ;;  %v6243_v7 = vadd.f32 %v6150_v12, %v13178_v41  ;;  %v6152_v48 = vpop.f32.mrb[101].mxu0  ;;  %v5228_v32 = vadd.f32 %v14372_v43, %v3679_v57 }
 0x50a   :  { %v6153_v37 = vpop.f32.mrb[102].mxu0  ;;  %v13217_v51 = vadd.f32 %v14371_v5, %v5227_v1  ;;  %v6575_v62 = vsel %vm6447_vm9, %v6383_v25, %v6511_v52 }
 0x50b   :  { %v6576_v11 = vsel %vm6448_vm10, %v6384_v4, %v6512_v50  ;;  %v6314_v40 = vmul.f32 %v13095_v29, %v6243_v7  ;;  %v6244_v10 = vadd.f32 %v6153_v37, %v5732_v33  ;;  %v6155_v28 = vpop.f32.mrb[103].mxu0  ;;  %v13222_v31 = vadd.f32 %v14373_v58, %v5228_v32 }
 0x50c   :  { %v7744_v22 = vpack.c.bf16 %v6576_v11, %v6575_v62 }
 0x50d   :  { %v6385_v41 = vadd.f32 %v13103_v2, %v6314_v40  ;;  %v6315_v36 = vmul.f32 %v13095_v29, %v6244_v10 }
 0x50e   :  { %7796 = vst [vmem:[#allocation2 + $0xd0] sm:$0xff] %v7744_v22  }
 0x50f   :  { %v6513_v61 = vmul.f32 0.01, %v6385_v41  ;;  %v6386_v0 = vadd.f32 %v13103_v2, %v6315_v36  ;;  %vm6449_vm11 = vcmp.gt.f32.partialorder %v6385_v41, 0.0 }
 0x510   :  { %v6158_v46 = vpop.f32.mrb[224].mxu0 }
 0x511   :  { %vm6450_vm12 = vcmp.gt.f32.partialorder %v6386_v0, 0.0  ;;  %v6514_v19 = vmul.f32 0.01, %v6386_v0  ;;  %v8140_v47 = vadd.f32 %v6158_v46, %v3672_v9  ;;  %v6160_v21 = vpop.f32.mrb[225].mxu0  ;;  %v6577_v39 = vsel %vm6449_vm11, %v6385_v41, %v6513_v61 }
 0x512   :  { %v6161_v33 = vpop.f32.mrb[226].mxu0 }
 0x513   :  { %v6578_v60 = vsel %vm6450_vm12, %v6386_v0, %v6514_v19  ;;  %v6316_v42 = vmul.f32 %v13095_v29, %v8140_v47  ;;  %v8141_v44 = vadd.f32 %v6161_v33, %v3673_v45  ;;  %v6163_v54 = vpop.f32.mrb[227].mxu0 }
 0x514   :  { %v7749_v38 = vpack.c.bf16 %v6578_v60, %v6577_v39 }
 0x515   :  { %v6387_v63 = vadd.f32 %v13103_v2, %v6316_v42  ;;  %v6317_v27 = vmul.f32 %v13095_v29, %v8141_v44 }
 0x516   :  { %7797 = vst [vmem:[#allocation2 + $0xd8] sm:$0xff] %v7749_v38  }
 0x517   :  { %v6515_v14 = vmul.f32 0.01, %v6387_v63  ;;  %v6388_v26 = vadd.f32 %v13103_v2, %v6317_v27  ;;  %vm6451_vm13 = vcmp.gt.f32.partialorder %v6387_v63, 0.0 }
 0x518   :  { %v6166_v24 = vpop.f32.mrb[104].mxu0 }
 0x519   :  { %vm6452_vm14 = vcmp.gt.f32.partialorder %v6388_v26, 0.0  ;;  %v6516_v9 = vmul.f32 0.01, %v6388_v26  ;;  %v6247_v56 = vadd.f32 %v6166_v24, %v13196_v53  ;;  %v6168_v23 = vpop.f32.mrb[105].mxu0  ;;  %v6579_v20 = vsel %vm6451_vm13, %v6387_v63, %v6515_v14 }
 0x51a   :  { %v6169_v25 = vpop.f32.mrb[106].mxu0 }
 0x51b   :  { %v6580_v45 = vsel %vm6452_vm14, %v6388_v26, %v6516_v9  ;;  %v6318_v15 = vmul.f32 %v13095_v29, %v6247_v56  ;;  %v6248_v49 = vadd.f32 %v6169_v25, %v13202_v18  ;;  %v6171_v59 = vpop.f32.mrb[107].mxu0 }
 0x51c   :  { %v7754_v3 = vpack.c.bf16 %v6580_v45, %v6579_v20 }
 0x51d   :  { %v6389_v6 = vadd.f32 %v13103_v2, %v6318_v15  ;;  %v6319_v13 = vmul.f32 %v13095_v29, %v6248_v49 }
 0x51e   :  { %7798 = vst [vmem:[#allocation2 + $0xe0] sm:$0xff] %v7754_v3  }
 0x51f   :  { %v6517_v52 = vmul.f32 0.01, %v6389_v6  ;;  %v6390_v4 = vadd.f32 %v13103_v2, %v6319_v13  ;;  %vm6453_vm15 = vcmp.gt.f32.partialorder %v6389_v6, 0.0 }
 0x520   :  { %v6174_v53 = vpop.f32.mrb[232].mxu0 }
 0x521   :  { %vm6454_vm0 = vcmp.gt.f32.partialorder %v6390_v4, 0.0  ;;  %v6518_v16 = vmul.f32 0.01, %v6390_v4  ;;  %v8142_v17 = vadd.f32 %v6174_v53, %v3676_v35  ;;  %v6176_v57 = vpop.f32.mrb[233].mxu0  ;;  %v6581_v55 = vsel %vm6453_vm15, %v6389_v6, %v6517_v52 }
 0x522   :  { %v6177_v12 = vpop.f32.mrb[234].mxu0 }
 0x523   :  { %v6582_v30 = vsel %vm6454_vm0, %v6390_v4, %v6518_v16  ;;  %v6320_v18 = vmul.f32 %v13095_v29, %v8142_v17  ;;  %v8143_v1 = vadd.f32 %v6177_v12, %v3677_v34  ;;  %v6179_v50 = vpop.f32.mrb[235].mxu0 }
 0x524   :  { %v7759_v7 = vpack.c.bf16 %v6582_v30, %v6581_v55 }
 0x525   :  { %v6391_v48 = vadd.f32 %v13103_v2, %v6320_v18  ;;  %v6321_v37 = vmul.f32 %v13095_v29, %v8143_v1 }
 0x526   :  { %7799 = vst [vmem:[#allocation2 + $0xe8] sm:$0xff] %v7759_v7  }
 0x527   :  { %v6519_v8 = vmul.f32 0.01, %v6391_v48  ;;  %v6392_v5 = vadd.f32 %v13103_v2, %v6321_v37  ;;  %vm6455_vm1 = vcmp.gt.f32.partialorder %v6391_v48, 0.0 }
 0x528   :  { %v6182_v43 = vpop.f32.mrb[108].mxu0 }
 0x529   :  { %vm6456_vm2 = vcmp.gt.f32.partialorder %v6392_v5, 0.0  ;;  %v6520_v35 = vmul.f32 0.01, %v6392_v5  ;;  %v6251_v32 = vadd.f32 %v6182_v43, %v13217_v51  ;;  %v6184_v62 = vpop.f32.mrb[109].mxu0  ;;  %v6583_v40 = vsel %vm6455_vm1, %v6391_v48, %v6519_v8 }
 0x52a   :  { %v6185_v11 = vpop.f32.mrb[110].mxu0 }
 0x52b   :  { %v6584_v34 = vsel %vm6456_vm2, %v6392_v5, %v6520_v35  ;;  %v6322_v10 = vmul.f32 %v13095_v29, %v6251_v32  ;;  %v6252_v28 = vadd.f32 %v6185_v11, %v13222_v31  ;;  %v6187_v22 = vpop.f32.mrb[111].mxu0 }
 0x52c   :  { %v7764_v58 = vpack.c.bf16 %v6584_v34, %v6583_v40 }
 0x52d   :  { %v6393_v41 = vadd.f32 %v13103_v2, %v6322_v10  ;;  %v6323_v36 = vmul.f32 %v13095_v29, %v6252_v28 }
 0x52e   :  { %7800 = vst [vmem:[#allocation2 + $0xf0] sm:$0xff] %v7764_v58  }
 0x52f   :  { %v6521_v61 = vmul.f32 0.01, %v6393_v41  ;;  %v6394_v0 = vadd.f32 %v13103_v2, %v6323_v36  ;;  %vm6457_vm3 = vcmp.gt.f32.partialorder %v6393_v41, 0.0 }
 0x531   :  { %vm6458_vm4 = vcmp.gt.f32.partialorder %v6394_v0, 0.0  ;;  %v6522_v51 = vmul.f32 0.01, %v6394_v0  ;;  %v6585_v46 = vsel %vm6457_vm3, %v6393_v41, %v6521_v61 }
 0x533   :  { %v6586_v19 = vsel %vm6458_vm4, %v6394_v0, %v6522_v51 }
 0x534   :  { %v7769_v47 = vpack.c.bf16 %v6586_v19, %v6585_v46 }
 0x536   :  { %7801 = vst [vmem:[#allocation2 + $0xf8] sm:$0xff] %v7769_v47  }
 0x537   :  { %8635 = shalt.err (!%p8632_p4)
}
 0x538   :  { %s8636_s8 = scalar_lea.hbm %s13267_s6, 4096 }
 0x539   :  { %p8637_p5 = scmp.ne.s32.totalorder %s13267_s6, %s8636_s8  ;;  %p8640_p6 = scmp.lt.u32.totalorder %s8636_s8, %s13267_s6 }
 0x53b   :  { %p8642_p7 = pnand %p8640_p6, %p8637_p5 }
 0x53d   :  { %8645 = shalt.err (!%p8642_p7)
}
 0x53e   :  { %s8652_s14 = smov 4  }
 0x53f   :  { %6918 = dma.vmem_to_hbm [thread:$0]  %s6913_s5, 4096, %s13267_s6, [#allocation3], %s8648_s9, %s8648_s9, %s8652_s14  }
 0x540   :  { %8646 = dma.done.wait [#allocation3], 4096  }
 0x541   :  { %8647 = vsyncadd [#allocation3], 4294963200 }
 0x542   :  { %6922 = vsyncpa [#allocation3], 1 }

</bundles_post_ra>
